<compile_context>
chip_gen: v5e
topology: v5e:2x2
jax: 0.10.0
libtpu: 0.0.40
codegen_flags: <defaults>
</compile_context>

<pallas_src>
import jax
import jax.numpy as jnp
from jax.experimental import pallas as pl
from jax.experimental.pallas import tpu as pltpu

_VMEM_LIMIT = 32 * 1024 * 1024  # explicit scoped-VMEM cap, safe on v5e/v6e/v7x


def _round_up(x, m):
    return (x + m - 1) // m * m


# ----------------- fused (BN+ReLU) matmul Pallas kernels -----------------

def _mm_plain_kernel(x_ref, w_ref, o_ref):
    o_ref[...] = jnp.dot(x_ref[...].astype(jnp.bfloat16), w_ref[...],
                         preferred_element_type=jnp.float32)


def _mm_bn_relu_kernel(x_ref, scale_ref, shift_ref, w_ref, o_ref):
    a = jnp.maximum(x_ref[...] * scale_ref[...] + shift_ref[...], 0.0)
    o_ref[...] = jnp.dot(a.astype(jnp.bfloat16), w_ref[...],
                         preferred_element_type=jnp.float32)


def fused_bn_relu_matmul(a, scale, shift, w_packed, n_valid):
    """out = relu(a*scale+shift) @ w_packed (bf16 MXU, f32 accumulation).

    scale/shift may be None (no input BN/ReLU: the z layer).  w_packed is the
    pre-padded, pre-cast bf16 (Kp, Np) weight.  Returns out[:M, :n_valid].
    """
    M, K = a.shape
    Kp, Np = w_packed.shape
    tm = min(_round_up(M, 8), 512)
    Mp = _round_up(M, tm)
    tn = next(t for t in (512, 256, 128) if Np % t == 0)

    a_p = a
    if (Mp, Kp) != (M, K):  # only the z layer (K=100) and the last (K=64)
        a_p = jnp.pad(a, ((0, Mp - M), (0, Kp - K)))

    if scale is None:
        kernel = _mm_plain_kernel
        operands = (a_p, w_packed)
        in_specs = [pl.BlockSpec((tm, Kp), lambda i, j: (i, 0)),
                    pl.BlockSpec((Kp, tn), lambda i, j: (0, j))]
    else:
        sc = scale.reshape(1, K)
        sh = shift.reshape(1, K)
        if Kp != K:
            sc = jnp.pad(sc, ((0, 0), (0, Kp - K)))
            sh = jnp.pad(sh, ((0, 0), (0, Kp - K)))
        kernel = _mm_bn_relu_kernel
        operands = (a_p, sc, sh, w_packed)
        in_specs = [pl.BlockSpec((tm, Kp), lambda i, j: (i, 0)),
                    pl.BlockSpec((1, Kp), lambda i, j: (0, 0)),
                    pl.BlockSpec((1, Kp), lambda i, j: (0, 0)),
                    pl.BlockSpec((Kp, tn), lambda i, j: (0, j))]

    out = pl.pallas_call(
        kernel,
        out_shape=jax.ShapeDtypeStruct((Mp, Np), jnp.float32),
        grid_spec=pltpu.PrefetchScalarGridSpec(
            num_scalar_prefetch=0,
            grid=(Mp // tm, Np // tn),
            in_specs=in_specs,
            out_specs=pl.BlockSpec((tm, tn), lambda i, j: (i, j)),
        ),
        compiler_params=pltpu.CompilerParams(
            dimension_semantics=("parallel", "parallel"),
            vmem_limit_bytes=_VMEM_LIMIT),
    )(*operands)
    return out[:M, :n_valid]


# ------------- BatchNorm batch statistics (parallel partial sums) -------------

def _bn_stats_kernel(x_ref, sum_ref, sq_ref):
    x = x_ref[...]
    xg = x.reshape(-1, 8, x.shape[-1])          # keep 8 sublane rows of partials
    sum_ref[...] = jnp.sum(xg, axis=0)
    sq_ref[...] = jnp.sum(xg * xg, axis=0)


def bn_scale_shift(x2, gamma, beta, eps=1e-5):
    """PyTorch BatchNorm2d training-mode (biased var) scale/shift from batch stats."""
    M, C = x2.shape
    pack = 1
    if C < 128 and 128 % C == 0 and M % (128 // C) == 0:
        pack = 128 // C                          # lane-pack the C=64 layer
    Cp = C * pack
    Mg = M // pack
    xs = x2.reshape(Mg, Cp)
    bm = min(512, _round_up(max(Mg // 2, 1), 8))  # >=2 parallel blocks
    Mp = _round_up(Mg, bm)
    if Mp != Mg:
        xs = jnp.pad(xs, ((0, Mp - Mg), (0, 0)))  # zero rows: no effect on sums
    nblk = Mp // bm

    psum, psq = pl.pallas_call(
        _bn_stats_kernel,
        out_shape=(jax.ShapeDtypeStruct((nblk * 8, Cp), jnp.float32),
                   jax.ShapeDtypeStruct((nblk * 8, Cp), jnp.float32)),
        grid_spec=pltpu.PrefetchScalarGridSpec(
            num_scalar_prefetch=0,
            grid=(nblk,),
            in_specs=[pl.BlockSpec((bm, Cp), lambda i: (i, 0))],
            out_specs=(pl.BlockSpec((8, Cp), lambda i: (i, 0)),
                       pl.BlockSpec((8, Cp), lambda i: (i, 0))),
        ),
        compiler_params=pltpu.CompilerParams(
            dimension_semantics=("parallel",),
            vmem_limit_bytes=_VMEM_LIMIT),
    )(xs)

    s = jnp.sum(psum, axis=0)
    sq = jnp.sum(psq, axis=0)
    if pack > 1:
        s = s.reshape(pack, C).sum(axis=0)
        sq = sq.reshape(pack, C).sum(axis=0)
    mean = s / M
    var = jnp.maximum(sq / M - mean * mean, 0.0)   # biased variance, clamped
    scale = gamma * jax.lax.rsqrt(var + eps)
    shift = beta - mean * scale
    return scale, shift


# ------------- col2im: depth-to-space phase decomposition (XLA glue) -------------

def _shifted(t, dy, dx):
    """s[b, m, n, c] = t[b, m+dy, n+dx, c], zero-filled outside the range."""
    _, h, w, _ = t.shape
    if dy == -1:
        t = jnp.pad(t, ((0, 0), (1, 0), (0, 0), (0, 0)))[:, :h]
    elif dy == 1:
        t = jnp.pad(t, ((0, 0), (0, 1), (0, 0), (0, 0)))[:, 1:]
    if dx == -1:
        t = jnp.pad(t, ((0, 0), (0, 0), (1, 0), (0, 0)))[:, :, :w]
    elif dx == 1:
        t = jnp.pad(t, ((0, 0), (0, 0), (0, 1), (0, 0)))[:, :, 1:]
    return t


# stride=2, k=4, pad=1: output row 2m+py receives taps ky=1 (from input m) and
# ky=3 (from m-1) for py=0; ky=2 (from m) and ky=0 (from m+1) for py=1.
_PHASE_TAPS = (((1, 0), (3, -1)), ((2, 0), (0, 1)))


def _col2im(y6, stride, padding):
    """Overlap-add of per-pixel k x k patches (ConvTranspose2d col2im).

    y6: (N, H, W, k, k, Co).
    TODO(synk): left in XLA as a depth-to-space phase decomposition (pads,
    adds, one pixel-shuffle transpose that XLA fuses); an in-kernel Pallas
    version would need risky VMEM relayouts for these tiny tensors.
    """
    nb, h, w, k, _, co = y6.shape
    if stride == 1 and padding == 0 and h == 1 and w == 1:
        return y6[:, 0, 0]                     # output is exactly the k x k patch
    assert stride == 2 and padding == 1 and k == 4
    phases = []
    for py in (0, 1):
        for px in (0, 1):
            acc = None
            for ky, dy in _PHASE_TAPS[py]:
                for kx, dx in _PHASE_TAPS[px]:
                    term = _shifted(y6[:, :, :, ky, kx, :], dy, dx)
                    acc = term if acc is None else acc + term
            phases.append(acc)
    ph = jnp.stack(phases, axis=0).reshape(2, 2, nb, h, w, co)
    return ph.transpose(2, 3, 0, 4, 1, 5).reshape(nb, 2 * h, 2 * w, co)


# ------------------------------ LFWGenerator ------------------------------

_LAYER_CFG = [
    # (Ci, Co, k, stride, padding, has_bn_after)
    (100, 64 * 8, 4, 1, 0, True),
    (64 * 8, 64 * 4, 4, 2, 1, True),
    (64 * 4, 64 * 2, 4, 2, 1, True),
    (64 * 2, 64, 4, 2, 1, True),
    (64, 3, 4, 2, 1, False),
]


def _pack_weight(w):
    """(Ci, Co, k, k) f32 -> tap-major (ky,kx,co) columns, padded, bf16."""
    ci, co, k, _ = w.shape
    b = jnp.transpose(w, (0, 2, 3, 1)).reshape(ci, k * k * co)
    kp = _round_up(ci, 128)
    np_ = _round_up(k * k * co, 128)
    return jnp.pad(b, ((0, kp - ci), (0, np_ - k * k * co))).astype(jnp.bfloat16)


def init_params(key):
    params = []
    for (ci, co, k, _s, _p, has_bn) in _LAYER_CFG:
        key, sub = jax.random.split(key)
        w = 0.02 * jax.random.normal(sub, (ci, co, k, k), jnp.float32)
        layer = {"w_packed": _pack_weight(w)}   # one-time pad + bf16 cast
        if has_bn:
            layer["gamma"] = jnp.ones((co,), jnp.float32)   # BatchNorm2d defaults
            layer["beta"] = jnp.zeros((co,), jnp.float32)
        params.append(layer)
    return params


def lfw_generator(params, z_nchw):
    """(N, 100, 1, 1) -> (N, 3, 64, 64), matching the PyTorch module."""
    nb = z_nchw.shape[0]
    x = z_nchw.reshape(nb, _LAYER_CFG[0][0]).astype(jnp.float32)
    h = w = 1
    scale = shift = None          # no BN/ReLU in front of the first ConvTranspose
    for p, (ci, co, k, stride, pad, has_bn) in zip(params, _LAYER_CFG):
        a = x.reshape(nb * h * w, ci)
        # BN(prev)+ReLU+bf16 cast fused into the matmul A-path.
        y = fused_bn_relu_matmul(a, scale, shift, p["w_packed"], k * k * co)
        y6 = y.reshape(nb, h, w, k, k, co)
        conv = _col2im(y6, stride, pad)          # raw ConvTranspose2d output
        h, w = conv.shape[1], conv.shape[2]
        if has_bn:
            scale, shift = bn_scale_shift(conv.reshape(nb * h * w, co),
                                          p["gamma"], p["beta"])
            x = conv                             # BN+ReLU applied in next matmul
        else:
            # TODO(synk): final tanh (24K elems) left to XLA, fused with the
            # NHWC->NCHW transpose; a standalone pallas_call costs more than it saves.
            x = jnp.tanh(conv)
            scale = shift = None
    return jnp.transpose(x, (0, 3, 1, 2))        # back to NCHW: (N, 3, 64, 64)


if __name__ == "__main__":
    key = jax.random.PRNGKey(0)
    pkey, zkey = jax.random.split(key)
    params = init_params(pkey)
    z = jax.random.normal(zkey, (2, 100, 1, 1), jnp.float32)

    out = jax.jit(lfw_generator)(params, z)
    out = jax.block_until_ready(out)

    assert out.shape == (2, 3, 64, 64), out.shape
    assert out.dtype == jnp.float32
    assert bool(jnp.all(jnp.isfinite(out)))
    assert bool(jnp.all(jnp.abs(out) <= 1.0 + 1e-6))  # tanh output range
    print("KERNEL_OK")
</pallas_src>

<mosaic_0001>
module attributes {stable_mosaic.version = 11 : i64} {
  func.func @_mm_plain_kernel(%arg0: i32, %arg1: i32, %arg2: memref<8x128xf32, #tpu.memory_space<vmem>>, %arg3: memref<128x512xbf16, #tpu.memory_space<vmem>>, %arg4: memref<8x512xf32, #tpu.memory_space<vmem>>) attributes {dimension_semantics = [#tpu.dimension_semantics<parallel>, #tpu.dimension_semantics<parallel>], iteration_bounds = array<i64: 1, 16>, scalar_prefetch = 0 : i64, scratch_operands = 0 : i64, tpu.core_type = #tpu.core_type<tc>, window_params = [{transform_indices = @transform_0, window_bounds = array<i64: 8, 128>}, {transform_indices = @transform_1, window_bounds = array<i64: 128, 512>}, {transform_indices = @transform_2, window_bounds = array<i64: 8, 512>}]} {
    %c0 = arith.constant 0 : index
    %c0_0 = arith.constant 0 : index
    %0 = vector.load %arg2[%c0, %c0_0] : memref<8x128xf32, #tpu.memory_space<vmem>>, vector<8x128xf32>
    %1 = arith.truncf %0 : vector<8x128xf32> to vector<8x128xbf16>
    %c0_1 = arith.constant 0 : index
    %c0_2 = arith.constant 0 : index
    %2 = vector.load %arg3[%c0_1, %c0_2] : memref<128x512xbf16, #tpu.memory_space<vmem>>, vector<128x512xbf16>
    %cst = arith.constant dense<0.000000e+00> : vector<8x512xf32>
    %3 = tpu.matmul %1, %2, %cst {dimension_numbers = #tpu.dot_dimension_numbers<[1], [0], [0], [1], [0, 0, 1, 1], [], []>} : vector<8x128xbf16>, vector<128x512xbf16>, vector<8x512xf32> -> vector<8x512xf32>
    %c0_3 = arith.constant 0 : index
    %c0_4 = arith.constant 0 : index
    %4 = vector.load %arg4[%c0_3, %c0_4] : memref<8x512xf32, #tpu.memory_space<vmem>>, vector<8x512xf32>
    tpu.vector_store %arg4[%c0_3, %c0_4], %3 {strides = array<i32>} : memref<8x512xf32, #tpu.memory_space<vmem>>, vector<8x512xf32>,
    return
  }
  func.func @transform_0(%arg0: i32, %arg1: i32) -> (i32, i32) {
    %c0_i32 = arith.constant 0 : i32
    %c0_i32_0 = arith.constant 0 : i32
    return %arg0, %c0_i32 : i32, i32
  }
  func.func @transform_1(%arg0: i32, %arg1: i32) -> (i32, i32) {
    %c0_i32 = arith.constant 0 : i32
    %c0_i32_0 = arith.constant 0 : i32
    return %c0_i32, %arg1 : i32, i32
  }
  func.func @transform_2(%arg0: i32, %arg1: i32) -> (i32, i32) {
    %c0_i32 = arith.constant 0 : i32
    return %arg0, %arg1 : i32, i32
  }
}

module attributes {stable_mosaic.version = 11 : i64} {
  func.func @_bn_stats_kernel(%arg0: i32, %arg1: memref<16x512xf32, #tpu.memory_space<vmem>>, %arg2: memref<8x512xf32, #tpu.memory_space<vmem>>, %arg3: memref<8x512xf32, #tpu.memory_space<vmem>>) attributes {dimension_semantics = [#tpu.dimension_semantics<parallel>], iteration_bounds = array<i64: 2>, scalar_prefetch = 0 : i64, scratch_operands = 0 : i64, tpu.core_type = #tpu.core_type<tc>, window_params = [{transform_indices = @transform_0, window_bounds = array<i64: 16, 512>}, {transform_indices = @transform_1, window_bounds = array<i64: 8, 512>}, {transform_indices = @transform_2, window_bounds = array<i64: 8, 512>}]} {
    %c0 = arith.constant 0 : index
    %c0_0 = arith.constant 0 : index
    %0 = vector.load %arg1[%c0, %c0_0] : memref<16x512xf32, #tpu.memory_space<vmem>>, vector<16x512xf32>
    %1 = vector.shape_cast %0 : vector<16x512xf32> to vector<2x8x512xf32>
    %cst = arith.constant dense<0.000000e+00> : vector<8x512xf32>
    %2 = vector.multi_reduction <add>, %1, %cst [0] : vector<2x8x512xf32> to vector<8x512xf32>
    %c0_1 = arith.constant 0 : index
    %c0_2 = arith.constant 0 : index
    %3 = vector.load %arg2[%c0_1, %c0_2] : memref<8x512xf32, #tpu.memory_space<vmem>>, vector<8x512xf32>
    tpu.vector_store %arg2[%c0_1, %c0_2], %2 {strides = array<i32>} : memref<8x512xf32, #tpu.memory_space<vmem>>, vector<8x512xf32>,
    %4 = arith.mulf %1, %1 : vector<2x8x512xf32>
    %cst_3 = arith.constant dense<0.000000e+00> : vector<8x512xf32>
    %5 = vector.multi_reduction <add>, %4, %cst_3 [0] : vector<2x8x512xf32> to vector<8x512xf32>
    %c0_4 = arith.constant 0 : index
    %c0_5 = arith.constant 0 : index
    %6 = vector.load %arg3[%c0_4, %c0_5] : memref<8x512xf32, #tpu.memory_space<vmem>>, vector<8x512xf32>
    tpu.vector_store %arg3[%c0_4, %c0_5], %5 {strides = array<i32>} : memref<8x512xf32, #tpu.memory_space<vmem>>, vector<8x512xf32>,
    return
  }
  func.func @transform_0(%arg0: i32) -> (i32, i32) {
    %c0_i32 = arith.constant 0 : i32
    %c0_i32_0 = arith.constant 0 : i32
    return %arg0, %c0_i32 : i32, i32
  }
  func.func @transform_1(%arg0: i32) -> (i32, i32) {
    %c0_i32 = arith.constant 0 : i32
    %c0_i32_0 = arith.constant 0 : i32
    return %arg0, %c0_i32 : i32, i32
  }
  func.func @transform_2(%arg0: i32) -> (i32, i32) {
    %c0_i32 = arith.constant 0 : i32
    %c0_i32_0 = arith.constant 0 : i32
    return %arg0, %c0_i32 : i32, i32
  }
}

module attributes {stable_mosaic.version = 11 : i64} {
  func.func @_mm_bn_relu_kernel(%arg0: i32, %arg1: i32, %arg2: memref<32x512xf32, #tpu.memory_space<vmem>>, %arg3: memref<1x512xf32, #tpu.memory_space<vmem>>, %arg4: memref<1x512xf32, #tpu.memory_space<vmem>>, %arg5: memref<512x512xbf16, #tpu.memory_space<vmem>>, %arg6: memref<32x512xf32, #tpu.memory_space<vmem>>) attributes {dimension_semantics = [#tpu.dimension_semantics<parallel>, #tpu.dimension_semantics<parallel>], iteration_bounds = array<i64: 1, 8>, scalar_prefetch = 0 : i64, scratch_operands = 0 : i64, tpu.core_type = #tpu.core_type<tc>, window_params = [{transform_indices = @transform_0, window_bounds = array<i64: 32, 512>}, {pipeline_mode = #tpu.pipeline_mode<synchronous>, transform_indices = @transform_1, window_bounds = array<i64: 1, 512>}, {pipeline_mode = #tpu.pipeline_mode<synchronous>, transform_indices = @transform_2, window_bounds = array<i64: 1, 512>}, {transform_indices = @transform_3, window_bounds = array<i64: 512, 512>}, {transform_indices = @transform_4, window_bounds = array<i64: 32, 512>}]} {
    %c0 = arith.constant 0 : index
    %c0_0 = arith.constant 0 : index
    %0 = vector.load %arg2[%c0, %c0_0] : memref<32x512xf32, #tpu.memory_space<vmem>>, vector<32x512xf32>
    %c0_1 = arith.constant 0 : index
    %c0_2 = arith.constant 0 : index
    %1 = vector.load %arg3[%c0_1, %c0_2] : memref<1x512xf32, #tpu.memory_space<vmem>>, vector<1x512xf32>
    %2 = vector.broadcast %1 : vector<1x512xf32> to vector<32x512xf32>
    %3 = arith.mulf %0, %2 : vector<32x512xf32>
    %c0_3 = arith.constant 0 : index
    %c0_4 = arith.constant 0 : index
    %4 = vector.load %arg4[%c0_3, %c0_4] : memref<1x512xf32, #tpu.memory_space<vmem>>, vector<1x512xf32>
    %5 = vector.broadcast %4 : vector<1x512xf32> to vector<32x512xf32>
    %6 = arith.addf %3, %5 : vector<32x512xf32>
    %cst = arith.constant 0.000000e+00 : f32
    %7 = vector.broadcast %cst : f32 to vector<32x512xf32>
    %8 = arith.maximumf %6, %7 : vector<32x512xf32>
    %9 = arith.truncf %8 : vector<32x512xf32> to vector<32x512xbf16>
    %c0_5 = arith.constant 0 : index
    %c0_6 = arith.constant 0 : index
    %10 = vector.load %arg5[%c0_5, %c0_6] : memref<512x512xbf16, #tpu.memory_space<vmem>>, vector<512x512xbf16>
    %cst_7 = arith.constant dense<0.000000e+00> : vector<32x512xf32>
    %11 = tpu.matmul %9, %10, %cst_7 {dimension_numbers = #tpu.dot_dimension_numbers<[1], [0], [0], [1], [0, 0, 1, 1], [], []>} : vector<32x512xbf16>, vector<512x512xbf16>, vector<32x512xf32> -> vector<32x512xf32>
    %c0_8 = arith.constant 0 : index
    %c0_9 = arith.constant 0 : index
    %12 = vector.load %arg6[%c0_8, %c0_9] : memref<32x512xf32, #tpu.memory_space<vmem>>, vector<32x512xf32>
    tpu.vector_store %arg6[%c0_8, %c0_9], %11 {strides = array<i32>} : memref<32x512xf32, #tpu.memory_space<vmem>>, vector<32x512xf32>,
    return
  }
  func.func @transform_0(%arg0: i32, %arg1: i32) -> (i32, i32) {
    %c0_i32 = arith.constant 0 : i32
    %c0_i32_0 = arith.constant 0 : i32
    return %arg0, %c0_i32 : i32, i32
  }
  func.func @transform_1(%arg0: i32, %arg1: i32) -> (i32, i32) {
    %c0_i32 = arith.constant 0 : i32
    %c0_i32_0 = arith.constant 0 : i32
    %c0_i32_1 = arith.constant 0 : i32
    return %c0_i32, %c0_i32_0 : i32, i32
  }
  func.func @transform_2(%arg0: i32, %arg1: i32) -> (i32, i32) {
    %c0_i32 = arith.constant 0 : i32
    %c0_i32_0 = arith.constant 0 : i32
    %c0_i32_1 = arith.constant 0 : i32
    return %c0_i32, %c0_i32_0 : i32, i32
  }
  func.func @transform_3(%arg0: i32, %arg1: i32) -> (i32, i32) {
    %c0_i32 = arith.constant 0 : i32
    %c0_i32_0 = arith.constant 0 : i32
    return %c0_i32, %arg1 : i32, i32
  }
  func.func @transform_4(%arg0: i32, %arg1: i32) -> (i32, i32) {
    %c0_i32 = arith.constant 0 : i32
    return %arg0, %arg1 : i32, i32
  }
}

module attributes {stable_mosaic.version = 11 : i64} {
  func.func @_bn_stats_kernel(%arg0: i32, %arg1: memref<64x256xf32, #tpu.memory_space<vmem>>, %arg2: memref<8x256xf32, #tpu.memory_space<vmem>>, %arg3: memref<8x256xf32, #tpu.memory_space<vmem>>) attributes {dimension_semantics = [#tpu.dimension_semantics<parallel>], iteration_bounds = array<i64: 2>, scalar_prefetch = 0 : i64, scratch_operands = 0 : i64, tpu.core_type = #tpu.core_type<tc>, window_params = [{transform_indices = @transform_0, window_bounds = array<i64: 64, 256>}, {transform_indices = @transform_1, window_bounds = array<i64: 8, 256>}, {transform_indices = @transform_2, window_bounds = array<i64: 8, 256>}]} {
    %c0 = arith.constant 0 : index
    %c0_0 = arith.constant 0 : index
    %0 = vector.load %arg1[%c0, %c0_0] : memref<64x256xf32, #tpu.memory_space<vmem>>, vector<64x256xf32>
    %1 = vector.shape_cast %0 : vector<64x256xf32> to vector<8x8x256xf32>
    %cst = arith.constant dense<0.000000e+00> : vector<8x256xf32>
    %2 = vector.multi_reduction <add>, %1, %cst [0] : vector<8x8x256xf32> to vector<8x256xf32>
    %c0_1 = arith.constant 0 : index
    %c0_2 = arith.constant 0 : index
    %3 = vector.load %arg2[%c0_1, %c0_2] : memref<8x256xf32, #tpu.memory_space<vmem>>, vector<8x256xf32>
    tpu.vector_store %arg2[%c0_1, %c0_2], %2 {strides = array<i32>} : memref<8x256xf32, #tpu.memory_space<vmem>>, vector<8x256xf32>,
    %4 = arith.mulf %1, %1 : vector<8x8x256xf32>
    %cst_3 = arith.constant dense<0.000000e+00> : vector<8x256xf32>
    %5 = vector.multi_reduction <add>, %4, %cst_3 [0] : vector<8x8x256xf32> to vector<8x256xf32>
    %c0_4 = arith.constant 0 : index
    %c0_5 = arith.constant 0 : index
    %6 = vector.load %arg3[%c0_4, %c0_5] : memref<8x256xf32, #tpu.memory_space<vmem>>, vector<8x256xf32>
    tpu.vector_store %arg3[%c0_4, %c0_5], %5 {strides = array<i32>} : memref<8x256xf32, #tpu.memory_space<vmem>>, vector<8x256xf32>,
    return
  }
  func.func @transform_0(%arg0: i32) -> (i32, i32) {
    %c0_i32 = arith.constant 0 : i32
    %c0_i32_0 = arith.constant 0 : i32
    return %arg0, %c0_i32 : i32, i32
  }
  func.func @transform_1(%arg0: i32) -> (i32, i32) {
    %c0_i32 = arith.constant 0 : i32
    %c0_i32_0 = arith.constant 0 : i32
    return %arg0, %c0_i32 : i32, i32
  }
  func.func @transform_2(%arg0: i32) -> (i32, i32) {
    %c0_i32 = arith.constant 0 : i32
    %c0_i32_0 = arith.constant 0 : i32
    return %arg0, %c0_i32 : i32, i32
  }
}

module attributes {stable_mosaic.version = 11 : i64} {
  func.func @_mm_bn_relu_kernel(%arg0: i32, %arg1: i32, %arg2: memref<128x256xf32, #tpu.memory_space<vmem>>, %arg3: memref<1x256xf32, #tpu.memory_space<vmem>>, %arg4: memref<1x256xf32, #tpu.memory_space<vmem>>, %arg5: memref<256x512xbf16, #tpu.memory_space<vmem>>, %arg6: memref<128x512xf32, #tpu.memory_space<vmem>>) attributes {dimension_semantics = [#tpu.dimension_semantics<parallel>, #tpu.dimension_semantics<parallel>], iteration_bounds = array<i64: 1, 4>, scalar_prefetch = 0 : i64, scratch_operands = 0 : i64, tpu.core_type = #tpu.core_type<tc>, window_params = [{transform_indices = @transform_0, window_bounds = array<i64: 128, 256>}, {pipeline_mode = #tpu.pipeline_mode<synchronous>, transform_indices = @transform_1, window_bounds = array<i64: 1, 256>}, {pipeline_mode = #tpu.pipeline_mode<synchronous>, transform_indices = @transform_2, window_bounds = array<i64: 1, 256>}, {transform_indices = @transform_3, window_bounds = array<i64: 256, 512>}, {transform_indices = @transform_4, window_bounds = array<i64: 128, 512>}]} {
    %c0 = arith.constant 0 : index
    %c0_0 = arith.constant 0 : index
    %0 = vector.load %arg2[%c0, %c0_0] : memref<128x256xf32, #tpu.memory_space<vmem>>, vector<128x256xf32>
    %c0_1 = arith.constant 0 : index
    %c0_2 = arith.constant 0 : index
    %1 = vector.load %arg3[%c0_1, %c0_2] : memref<1x256xf32, #tpu.memory_space<vmem>>, vector<1x256xf32>
    %2 = vector.broadcast %1 : vector<1x256xf32> to vector<128x256xf32>
    %3 = arith.mulf %0, %2 : vector<128x256xf32>
    %c0_3 = arith.constant 0 : index
    %c0_4 = arith.constant 0 : index
    %4 = vector.load %arg4[%c0_3, %c0_4] : memref<1x256xf32, #tpu.memory_space<vmem>>, vector<1x256xf32>
    %5 = vector.broadcast %4 : vector<1x256xf32> to vector<128x256xf32>
    %6 = arith.addf %3, %5 : vector<128x256xf32>
    %cst = arith.constant 0.000000e+00 : f32
    %7 = vector.broadcast %cst : f32 to vector<128x256xf32>
    %8 = arith.maximumf %6, %7 : vector<128x256xf32>
    %9 = arith.truncf %8 : vector<128x256xf32> to vector<128x256xbf16>
    %c0_5 = arith.constant 0 : index
    %c0_6 = arith.constant 0 : index
    %10 = vector.load %arg5[%c0_5, %c0_6] : memref<256x512xbf16, #tpu.memory_space<vmem>>, vector<256x512xbf16>
    %cst_7 = arith.constant dense<0.000000e+00> : vector<128x512xf32>
    %11 = tpu.matmul %9, %10, %cst_7 {dimension_numbers = #tpu.dot_dimension_numbers<[1], [0], [0], [1], [0, 0, 1, 1], [], []>} : vector<128x256xbf16>, vector<256x512xbf16>, vector<128x512xf32> -> vector<128x512xf32>
    %c0_8 = arith.constant 0 : index
    %c0_9 = arith.constant 0 : index
    %12 = vector.load %arg6[%c0_8, %c0_9] : memref<128x512xf32, #tpu.memory_space<vmem>>, vector<128x512xf32>
    tpu.vector_store %arg6[%c0_8, %c0_9], %11 {strides = array<i32>} : memref<128x512xf32, #tpu.memory_space<vmem>>, vector<128x512xf32>,
    return
  }
  func.func @transform_0(%arg0: i32, %arg1: i32) -> (i32, i32) {
    %c0_i32 = arith.constant 0 : i32
    %c0_i32_0 = arith.constant 0 : i32
    return %arg0, %c0_i32 : i32, i32
  }
  func.func @transform_1(%arg0: i32, %arg1: i32) -> (i32, i32) {
    %c0_i32 = arith.constant 0 : i32
    %c0_i32_0 = arith.constant 0 : i32
    %c0_i32_1 = arith.constant 0 : i32
    return %c0_i32, %c0_i32_0 : i32, i32
  }
  func.func @transform_2(%arg0: i32, %arg1: i32) -> (i32, i32) {
    %c0_i32 = arith.constant 0 : i32
    %c0_i32_0 = arith.constant 0 : i32
    %c0_i32_1 = arith.constant 0 : i32
    return %c0_i32, %c0_i32_0 : i32, i32
  }
  func.func @transform_3(%arg0: i32, %arg1: i32) -> (i32, i32) {
    %c0_i32 = arith.constant 0 : i32
    %c0_i32_0 = arith.constant 0 : i32
    return %c0_i32, %arg1 : i32, i32
  }
  func.func @transform_4(%arg0: i32, %arg1: i32) -> (i32, i32) {
    %c0_i32 = arith.constant 0 : i32
    return %arg0, %arg1 : i32, i32
  }
}

module attributes {stable_mosaic.version = 11 : i64} {
  func.func @_bn_stats_kernel(%arg0: i32, %arg1: memref<256x128xf32, #tpu.memory_space<vmem>>, %arg2: memref<8x128xf32, #tpu.memory_space<vmem>>, %arg3: memref<8x128xf32, #tpu.memory_space<vmem>>) attributes {dimension_semantics = [#tpu.dimension_semantics<parallel>], iteration_bounds = array<i64: 2>, scalar_prefetch = 0 : i64, scratch_operands = 0 : i64, tpu.core_type = #tpu.core_type<tc>, window_params = [{transform_indices = @transform_0, window_bounds = array<i64: 256, 128>}, {transform_indices = @transform_1, window_bounds = array<i64: 8, 128>}, {transform_indices = @transform_2, window_bounds = array<i64: 8, 128>}]} {
    %c0 = arith.constant 0 : index
    %c0_0 = arith.constant 0 : index
    %0 = vector.load %arg1[%c0, %c0_0] : memref<256x128xf32, #tpu.memory_space<vmem>>, vector<256x128xf32>
    %1 = vector.shape_cast %0 : vector<256x128xf32> to vector<32x8x128xf32>
    %cst = arith.constant dense<0.000000e+00> : vector<8x128xf32>
    %2 = vector.multi_reduction <add>, %1, %cst [0] : vector<32x8x128xf32> to vector<8x128xf32>
    %c0_1 = arith.constant 0 : index
    %c0_2 = arith.constant 0 : index
    %3 = vector.load %arg2[%c0_1, %c0_2] : memref<8x128xf32, #tpu.memory_space<vmem>>, vector<8x128xf32>
    tpu.vector_store %arg2[%c0_1, %c0_2], %2 {strides = array<i32>} : memref<8x128xf32, #tpu.memory_space<vmem>>, vector<8x128xf32>,
    %4 = arith.mulf %1, %1 : vector<32x8x128xf32>
    %cst_3 = arith.constant dense<0.000000e+00> : vector<8x128xf32>
    %5 = vector.multi_reduction <add>, %4, %cst_3 [0] : vector<32x8x128xf32> to vector<8x128xf32>
    %c0_4 = arith.constant 0 : index
    %c0_5 = arith.constant 0 : index
    %6 = vector.load %arg3[%c0_4, %c0_5] : memref<8x128xf32, #tpu.memory_space<vmem>>, vector<8x128xf32>
    tpu.vector_store %arg3[%c0_4, %c0_5], %5 {strides = array<i32>} : memref<8x128xf32, #tpu.memory_space<vmem>>, vector<8x128xf32>,
    return
  }
  func.func @transform_0(%arg0: i32) -> (i32, i32) {
    %c0_i32 = arith.constant 0 : i32
    %c0_i32_0 = arith.constant 0 : i32
    return %arg0, %c0_i32 : i32, i32
  }
  func.func @transform_1(%arg0: i32) -> (i32, i32) {
    %c0_i32 = arith.constant 0 : i32
    %c0_i32_0 = arith.constant 0 : i32
    return %arg0, %c0_i32 : i32, i32
  }
  func.func @transform_2(%arg0: i32) -> (i32, i32) {
    %c0_i32 = arith.constant 0 : i32
    %c0_i32_0 = arith.constant 0 : i32
    return %arg0, %c0_i32 : i32, i32
  }
}

module attributes {stable_mosaic.version = 11 : i64} {
  func.func @_mm_bn_relu_kernel(%arg0: i32, %arg1: i32, %arg2: memref<512x128xf32, #tpu.memory_space<vmem>>, %arg3: memref<1x128xf32, #tpu.memory_space<vmem>>, %arg4: memref<1x128xf32, #tpu.memory_space<vmem>>, %arg5: memref<128x512xbf16, #tpu.memory_space<vmem>>, %arg6: memref<512x512xf32, #tpu.memory_space<vmem>>) attributes {dimension_semantics = [#tpu.dimension_semantics<parallel>, #tpu.dimension_semantics<parallel>], iteration_bounds = array<i64: 1, 2>, scalar_prefetch = 0 : i64, scratch_operands = 0 : i64, tpu.core_type = #tpu.core_type<tc>, window_params = [{transform_indices = @transform_0, window_bounds = array<i64: 512, 128>}, {pipeline_mode = #tpu.pipeline_mode<synchronous>, transform_indices = @transform_1, window_bounds = array<i64: 1, 128>}, {pipeline_mode = #tpu.pipeline_mode<synchronous>, transform_indices = @transform_2, window_bounds = array<i64: 1, 128>}, {transform_indices = @transform_3, window_bounds = array<i64: 128, 512>}, {transform_indices = @transform_4, window_bounds = array<i64: 512, 512>}]} {
    %c0 = arith.constant 0 : index
    %c0_0 = arith.constant 0 : index
    %0 = vector.load %arg2[%c0, %c0_0] : memref<512x128xf32, #tpu.memory_space<vmem>>, vector<512x128xf32>
    %c0_1 = arith.constant 0 : index
    %c0_2 = arith.constant 0 : index
    %1 = vector.load %arg3[%c0_1, %c0_2] : memref<1x128xf32, #tpu.memory_space<vmem>>, vector<1x128xf32>
    %2 = vector.broadcast %1 : vector<1x128xf32> to vector<512x128xf32>
    %3 = arith.mulf %0, %2 : vector<512x128xf32>
    %c0_3 = arith.constant 0 : index
    %c0_4 = arith.constant 0 : index
    %4 = vector.load %arg4[%c0_3, %c0_4] : memref<1x128xf32, #tpu.memory_space<vmem>>, vector<1x128xf32>
    %5 = vector.broadcast %4 : vector<1x128xf32> to vector<512x128xf32>
    %6 = arith.addf %3, %5 : vector<512x128xf32>
    %cst = arith.constant 0.000000e+00 : f32
    %7 = vector.broadcast %cst : f32 to vector<512x128xf32>
    %8 = arith.maximumf %6, %7 : vector<512x128xf32>
    %9 = arith.truncf %8 : vector<512x128xf32> to vector<512x128xbf16>
    %c0_5 = arith.constant 0 : index
    %c0_6 = arith.constant 0 : index
    %10 = vector.load %arg5[%c0_5, %c0_6] : memref<128x512xbf16, #tpu.memory_space<vmem>>, vector<128x512xbf16>
    %cst_7 = arith.constant dense<0.000000e+00> : vector<512x512xf32>
    %11 = tpu.matmul %9, %10, %cst_7 {dimension_numbers = #tpu.dot_dimension_numbers<[1], [0], [0], [1], [0, 0, 1, 1], [], []>} : vector<512x128xbf16>, vector<128x512xbf16>, vector<512x512xf32> -> vector<512x512xf32>
    %c0_8 = arith.constant 0 : index
    %c0_9 = arith.constant 0 : index
    %12 = vector.load %arg6[%c0_8, %c0_9] : memref<512x512xf32, #tpu.memory_space<vmem>>, vector<512x512xf32>
    tpu.vector_store %arg6[%c0_8, %c0_9], %11 {strides = array<i32>} : memref<512x512xf32, #tpu.memory_space<vmem>>, vector<512x512xf32>,
    return
  }
  func.func @transform_0(%arg0: i32, %arg1: i32) -> (i32, i32) {
    %c0_i32 = arith.constant 0 : i32
    %c0_i32_0 = arith.constant 0 : i32
    return %arg0, %c0_i32 : i32, i32
  }
  func.func @transform_1(%arg0: i32, %arg1: i32) -> (i32, i32) {
    %c0_i32 = arith.constant 0 : i32
    %c0_i32_0 = arith.constant 0 : i32
    %c0_i32_1 = arith.constant 0 : i32
    return %c0_i32, %c0_i32_0 : i32, i32
  }
  func.func @transform_2(%arg0: i32, %arg1: i32) -> (i32, i32) {
    %c0_i32 = arith.constant 0 : i32
    %c0_i32_0 = arith.constant 0 : i32
    %c0_i32_1 = arith.constant 0 : i32
    return %c0_i32, %c0_i32_0 : i32, i32
  }
  func.func @transform_3(%arg0: i32, %arg1: i32) -> (i32, i32) {
    %c0_i32 = arith.constant 0 : i32
    %c0_i32_0 = arith.constant 0 : i32
    return %c0_i32, %arg1 : i32, i32
  }
  func.func @transform_4(%arg0: i32, %arg1: i32) -> (i32, i32) {
    %c0_i32 = arith.constant 0 : i32
    return %arg0, %arg1 : i32, i32
  }
}

module attributes {stable_mosaic.version = 11 : i64} {
  func.func @_bn_stats_kernel(%arg0: i32, %arg1: memref<512x128xf32, #tpu.memory_space<vmem>>, %arg2: memref<8x128xf32, #tpu.memory_space<vmem>>, %arg3: memref<8x128xf32, #tpu.memory_space<vmem>>) attributes {dimension_semantics = [#tpu.dimension_semantics<parallel>], iteration_bounds = array<i64: 2>, scalar_prefetch = 0 : i64, scratch_operands = 0 : i64, tpu.core_type = #tpu.core_type<tc>, window_params = [{transform_indices = @transform_0, window_bounds = array<i64: 512, 128>}, {transform_indices = @transform_1, window_bounds = array<i64: 8, 128>}, {transform_indices = @transform_2, window_bounds = array<i64: 8, 128>}]} {
    %c0 = arith.constant 0 : index
    %c0_0 = arith.constant 0 : index
    %0 = vector.load %arg1[%c0, %c0_0] : memref<512x128xf32, #tpu.memory_space<vmem>>, vector<512x128xf32>
    %1 = vector.shape_cast %0 : vector<512x128xf32> to vector<64x8x128xf32>
    %cst = arith.constant dense<0.000000e+00> : vector<8x128xf32>
    %2 = vector.multi_reduction <add>, %1, %cst [0] : vector<64x8x128xf32> to vector<8x128xf32>
    %c0_1 = arith.constant 0 : index
    %c0_2 = arith.constant 0 : index
    %3 = vector.load %arg2[%c0_1, %c0_2] : memref<8x128xf32, #tpu.memory_space<vmem>>, vector<8x128xf32>
    tpu.vector_store %arg2[%c0_1, %c0_2], %2 {strides = array<i32>} : memref<8x128xf32, #tpu.memory_space<vmem>>, vector<8x128xf32>,
    %4 = arith.mulf %1, %1 : vector<64x8x128xf32>
    %cst_3 = arith.constant dense<0.000000e+00> : vector<8x128xf32>
    %5 = vector.multi_reduction <add>, %4, %cst_3 [0] : vector<64x8x128xf32> to vector<8x128xf32>
    %c0_4 = arith.constant 0 : index
    %c0_5 = arith.constant 0 : index
    %6 = vector.load %arg3[%c0_4, %c0_5] : memref<8x128xf32, #tpu.memory_space<vmem>>, vector<8x128xf32>
    tpu.vector_store %arg3[%c0_4, %c0_5], %5 {strides = array<i32>} : memref<8x128xf32, #tpu.memory_space<vmem>>, vector<8x128xf32>,
    return
  }
  func.func @transform_0(%arg0: i32) -> (i32, i32) {
    %c0_i32 = arith.constant 0 : i32
    %c0_i32_0 = arith.constant 0 : i32
    return %arg0, %c0_i32 : i32, i32
  }
  func.func @transform_1(%arg0: i32) -> (i32, i32) {
    %c0_i32 = arith.constant 0 : i32
    %c0_i32_0 = arith.constant 0 : i32
    return %arg0, %c0_i32 : i32, i32
  }
  func.func @transform_2(%arg0: i32) -> (i32, i32) {
    %c0_i32 = arith.constant 0 : i32
    %c0_i32_0 = arith.constant 0 : i32
    return %arg0, %c0_i32 : i32, i32
  }
}

module attributes {stable_mosaic.version = 11 : i64} {
  func.func @_mm_bn_relu_kernel(%arg0: i32, %arg1: i32, %arg2: memref<512x128xf32, #tpu.memory_space<vmem>>, %arg3: memref<1x128xf32, #tpu.memory_space<vmem>>, %arg4: memref<1x128xf32, #tpu.memory_space<vmem>>, %arg5: memref<128x128xbf16, #tpu.memory_space<vmem>>, %arg6: memref<512x128xf32, #tpu.memory_space<vmem>>) attributes {dimension_semantics = [#tpu.dimension_semantics<parallel>, #tpu.dimension_semantics<parallel>], iteration_bounds = array<i64: 4, 1>, scalar_prefetch = 0 : i64, scratch_operands = 0 : i64, tpu.core_type = #tpu.core_type<tc>, window_params = [{transform_indices = @transform_0, window_bounds = array<i64: 512, 128>}, {pipeline_mode = #tpu.pipeline_mode<synchronous>, transform_indices = @transform_1, window_bounds = array<i64: 1, 128>}, {pipeline_mode = #tpu.pipeline_mode<synchronous>, transform_indices = @transform_2, window_bounds = array<i64: 1, 128>}, {transform_indices = @transform_3, window_bounds = array<i64: 128, 128>}, {transform_indices = @transform_4, window_bounds = array<i64: 512, 128>}]} {
    %c0 = arith.constant 0 : index
    %c0_0 = arith.constant 0 : index
    %0 = vector.load %arg2[%c0, %c0_0] : memref<512x128xf32, #tpu.memory_space<vmem>>, vector<512x128xf32>
    %c0_1 = arith.constant 0 : index
    %c0_2 = arith.constant 0 : index
    %1 = vector.load %arg3[%c0_1, %c0_2] : memref<1x128xf32, #tpu.memory_space<vmem>>, vector<1x128xf32>
    %2 = vector.broadcast %1 : vector<1x128xf32> to vector<512x128xf32>
    %3 = arith.mulf %0, %2 : vector<512x128xf32>
    %c0_3 = arith.constant 0 : index
    %c0_4 = arith.constant 0 : index
    %4 = vector.load %arg4[%c0_3, %c0_4] : memref<1x128xf32, #tpu.memory_space<vmem>>, vector<1x128xf32>
    %5 = vector.broadcast %4 : vector<1x128xf32> to vector<512x128xf32>
    %6 = arith.addf %3, %5 : vector<512x128xf32>
    %cst = arith.constant 0.000000e+00 : f32
    %7 = vector.broadcast %cst : f32 to vector<512x128xf32>
    %8 = arith.maximumf %6, %7 : vector<512x128xf32>
    %9 = arith.truncf %8 : vector<512x128xf32> to vector<512x128xbf16>
    %c0_5 = arith.constant 0 : index
    %c0_6 = arith.constant 0 : index
    %10 = vector.load %arg5[%c0_5, %c0_6] : memref<128x128xbf16, #tpu.memory_space<vmem>>, vector<128x128xbf16>
    %cst_7 = arith.constant dense<0.000000e+00> : vector<512x128xf32>
    %11 = tpu.matmul %9, %10, %cst_7 {dimension_numbers = #tpu.dot_dimension_numbers<[1], [0], [0], [1], [0, 0, 1, 1], [], []>} : vector<512x128xbf16>, vector<128x128xbf16>, vector<512x128xf32> -> vector<512x128xf32>
    %c0_8 = arith.constant 0 : index
    %c0_9 = arith.constant 0 : index
    %12 = vector.load %arg6[%c0_8, %c0_9] : memref<512x128xf32, #tpu.memory_space<vmem>>, vector<512x128xf32>
    tpu.vector_store %arg6[%c0_8, %c0_9], %11 {strides = array<i32>} : memref<512x128xf32, #tpu.memory_space<vmem>>, vector<512x128xf32>,
    return
  }
  func.func @transform_0(%arg0: i32, %arg1: i32) -> (i32, i32) {
    %c0_i32 = arith.constant 0 : i32
    %c0_i32_0 = arith.constant 0 : i32
    return %arg0, %c0_i32 : i32, i32
  }
  func.func @transform_1(%arg0: i32, %arg1: i32) -> (i32, i32) {
    %c0_i32 = arith.constant 0 : i32
    %c0_i32_0 = arith.constant 0 : i32
    %c0_i32_1 = arith.constant 0 : i32
    return %c0_i32, %c0_i32_0 : i32, i32
  }
  func.func @transform_2(%arg0: i32, %arg1: i32) -> (i32, i32) {
    %c0_i32 = arith.constant 0 : i32
    %c0_i32_0 = arith.constant 0 : i32
    %c0_i32_1 = arith.constant 0 : i32
    return %c0_i32, %c0_i32_0 : i32, i32
  }
  func.func @transform_3(%arg0: i32, %arg1: i32) -> (i32, i32) {
    %c0_i32 = arith.constant 0 : i32
    %c0_i32_0 = arith.constant 0 : i32
    return %c0_i32, %arg1 : i32, i32
  }
  func.func @transform_4(%arg0: i32, %arg1: i32) -> (i32, i32) {
    %c0_i32 = arith.constant 0 : i32
    return %arg0, %arg1 : i32, i32
  }
}

</mosaic_0001>

<bundles_post_ra>
// kernel: lfw_generator.9
= control target key start
LH: loop header
LB: loop body
LE: loop exit
PB: predicated region body
PF: predicated region fallthrough
CT: control target
= control target key end

     0   :  { %7 = vsyncpa [#allocation3], 0  ;;  %s1053_s0 = inlined_call_operand.vmem [shape: f32[8,128], index: 0, kind: input, shape index: {}]   ;;  %s1054_s1 = inlined_call_operand.hbm [shape: bf16[128,8192], index: 1, kind: input, shape index: {}]   ;;  %s1055_s2 = inlined_call_operand.vmem [shape: f32[8,8192], index: 2, kind: output, shape index: {}]  }
   0x1   :  { %9 = vsyncpa [#allocation3 + $0x1], 0  ;;  %s897_s9 = smov 0   ;;  %s899_s10 = smov 0  }
   0x2   :  { %s901_s11 = smov 0   ;;  %s903_s12 = smov 0  }
   0x3   :  { %s905_s13 = smov 0   ;;  %s907_s14 = smov 0  }
   0x4 LB: > { %s564_s15 = sadd.s32 4294967295, %s877_s14   ;;  %s24_s16 = sadd.s32 1, %s873_s13  ;;  %s877_s14 = sphi %s907_s14, %s15_s14   ;;  %s873_s13 = sphi %s905_s13, %s1062_s13   ;;  %s869_s12 = sphi %s903_s12, %s1061_s12   ;;  %s865_s11 = sphi %s901_s11, %s1060_s11   ;;  %s861_s10 = sphi %s899_s10, %s1059_s10   ;;  %s857_s9 = sphi %s897_s9, %s1058_s9  }
   0x5   : > { %p25_p0 = scmp.ge.s32.totalorder %s24_s16, 16  ;;  %s60_s17 = sadd.s32 1, %s865_s11 }
   0x6   : > { %p67_p1 = scmp.ne.s32.totalorder %s865_s11, %s861_s10  ;;  %p68_p2 = scmp.eq.s32.totalorder %s877_s14, 0 }
   0x7   : > { %s1064_s16 = smov (%p25_p0, %s24_s16), 0  ;;  %p73_p4 = scmp.ne.s32.totalorder %s861_s10, %s857_s9 }
   0x8   : > { %p933_p3 = por %p68_p2, %p67_p1  ;;  %s57_s19 = ssub.s32 %s873_s13, %s1064_s16 }
   0x9   : > { %p74_p5 = scmp.eq.s32.totalorder %s564_s15, 0  ;;  %p58_p6 = scmp.eq.s32.totalorder %s57_s19, 0 }
   0xa   : > { %p745_p8 = scmp.lt.s32.totalorder %s877_s14, 16  ;;  %s132_s22 = sand.u32 1, %s865_s11  }
   0xb   : > { %p940_p7 = por %p74_p5, %p73_p4  ;;  %s706_s23 = sshll.u32 %s873_s13, 4 }
   0xc   : > { %s946_s21 = scalar_select %p58_p6, %s865_s11, %s60_s17  }
   0xd   : > { %s569_s24 = sshll.u32 %s132_s22, 8  ;;  %s141_s27 = scalar_lea.hbm %s1054_s1, %s706_s23 }
   0xe   : > { %s142_s28 = sshll.u32 %s141_s27, 4  ;;  %s136_s29 = scalar_lea.vmem [#allocation2], %s569_s24  ;;  %s143_s28 = int_to_ptr.hbm [resolvable:$true] %s142_s28 }
   0xf   : > { %s144_s30 = sshll.u32 %s136_s29, 4  ;;  %p742_p9 = pnand %p745_p8, %p933_p3  ;;  %s145_s30 = int_to_ptr.vmem [resolvable:$true] %s144_s30 }
  0x10   : > { %p572_p10 = scmp.ge.s32.totalorder %s877_s14, 1  ;;  %s133_s3 = scalar_lea.sflag [#allocation3], %s132_s22 }
  0x11   : > { %s879_s4 = smov 4096   ;;  %s880_s5 = smov 256  }
  0x12   : > { %s881_s6 = smov 16   ;;  %p152_p11 = scmp.lt.s32.totalorder %s877_s14, 17 }
  0x13   : > { %744 = dma.hbm_to_vmem [thread:$0]  (!%p742_p9), %s143_s28, 4096, %s145_s30, %s133_s3, %s879_s4, %s880_s5, %s881_s6  }
  0x14   : > { %p153_p12 = pnand %p572_p10, %p152_p11 }
  0x15   : > { %s158_s7 = sand.u32 (!%p153_p12), 1, %s861_s10  }
  0x16   : > { %156 = sbr.rel (%p153_p12) target bundleno = 204 (0xcc), region = 28  ;;  %s573_s8 = sshll.u32 (!%p153_p12), %s158_s7, 8 }
  0x17   : > { %s159_s9 = scalar_lea.sflag (!%p153_p12), [#allocation3], %s158_s7  ;;  %s958_s15 = scalar_lea.vmem (!%p153_p12), [#allocation2], %s573_s8 }
  0x1b   : > { %852 = dma.done.wait (%p940_p7), %s159_s9, 4096  }
  0x1c   : > { %854 = vsyncadd (%p940_p7), %s159_s9, 4294963200  ;;  %v690_v0 = vld [vmem:[%s958_s15 + $0xe0] sm:$0xf]  ;;  %v737_v1 = vld [vmem:[%s958_s15 + $0xec] sm:$0xf0]  ;;  %s574_s19 = sshll.u32 %s869_s12, 2 }
  0x1d   : > { %v735_v2 = vld [vmem:[%s958_s15 + $0xe4] sm:$0xf]  ;;  %v691_v3 = vor.u32 %v737_v1, %v690_v0  ;;  %v692_v4 = vld [vmem:[%s958_s15 + $0xf0] sm:$0xf0]  ;;  %v698_v5 = vld [vmem:[%s958_s15 + $0xe8] sm:$0xf] }
  0x1e   : > { %v738_v6 = vld [vmem:[%s958_s15 + $0xf4] sm:$0xf0]  ;;  %v695_v7 = vor.u32 %v735_v2, %v692_v4  ;;  %v736_v9 = vld [vmem:[%s958_s15 + $0xec] sm:$0xf]  ;;  %v700_v10 = vld [vmem:[%s958_s15 + $0xf8] sm:$0xf0] }
  0x1f   : > { %v699_v8 = vor.u32 %v738_v6, %v698_v5  ;;  %v674_v11 = vld [vmem:[%s958_s15 + $0xc0] sm:$0xf]  ;;  %401 = vmatpush.bf16.msra.mxu0 %v691_v3  ;;  %v703_v12 = vor.u32 %v736_v9, %v700_v10  ;;  %v733_v13 = vld [vmem:[%s958_s15 + $0xcc] sm:$0xf0]  ;;  %v731_v14 = vld [vmem:[%s958_s15 + $0xc4] sm:$0xf] }
  0x20   : > { %v676_v15 = vld [vmem:[%s958_s15 + $0xd0] sm:$0xf0]  ;;  %414 = vmatpush.bf16.msra.mxu1 %v695_v7  ;;  %v675_v16 = vor.u32 %v733_v13, %v674_v11  ;;  %v682_v18 = vld [vmem:[%s958_s15 + $0xc8] sm:$0xf]  ;;  %v734_v19 = vld [vmem:[%s958_s15 + $0xd4] sm:$0xf0] }
  0x21   : > { %427 = vmatpush.bf16.msra.mxu2 %v699_v8  ;;  %v679_v17 = vor.u32 %v731_v14, %v676_v15  ;;  %v732_v20 = vld [vmem:[%s958_s15 + $0xcc] sm:$0xf]  ;;  %440 = vmatpush.bf16.msra.mxu3 %v703_v12  ;;  %v683_v21 = vor.u32 %v734_v19, %v682_v18  ;;  %v684_v22 = vld [vmem:[%s958_s15 + $0xd8] sm:$0xf0]  ;;  %v658_v23 = vld [vmem:[%s958_s15 + $0xa0] sm:$0xf] }
  0x22   : > { %v729_v24 = vld [vmem:[%s958_s15 + $0xac] sm:$0xf0]  ;;  %v687_v25 = vor.u32 %v732_v20, %v684_v22  ;;  %v727_v26 = vld [vmem:[%s958_s15 + $0xa4] sm:$0xf]  ;;  %v660_v27 = vld [vmem:[%s958_s15 + $0xb0] sm:$0xf0] }
  0x23   : > { %v666_v28 = vld [vmem:[%s958_s15 + $0xa8] sm:$0xf]  ;;  %402 = vmatpush.bf16.msra.mxu0 %v675_v16  ;;  %v659_v29 = vor.u32 %v729_v24, %v658_v23  ;;  %v730_v30 = vld [vmem:[%s958_s15 + $0xb4] sm:$0xf0]  ;;  %v728_v31 = vld [vmem:[%s958_s15 + $0xac] sm:$0xf]  ;;  %v663_v33 = vor.u32 %v727_v26, %v660_v27 }
  0x24   : > { %v668_v32 = vld [vmem:[%s958_s15 + $0xb8] sm:$0xf0]  ;;  %415 = vmatpush.bf16.msra.mxu1 %v679_v17  ;;  %v667_v34 = vor.u32 %v730_v30, %v666_v28  ;;  %v642_v35 = vld [vmem:[%s958_s15 + $0x80] sm:$0xf]  ;;  %v725_v36 = vld [vmem:[%s958_s15 + $0x8c] sm:$0xf0] }
  0x25   : > { %428 = vmatpush.bf16.msra.mxu2 %v683_v21  ;;  %v723_v37 = vld [vmem:[%s958_s15 + $0x84] sm:$0xf]  ;;  %441 = vmatpush.bf16.msra.mxu3 %v687_v25  ;;  %v671_v38 = vor.u32 %v728_v31, %v668_v32  ;;  %v644_v39 = vld [vmem:[%s958_s15 + $0x90] sm:$0xf0]  ;;  %v650_v40 = vld [vmem:[%s958_s15 + $0x88] sm:$0xf]  ;;  %v643_v44 = vor.u32 %v725_v36, %v642_v35 }
  0x26   : > { %v726_v41 = vld [vmem:[%s958_s15 + $0x94] sm:$0xf0]  ;;  %v724_v42 = vld [vmem:[%s958_s15 + $0x8c] sm:$0xf]  ;;  %v652_v43 = vld [vmem:[%s958_s15 + $0x98] sm:$0xf0]  ;;  %v647_v45 = vor.u32 %v723_v37, %v644_v39 }
  0x27   : > { %403 = vmatpush.bf16.msra.mxu0 %v659_v29  ;;  %v651_v46 = vor.u32 %v726_v41, %v650_v40  ;;  %v626_v47 = vld [vmem:[%s958_s15 + $0x60] sm:$0xf]  ;;  %v721_v48 = vld [vmem:[%s958_s15 + $0x6c] sm:$0xf0]  ;;  %v719_v49 = vld [vmem:[%s958_s15 + $0x64] sm:$0xf]  ;;  %v655_v50 = vor.u32 %v724_v42, %v652_v43 }
  0x28   : > { %416 = vmatpush.bf16.msra.mxu1 %v663_v33  ;;  %v628_v51 = vld [vmem:[%s958_s15 + $0x70] sm:$0xf0]  ;;  %v634_v52 = vld [vmem:[%s958_s15 + $0x68] sm:$0xf]  ;;  %v722_v53 = vld [vmem:[%s958_s15 + $0x74] sm:$0xf0]  ;;  %v627_v56 = vor.u32 %v721_v48, %v626_v47 }
  0x29   : > { %429 = vmatpush.bf16.msra.mxu2 %v667_v34  ;;  %442 = vmatpush.bf16.msra.mxu3 %v671_v38  ;;  %v720_v54 = vld [vmem:[%s958_s15 + $0x6c] sm:$0xf]  ;;  %v636_v55 = vld [vmem:[%s958_s15 + $0x78] sm:$0xf0]  ;;  %v631_v57 = vor.u32 %v719_v49, %v628_v51  ;;  %v635_v58 = vor.u32 %v722_v53, %v634_v52  ;;  %v610_v59 = vld [vmem:[%s958_s15 + $0x40] sm:$0xf] }
  0x2a   : > { %v717_v60 = vld [vmem:[%s958_s15 + $0x4c] sm:$0xf0]  ;;  %v715_v61 = vld [vmem:[%s958_s15 + $0x44] sm:$0xf]  ;;  %v639_v62 = vor.u32 %v720_v54, %v636_v55  ;;  %v612_v63 = vld [vmem:[%s958_s15 + $0x50] sm:$0xf0] }
  0x2b   : > { %404 = vmatpush.bf16.msra.mxu0 %v643_v44  ;;  %v618_v0 = vld [vmem:[%s958_s15 + $0x48] sm:$0xf]  ;;  %v718_v1 = vld [vmem:[%s958_s15 + $0x54] sm:$0xf0]  ;;  %v716_v2 = vld [vmem:[%s958_s15 + $0x4c] sm:$0xf]  ;;  %v611_v4 = vor.u32 %v717_v60, %v610_v59  ;;  %v615_v5 = vor.u32 %v715_v61, %v612_v63 }
  0x2c   : > { %417 = vmatpush.bf16.msra.mxu1 %v647_v45  ;;  %v620_v3 = vld [vmem:[%s958_s15 + $0x58] sm:$0xf0]  ;;  %v619_v6 = vor.u32 %v718_v1, %v618_v0  ;;  %v594_v7 = vld [vmem:[%s958_s15 + $0x20] sm:$0xf]  ;;  %v713_v8 = vld [vmem:[%s958_s15 + $0x2c] sm:$0xf0] }
  0x2d   : > { %430 = vmatpush.bf16.msra.mxu2 %v651_v46  ;;  %443 = vmatpush.bf16.msra.mxu3 %v655_v50  ;;  %v711_v9 = vld [vmem:[%s958_s15 + $0x24] sm:$0xf]  ;;  %v623_v10 = vor.u32 %v716_v2, %v620_v3  ;;  %v596_v11 = vld [vmem:[%s958_s15 + $0x30] sm:$0xf0]  ;;  %v602_v12 = vld [vmem:[%s958_s15 + $0x28] sm:$0xf]  ;;  %v595_v16 = vor.u32 %v713_v8, %v594_v7 }
  0x2e   : > { %v714_v13 = vld [vmem:[%s958_s15 + $0x34] sm:$0xf0]  ;;  %v712_v14 = vld [vmem:[%s958_s15 + $0x2c] sm:$0xf]  ;;  %v604_v15 = vld [vmem:[%s958_s15 + $0x38] sm:$0xf0]  ;;  %v599_v17 = vor.u32 %v711_v9, %v596_v11 }
  0x2f   : > { %405 = vmatpush.bf16.msra.mxu0 %v627_v56  ;;  %v603_v18 = vor.u32 %v714_v13, %v602_v12  ;;  %v578_v19 = vld [vmem:[%s958_s15] sm:$0xf]  ;;  %v709_v20 = vld [vmem:[%s958_s15 + $0xc] sm:$0xf0]  ;;  %v707_v21 = vld [vmem:[%s958_s15 + $0x4] sm:$0xf]  ;;  %v607_v22 = vor.u32 %v712_v14, %v604_v15 }
  0x30   : > { %418 = vmatpush.bf16.msra.mxu1 %v631_v57  ;;  %v580_v23 = vld [vmem:[%s958_s15 + $0x10] sm:$0xf0]  ;;  %v586_v24 = vld [vmem:[%s958_s15 + $0x8] sm:$0xf]  ;;  %v710_v25 = vld [vmem:[%s958_s15 + $0x14] sm:$0xf0]  ;;  %v579_v28 = vor.u32 %v709_v20, %v578_v19 }
  0x31   : > { %431 = vmatpush.bf16.msra.mxu2 %v635_v58  ;;  %444 = vmatpush.bf16.msra.mxu3 %v639_v62  ;;  %v708_v26 = vld [vmem:[%s958_s15 + $0xc] sm:$0xf]  ;;  %v588_v27 = vld [vmem:[%s958_s15 + $0x18] sm:$0xf0]  ;;  %v207_v29 = vld [vmem:[%s1053_s0] sm:$0xff]  ;;  %v583_v30 = vor.u32 %v707_v21, %v580_v23  ;;  %v587_v31 = vor.u32 %v710_v25, %v586_v24  ;;  %p200_p13 = scmp.lt.s32.totalorder %s574_s19, 63 }
  0x32   : > { %v591_v32 = vor.u32 %v708_v26, %v588_v27  ;;  %v208_v33 = vpack.c.bf16 %v207_v29, %v207_v29 }
  0x33   : > { %406 = vmatpush.bf16.msra.mxu0 %v611_v4  ;;  %s1066_s19 = smov (!%p200_p13, %s574_s19), 63 }
  0x34   : > { %419 = vmatpush.bf16.msra.mxu1 %v615_v5  ;;  %s575_s20 = sshll.u32 %s1066_s19, 3 }
  0x35   : > { %432 = vmatpush.bf16.msra.mxu2 %v619_v6  ;;  %445 = vmatpush.bf16.msra.mxu3 %v623_v10  ;;  %s205_s24 = scalar_lea.vmem %s1055_s2, %s575_s20 }
  0x37   : > { %407 = vmatpush.bf16.msra.mxu0 %v595_v16 }
  0x38   : > { %420 = vmatpush.bf16.msra.mxu1 %v599_v17 }
  0x39   : > { %433 = vmatpush.bf16.msra.mxu2 %v603_v18  ;;  %446 = vmatpush.bf16.msra.mxu3 %v607_v22 }
  0x3b   : > { %408 = vmatpush.bf16.msra.mxu0 %v579_v28 }
  0x3c   : > { %421 = vmatpush.bf16.msra.mxu1 %v583_v30 }
  0x3d   : > { %434 = vmatpush.bf16.msra.mxu2 %v587_v31  ;;  %447 = vmatpush.bf16.msra.mxu3 %v591_v32 }
  0x3e   : > { %409 = vmatmul.bf16.vlgmr.msra.gmra.mxu0 %v208_v33 }
  0x3f   : > { %422 = vmatmul.bf16.vlgmr.msra.gmra.mxu1 %v208_v33 }
  0x40   : > { %435 = vmatmul.bf16.vlgmr.msra.gmra.mxu2 %v208_v33  ;;  %448 = vmatmul.bf16.vlgmr.msra.gmra.mxu3 %v208_v33 }
  0xbb   : > { %v410_v34 = vpop.f32.mrf.mxu0 }
  0xbc   : > { %453 = vst [vmem:[%s205_s24] sm:$0xff] %v410_v34  ;;  %v423_v35 = vpop.f32.mrf.mxu1 }
  0xbd   : > { %454 = vst [vmem:[%s205_s24 + $0x8] sm:$0xff] %v423_v35 }
  0xc3   : > { %v436_v36 = vpop.f32.mrf.mxu2  ;;  %v449_v37 = vpop.f32.mrf.mxu3 }
  0xc4   : > { %455 = vst [vmem:[%s205_s24 + $0x10] sm:$0xff] %v436_v36  ;;  %v412_v38 = vpop.f32.mrf.mxu0  ;;  %v425_v39 = vpop.f32.mrf.mxu1 }
  0xc5   : > { %456 = vst [vmem:[%s205_s24 + $0x18] sm:$0xff] %v449_v37 }
  0xcb   : > { %v438_v40 = vpop.f32.mrf.mxu2  ;;  %v451_v41 = vpop.f32.mrf.mxu3 }
  0xcc PF: > { %s15_s14 = sadd.s32 1, %s877_s14   ;;  %s1058_s9 = smov %s861_s10 }
  0xcd   : > { %p12_p0 = scmp.ge.s32.totalorder %s15_s14, 18   ;;  %s1059_s10 = smov %s865_s11 }
  0xce   : > { %s1060_s11 = smov %s946_s21  ;;  %s1061_s12 = smov %s873_s13 }
  0xcf   : > { %s1062_s13 = smov %s1064_s16  ;;  %14 = sbr.rel (!%p12_p0) target bundleno = 4 (0x4), region = 71 }
  0xd4   :  { %487 = vsyncpa [#allocation3], 1 }
  0xd5   :  { %489 = vsyncpa [#allocation3 + $0x1], 1 }

// kernel: lfw_generator.10
= control target key start
LH: loop header
LB: loop body
LE: loop exit
PB: predicated region body
PF: predicated region fallthrough
CT: control target
= control target key end

     0   :  { %s330_s9 = smov 0   ;;  %s353_s0 = inlined_call_operand.vmem [shape: f32[32,512], index: 0, kind: input, shape index: {}]   ;;  %s354_s1 = inlined_call_operand.vmem [shape: f32[16,512], index: 1, kind: output, shape index: {0}]   ;;  %s355_s2 = inlined_call_operand.vmem [shape: f32[16,512], index: 2, kind: output, shape index: {1}]  }
   0x1 LB: > { %s282_s10 = sadd.s32 4294967295, %s313_s9   ;;  %p286_p0 = scmp.ge.s32.totalorder %s313_s9, 1  ;;  %s313_s9 = sphi %s330_s9, %s13_s9  }
   0x2   : > { %p117_p1 = scmp.lt.s32.totalorder %s313_s9, 3 }
   0x4   : > { %p118_p2 = pnand %p286_p0, %p117_p1 }
   0x5   : > { %s287_s11 = sshll.u32 (!%p118_p2), %s282_s10, 1  ;;  %p152_p3 = scmp.lt.s32.totalorder (!%p118_p2), %s282_s10, 1 }
   0x6   : > { %121 = sbr.rel (%p118_p2) target bundleno = 26 (0x1a), region = 24  ;;  %p146_p4 = scmp.lt.s32.totalorder (!%p118_p2), %s287_s11, 3 }
   0xb   : > { %s357_s10 = smov (!%p152_p3, %s282_s10), 1  ;;  %s359_s11 = smov (!%p146_p4, %s287_s11), 3 }
   0xc   : > { %s297_s12 = sshll.u32 %s357_s10, 5  ;;  %s296_s13 = sshll.u32 %s359_s11, 5 }
   0xd   : > { %s150_s16 = scalar_lea.vmem %s353_s0, %s296_s13  ;;  %s156_s19 = scalar_lea.vmem %s354_s1, %s297_s12 }
   0xe   : > { %v162_v0 = vld [vmem:[%s150_s16] sm:$0xff]  ;;  %v163_v2 = vld [vmem:[%s150_s16 + $0x8] sm:$0xff]  ;;  %v164_v5 = vld [vmem:[%s150_s16 + $0x10] sm:$0xff]  ;;  %s161_s22 = scalar_lea.vmem %s355_s2, %s297_s12 }
   0xf   : > { %v166_v1 = vld [vmem:[%s150_s16 + $0x20] sm:$0xff]  ;;  %v167_v4 = vld [vmem:[%s150_s16 + $0x28] sm:$0xff]  ;;  %v168_v6 = vld [vmem:[%s150_s16 + $0x30] sm:$0xff]  ;;  %v178_v7 = vmul.f32 %v162_v0, %v162_v0  ;;  %v179_v9 = vmul.f32 %v163_v2, %v163_v2  ;;  %v180_v15 = vmul.f32 %v164_v5, %v164_v5 }
  0x10   : > { %v170_v3 = vadd.f32 %v166_v1, %v162_v0  ;;  %v182_v8 = vmul.f32 %v166_v1, %v166_v1  ;;  %v171_v10 = vadd.f32 %v167_v4, %v163_v2  ;;  %v172_v11 = vadd.f32 %v168_v6, %v164_v5  ;;  %v165_v12 = vld [vmem:[%s150_s16 + $0x18] sm:$0xff] }
  0x11   : > { %v169_v13 = vld [vmem:[%s150_s16 + $0x38] sm:$0xff]  ;;  %v183_v14 = vmul.f32 %v167_v4, %v167_v4  ;;  %v184_v18 = vmul.f32 %v168_v6, %v168_v6  ;;  %v181_v19 = vmul.f32 %v165_v12, %v165_v12 }
  0x12   : > { %174 = vst [vmem:[%s156_s19] sm:$0xff] %v170_v3  ;;  %v173_v16 = vadd.f32 %v169_v13, %v165_v12  ;;  %v186_v17 = vadd.f32 %v182_v8, %v178_v7  ;;  %v185_v21 = vmul.f32 %v169_v13, %v169_v13 }
  0x13   : > { %175 = vst [vmem:[%s156_s19 + $0x8] sm:$0xff] %v171_v10  ;;  %v187_v20 = vadd.f32 %v183_v14, %v179_v9  ;;  %v188_v22 = vadd.f32 %v184_v18, %v180_v15 }
  0x14   : > { %176 = vst [vmem:[%s156_s19 + $0x10] sm:$0xff] %v172_v11  ;;  %v189_v23 = vadd.f32 %v185_v21, %v181_v19 }
  0x15   : > { %177 = vst [vmem:[%s156_s19 + $0x18] sm:$0xff] %v173_v16 }
  0x16   : > { %190 = vst [vmem:[%s161_s22] sm:$0xff] %v186_v17 }
  0x17   : > { %191 = vst [vmem:[%s161_s22 + $0x8] sm:$0xff] %v187_v20 }
  0x18   : > { %192 = vst [vmem:[%s161_s22 + $0x10] sm:$0xff] %v188_v22 }
  0x19   : > { %193 = vst [vmem:[%s161_s22 + $0x18] sm:$0xff] %v189_v23 }
  0x1a PF: > { %s13_s9 = sadd.s32 1, %s313_s9  }
  0x1b   : > { %p10_p5 = scmp.ge.s32.totalorder %s13_s9, 4  }
  0x1d   :  { %12 = sbr.rel (!%p10_p5) target bundleno = 1 (0x1), region = 66 }

// kernel: lfw_generator.11
= control target key start
LH: loop header
LB: loop body
LE: loop exit
PB: predicated region body
PF: predicated region fallthrough
CT: control target
= control target key end

     0   :  { %9 = vsyncpa [#allocation3], 0  ;;  %s3019_s0 = inlined_call_operand.vmem [shape: f32[32,512], index: 0, kind: input, shape index: {}]   ;;  %s3020_s1 = inlined_call_operand.vmem [shape: f32[1,512], index: 1, kind: input, shape index: {}]   ;;  %s3021_s2 = inlined_call_operand.vmem [shape: f32[1,512], index: 2, kind: input, shape index: {}]   ;;  %s3022_s3 = inlined_call_operand.hbm [shape: bf16[512,4096], index: 3, kind: input, shape index: {}]   ;;  %s3023_s4 = inlined_call_operand.vmem [shape: f32[32,4096], index: 4, kind: output, shape index: {}]  }
   0x1   :  { %11 = vsyncpa [#allocation3 + $0x1], 0  ;;  %s2410_s15 = smov 0   ;;  %s2412_s16 = smov 0  }
   0x2   :  { %s2414_s17 = smov 0   ;;  %s2416_s18 = smov 0  }
   0x3   :  { %s2418_s19 = smov 0   ;;  %s2420_s20 = smov 0  }
   0x4 LB: > { %s1584_s21 = sadd.s32 4294967295, %s2380_s20   ;;  %s26_s22 = sadd.s32 1, %s2376_s19  ;;  %s2380_s20 = sphi %s2420_s20, %s17_s20   ;;  %s2376_s19 = sphi %s2418_s19, %s3031_s19   ;;  %s2372_s18 = sphi %s2416_s18, %s3030_s18   ;;  %s2368_s17 = sphi %s2414_s17, %s3029_s17   ;;  %s2364_s16 = sphi %s2412_s16, %s3028_s16   ;;  %s2360_s15 = sphi %s2410_s15, %s3027_s15  }
   0x5   : > { %p27_p0 = scmp.ge.s32.totalorder %s26_s22, 8  ;;  %s104_s23 = sadd.s32 1, %s2368_s17 }
   0x6   : > { %p111_p1 = scmp.ne.s32.totalorder %s2368_s17, %s2364_s16  ;;  %p112_p2 = scmp.eq.s32.totalorder %s2380_s20, 0 }
   0x7   : > { %s3033_s22 = smov (%p27_p0, %s26_s22), 0  ;;  %p117_p4 = scmp.ne.s32.totalorder %s2364_s16, %s2360_s15 }
   0x8   : > { %p2446_p3 = por %p112_p2, %p111_p1  ;;  %s101_s25 = ssub.s32 %s2376_s19, %s3033_s22 }
   0x9   : > { %p118_p5 = scmp.eq.s32.totalorder %s1584_s21, 0  ;;  %p102_p6 = scmp.eq.s32.totalorder %s101_s25, 0 }
   0xa   : > { %p143_p7 = scmp.eq.s32.totalorder %s1584_s21, 7  ;;  %p2248_p10 = scmp.lt.s32.totalorder %s2380_s20, 8 }
   0xb   : > { %p2453_p8 = por %p118_p5, %p117_p4  ;;  %s185_s29 = sand.u32 1, %s2368_s17  }
   0xc   : > { %s2458_s27 = scalar_select %p102_p6, %s2368_s17, %s104_s23  }
   0xd   : > { %p2460_p9 = por %p143_p7, %p111_p1  ;;  %s2112_s30 = sshll.u32 %s2376_s19, 4 }
   0xe   : > { %s1589_s5 = sshll.u32 %s185_s29, 10  ;;  %s194_s8 = scalar_lea.hbm %s3022_s3, %s2112_s30 }
   0xf   : > { %s195_s9 = sshll.u32 %s194_s8, 4  ;;  %s189_s10 = scalar_lea.vmem [#allocation2], %s1589_s5  ;;  %s196_s9 = int_to_ptr.hbm [resolvable:$true] %s195_s9 }
  0x10   : > { %s197_s11 = sshll.u32 %s189_s10, 4  ;;  %p2245_p11 = pnand %p2248_p10, %p2446_p3  ;;  %s198_s11 = int_to_ptr.vmem [resolvable:$true] %s197_s11 }
  0x11   : > { %p1592_p12 = scmp.ge.s32.totalorder %s2380_s20, 1  ;;  %s186_s12 = scalar_lea.sflag [#allocation3], %s185_s29 }
  0x12   : > { %s2382_s13 = smov 2048   ;;  %s2383_s14 = smov 256  }
  0x13   : > { %s2384_s15 = smov 16   ;;  %p205_p13 = scmp.lt.s32.totalorder %s2380_s20, 9 }
  0x14   : > { %2247 = dma.hbm_to_vmem [thread:$0]  (!%p2245_p11), %s196_s9, 16384, %s198_s11, %s186_s12, %s2382_s13, %s2383_s14, %s2384_s15  }
  0x15   : > { %p206_p0 = pnand %p1592_p12, %p205_p13 }
  0x16   : > { %s2475_s21 = sand.u32 (!%p206_p0), 1, %s2364_s16  }
  0x17   : > { %209 = sbr.rel (%p206_p0) target bundleno = 343 (0x157), region = 36  ;;  %s1593_s23 = sshll.u32 (!%p206_p0), %s2475_s21, 10 }
  0x18   : > { %s212_s25 = scalar_lea.sflag (!%p206_p0), [#allocation3], %s2475_s21  ;;  %s2479_s30 = scalar_lea.vmem (!%p206_p0), [#allocation2], %s1593_s23 }
  0x1c   : > { %2355 = dma.done.wait (%p2453_p8), %s212_s25, 16384  }
  0x1d   : > { %2357 = vsyncadd (%p2453_p8), %s212_s25, 4294950912  ;;  %v1709_v0 = vld [vmem:[%s2479_s30 + $0xe0] sm:$0xf]  ;;  %v2143_v1 = vld [vmem:[%s2479_s30 + $0xec] sm:$0xf0] }
  0x1e   : > { %v1837_v2 = vld [vmem:[%s2479_s30 + $0x1e0] sm:$0xf]  ;;  %v1710_v3 = vor.u32 %v2143_v1, %v1709_v0  ;;  %v2175_v4 = vld [vmem:[%s2479_s30 + $0x1ec] sm:$0xf0] }
  0x1f   : > { %v1965_v5 = vld [vmem:[%s2479_s30 + $0x2e0] sm:$0xf]  ;;  %v2207_v6 = vld [vmem:[%s2479_s30 + $0x2ec] sm:$0xf0]  ;;  %v1838_v7 = vor.u32 %v2175_v4, %v1837_v2 }
  0x20   : > { %v1966_v8 = vor.u32 %v2207_v6, %v1965_v5  ;;  %v2093_v9 = vld [vmem:[%s2479_s30 + $0x3e0] sm:$0xf]  ;;  %v2239_v10 = vld [vmem:[%s2479_s30 + $0x3ec] sm:$0xf0]  ;;  %1116 = vmatpush.bf16.msra.mxu0 %v1710_v3 }
  0x21   : > { %v1693_v11 = vld [vmem:[%s2479_s30 + $0xc0] sm:$0xf]  ;;  %v2094_v12 = vor.u32 %v2239_v10, %v2093_v9  ;;  %v2139_v13 = vld [vmem:[%s2479_s30 + $0xcc] sm:$0xf0]  ;;  %1135 = vmatpush.bf16.msra.mxu1 %v1838_v7 }
  0x22   : > { %v1821_v14 = vld [vmem:[%s2479_s30 + $0x1c0] sm:$0xf]  ;;  %v2171_v15 = vld [vmem:[%s2479_s30 + $0x1cc] sm:$0xf0]  ;;  %1154 = vmatpush.bf16.msra.mxu2 %v1966_v8  ;;  %v1694_v16 = vor.u32 %v2139_v13, %v1693_v11 }
  0x23   : > { %v1822_v17 = vor.u32 %v2171_v15, %v1821_v14  ;;  %v1949_v18 = vld [vmem:[%s2479_s30 + $0x2c0] sm:$0xf]  ;;  %v2203_v19 = vld [vmem:[%s2479_s30 + $0x2cc] sm:$0xf0]  ;;  %1173 = vmatpush.bf16.msra.mxu3 %v2094_v12 }
  0x24   : > { %v2077_v20 = vld [vmem:[%s2479_s30 + $0x3c0] sm:$0xf]  ;;  %v1950_v21 = vor.u32 %v2203_v19, %v1949_v18  ;;  %v2235_v22 = vld [vmem:[%s2479_s30 + $0x3cc] sm:$0xf0]  ;;  %1117 = vmatpush.bf16.msra.mxu0 %v1694_v16 }
  0x25   : > { %v1677_v23 = vld [vmem:[%s2479_s30 + $0xa0] sm:$0xf]  ;;  %v2135_v24 = vld [vmem:[%s2479_s30 + $0xac] sm:$0xf0]  ;;  %v2078_v25 = vor.u32 %v2235_v22, %v2077_v20  ;;  %1136 = vmatpush.bf16.msra.mxu1 %v1822_v17 }
  0x26   : > { %v1805_v26 = vld [vmem:[%s2479_s30 + $0x1a0] sm:$0xf]  ;;  %v2167_v27 = vld [vmem:[%s2479_s30 + $0x1ac] sm:$0xf0]  ;;  %v1678_v29 = vor.u32 %v2135_v24, %v1677_v23  ;;  %1155 = vmatpush.bf16.msra.mxu2 %v1950_v21 }
  0x27   : > { %v1933_v28 = vld [vmem:[%s2479_s30 + $0x2a0] sm:$0xf]  ;;  %v2199_v30 = vld [vmem:[%s2479_s30 + $0x2ac] sm:$0xf0]  ;;  %v1806_v33 = vor.u32 %v2167_v27, %v1805_v26  ;;  %1174 = vmatpush.bf16.msra.mxu3 %v2078_v25 }
  0x28   : > { %v2061_v31 = vld [vmem:[%s2479_s30 + $0x3a0] sm:$0xf]  ;;  %v2231_v32 = vld [vmem:[%s2479_s30 + $0x3ac] sm:$0xf0]  ;;  %v1934_v34 = vor.u32 %v2199_v30, %v1933_v28  ;;  %1118 = vmatpush.bf16.msra.mxu0 %v1678_v29 }
  0x29   : > { %v1661_v35 = vld [vmem:[%s2479_s30 + $0x80] sm:$0xf]  ;;  %v2131_v36 = vld [vmem:[%s2479_s30 + $0x8c] sm:$0xf0]  ;;  %v2062_v38 = vor.u32 %v2231_v32, %v2061_v31  ;;  %1137 = vmatpush.bf16.msra.mxu1 %v1806_v33 }
  0x2a   : > { %v1789_v37 = vld [vmem:[%s2479_s30 + $0x180] sm:$0xf]  ;;  %v2163_v39 = vld [vmem:[%s2479_s30 + $0x18c] sm:$0xf0]  ;;  %v1662_v44 = vor.u32 %v2131_v36, %v1661_v35  ;;  %1156 = vmatpush.bf16.msra.mxu2 %v1934_v34  ;;  %v257_v35 = vld [vmem:[%s3019_s0 + $0x8] sm:$0xff] }
  0x2b   : > { %v1917_v40 = vld [vmem:[%s2479_s30 + $0x280] sm:$0xf]  ;;  %v2195_v41 = vld [vmem:[%s2479_s30 + $0x28c] sm:$0xf0]  ;;  %v1790_v46 = vor.u32 %v2163_v39, %v1789_v37  ;;  %1175 = vmatpush.bf16.msra.mxu3 %v2062_v38  ;;  %v261_v38 = vld [vmem:[%s3019_s0 + $0x28] sm:$0xff] }
  0x2c   : > { %v2045_v42 = vld [vmem:[%s2479_s30 + $0x380] sm:$0xf]  ;;  %v2227_v43 = vld [vmem:[%s2479_s30 + $0x38c] sm:$0xf0]  ;;  %v1918_v47 = vor.u32 %v2195_v41, %v1917_v40  ;;  %1119 = vmatpush.bf16.msra.mxu0 %v1662_v44 }
  0x2d   : > { %v1645_v45 = vld [vmem:[%s2479_s30 + $0x60] sm:$0xf]  ;;  %v2127_v48 = vld [vmem:[%s2479_s30 + $0x6c] sm:$0xf0]  ;;  %v2046_v51 = vor.u32 %v2227_v43, %v2045_v42  ;;  %1138 = vmatpush.bf16.msra.mxu1 %v1790_v46  ;;  %v259_v46 = vld [vmem:[%s3019_s0 + $0x18] sm:$0xff] }
  0x2e   : > { %v1773_v49 = vld [vmem:[%s2479_s30 + $0x160] sm:$0xf]  ;;  %v2159_v50 = vld [vmem:[%s2479_s30 + $0x16c] sm:$0xf0]  ;;  %v1646_v58 = vor.u32 %v2127_v48, %v1645_v45  ;;  %1157 = vmatpush.bf16.msra.mxu2 %v1918_v47  ;;  %v263_v47 = vld [vmem:[%s3019_s0 + $0x38] sm:$0xff] }
  0x2f   : > { %v1901_v52 = vld [vmem:[%s2479_s30 + $0x260] sm:$0xf]  ;;  %v2191_v53 = vld [vmem:[%s2479_s30 + $0x26c] sm:$0xf0]  ;;  %v1774_v63 = vor.u32 %v2159_v50, %v1773_v49  ;;  %1176 = vmatpush.bf16.msra.mxu3 %v2046_v51 }
  0x30   : > { %v2029_v54 = vld [vmem:[%s2479_s30 + $0x360] sm:$0xf]  ;;  %v2223_v55 = vld [vmem:[%s2479_s30 + $0x36c] sm:$0xf0]  ;;  %v1902_v0 = vor.u32 %v2191_v53, %v1901_v52  ;;  %1120 = vmatpush.bf16.msra.mxu0 %v1646_v58  ;;  %v2205_v53 = vld [vmem:[%s2479_s30 + $0x2e4] sm:$0xf] }
  0x31   : > { %v1629_v56 = vld [vmem:[%s2479_s30 + $0x40] sm:$0xf]  ;;  %v2123_v57 = vld [vmem:[%s2479_s30 + $0x4c] sm:$0xf0]  ;;  %v2030_v6 = vor.u32 %v2223_v55, %v2029_v54  ;;  %1139 = vmatpush.bf16.msra.mxu1 %v1774_v63  ;;  %v1967_v54 = vld [vmem:[%s2479_s30 + $0x2f0] sm:$0xf0] }
  0x32   : > { %v1757_v59 = vld [vmem:[%s2479_s30 + $0x140] sm:$0xf]  ;;  %v2155_v60 = vld [vmem:[%s2479_s30 + $0x14c] sm:$0xf0]  ;;  %v1630_v13 = vor.u32 %v2123_v57, %v1629_v56  ;;  %1158 = vmatpush.bf16.msra.mxu2 %v1902_v0  ;;  %v2141_v63 = vld [vmem:[%s2479_s30 + $0xe4] sm:$0xf] }
  0x33   : > { %v1885_v61 = vld [vmem:[%s2479_s30 + $0x240] sm:$0xf]  ;;  %v2187_v62 = vld [vmem:[%s2479_s30 + $0x24c] sm:$0xf0]  ;;  %v1758_v17 = vor.u32 %v2155_v60, %v1757_v59  ;;  %1177 = vmatpush.bf16.msra.mxu3 %v2030_v6  ;;  %v1711_v0 = vld [vmem:[%s2479_s30 + $0xf0] sm:$0xf0] }
  0x34   : > { %v2013_v1 = vld [vmem:[%s2479_s30 + $0x340] sm:$0xf]  ;;  %v2219_v2 = vld [vmem:[%s2479_s30 + $0x34c] sm:$0xf0]  ;;  %v1886_v18 = vor.u32 %v2187_v62, %v1885_v61  ;;  %1121 = vmatpush.bf16.msra.mxu0 %v1630_v13  ;;  %v1839_v6 = vld [vmem:[%s2479_s30 + $0x1f0] sm:$0xf0] }
  0x35   : > { %v2534_v3 = vld [vmem:[%s2479_s30 + $0x20] sm:$0xf]  ;;  %v2537_v4 = vld [vmem:[%s2479_s30 + $0x2c] sm:$0xf0]  ;;  %v2014_v22 = vor.u32 %v2219_v2, %v2013_v1  ;;  %1140 = vmatpush.bf16.msra.mxu1 %v1758_v17  ;;  %v2173_v1 = vld [vmem:[%s2479_s30 + $0x1e4] sm:$0xf] }
  0x36   : > { %v2540_v5 = vld [vmem:[%s2479_s30 + $0x120] sm:$0xf]  ;;  %v2543_v7 = vld [vmem:[%s2479_s30 + $0x12c] sm:$0xf0]  ;;  %v1614_v23 = vor.u32 %v2537_v4, %v2534_v3  ;;  %1159 = vmatpush.bf16.msra.mxu2 %v1886_v18 }
  0x37   : > { %v2546_v8 = vld [vmem:[%s2479_s30 + $0x220] sm:$0xf]  ;;  %v2549_v9 = vld [vmem:[%s2479_s30 + $0x22c] sm:$0xf0]  ;;  %v1742_v24 = vor.u32 %v2543_v7, %v2540_v5  ;;  %1178 = vmatpush.bf16.msra.mxu3 %v2014_v22  ;;  %v1970_v5 = vor.u32 %v2205_v53, %v1967_v54  ;;  %v2237_v7 = vld [vmem:[%s2479_s30 + $0x3e4] sm:$0xf] }
  0x38   : > { %v2552_v10 = vld [vmem:[%s2479_s30 + $0x320] sm:$0xf]  ;;  %v2555_v11 = vld [vmem:[%s2479_s30 + $0x32c] sm:$0xf0]  ;;  %v1870_v25 = vor.u32 %v2549_v9, %v2546_v8  ;;  %1122 = vmatpush.bf16.msra.mxu0 %v1614_v23  ;;  %v1951_v22 = vld [vmem:[%s2479_s30 + $0x2d0] sm:$0xf0] }
  0x39   : > { %v2558_v12 = vld [vmem:[%s2479_s30] sm:$0xf]  ;;  %v2561_v14 = vld [vmem:[%s2479_s30 + $0xc] sm:$0xf0]  ;;  %v1998_v29 = vor.u32 %v2555_v11, %v2552_v10  ;;  %1141 = vmatpush.bf16.msra.mxu1 %v1742_v24  ;;  %v2193_v54 = vld [vmem:[%s2479_s30 + $0x284] sm:$0xf] }
  0x3a   : > { %v2564_v15 = vld [vmem:[%s2479_s30 + $0x100] sm:$0xf]  ;;  %v2567_v16 = vld [vmem:[%s2479_s30 + $0x10c] sm:$0xf0]  ;;  %v1598_v30 = vor.u32 %v2561_v14, %v2558_v12  ;;  %1160 = vmatpush.bf16.msra.mxu2 %v1870_v25  ;;  %v2095_v12 = vld [vmem:[%s2479_s30 + $0x3f0] sm:$0xf0]  ;;  %v1842_v25 = vor.u32 %v2173_v1, %v1839_v6 }
  0x3b   : > { %v2570_v19 = vld [vmem:[%s2479_s30 + $0x200] sm:$0xf]  ;;  %v2573_v20 = vld [vmem:[%s2479_s30 + $0x20c] sm:$0xf0]  ;;  %v1726_v31 = vor.u32 %v2567_v16, %v2564_v15  ;;  %1179 = vmatpush.bf16.msra.mxu3 %v1998_v29  ;;  %v1823_v29 = vld [vmem:[%s2479_s30 + $0x1d0] sm:$0xf0]  ;;  %v2098_v15 = vor.u32 %v2237_v7, %v2095_v12 }
  0x3c   : > { %v2576_v21 = vld [vmem:[%s2479_s30 + $0x300] sm:$0xf]  ;;  %v2585_v26 = vld [vmem:[%s2479_s30 + $0x30c] sm:$0xf0]  ;;  %v1854_v32 = vor.u32 %v2573_v20, %v2570_v19  ;;  %1123 = vmatpush.bf16.msra.mxu0 %v1598_v30  ;;  %v2693_v19 = vld [vmem:[%s2479_s30 + $0xa4] sm:$0xf] }
  0x3d   : > { %v256_v27 = vld [vmem:[%s3019_s0] sm:$0xff]  ;;  %v258_v41 = vld [vmem:[%s3019_s0 + $0x10] sm:$0xff]  ;;  %v1982_v42 = vor.u32 %v2585_v26, %v2576_v21  ;;  %1142 = vmatpush.bf16.msra.mxu1 %v1726_v31  ;;  %v271_v12 = vld [vmem:[%s3019_s0 + $0x78] sm:$0xff] }
  0x3e   : > { %v260_v28 = vld [vmem:[%s3019_s0 + $0x20] sm:$0xff]  ;;  %v262_v43 = vld [vmem:[%s3019_s0 + $0x30] sm:$0xff]  ;;  %1161 = vmatpush.bf16.msra.mxu2 %v1854_v32 }
  0x3f   : > { %v272_v33 = vld [vmem:[%s3020_s1] sm:$0xf]  ;;  %v2201_v21 = vld [vmem:[%s2479_s30 + $0x2c4] sm:$0xf]  ;;  %1180 = vmatpush.bf16.msra.mxu3 %v1982_v42  ;;  %v266_v6 = vld [vmem:[%s3019_s0 + $0x50] sm:$0xff] }
  0x40   : > { %v298_v34 = vld [vmem:[%s3021_s2] sm:$0xf]  ;;  %v2610_v36 = vperm.slane %v272_v33, 0  ;;  %v2617_v39 = vperm.slane %v272_v33, 1  ;;  %v2629_v44 = vperm.slane %v272_v33, 2  ;;  %v2639_v48 = vperm.slane %v272_v33, 3 }
  0x41   : > { %v2612_v37 = vperm.slane %v298_v34, 0  ;;  %v2619_v40 = vperm.slane %v298_v34, 1  ;;  %v2631_v45 = vperm.slane %v298_v34, 2  ;;  %v2660_v4 = vperm.slane %v298_v34, 3  ;;  %v2137_v26 = vld [vmem:[%s2479_s30 + $0xc4] sm:$0xf]  ;;  %1211 = vmatpush.bf16.msrb.mxu1 %v1842_v25 }
  0x42   : > { %v282_v49 = vmul.f32 %v2610_v36, %v256_v27  ;;  %v286_v50 = vmul.f32 %v2610_v36, %v260_v28  ;;  %v283_v51 = vmul.f32 %v2617_v39, %v257_v35  ;;  %v287_v52 = vmul.f32 %v2617_v39, %v261_v38  ;;  %v1695_v27 = vld [vmem:[%s2479_s30 + $0xd0] sm:$0xf0]  ;;  %v2169_v28 = vld [vmem:[%s2479_s30 + $0x1c4] sm:$0xf]  ;;  %1230 = vmatpush.bf16.msrb.mxu2 %v1970_v5 }
  0x43   : > { %v284_v55 = vmul.f32 %v2629_v44, %v258_v41  ;;  %v288_v56 = vmul.f32 %v2629_v44, %v262_v43  ;;  %v285_v57 = vmul.f32 %v2639_v48, %v259_v46  ;;  %v289_v58 = vmul.f32 %v2639_v48, %v263_v47  ;;  %v264_v33 = vld [vmem:[%s3019_s0 + $0x40] sm:$0xff]  ;;  %v2079_v43 = vld [vmem:[%s2479_s30 + $0x3d0] sm:$0xf0]  ;;  %1249 = vmatpush.bf16.msrb.mxu3 %v2098_v15 }
  0x44   : > { %v308_v59 = vadd.f32 %v2612_v37, %v282_v49  ;;  %v312_v60 = vadd.f32 %v2612_v37, %v286_v50  ;;  %v309_v61 = vadd.f32 %v2619_v40, %v283_v51  ;;  %v313_v62 = vadd.f32 %v2619_v40, %v287_v52  ;;  %v2233_v41 = vld [vmem:[%s2479_s30 + $0x3c4] sm:$0xf]  ;;  %v1935_v46 = vld [vmem:[%s2479_s30 + $0x2b0] sm:$0xf0] }
  0x45   : > { %v310_v2 = vadd.f32 %v2631_v45, %v284_v55  ;;  %v314_v3 = vadd.f32 %v2631_v45, %v288_v56  ;;  %v311_v17 = vadd.f32 %v2660_v4, %v285_v57  ;;  %v315_v18 = vadd.f32 %v2660_v4, %v289_v58  ;;  %v2197_v31 = vld [vmem:[%s2479_s30 + $0x2a4] sm:$0xf]  ;;  %v2699_v47 = vld [vmem:[%s2479_s30 + $0xb0] sm:$0xf0] }
  0x46   : > { %v324_v8 = vmax.f32 %v308_v59, 0.0  ;;  %v328_v9 = vmax.f32 %v312_v60, 0.0  ;;  %v325_v10 = vmax.f32 %v309_v61, 0.0  ;;  %v329_v11 = vmax.f32 %v313_v62, 0.0  ;;  %v2165_v42 = vld [vmem:[%s2479_s30 + $0x1a4] sm:$0xf] }
  0x47   : > { %v326_v13 = vmax.f32 %v310_v2, 0.0  ;;  %v330_v14 = vmax.f32 %v314_v3, 0.0  ;;  %v327_v34 = vmax.f32 %v311_v17, 0.0  ;;  %v331_v35 = vmax.f32 %v315_v18, 0.0  ;;  %v1807_v49 = vld [vmem:[%s2479_s30 + $0x1b0] sm:$0xf0] }
  0x48   : > { %v2669_v23 = vpack.c.bf16 %v328_v9, %v324_v8  ;;  %v2671_v24 = vpack.c.bf16 %v329_v11, %v325_v10  ;;  %v1714_v38 = vor.u32 %v2141_v63, %v1711_v0  ;;  %v1954_v16 = vor.u32 %v2201_v21, %v1951_v22  ;;  %v2706_v50 = vld [vmem:[%s2479_s30 + $0x3a4] sm:$0xf]  ;;  %v2709_v51 = vld [vmem:[%s2479_s30 + $0x3b0] sm:$0xf0]  ;;  %v265_v63 = vld [vmem:[%s3019_s0 + $0x48] sm:$0xff] }
  0x49   : > { %v2686_v30 = vpack.c.bf16 %v330_v14, %v326_v13  ;;  %v2696_v20 = vpack.c.bf16 %v331_v35, %v327_v34  ;;  %v1826_v32 = vor.u32 %v2169_v28, %v1823_v29  ;;  %v1698_v52 = vor.u32 %v2137_v26, %v1695_v27  ;;  %v1919_v55 = vld [vmem:[%s2479_s30 + $0x290] sm:$0xf0]  ;;  %v2715_v56 = vld [vmem:[%s2479_s30 + $0x184] sm:$0xf]  ;;  %v269_v3 = vld [vmem:[%s3019_s0 + $0x68] sm:$0xff] }
  0x4a   : > { %1124 = vmatmul.bf16.vlgmr.msra.gmra.mxu0 %v2669_v23  ;;  %1143 = vmatmul.bf16.vlgmr.msra.gmra.mxu1 %v2671_v24  ;;  %v2082_v53 = vor.u32 %v2233_v41, %v2079_v43  ;;  %v290_v57 = vmul.f32 %v2610_v36, %v264_v33  ;;  %v1938_v58 = vor.u32 %v2197_v31, %v1935_v46  ;;  %v1791_v61 = vld [vmem:[%s2479_s30 + $0x190] sm:$0xf0]  ;;  %v268_v62 = vld [vmem:[%s3019_s0 + $0x60] sm:$0xff]  ;;  %v267_v11 = vld [vmem:[%s3019_s0 + $0x58] sm:$0xff] }
  0x4b   : > { %1162 = vmatmul.bf16.vlgmr.msra.gmra.mxu2 %v2686_v30  ;;  %1181 = vmatmul.bf16.vlgmr.msra.gmra.mxu3 %v2696_v20  ;;  %v1682_v59 = vor.u32 %v2693_v19, %v2699_v47  ;;  %v1810_v60 = vor.u32 %v2165_v42, %v1807_v49  ;;  %v2066_v0 = vor.u32 %v2706_v50, %v2709_v51  ;;  %v270_v7 = vld [vmem:[%s3019_s0 + $0x70] sm:$0xff]  ;;  %v2129_v13 = vld [vmem:[%s2479_s30 + $0x84] sm:$0xf] }
  0x4c   : > { %1192 = vmatpush.bf16.msrb.mxu0 %v1714_v38  ;;  %1231 = vmatpush.bf16.msrb.mxu2 %v1954_v16  ;;  %v294_v1 = vmul.f32 %v2610_v36, %v268_v62  ;;  %v316_v2 = vadd.f32 %v2612_v37, %v290_v57  ;;  %v291_v5 = vmul.f32 %v2617_v39, %v265_v63  ;;  %v1663_v14 = vld [vmem:[%s2479_s30 + $0x90] sm:$0xf0]  ;;  %v2225_v21 = vld [vmem:[%s2479_s30 + $0x384] sm:$0xf] }
  0x4d   : > { %1212 = vmatpush.bf16.msrb.mxu1 %v1826_v32  ;;  %v1922_v8 = vor.u32 %v2193_v54, %v1919_v55  ;;  %v295_v36 = vmul.f32 %v2617_v39, %v269_v3  ;;  %v292_v9 = vmul.f32 %v2629_v44, %v266_v6  ;;  %v296_v10 = vmul.f32 %v2629_v44, %v270_v7  ;;  %v2047_v22 = vld [vmem:[%s2479_s30 + $0x390] sm:$0xf0]  ;;  %v2189_v28 = vld [vmem:[%s2479_s30 + $0x264] sm:$0xf] }
  0x4e   : > { %v1794_v17 = vor.u32 %v2715_v56, %v1791_v61  ;;  %v320_v39 = vadd.f32 %v2612_v37, %v294_v1  ;;  %v317_v18 = vadd.f32 %v2619_v40, %v291_v5  ;;  %v293_v44 = vmul.f32 %v2639_v48, %v267_v11  ;;  %1250 = vmatpush.bf16.msrb.mxu3 %v2082_v53  ;;  %v1903_v35 = vld [vmem:[%s2479_s30 + $0x270] sm:$0xf0]  ;;  %v2157_v38 = vld [vmem:[%s2479_s30 + $0x164] sm:$0xf] }
  0x4f   : > { %v321_v25 = vadd.f32 %v2619_v40, %v295_v36  ;;  %v318_v26 = vadd.f32 %v2631_v45, %v292_v9  ;;  %v322_v27 = vadd.f32 %v2631_v45, %v296_v10  ;;  %v332_v37 = vmax.f32 %v316_v2, 0.0  ;;  %v1775_v16 = vld [vmem:[%s2479_s30 + $0x170] sm:$0xf0]  ;;  %v2221_v42 = vld [vmem:[%s2479_s30 + $0x364] sm:$0xf] }
  0x50   : > { %1193 = vmatpush.bf16.msrb.mxu0 %v1698_v52  ;;  %1232 = vmatpush.bf16.msrb.mxu2 %v1938_v58  ;;  %v336_v29 = vmax.f32 %v320_v39, 0.0  ;;  %v297_v33 = vmul.f32 %v2639_v48, %v271_v12  ;;  %v319_v34 = vadd.f32 %v2660_v4, %v293_v44  ;;  %v333_v41 = vmax.f32 %v317_v18, 0.0  ;;  %v2125_v48 = vld [vmem:[%s2479_s30 + $0x64] sm:$0xf]  ;;  %v1647_v47 = vld [vmem:[%s2479_s30 + $0x70] sm:$0xf0] }
  0x51   : > { %1213 = vmatpush.bf16.msrb.mxu1 %v1810_v60  ;;  %v337_v40 = vmax.f32 %v321_v25, 0.0  ;;  %v334_v43 = vmax.f32 %v318_v26, 0.0  ;;  %v338_v15 = vmax.f32 %v322_v27, 0.0  ;;  %v1666_v45 = vor.u32 %v2129_v13, %v1663_v14  ;;  %v2031_v49 = vld [vmem:[%s2479_s30 + $0x370] sm:$0xf0] }
  0x52   : > { %v323_v31 = vadd.f32 %v2660_v4, %v297_v33  ;;  %v335_v46 = vmax.f32 %v319_v34, 0.0  ;;  %1251 = vmatpush.bf16.msrb.mxu3 %v2066_v0  ;;  %v2050_v19 = vor.u32 %v2225_v21, %v2047_v22  ;;  %v1906_v32 = vor.u32 %v2189_v28, %v1903_v35  ;;  %v2185_v4 = vld [vmem:[%s2479_s30 + $0x244] sm:$0xf]  ;;  %v1887_v53 = vld [vmem:[%s2479_s30 + $0x250] sm:$0xf0] }
  0x53   : > { %v2772_v50 = vpack.c.bf16 %v336_v29, %v332_v37  ;;  %v1778_v52 = vor.u32 %v2157_v38, %v1775_v16  ;;  %v2776_v54 = vpack.c.bf16 %v337_v40, %v333_v41  ;;  %v2778_v55 = vpack.c.bf16 %v338_v15, %v334_v43  ;;  %v2153_v56 = vld [vmem:[%s2479_s30 + $0x144] sm:$0xf]  ;;  %v1759_v57 = vld [vmem:[%s2479_s30 + $0x150] sm:$0xf0]  ;;  %v1973_v21 = vld [vmem:[%s2479_s30 + $0x2e8] sm:$0xf] }
  0x54   : > { %1194 = vmatpush.bf16.msrb.mxu0 %v1682_v59  ;;  %1233 = vmatpush.bf16.msrb.mxu2 %v1922_v8  ;;  %v339_v51 = vmax.f32 %v323_v31, 0.0  ;;  %v1650_v59 = vor.u32 %v2125_v48, %v1647_v47  ;;  %v2034_v60 = vor.u32 %v2221_v42, %v2031_v49  ;;  %v1890_v61 = vor.u32 %v2185_v4, %v1887_v53  ;;  %v2121_v62 = vld [vmem:[%s2479_s30 + $0x44] sm:$0xf]  ;;  %v1631_v63 = vld [vmem:[%s2479_s30 + $0x50] sm:$0xf0] }
  0x55   : > { %1214 = vmatpush.bf16.msrb.mxu1 %v1794_v17  ;;  %v2217_v0 = vld [vmem:[%s2479_s30 + $0x344] sm:$0xf]  ;;  %v1762_v1 = vor.u32 %v2153_v56, %v1759_v57  ;;  %v2015_v2 = vld [vmem:[%s2479_s30 + $0x350] sm:$0xf0]  ;;  %v1634_v8 = vor.u32 %v2121_v62, %v1631_v63  ;;  %v2208_v22 = vld [vmem:[%s2479_s30 + $0x2f4] sm:$0xf0] }
  0x56   : > { %v2782_v58 = vpack.c.bf16 %v339_v51, %v335_v46  ;;  %1252 = vmatpush.bf16.msrb.mxu3 %v2050_v19  ;;  %v2181_v3 = vld [vmem:[%s2479_s30 + $0x224] sm:$0xf]  ;;  %v1871_v5 = vld [vmem:[%s2479_s30 + $0x230] sm:$0xf0]  ;;  %v2018_v9 = vor.u32 %v2217_v0, %v2015_v2  ;;  %v1845_v27 = vld [vmem:[%s2479_s30 + $0x1e8] sm:$0xf]  ;;  %v1974_v41 = vor.u32 %v2208_v22, %v1973_v21 }
  0x57   : > { %v2149_v6 = vld [vmem:[%s2479_s30 + $0x124] sm:$0xf]  ;;  %v1743_v7 = vld [vmem:[%s2479_s30 + $0x130] sm:$0xf0]  ;;  %v1874_v10 = vor.u32 %v2181_v3, %v1871_v5  ;;  %v2176_v28 = vld [vmem:[%s2479_s30 + $0x1f4] sm:$0xf0] }
  0x58   : > { %1195 = vmatpush.bf16.msrb.mxu0 %v1666_v45  ;;  %1234 = vmatpush.bf16.msrb.mxu2 %v1906_v32  ;;  %v2117_v36 = vld [vmem:[%s2479_s30 + $0x24] sm:$0xf]  ;;  %v1615_v11 = vld [vmem:[%s2479_s30 + $0x30] sm:$0xf0]  ;;  %v1746_v14 = vor.u32 %v2149_v6, %v1743_v7  ;;  %v1717_v40 = vld [vmem:[%s2479_s30 + $0xe8] sm:$0xf]  ;;  %v1846_v16 = vor.u32 %v2176_v28, %v1845_v27 }
  0x59   : > { %1215 = vmatpush.bf16.msrb.mxu1 %v1778_v52  ;;  %v2213_v12 = vld [vmem:[%s2479_s30 + $0x324] sm:$0xf]  ;;  %v1999_v13 = vld [vmem:[%s2479_s30 + $0x330] sm:$0xf0]  ;;  %v1618_v25 = vor.u32 %v2117_v36, %v1615_v11  ;;  %v2144_v43 = vld [vmem:[%s2479_s30 + $0xf4] sm:$0xf0] }
  0x5a   : > { %1129 = vmatmul.bf16.gmra.mxu0 %v2772_v50  ;;  %1148 = vmatmul.bf16.gmra.mxu1 %v2776_v54  ;;  %v2177_v17 = vld [vmem:[%s2479_s30 + $0x204] sm:$0xf]  ;;  %v1855_v39 = vld [vmem:[%s2479_s30 + $0x210] sm:$0xf0]  ;;  %v2002_v37 = vor.u32 %v2213_v12, %v1999_v13  ;;  %v2101_v15 = vld [vmem:[%s2479_s30 + $0x3e8] sm:$0xf]  ;;  %v1718_v32 = vor.u32 %v2144_v43, %v1717_v40 }
  0x5b   : > { %1167 = vmatmul.bf16.gmra.mxu2 %v2778_v55  ;;  %1186 = vmatmul.bf16.gmra.mxu3 %v2782_v58  ;;  %v2145_v18 = vld [vmem:[%s2479_s30 + $0x104] sm:$0xf]  ;;  %v1727_v44 = vld [vmem:[%s2479_s30 + $0x110] sm:$0xf0]  ;;  %v1858_v29 = vor.u32 %v2177_v17, %v1855_v39  ;;  %v2240_v45 = vld [vmem:[%s2479_s30 + $0x3f4] sm:$0xf0] }
  0x5c   : > { %1196 = vmatpush.bf16.msrb.mxu0 %v1650_v59  ;;  %1253 = vmatpush.bf16.msrb.mxu3 %v2034_v60  ;;  %v2113_v26 = vld [vmem:[%s2479_s30 + $0x4] sm:$0xf]  ;;  %v1599_v33 = vld [vmem:[%s2479_s30 + $0x10] sm:$0xf0]  ;;  %v1730_v38 = vor.u32 %v2145_v18, %v1727_v44  ;;  %v1957_v31 = vld [vmem:[%s2479_s30 + $0x2c8] sm:$0xf]  ;;  %v2102_v49 = vor.u32 %v2240_v45, %v2101_v15 }
  0x5d   : > { %1235 = vmatpush.bf16.msrb.mxu2 %v1890_v61  ;;  %1216 = vmatpush.bf16.msrb.mxu1 %v1762_v1  ;;  %v2209_v34 = vld [vmem:[%s2479_s30 + $0x304] sm:$0xf]  ;;  %v1983_v35 = vld [vmem:[%s2479_s30 + $0x310] sm:$0xf0]  ;;  %v2204_v46 = vld [vmem:[%s2479_s30 + $0x2d4] sm:$0xf0]  ;;  %v1602_v48 = vor.u32 %v2113_v26, %v1599_v33 }
  0x5e   : > { %v1986_v19 = vor.u32 %v2209_v34, %v1983_v35  ;;  %v1701_v47 = vld [vmem:[%s2479_s30 + $0xc8] sm:$0xf]  ;;  %v2140_v42 = vld [vmem:[%s2479_s30 + $0xd4] sm:$0xf0]  ;;  %v1958_v51 = vor.u32 %v2204_v46, %v1957_v31 }
  0x5f   : > { %v1829_v52 = vld [vmem:[%s2479_s30 + $0x1c8] sm:$0xf]  ;;  %v2172_v4 = vld [vmem:[%s2479_s30 + $0x1d4] sm:$0xf0]  ;;  %v1702_v60 = vor.u32 %v2140_v42, %v1701_v47 }
  0x60   : > { %1197 = vmatpush.bf16.msrb.mxu0 %v1634_v8  ;;  %1254 = vmatpush.bf16.msrb.mxu3 %v2018_v9  ;;  %v2085_v53 = vld [vmem:[%s2479_s30 + $0x3c8] sm:$0xf]  ;;  %v2236_v56 = vld [vmem:[%s2479_s30 + $0x3d4] sm:$0xf0]  ;;  %v1830_v61 = vor.u32 %v2172_v4, %v1829_v52 }
  0x61   : > { %1236 = vmatpush.bf16.msrb.mxu2 %v1874_v10  ;;  %1217 = vmatpush.bf16.msrb.mxu1 %v1746_v14  ;;  %v1941_v57 = vld [vmem:[%s2479_s30 + $0x2a8] sm:$0xf]  ;;  %v2200_v59 = vld [vmem:[%s2479_s30 + $0x2b4] sm:$0xf0]  ;;  %v2086_v0 = vor.u32 %v2236_v56, %v2085_v53 }
  0x62   : > { %v1685_v62 = vld [vmem:[%s2479_s30 + $0xa8] sm:$0xf]  ;;  %v2136_v63 = vld [vmem:[%s2479_s30 + $0xb4] sm:$0xf0]  ;;  %v1942_v1 = vor.u32 %v2200_v59, %v1941_v57 }
  0x63   : > { %v1813_v2 = vld [vmem:[%s2479_s30 + $0x1a8] sm:$0xf]  ;;  %v2168_v3 = vld [vmem:[%s2479_s30 + $0x1b4] sm:$0xf0]  ;;  %v1686_v36 = vor.u32 %v2136_v63, %v1685_v62 }
  0x64   : > { %1198 = vmatpush.bf16.msrb.mxu0 %v1618_v25  ;;  %1255 = vmatpush.bf16.msrb.mxu3 %v2002_v37  ;;  %v2069_v5 = vld [vmem:[%s2479_s30 + $0x3a8] sm:$0xf]  ;;  %v2232_v6 = vld [vmem:[%s2479_s30 + $0x3b4] sm:$0xf0]  ;;  %v1814_v9 = vor.u32 %v2168_v3, %v1813_v2 }
  0x65   : > { %1237 = vmatpush.bf16.msrb.mxu2 %v1858_v29  ;;  %1218 = vmatpush.bf16.msrb.mxu1 %v1730_v38  ;;  %v1925_v7 = vld [vmem:[%s2479_s30 + $0x288] sm:$0xf]  ;;  %v2196_v8 = vld [vmem:[%s2479_s30 + $0x294] sm:$0xf0]  ;;  %v2070_v12 = vor.u32 %v2232_v6, %v2069_v5 }
  0x66   : > { %v1669_v10 = vld [vmem:[%s2479_s30 + $0x88] sm:$0xf]  ;;  %v2132_v11 = vld [vmem:[%s2479_s30 + $0x94] sm:$0xf0]  ;;  %v1926_v13 = vor.u32 %v2196_v8, %v1925_v7 }
  0x67   : > { %v1797_v14 = vld [vmem:[%s2479_s30 + $0x188] sm:$0xf]  ;;  %v2164_v17 = vld [vmem:[%s2479_s30 + $0x194] sm:$0xf0]  ;;  %v1670_v22 = vor.u32 %v2132_v11, %v1669_v10 }
  0x68   : > { %1199 = vmatpush.bf16.msrb.mxu0 %v1602_v48  ;;  %1256 = vmatpush.bf16.msrb.mxu3 %v1986_v19  ;;  %v2053_v39 = vld [vmem:[%s2479_s30 + $0x388] sm:$0xf]  ;;  %v2228_v18 = vld [vmem:[%s2479_s30 + $0x394] sm:$0xf0]  ;;  %v1798_v25 = vor.u32 %v2164_v17, %v1797_v14  ;;  %v1719_v14 = vld [vmem:[%s2479_s30 + $0xf8] sm:$0xf0] }
  0x69   : > { %1306 = vmatpush.bf16.msra.mxu2 %v1974_v41  ;;  %1287 = vmatpush.bf16.msra.mxu1 %v1846_v16  ;;  %v1909_v44 = vld [vmem:[%s2479_s30 + $0x268] sm:$0xf]  ;;  %v2192_v21 = vld [vmem:[%s2479_s30 + $0x274] sm:$0xf0]  ;;  %v2054_v28 = vor.u32 %v2228_v18, %v2053_v39  ;;  %v2174_v17 = vld [vmem:[%s2479_s30 + $0x1ec] sm:$0xf] }
  0x6a   : > { %1219 = vmatmul.bf16.vlgmr.msrb.gmra.mxu1 %v2671_v24  ;;  %v1653_v26 = vld [vmem:[%s2479_s30 + $0x68] sm:$0xf]  ;;  %v2128_v27 = vld [vmem:[%s2479_s30 + $0x74] sm:$0xf0]  ;;  %v1910_v37 = vor.u32 %v2192_v21, %v1909_v44  ;;  %v1847_v39 = vld [vmem:[%s2479_s30 + $0x1f8] sm:$0xf0] }
  0x6b   : > { %1200 = vmatmul.bf16.vlgmr.msrb.gmra.mxu0 %v2669_v23  ;;  %1238 = vmatmul.bf16.vlgmr.msrb.gmra.mxu2 %v2686_v30  ;;  %v1781_v29 = vld [vmem:[%s2479_s30 + $0x168] sm:$0xf]  ;;  %v2160_v33 = vld [vmem:[%s2479_s30 + $0x174] sm:$0xf0]  ;;  %v1654_v40 = vor.u32 %v2128_v27, %v1653_v26  ;;  %v2238_v18 = vld [vmem:[%s2479_s30 + $0x3ec] sm:$0xf] }
  0x6c   : > { %1268 = vmatpush.bf16.msra.mxu0 %v1718_v32  ;;  %1325 = vmatpush.bf16.msra.mxu3 %v2102_v49  ;;  %v2037_v34 = vld [vmem:[%s2479_s30 + $0x368] sm:$0xf]  ;;  %v2224_v35 = vld [vmem:[%s2479_s30 + $0x374] sm:$0xf0]  ;;  %v1782_v43 = vor.u32 %v2160_v33, %v1781_v29  ;;  %v2103_v44 = vld [vmem:[%s2479_s30 + $0x3f8] sm:$0xf0] }
  0x6d   : > { %1307 = vmatpush.bf16.msra.mxu2 %v1958_v51  ;;  %1257 = vmatmul.bf16.vlgmr.msrb.gmra.mxu3 %v2696_v20  ;;  %v1893_v38 = vld [vmem:[%s2479_s30 + $0x248] sm:$0xf]  ;;  %v2188_v41 = vld [vmem:[%s2479_s30 + $0x254] sm:$0xf0]  ;;  %v2038_v45 = vor.u32 %v2224_v35, %v2037_v34  ;;  %v1959_v26 = vld [vmem:[%s2479_s30 + $0x2d8] sm:$0xf0]  ;;  %v2106_v29 = vor.u32 %v2238_v18, %v2103_v44 }
  0x6e   : > { %1288 = vmatpush.bf16.msra.mxu1 %v1830_v61  ;;  %v1637_v15 = vld [vmem:[%s2479_s30 + $0x48] sm:$0xf]  ;;  %v2124_v16 = vld [vmem:[%s2479_s30 + $0x54] sm:$0xf0]  ;;  %v1894_v31 = vor.u32 %v2188_v41, %v1893_v38  ;;  %v2138_v33 = vld [vmem:[%s2479_s30 + $0xcc] sm:$0xf] }
  0x6f   : > { %v1765_v46 = vld [vmem:[%s2479_s30 + $0x148] sm:$0xf]  ;;  %v2156_v48 = vld [vmem:[%s2479_s30 + $0x154] sm:$0xf0]  ;;  %v1638_v49 = vor.u32 %v2124_v16, %v1637_v15  ;;  %v1703_v34 = vld [vmem:[%s2479_s30 + $0xd8] sm:$0xf0] }
  0x70   : > { %1269 = vmatpush.bf16.msra.mxu0 %v1702_v60  ;;  %1326 = vmatpush.bf16.msra.mxu3 %v2086_v0  ;;  %v2021_v19 = vld [vmem:[%s2479_s30 + $0x348] sm:$0xf]  ;;  %v2220_v32 = vld [vmem:[%s2479_s30 + $0x354] sm:$0xf0]  ;;  %v1766_v51 = vor.u32 %v2156_v48, %v1765_v46  ;;  %v2206_v0 = vld [vmem:[%s2479_s30 + $0x2ec] sm:$0xf] }
  0x71   : > { %1308 = vmatpush.bf16.msra.mxu2 %v1942_v1  ;;  %v1877_v47 = vld [vmem:[%s2479_s30 + $0x228] sm:$0xf]  ;;  %v2184_v42 = vld [vmem:[%s2479_s30 + $0x234] sm:$0xf0]  ;;  %v2022_v53 = vor.u32 %v2220_v32, %v2021_v19  ;;  %v1975_v1 = vld [vmem:[%s2479_s30 + $0x2f8] sm:$0xf0] }
  0x72   : > { %1289 = vmatpush.bf16.msra.mxu1 %v1814_v9  ;;  %v1621_v52 = vld [vmem:[%s2479_s30 + $0x28] sm:$0xf]  ;;  %v2120_v4 = vld [vmem:[%s2479_s30 + $0x34] sm:$0xf0]  ;;  %v1878_v56 = vor.u32 %v2184_v42, %v1877_v47  ;;  %v2170_v38 = vld [vmem:[%s2479_s30 + $0x1cc] sm:$0xf] }
  0x73   : > { %v1749_v57 = vld [vmem:[%s2479_s30 + $0x128] sm:$0xf]  ;;  %v2152_v59 = vld [vmem:[%s2479_s30 + $0x134] sm:$0xf0]  ;;  %v1622_v2 = vor.u32 %v2120_v4, %v1621_v52  ;;  %v1831_v41 = vld [vmem:[%s2479_s30 + $0x1d8] sm:$0xf0] }
  0x74   : > { %1270 = vmatpush.bf16.msra.mxu0 %v1686_v36  ;;  %1327 = vmatpush.bf16.msra.mxu3 %v2070_v12  ;;  %v2005_v60 = vld [vmem:[%s2479_s30 + $0x328] sm:$0xf]  ;;  %v2216_v61 = vld [vmem:[%s2479_s30 + $0x334] sm:$0xf0]  ;;  %v1750_v3 = vor.u32 %v2152_v59, %v1749_v57  ;;  %v1978_v12 = vor.u32 %v2206_v0, %v1975_v1  ;;  %v2087_v15 = vld [vmem:[%s2479_s30 + $0x3d8] sm:$0xf0]  ;;  %v1834_v48 = vor.u32 %v2170_v38, %v1831_v41 }
  0x75   : > { %1309 = vmatpush.bf16.msra.mxu2 %v1926_v13  ;;  %v1861_v62 = vld [vmem:[%s2479_s30 + $0x208] sm:$0xf]  ;;  %v2180_v63 = vld [vmem:[%s2479_s30 + $0x214] sm:$0xf0]  ;;  %v2006_v8 = vor.u32 %v2216_v61, %v2005_v60  ;;  %v2142_v13 = vld [vmem:[%s2479_s30 + $0xec] sm:$0xf] }
  0x76   : > { %1290 = vmatpush.bf16.msra.mxu1 %v1798_v25  ;;  %v1605_v5 = vld [vmem:[%s2479_s30 + $0x8] sm:$0xf]  ;;  %v2116_v6 = vld [vmem:[%s2479_s30 + $0x14] sm:$0xf0]  ;;  %v1862_v36 = vor.u32 %v2180_v63, %v1861_v62  ;;  %v2202_v25 = vld [vmem:[%s2479_s30 + $0x2cc] sm:$0xf] }
  0x77   : > { %v1733_v7 = vld [vmem:[%s2479_s30 + $0x108] sm:$0xf]  ;;  %v2148_v9 = vld [vmem:[%s2479_s30 + $0x114] sm:$0xf0]  ;;  %v1606_v21 = vor.u32 %v2116_v6, %v1605_v5  ;;  %v1962_v35 = vor.u32 %v2202_v25, %v1959_v26  ;;  %v2198_v16 = vld [vmem:[%s2479_s30 + $0x2ac] sm:$0xf] }
  0x78   : > { %1271 = vmatpush.bf16.msra.mxu0 %v1670_v22  ;;  %1328 = vmatpush.bf16.msra.mxu3 %v2054_v28  ;;  %v1989_v10 = vld [vmem:[%s2479_s30 + $0x308] sm:$0xf]  ;;  %v2212_v11 = vld [vmem:[%s2479_s30 + $0x314] sm:$0xf0]  ;;  %v1734_v22 = vor.u32 %v2148_v9, %v1733_v7  ;;  %v1722_v28 = vor.u32 %v2142_v13, %v1719_v14  ;;  %v1687_v46 = vld [vmem:[%s2479_s30 + $0xb8] sm:$0xf0] }
  0x79   : > { %1310 = vmatpush.bf16.msra.mxu2 %v1910_v37  ;;  %v1990_v27 = vor.u32 %v2212_v11, %v1989_v10  ;;  %v1850_v37 = vor.u32 %v2174_v17, %v1847_v39  ;;  %v2166_v32 = vld [vmem:[%s2479_s30 + $0x1ac] sm:$0xf]  ;;  %v1815_v47 = vld [vmem:[%s2479_s30 + $0x1b8] sm:$0xf0] }
  0x7a   : > { %1291 = vmatpush.bf16.msra.mxu1 %v1782_v43  ;;  %v2234_v43 = vld [vmem:[%s2479_s30 + $0x3cc] sm:$0xf]  ;;  %v2071_v52 = vld [vmem:[%s2479_s30 + $0x3b8] sm:$0xf0]  ;;  %v1818_v59 = vor.u32 %v2166_v32, %v1815_v47 }
  0x7b   : > { %1205 = vmatmul.bf16.gmra.mxu0 %v2772_v50  ;;  %1224 = vmatmul.bf16.gmra.mxu1 %v2776_v54  ;;  %v2090_v19 = vor.u32 %v2234_v43, %v2087_v15  ;;  %v2194_v4 = vld [vmem:[%s2479_s30 + $0x28c] sm:$0xf]  ;;  %v1671_v57 = vld [vmem:[%s2479_s30 + $0x98] sm:$0xf0] }
  0x7c   : > { %1272 = vmatpush.bf16.msra.mxu0 %v1654_v40  ;;  %1329 = vmatpush.bf16.msra.mxu3 %v2038_v45  ;;  %v1706_v40 = vor.u32 %v2138_v33, %v1703_v34  ;;  %v1943_v45 = vld [vmem:[%s2479_s30 + $0x2b8] sm:$0xf0]  ;;  %v2162_v61 = vld [vmem:[%s2479_s30 + $0x18c] sm:$0xf] }
  0x7d   : > { %1311 = vmatpush.bf16.msra.mxu2 %v1894_v31  ;;  %1262 = vmatmul.bf16.gmra.mxu3 %v2782_v58  ;;  %v2134_v31 = vld [vmem:[%s2479_s30 + $0xac] sm:$0xf]  ;;  %v1946_v42 = vor.u32 %v2198_v16, %v1943_v45  ;;  %v1799_v62 = vld [vmem:[%s2479_s30 + $0x198] sm:$0xf0] }
  0x7e   : > { %1243 = vmatmul.bf16.gmra.mxu2 %v2778_v55  ;;  %1292 = vmatpush.bf16.msra.mxu1 %v1766_v51  ;;  %v2230_v51 = vld [vmem:[%s2479_s30 + $0x3ac] sm:$0xf]  ;;  %v1911_v5 = vld [vmem:[%s2479_s30 + $0x278] sm:$0xf0] }
  0x7f   : > { %v2074_v60 = vor.u32 %v2230_v51, %v2071_v52  ;;  %v2226_v1 = vld [vmem:[%s2479_s30 + $0x38c] sm:$0xf]  ;;  %v1655_v7 = vld [vmem:[%s2479_s30 + $0x78] sm:$0xf0] }
  0x80   : > { %1273 = vmatpush.bf16.msra.mxu0 %v1638_v49  ;;  %1330 = vmatpush.bf16.msra.mxu3 %v2022_v53  ;;  %v1690_v49 = vor.u32 %v2134_v31, %v1687_v46  ;;  %v1927_v53 = vld [vmem:[%s2479_s30 + $0x298] sm:$0xf0]  ;;  %v2126_v6 = vld [vmem:[%s2479_s30 + $0x6c] sm:$0xf] }
  0x81   : > { %1312 = vmatpush.bf16.msra.mxu2 %v1878_v56  ;;  %v2130_v56 = vld [vmem:[%s2479_s30 + $0x8c] sm:$0xf]  ;;  %v1930_v63 = vor.u32 %v2194_v4, %v1927_v53  ;;  %v1783_v10 = vld [vmem:[%s2479_s30 + $0x178] sm:$0xf0] }
  0x82   : > { %1293 = vmatpush.bf16.msra.mxu1 %v1750_v3  ;;  %v1674_v0 = vor.u32 %v2130_v56, %v1671_v57  ;;  %v2190_v3 = vld [vmem:[%s2479_s30 + $0x26c] sm:$0xf]  ;;  %v2039_v14 = vld [vmem:[%s2479_s30 + $0x378] sm:$0xf0] }
  0x83   : > { %v2158_v9 = vld [vmem:[%s2479_s30 + $0x16c] sm:$0xf]  ;;  %v1914_v11 = vor.u32 %v2190_v3, %v1911_v5  ;;  %v1895_v39 = vld [vmem:[%s2479_s30 + $0x258] sm:$0xf0] }
  0x84   : > { %1274 = vmatpush.bf16.msra.mxu0 %v1622_v2  ;;  %1331 = vmatpush.bf16.msra.mxu3 %v2006_v8  ;;  %v2055_v2 = vld [vmem:[%s2479_s30 + $0x398] sm:$0xf0]  ;;  %v1802_v8 = vor.u32 %v2162_v61, %v1799_v62  ;;  %v2222_v13 = vld [vmem:[%s2479_s30 + $0x36c] sm:$0xf] }
  0x85   : > { %1313 = vmatpush.bf16.msra.mxu2 %v1862_v36  ;;  %v2058_v36 = vor.u32 %v2226_v1, %v2055_v2  ;;  %v2186_v17 = vld [vmem:[%s2479_s30 + $0x24c] sm:$0xf]  ;;  %v1639_v44 = vld [vmem:[%s2479_s30 + $0x58] sm:$0xf0] }
  0x86   : > { %1294 = vmatpush.bf16.msra.mxu1 %v1734_v22  ;;  %v2122_v18 = vld [vmem:[%s2479_s30 + $0x4c] sm:$0xf]  ;;  %v2042_v22 = vor.u32 %v2222_v13, %v2039_v14  ;;  %v1767_v26 = vld [vmem:[%s2479_s30 + $0x158] sm:$0xf0] }
  0x87   : > { %v2154_v25 = vld [vmem:[%s2479_s30 + $0x14c] sm:$0xf]  ;;  %v1879_v34 = vld [vmem:[%s2479_s30 + $0x238] sm:$0xf0] }
  0x88   : > { %1275 = vmatpush.bf16.msra.mxu0 %v1606_v21  ;;  %1332 = vmatpush.bf16.msra.mxu3 %v1990_v27  ;;  %v1786_v21 = vor.u32 %v2158_v9, %v1783_v10  ;;  %v1898_v27 = vor.u32 %v2186_v17, %v1895_v39  ;;  %v2182_v33 = vld [vmem:[%s2479_s30 + $0x22c] sm:$0xf]  ;;  %v1623_v38 = vld [vmem:[%s2479_s30 + $0x38] sm:$0xf0]  ;;  %v1770_v41 = vor.u32 %v2154_v25, %v1767_v26 }
  0x89   : > { %1382 = vmatpush.bf16.msrb.mxu2 %v1978_v12  ;;  %v1658_v12 = vor.u32 %v2126_v6, %v1655_v7  ;;  %v2150_v43 = vld [vmem:[%s2479_s30 + $0x12c] sm:$0xf]  ;;  %v1751_v15 = vld [vmem:[%s2479_s30 + $0x138] sm:$0xf0]  ;;  %v1882_v16 = vor.u32 %v2182_v33, %v1879_v34 }
  0x8a   : > { %1363 = vmatpush.bf16.msrb.mxu1 %v1850_v37  ;;  %v2218_v37 = vld [vmem:[%s2479_s30 + $0x34c] sm:$0xf]  ;;  %v2007_v46 = vld [vmem:[%s2479_s30 + $0x338] sm:$0xf0] }
  0x8b   : > { %1276 = vmatmul.bf16.vlgmr.msra.gmra.mxu0 %v2669_v23  ;;  %1295 = vmatmul.bf16.vlgmr.msra.gmra.mxu1 %v2671_v24  ;;  %v2214_v31 = vld [vmem:[%s2479_s30 + $0x32c] sm:$0xf]  ;;  %v1607_v47 = vld [vmem:[%s2479_s30 + $0x18] sm:$0xf0] }
  0x8c   : > { %1344 = vmatpush.bf16.msrb.mxu0 %v1722_v28  ;;  %1401 = vmatpush.bf16.msrb.mxu3 %v2106_v29  ;;  %v1642_v28 = vor.u32 %v2122_v18, %v1639_v44  ;;  %v2023_v29 = vld [vmem:[%s2479_s30 + $0x358] sm:$0xf0]  ;;  %v2114_v32 = vld [vmem:[%s2479_s30 + $0xc] sm:$0xf] }
  0x8d   : > { %1383 = vmatpush.bf16.msrb.mxu2 %v1962_v35  ;;  %1333 = vmatmul.bf16.vlgmr.msra.gmra.mxu3 %v2696_v20  ;;  %v2118_v35 = vld [vmem:[%s2479_s30 + $0x2c] sm:$0xf]  ;;  %v1610_v4 = vor.u32 %v2114_v32, %v1607_v47  ;;  %v1735_v53 = vld [vmem:[%s2479_s30 + $0x118] sm:$0xf0] }
  0x8e   : > { %1314 = vmatmul.bf16.vlgmr.msra.gmra.mxu2 %v2686_v30  ;;  %1364 = vmatpush.bf16.msrb.mxu1 %v1834_v48  ;;  %v1626_v45 = vor.u32 %v2118_v35, %v1623_v38  ;;  %v2178_v48 = vld [vmem:[%s2479_s30 + $0x20c] sm:$0xf]  ;;  %v1991_v57 = vld [vmem:[%s2479_s30 + $0x318] sm:$0xf0] }
  0x8f   : > { %v2146_v51 = vld [vmem:[%s2479_s30 + $0x10c] sm:$0xf] }
  0x90   : > { %1345 = vmatpush.bf16.msrb.mxu0 %v1706_v40  ;;  %1402 = vmatpush.bf16.msrb.mxu3 %v2090_v19  ;;  %v2026_v40 = vor.u32 %v2218_v37, %v2023_v29  ;;  %v1863_v19 = vld [vmem:[%s2479_s30 + $0x218] sm:$0xf0]  ;;  %v2210_v56 = vld [vmem:[%s2479_s30 + $0x30c] sm:$0xf]  ;;  %s1594_s30 = sshll.u32 %s2475_s21, 7  ;;  %s2241_s21 = sshll.u32 (%p2460_p9), %s2372_s18, 5 }
  0x91   : > { %1384 = vmatpush.bf16.msrb.mxu2 %v1946_v42  ;;  %v1754_v42 = vor.u32 %v2150_v43, %v1751_v15  ;;  %v1866_v52 = vor.u32 %v2178_v48, %v1863_v19  ;;  %s2961_s6 = scalar_lea.vmem [#allocation4], %s1594_s30  ;;  %s1448_s9 = scalar_lea.vmem (%p2460_p9), %s3023_s4, %s2241_s21 }
  0x92   : > { %1365 = vmatpush.bf16.msrb.mxu1 %v1818_v59  ;;  %v1738_v59 = vor.u32 %v2146_v51, %v1735_v53 }
  0x94   : > { %1346 = vmatpush.bf16.msrb.mxu0 %v1690_v49  ;;  %1403 = vmatpush.bf16.msrb.mxu3 %v2074_v60  ;;  %v2010_v49 = vor.u32 %v2214_v31, %v2007_v46  ;;  %v1994_v60 = vor.u32 %v2210_v56, %v1991_v57 }
  0x95   : > { %1385 = vmatpush.bf16.msrb.mxu2 %v1930_v63 }
  0x96   : > { %1366 = vmatpush.bf16.msrb.mxu1 %v1802_v8 }
  0x98   : > { %1347 = vmatpush.bf16.msrb.mxu0 %v1674_v0  ;;  %1404 = vmatpush.bf16.msrb.mxu3 %v2058_v36 }
  0x99   : > { %1386 = vmatpush.bf16.msrb.mxu2 %v1914_v11 }
  0x9a   : > { %1367 = vmatpush.bf16.msrb.mxu1 %v1786_v21 }
  0x9b   : > { %1281 = vmatmul.bf16.gmra.mxu0 %v2772_v50  ;;  %1300 = vmatmul.bf16.gmra.mxu1 %v2776_v54 }
  0x9c   : > { %1348 = vmatpush.bf16.msrb.mxu0 %v1658_v12  ;;  %1405 = vmatpush.bf16.msrb.mxu3 %v2042_v22 }
  0x9d   : > { %1387 = vmatpush.bf16.msrb.mxu2 %v1898_v27  ;;  %1338 = vmatmul.bf16.gmra.mxu3 %v2782_v58 }
  0x9e   : > { %1319 = vmatmul.bf16.gmra.mxu2 %v2778_v55  ;;  %1368 = vmatpush.bf16.msrb.mxu1 %v1770_v41 }
  0xa0   : > { %1349 = vmatpush.bf16.msrb.mxu0 %v1642_v28  ;;  %1406 = vmatpush.bf16.msrb.mxu3 %v2026_v40 }
  0xa1   : > { %1388 = vmatpush.bf16.msrb.mxu2 %v1882_v16 }
  0xa2   : > { %1369 = vmatpush.bf16.msrb.mxu1 %v1754_v42 }
  0xa4   : > { %1350 = vmatpush.bf16.msrb.mxu0 %v1626_v45  ;;  %1407 = vmatpush.bf16.msrb.mxu3 %v2010_v49 }
  0xa5   : > { %1389 = vmatpush.bf16.msrb.mxu2 %v1866_v52 }
  0xa6   : > { %1370 = vmatpush.bf16.msrb.mxu1 %v1738_v59 }
  0xa8   : > { %1351 = vmatpush.bf16.msrb.mxu0 %v1610_v4  ;;  %1408 = vmatpush.bf16.msrb.mxu3 %v1994_v60 }
  0xab   : > { %1352 = vmatmul.bf16.vlgmr.msrb.gmra.mxu0 %v2669_v23  ;;  %1371 = vmatmul.bf16.vlgmr.msrb.gmra.mxu1 %v2671_v24 }
  0xad   : > { %1409 = vmatmul.bf16.vlgmr.msrb.gmra.mxu3 %v2696_v20 }
  0xae   : > { %1390 = vmatmul.bf16.vlgmr.msrb.gmra.mxu2 %v2686_v30 }
  0xbb   : > { %1357 = vmatmul.bf16.gmra.mxu0 %v2772_v50  ;;  %1376 = vmatmul.bf16.gmra.mxu1 %v2776_v54 }
  0xbd   : > { %1414 = vmatmul.bf16.gmra.mxu3 %v2782_v58 }
  0xbe   : > { %1395 = vmatmul.bf16.gmra.mxu2 %v2778_v55 }
  0xc7   : > { %v1125_v61 = vpop.f32.mrf.mxu0  ;;  %v1144_v62 = vpop.f32.mrf.mxu1 }
  0xc8   : > { %v1145_v63 = vadd.f32 %v1144_v62, %v1125_v61 }
  0xce   : > { %v1163_v0 = vpop.f32.mrf.mxu2  ;;  %v1182_v1 = vpop.f32.mrf.mxu3 }
  0xcf   : > { %v1164_v23 = vadd.f32 %v1163_v0, %v1145_v63  ;;  %v1127_v24 = vpop.f32.mrf.mxu0  ;;  %v1146_v2 = vpop.f32.mrf.mxu1 }
  0xd0   : > { %v1147_v20 = vadd.f32 %v1146_v2, %v1127_v24 }
  0xd1   : > { %v1183_v30 = vadd.f32 %v1182_v1, %v1164_v23 }
  0xd3   : > { %1420 = vst [vmem:[%s2961_s6] sm:$0xff] %v1183_v30 }
  0xd6   : > { %v1165_v50 = vpop.f32.mrf.mxu2  ;;  %v1184_v55 = vpop.f32.mrf.mxu3 }
  0xd7   : > { %v1166_v54 = vadd.f32 %v1165_v50, %v1147_v20  ;;  %v1130_v58 = vpop.f32.mrf.mxu0  ;;  %v1149_v3 = vpop.f32.mrf.mxu1 }
  0xd8   : > { %v1150_v6 = vadd.f32 %v1149_v3, %v1130_v58 }
  0xd9   : > { %v1185_v5 = vadd.f32 %v1184_v55, %v1166_v54 }
  0xdb   : > { %1424 = vst [vmem:[%s2961_s6 + $0x20] sm:$0xff] %v1185_v5 }
  0xde   : > { %v1168_v7 = vpop.f32.mrf.mxu2  ;;  %v1187_v36 = vpop.f32.mrf.mxu3 }
  0xdf   : > { %v1169_v8 = vadd.f32 %v1168_v7, %v1150_v6  ;;  %v1132_v9 = vpop.f32.mrf.mxu0  ;;  %v1151_v10 = vpop.f32.mrf.mxu1 }
  0xe0   : > { %v1152_v12 = vadd.f32 %v1151_v10, %v1132_v9 }
  0xe1   : > { %v1188_v11 = vadd.f32 %v1187_v36, %v1169_v8 }
  0xe3   : > { %1428 = vst [vmem:[%s2961_s6 + $0x40] sm:$0xff] %v1188_v11 }
  0xe6   : > { %v1170_v13 = vpop.f32.mrf.mxu2  ;;  %v1189_v17 = vpop.f32.mrf.mxu3 }
  0xe7   : > { %v1171_v14 = vadd.f32 %v1170_v13, %v1152_v12  ;;  %v1220_v18 = vpop.f32.mrf.mxu1 }
  0xe8   : > { %v1201_v39 = vpop.f32.mrf.mxu0 }
  0xe9   : > { %v1190_v44 = vadd.f32 %v1189_v17, %v1171_v14  ;;  %v1221_v21 = vadd.f32 %v1220_v18, %v1201_v39 }
  0xeb   : > { %1432 = vst [vmem:[%s2961_s6 + $0x60] sm:$0xff] %v1190_v44 }
  0xee   : > { %v1239_v22 = vpop.f32.mrf.mxu2 }
  0xef   : > { %v1240_v26 = vadd.f32 %v1239_v22, %v1221_v21  ;;  %v1222_v28 = vpop.f32.mrf.mxu1 }
  0xf0   : > { %v1258_v25 = vpop.f32.mrf.mxu3  ;;  %v1203_v27 = vpop.f32.mrf.mxu0 }
  0xf1   : > { %v1259_v37 = vadd.f32 %v1258_v25, %v1240_v26  ;;  %v1223_v29 = vadd.f32 %v1222_v28, %v1203_v27 }
  0xf3   : > { %1421 = vst [vmem:[%s2961_s6 + $0x8] sm:$0xff] %v1259_v37 }
  0xf6   : > { %v1241_v33 = vpop.f32.mrf.mxu2 }
  0xf7   : > { %v1242_v35 = vadd.f32 %v1241_v33, %v1223_v29 }
  0xf8   : > { %v1260_v34 = vpop.f32.mrf.mxu3  ;;  %v1206_v38 = vpop.f32.mrf.mxu0 }
  0xf9   : > { %v1225_v41 = vpop.f32.mrf.mxu1  ;;  %v1261_v40 = vadd.f32 %v1260_v34, %v1242_v35 }
  0xfa   : > { %v1226_v43 = vadd.f32 %v1225_v41, %v1206_v38 }
  0xfb   : > { %1425 = vst [vmem:[%s2961_s6 + $0x28] sm:$0xff] %v1261_v40 }
 0x100   : > { %v1263_v16 = vpop.f32.mrf.mxu3  ;;  %v1208_v31 = vpop.f32.mrf.mxu0 }
 0x101   : > { %v1244_v15 = vpop.f32.mrf.mxu2  ;;  %v1227_v46 = vpop.f32.mrf.mxu1 }
 0x102   : > { %v1245_v45 = vadd.f32 %v1244_v15, %v1226_v43  ;;  %v1228_v19 = vadd.f32 %v1227_v46, %v1208_v31  ;;  %v1461_v31 = vld [vmem:[%s2961_s6] sm:$0xff] (%p2460_p9)  ;;  %v1463_v46 = vld [vmem:[%s2961_s6 + $0x8] sm:$0xff] (%p2460_p9) }
 0x103   : > { %1462 = vst [vmem:[%s1448_s9] sm:$0xff] (%p2460_p9), %v1461_v31 }
 0x104   : > { %v1264_v48 = vadd.f32 %v1263_v16, %v1245_v45  ;;  %1464 = vst [vmem:[%s1448_s9 + $0x8] sm:$0xff] (%p2460_p9), %v1463_v46 }
 0x106   : > { %1429 = vst [vmem:[%s2961_s6 + $0x48] sm:$0xff] %v1264_v48 }
 0x108   : > { %v1265_v47 = vpop.f32.mrf.mxu3  ;;  %v1277_v49 = vpop.f32.mrf.mxu0 }
 0x109   : > { %v1246_v32 = vpop.f32.mrf.mxu2  ;;  %v1296_v51 = vpop.f32.mrf.mxu1 }
 0x10a   : > { %v1247_v42 = vadd.f32 %v1246_v32, %v1228_v19  ;;  %v1297_v4 = vadd.f32 %v1296_v51, %v1277_v49  ;;  %v1469_v32 = vld [vmem:[%s2961_s6 + $0x20] sm:$0xff] (%p2460_p9) }
 0x10b   : > { %1470 = vst [vmem:[%s1448_s9 + $0x100] sm:$0xff] (%p2460_p9), %v1469_v32  ;;  %v1477_v51 = vld [vmem:[%s2961_s6 + $0x40] sm:$0xff] (%p2460_p9) }
 0x10c   : > { %v1266_v52 = vadd.f32 %v1265_v47, %v1247_v42  ;;  %v1471_v47 = vld [vmem:[%s2961_s6 + $0x28] sm:$0xff] (%p2460_p9)  ;;  %1478 = vst [vmem:[%s1448_s9 + $0x200] sm:$0xff] (%p2460_p9), %v1477_v51 }
 0x10d   : > { %1472 = vst [vmem:[%s1448_s9 + $0x108] sm:$0xff] (%p2460_p9), %v1471_v47 }
 0x10e   : > { %1433 = vst [vmem:[%s2961_s6 + $0x68] sm:$0xff] %v1266_v52  ;;  %v1479_v52 = vld [vmem:[%s2961_s6 + $0x48] sm:$0xff] (%p2460_p9) }
 0x10f   : > { %1480 = vst [vmem:[%s1448_s9 + $0x208] sm:$0xff] (%p2460_p9), %v1479_v52 }
 0x110   : > { %v1334_v56 = vpop.f32.mrf.mxu3  ;;  %v1279_v59 = vpop.f32.mrf.mxu0 }
 0x111   : > { %v1315_v53 = vpop.f32.mrf.mxu2  ;;  %v1298_v60 = vpop.f32.mrf.mxu1 }
 0x112   : > { %v1316_v57 = vadd.f32 %v1315_v53, %v1297_v4  ;;  %v1299_v62 = vadd.f32 %v1298_v60, %v1279_v59 }
 0x114   : > { %v1335_v61 = vadd.f32 %v1334_v56, %v1316_v57  ;;  %v1485_v56 = vld [vmem:[%s2961_s6 + $0x60] sm:$0xff] (%p2460_p9) }
 0x115   : > { %v1487_v57 = vld [vmem:[%s2961_s6 + $0x68] sm:$0xff] (%p2460_p9)  ;;  %1486 = vst [vmem:[%s1448_s9 + $0x300] sm:$0xff] (%p2460_p9), %v1485_v56 }
 0x116   : > { %1422 = vst [vmem:[%s2961_s6 + $0x10] sm:$0xff] %v1335_v61 }
 0x117   : > { %1488 = vst [vmem:[%s1448_s9 + $0x308] sm:$0xff] (%p2460_p9), %v1487_v57 }
 0x118   : > { %v1336_v0 = vpop.f32.mrf.mxu3  ;;  %v1282_v1 = vpop.f32.mrf.mxu0 }
 0x119   : > { %v1317_v63 = vpop.f32.mrf.mxu2  ;;  %v1301_v24 = vpop.f32.mrf.mxu1 }
 0x11a   : > { %v1318_v23 = vadd.f32 %v1317_v63, %v1299_v62  ;;  %v1302_v30 = vadd.f32 %v1301_v24, %v1282_v1 }
 0x11c   : > { %v1337_v2 = vadd.f32 %v1336_v0, %v1318_v23 }
 0x11d   : > { %v1465_v48 = vld [vmem:[%s2961_s6 + $0x10] sm:$0xff] (%p2460_p9) }
 0x11e   : > { %1426 = vst [vmem:[%s2961_s6 + $0x30] sm:$0xff] %v1337_v2 }
 0x11f   : > { %1466 = vst [vmem:[%s1448_s9 + $0x10] sm:$0xff] (%p2460_p9), %v1465_v48 }
 0x120   : > { %v1339_v50 = vpop.f32.mrf.mxu3  ;;  %v1284_v55 = vpop.f32.mrf.mxu0 }
 0x121   : > { %v1320_v20 = vpop.f32.mrf.mxu2  ;;  %v1303_v58 = vpop.f32.mrf.mxu1 }
 0x122   : > { %v1321_v54 = vadd.f32 %v1320_v20, %v1302_v30  ;;  %v1304_v5 = vadd.f32 %v1303_v58, %v1284_v55 }
 0x124   : > { %v1340_v3 = vadd.f32 %v1339_v50, %v1321_v54 }
 0x125   : > { %v1473_v42 = vld [vmem:[%s2961_s6 + $0x30] sm:$0xff] (%p2460_p9) }
 0x126   : > { %1430 = vst [vmem:[%s2961_s6 + $0x50] sm:$0xff] %v1340_v3 }
 0x127   : > { %1474 = vst [vmem:[%s1448_s9 + $0x110] sm:$0xff] (%p2460_p9), %v1473_v42 }
 0x128   : > { %v1341_v7 = vpop.f32.mrf.mxu3  ;;  %v1353_v36 = vpop.f32.mrf.mxu0 }
 0x129   : > { %v1322_v6 = vpop.f32.mrf.mxu2  ;;  %v1372_v9 = vpop.f32.mrf.mxu1 }
 0x12a   : > { %v1323_v8 = vadd.f32 %v1322_v6, %v1304_v5  ;;  %v1373_v11 = vadd.f32 %v1372_v9, %v1353_v36 }
 0x12c   : > { %v1342_v10 = vadd.f32 %v1341_v7, %v1323_v8 }
 0x12d   : > { %v1481_v4 = vld [vmem:[%s2961_s6 + $0x50] sm:$0xff] (%p2460_p9) }
 0x12e   : > { %1434 = vst [vmem:[%s2961_s6 + $0x70] sm:$0xff] %v1342_v10 }
 0x12f   : > { %1482 = vst [vmem:[%s1448_s9 + $0x210] sm:$0xff] (%p2460_p9), %v1481_v4 }
 0x130   : > { %v1410_v13 = vpop.f32.mrf.mxu3  ;;  %v1355_v17 = vpop.f32.mrf.mxu0 }
 0x131   : > { %v1391_v12 = vpop.f32.mrf.mxu2  ;;  %v1374_v39 = vpop.f32.mrf.mxu1 }
 0x132   : > { %v1392_v14 = vadd.f32 %v1391_v12, %v1373_v11  ;;  %v1375_v44 = vadd.f32 %v1374_v39, %v1355_v17 }
 0x134   : > { %v1411_v18 = vadd.f32 %v1410_v13, %v1392_v14 }
 0x135   : > { %v1489_v59 = vld [vmem:[%s2961_s6 + $0x70] sm:$0xff] (%p2460_p9) }
 0x136   : > { %1423 = vst [vmem:[%s2961_s6 + $0x18] sm:$0xff] %v1411_v18 }
 0x137   : > { %1490 = vst [vmem:[%s1448_s9 + $0x310] sm:$0xff] (%p2460_p9), %v1489_v59 }
 0x138   : > { %v1412_v22 = vpop.f32.mrf.mxu3  ;;  %v1358_v26 = vpop.f32.mrf.mxu0 }
 0x139   : > { %v1393_v21 = vpop.f32.mrf.mxu2  ;;  %v1377_v27 = vpop.f32.mrf.mxu1 }
 0x13a   : > { %v1394_v25 = vadd.f32 %v1393_v21, %v1375_v44  ;;  %v1378_v37 = vadd.f32 %v1377_v27, %v1358_v26 }
 0x13c   : > { %v1413_v28 = vadd.f32 %v1412_v22, %v1394_v25 }
 0x13d   : > { %v1467_v19 = vld [vmem:[%s2961_s6 + $0x18] sm:$0xff] (%p2460_p9) }
 0x13e   : > { %1427 = vst [vmem:[%s2961_s6 + $0x38] sm:$0xff] %v1413_v28 }
 0x13f   : > { %1468 = vst [vmem:[%s1448_s9 + $0x18] sm:$0xff] (%p2460_p9), %v1467_v19 }
 0x140   : > { %v1415_v33 = vpop.f32.mrf.mxu3  ;;  %v1360_v38 = vpop.f32.mrf.mxu0 }
 0x141   : > { %v1396_v29 = vpop.f32.mrf.mxu2  ;;  %v1379_v41 = vpop.f32.mrf.mxu1 }
 0x142   : > { %v1397_v34 = vadd.f32 %v1396_v29, %v1378_v37  ;;  %v1380_v40 = vadd.f32 %v1379_v41, %v1360_v38 }
 0x144   : > { %v1416_v35 = vadd.f32 %v1415_v33, %v1397_v34 }
 0x145   : > { %v1475_v49 = vld [vmem:[%s2961_s6 + $0x38] sm:$0xff] (%p2460_p9) }
 0x146   : > { %1431 = vst [vmem:[%s2961_s6 + $0x58] sm:$0xff] %v1416_v35 }
 0x147   : > { %1476 = vst [vmem:[%s1448_s9 + $0x118] sm:$0xff] (%p2460_p9), %v1475_v49 }
 0x148   : > { %v1417_v16 = vpop.f32.mrf.mxu3 }
 0x149   : > { %v1398_v43 = vpop.f32.mrf.mxu2 }
 0x14a   : > { %v1399_v15 = vadd.f32 %v1398_v43, %v1380_v40  ;;  %1442 = sbr.rel (!%p2460_p9) target bundleno = 343 (0x157), region = 44 }
 0x14c   : > { %v1418_v45 = vadd.f32 %v1417_v16, %v1399_v15 }
 0x14d   : > { %v1483_v53 = vld [vmem:[%s2961_s6 + $0x58] sm:$0xff] (%p2460_p9) }
 0x14e   : > { %1435 = vst [vmem:[%s2961_s6 + $0x78] sm:$0xff] %v1418_v45 }
 0x14f   : > { %1484 = vst [vmem:[%s1448_s9 + $0x218] sm:$0xff] %v1483_v53 }
 0x155   : > { %v1491_v60 = vld [vmem:[%s2961_s6 + $0x78] sm:$0xff] }
 0x156   : > { %1492 = vst [vmem:[%s1448_s9 + $0x318] sm:$0xff] %v1491_v60 }
 0x157 PF: > { %s17_s20 = sadd.s32 1, %s2380_s20   ;;  %s3027_s15 = smov %s2364_s16 }
 0x158   : > { %p14_p1 = scmp.ge.s32.totalorder %s17_s20, 10   ;;  %s3028_s16 = smov %s2368_s17 }
 0x159   : > { %s3029_s17 = smov %s2458_s27  ;;  %s3030_s18 = smov %s2376_s19 }
 0x15a   : > { %s3031_s19 = smov %s3033_s22  ;;  %16 = sbr.rel (!%p14_p1) target bundleno = 4 (0x4), region = 102 }
 0x15f   :  { %1508 = vsyncpa [#allocation3], 1 }
 0x160   :  { %1510 = vsyncpa [#allocation3 + $0x1], 1 }

// kernel: lfw_generator.12
= control target key start
LH: loop header
LB: loop body
LE: loop exit
PB: predicated region body
PF: predicated region fallthrough
CT: control target
= control target key end

     0   :  { %s362_s9 = smov 0   ;;  %s410_s0 = inlined_call_operand.vmem [shape: f32[128,256], index: 0, kind: input, shape index: {}]   ;;  %s411_s1 = inlined_call_operand.vmem [shape: f32[16,256], index: 1, kind: output, shape index: {0}]   ;;  %s412_s2 = inlined_call_operand.vmem [shape: f32[16,256], index: 2, kind: output, shape index: {1}]  }
   0x1 LB: > { %s368_s10 = sadd.s32 4294967295, %s345_s9   ;;  %p318_p0 = scmp.ge.s32.totalorder %s345_s9, 1  ;;  %s345_s9 = sphi %s362_s9, %s13_s9  }
   0x2   : > { %p117_p1 = scmp.lt.s32.totalorder %s345_s9, 3 }
   0x4   : > { %p118_p2 = pnand %p318_p0, %p117_p1 }
   0x5   : > { %s319_s11 = sshll.u32 (!%p118_p2), %s368_s10, 3  ;;  %p152_p4 = scmp.lt.s32.totalorder (!%p118_p2), %s368_s10, 1 }
   0x6   : > { %121 = sbr.rel (%p118_p2) target bundleno = 33 (0x21), region = 24  ;;  %p146_p3 = scmp.lt.s32.totalorder (!%p118_p2), %s319_s11, 15 }
   0xb   : > { %s414_s11 = smov (!%p146_p3, %s319_s11), 15  ;;  %s416_s10 = smov (!%p152_p4, %s368_s10), 1 }
   0xc   : > { %s328_s12 = sshll.u32 %s414_s11, 4  ;;  %s329_s16 = sshll.u32 %s416_s10, 4 }
   0xd   : > { %s376_s15 = scalar_lea.vmem %s410_s0, %s328_s12  ;;  %s156_s19 = scalar_lea.vmem %s411_s1, %s329_s16 }
   0xe   : > { %v162_v0 = vld [vmem:[%s376_s15] sm:$0xff]  ;;  %v164_v1 = vld [vmem:[%s376_s15 + $0x10] sm:$0xff]  ;;  %v163_v9 = vld [vmem:[%s376_s15 + $0x8] sm:$0xff]  ;;  %s161_s22 = scalar_lea.vmem %s412_s2, %s329_s16 }
   0xf   : > { %v166_v2 = vld [vmem:[%s376_s15 + $0x20] sm:$0xff]  ;;  %v168_v3 = vld [vmem:[%s376_s15 + $0x30] sm:$0xff]  ;;  %v178_v4 = vadd.f32 %v164_v1, %v162_v0  ;;  %v194_v5 = vmul.f32 %v162_v0, %v162_v0  ;;  %v196_v6 = vmul.f32 %v164_v1, %v164_v1  ;;  %v165_v12 = vld [vmem:[%s376_s15 + $0x18] sm:$0xff]  ;;  %v195_v18 = vmul.f32 %v163_v9, %v163_v9 }
  0x10   : > { %v198_v7 = vmul.f32 %v166_v2, %v166_v2  ;;  %v170_v8 = vld [vmem:[%s376_s15 + $0x40] sm:$0xff]  ;;  %v172_v10 = vld [vmem:[%s376_s15 + $0x50] sm:$0xff]  ;;  %v167_v13 = vld [vmem:[%s376_s15 + $0x28] sm:$0xff]  ;;  %v200_v14 = vmul.f32 %v168_v3, %v168_v3  ;;  %v185_v17 = vadd.f32 %v165_v12, %v163_v9  ;;  %v197_v19 = vmul.f32 %v165_v12, %v165_v12 }
  0x11   : > { %v179_v11 = vadd.f32 %v178_v4, %v166_v2  ;;  %v210_v15 = vadd.f32 %v196_v6, %v194_v5  ;;  %v169_v16 = vld [vmem:[%s376_s15 + $0x38] sm:$0xff]  ;;  %v174_v20 = vld [vmem:[%s376_s15 + $0x60] sm:$0xff]  ;;  %v202_v22 = vmul.f32 %v170_v8, %v170_v8  ;;  %v199_v24 = vmul.f32 %v167_v13, %v167_v13  ;;  %v171_v25 = vld [vmem:[%s376_s15 + $0x48] sm:$0xff] }
  0x12   : > { %v186_v26 = vadd.f32 %v185_v17, %v167_v13  ;;  %v204_v27 = vmul.f32 %v172_v10, %v172_v10  ;;  %v176_v28 = vld [vmem:[%s376_s15 + $0x70] sm:$0xff]  ;;  %v201_v31 = vmul.f32 %v169_v16, %v169_v16  ;;  %v217_v32 = vadd.f32 %v197_v19, %v195_v18  ;;  %v173_v33 = vld [vmem:[%s376_s15 + $0x58] sm:$0xff]  ;;  %v175_v40 = vld [vmem:[%s376_s15 + $0x68] sm:$0xff] }
  0x13   : > { %v180_v21 = vadd.f32 %v179_v11, %v168_v3  ;;  %v211_v23 = vadd.f32 %v210_v15, %v198_v7  ;;  %v206_v35 = vmul.f32 %v174_v20, %v174_v20  ;;  %v203_v38 = vmul.f32 %v171_v25, %v171_v25  ;;  %v177_v47 = vld [vmem:[%s376_s15 + $0x78] sm:$0xff] }
  0x14   : > { %v187_v34 = vadd.f32 %v186_v26, %v169_v16  ;;  %v218_v39 = vadd.f32 %v217_v32, %v199_v24  ;;  %v208_v42 = vmul.f32 %v176_v28, %v176_v28  ;;  %v205_v45 = vmul.f32 %v173_v33, %v173_v33 }
  0x15   : > { %v181_v29 = vadd.f32 %v180_v21, %v170_v8  ;;  %v212_v30 = vadd.f32 %v211_v23, %v200_v14  ;;  %v207_v51 = vmul.f32 %v175_v40, %v175_v40  ;;  %v209_v55 = vmul.f32 %v177_v47, %v177_v47 }
  0x16   : > { %v188_v41 = vadd.f32 %v187_v34, %v171_v25  ;;  %v219_v46 = vadd.f32 %v218_v39, %v201_v31 }
  0x17   : > { %v182_v36 = vadd.f32 %v181_v29, %v172_v10  ;;  %v213_v37 = vadd.f32 %v212_v30, %v202_v22 }
  0x18   : > { %v189_v48 = vadd.f32 %v188_v41, %v173_v33  ;;  %v220_v52 = vadd.f32 %v219_v46, %v203_v38 }
  0x19   : > { %v183_v43 = vadd.f32 %v182_v36, %v174_v20  ;;  %v214_v44 = vadd.f32 %v213_v37, %v204_v27 }
  0x1a   : > { %v190_v53 = vadd.f32 %v189_v48, %v175_v40  ;;  %v221_v56 = vadd.f32 %v220_v52, %v205_v45 }
  0x1b   : > { %v184_v49 = vadd.f32 %v183_v43, %v176_v28  ;;  %v215_v50 = vadd.f32 %v214_v44, %v206_v35 }
  0x1c   : > { %v191_v57 = vadd.f32 %v190_v53, %v177_v47  ;;  %v222_v58 = vadd.f32 %v221_v56, %v207_v51 }
  0x1d   : > { %192 = vst [vmem:[%s156_s19] sm:$0xff] %v184_v49  ;;  %v216_v54 = vadd.f32 %v215_v50, %v208_v42 }
  0x1e   : > { %193 = vst [vmem:[%s156_s19 + $0x8] sm:$0xff] %v191_v57  ;;  %v223_v59 = vadd.f32 %v222_v58, %v209_v55 }
  0x1f   : > { %224 = vst [vmem:[%s161_s22] sm:$0xff] %v216_v54 }
  0x20   : > { %225 = vst [vmem:[%s161_s22 + $0x8] sm:$0xff] %v223_v59 }
  0x21 PF: > { %s13_s9 = sadd.s32 1, %s345_s9  }
  0x22   : > { %p10_p5 = scmp.ge.s32.totalorder %s13_s9, 4  }
  0x24   :  { %12 = sbr.rel (!%p10_p5) target bundleno = 1 (0x1), region = 66 }

// kernel: lfw_generator.13
= control target key start
LH: loop header
LB: loop body
LE: loop exit
PB: predicated region body
PF: predicated region fallthrough
CT: control target
= control target key end

     0   :  { %s2058_s15 = smov 0   ;;  %s2060_s16 = smov 0   ;;  %s2862_s0 = inlined_call_operand.vmem [shape: f32[128,256], index: 0, kind: input, shape index: {}]   ;;  %s2863_s1 = inlined_call_operand.vmem [shape: f32[1,256], index: 1, kind: input, shape index: {}]   ;;  %s2864_s2 = inlined_call_operand.vmem [shape: f32[1,256], index: 2, kind: input, shape index: {}]   ;;  %s2865_s3 = inlined_call_operand.vmem [shape: bf16[256,2048], index: 3, kind: input, shape index: {}]   ;;  %s2866_s4 = inlined_call_operand.vmem [shape: f32[128,2048], index: 4, kind: output, shape index: {}]  }
   0x1   :  { %s2062_s17 = smov 0   ;;  %s2064_s18 = smov 0  }
   0x2   :  { %s2066_s19 = smov 0  }
   0x3 LB: > { %s23_s20 = sadd.s32 1, %s2027_s18  ;;  %s1615_s21 = sadd.s32 4294967295, %s2031_s19   ;;  %s2031_s19 = sphi %s2066_s19, %s14_s19   ;;  %s2027_s18 = sphi %s2064_s18, %s2871_s18   ;;  %s2023_s17 = sphi %s2062_s17, %s2870_s17   ;;  %s2019_s16 = sphi %s2060_s16, %s2869_s16   ;;  %s2015_s15 = sphi %s2058_s15, %s2868_s15  }
   0x4   : > { %p24_p0 = scmp.ge.s32.totalorder %s23_s20, 4  ;;  %p108_p1 = scmp.ne.s32.totalorder %s2019_s16, %s2015_s15 }
   0x5   : > { %p109_p2 = scmp.eq.s32.totalorder %s2031_s19, 0  ;;  %p140_p4 = scmp.eq.s32.totalorder %s1615_s21, 3 }
   0x6   : > { %s2873_s20 = smov (%p24_p0, %s23_s20), 0  ;;  %s101_s23 = sadd.s32 1, %s2019_s16 }
   0x7   : > { %p110_p3 = por %p109_p2, %p108_p1  ;;  %s98_s22 = ssub.s32 %s2027_s18, %s2873_s20 }
   0x8   : > { %p99_p5 = scmp.eq.s32.totalorder %s98_s22, 0  ;;  %p2093_p6 = por %p140_p4, %p108_p1 }
   0x9   : > { %p1619_p7 = scmp.ge.s32.totalorder %s2031_s19, 4 }
   0xa   : > { %s2098_s25 = scalar_select %p99_p5, %s2019_s16, %s101_s23  }
   0xb   : > { %178 = sbr.rel (%p1619_p7) target bundleno = 84 (0x54), region = 28 }
  0x10   : > { %181 = sbr.rel (!%p110_p3) target bundleno = 84 (0x54), region = 32  ;;  %s183_s26 = sand.u32 (%p110_p3), 1, %s2019_s16  }
  0x11   : > { %s1887_s27 = sshll.u32 (%p110_p3), %s2027_s18, 4  ;;  %s1620_s28 = sshll.u32 (%p110_p3), %s183_s26, 9 }
  0x12   : > { %s2106_s5 = scalar_lea.vmem (%p110_p3), %s2865_s3, %s1887_s27  ;;  %s2111_s6 = scalar_lea.vmem (%p110_p3), [#allocation2], %s1620_s28 }
  0x13   : > { %v201_v0 = vld [vmem:[%s2106_s5] sm:$0xff] (%p110_p3)  ;;  %v203_v1 = vld [vmem:[%s2106_s5 + $0x8] sm:$0xff] (%p110_p3) }
  0x14   : > { %v205_v2 = vld [vmem:[%s2106_s5 + $0x40] sm:$0xff] (%p110_p3)  ;;  %202 = vst [vmem:[%s2111_s6] sm:$0xff] (%p110_p3), %v201_v0  ;;  %v207_v3 = vld [vmem:[%s2106_s5 + $0x48] sm:$0xff] (%p110_p3) }
  0x15   : > { %204 = vst [vmem:[%s2111_s6 + $0x8] sm:$0xff] %v203_v1  ;;  %v209_v4 = vld [vmem:[%s2106_s5 + $0x80] sm:$0xff]  ;;  %v211_v5 = vld [vmem:[%s2106_s5 + $0x88] sm:$0xff] }
  0x16   : > { %206 = vst [vmem:[%s2111_s6 + $0x10] sm:$0xff] %v205_v2  ;;  %v213_v6 = vld [vmem:[%s2106_s5 + $0xc0] sm:$0xff]  ;;  %v215_v7 = vld [vmem:[%s2106_s5 + $0xc8] sm:$0xff] }
  0x17   : > { %208 = vst [vmem:[%s2111_s6 + $0x18] sm:$0xff] %v207_v3  ;;  %v217_v8 = vld [vmem:[%s2106_s5 + $0x100] sm:$0xff]  ;;  %v219_v9 = vld [vmem:[%s2106_s5 + $0x108] sm:$0xff] }
  0x18   : > { %210 = vst [vmem:[%s2111_s6 + $0x20] sm:$0xff] %v209_v4  ;;  %v221_v10 = vld [vmem:[%s2106_s5 + $0x140] sm:$0xff]  ;;  %v223_v11 = vld [vmem:[%s2106_s5 + $0x148] sm:$0xff] }
  0x19   : > { %212 = vst [vmem:[%s2111_s6 + $0x28] sm:$0xff] %v211_v5  ;;  %v225_v12 = vld [vmem:[%s2106_s5 + $0x180] sm:$0xff]  ;;  %v227_v13 = vld [vmem:[%s2106_s5 + $0x188] sm:$0xff] }
  0x1a   : > { %214 = vst [vmem:[%s2111_s6 + $0x30] sm:$0xff] %v213_v6  ;;  %v229_v14 = vld [vmem:[%s2106_s5 + $0x1c0] sm:$0xff]  ;;  %v231_v15 = vld [vmem:[%s2106_s5 + $0x1c8] sm:$0xff] }
  0x1b   : > { %216 = vst [vmem:[%s2111_s6 + $0x38] sm:$0xff] %v215_v7  ;;  %v233_v16 = vld [vmem:[%s2106_s5 + $0x200] sm:$0xff]  ;;  %v235_v17 = vld [vmem:[%s2106_s5 + $0x208] sm:$0xff] }
  0x1c   : > { %218 = vst [vmem:[%s2111_s6 + $0x40] sm:$0xff] %v217_v8  ;;  %v237_v18 = vld [vmem:[%s2106_s5 + $0x240] sm:$0xff]  ;;  %v239_v19 = vld [vmem:[%s2106_s5 + $0x248] sm:$0xff] }
  0x1d   : > { %220 = vst [vmem:[%s2111_s6 + $0x48] sm:$0xff] %v219_v9  ;;  %v241_v20 = vld [vmem:[%s2106_s5 + $0x280] sm:$0xff]  ;;  %v243_v21 = vld [vmem:[%s2106_s5 + $0x288] sm:$0xff] }
  0x1e   : > { %222 = vst [vmem:[%s2111_s6 + $0x50] sm:$0xff] %v221_v10  ;;  %v245_v22 = vld [vmem:[%s2106_s5 + $0x2c0] sm:$0xff]  ;;  %v247_v23 = vld [vmem:[%s2106_s5 + $0x2c8] sm:$0xff] }
  0x1f   : > { %224 = vst [vmem:[%s2111_s6 + $0x58] sm:$0xff] %v223_v11  ;;  %v249_v24 = vld [vmem:[%s2106_s5 + $0x300] sm:$0xff]  ;;  %v251_v25 = vld [vmem:[%s2106_s5 + $0x308] sm:$0xff] }
  0x20   : > { %226 = vst [vmem:[%s2111_s6 + $0x60] sm:$0xff] %v225_v12  ;;  %v253_v26 = vld [vmem:[%s2106_s5 + $0x340] sm:$0xff]  ;;  %v255_v27 = vld [vmem:[%s2106_s5 + $0x348] sm:$0xff] }
  0x21   : > { %228 = vst [vmem:[%s2111_s6 + $0x68] sm:$0xff] %v227_v13  ;;  %v257_v28 = vld [vmem:[%s2106_s5 + $0x380] sm:$0xff]  ;;  %v259_v29 = vld [vmem:[%s2106_s5 + $0x388] sm:$0xff] }
  0x22   : > { %230 = vst [vmem:[%s2111_s6 + $0x70] sm:$0xff] %v229_v14  ;;  %v261_v30 = vld [vmem:[%s2106_s5 + $0x3c0] sm:$0xff]  ;;  %v263_v31 = vld [vmem:[%s2106_s5 + $0x3c8] sm:$0xff] }
  0x23   : > { %232 = vst [vmem:[%s2111_s6 + $0x78] sm:$0xff] %v231_v15  ;;  %v265_v32 = vld [vmem:[%s2106_s5 + $0x400] sm:$0xff]  ;;  %v267_v33 = vld [vmem:[%s2106_s5 + $0x408] sm:$0xff] }
  0x24   : > { %234 = vst [vmem:[%s2111_s6 + $0x80] sm:$0xff] %v233_v16  ;;  %v269_v34 = vld [vmem:[%s2106_s5 + $0x440] sm:$0xff]  ;;  %v271_v35 = vld [vmem:[%s2106_s5 + $0x448] sm:$0xff] }
  0x25   : > { %236 = vst [vmem:[%s2111_s6 + $0x88] sm:$0xff] %v235_v17  ;;  %v273_v36 = vld [vmem:[%s2106_s5 + $0x480] sm:$0xff]  ;;  %v275_v37 = vld [vmem:[%s2106_s5 + $0x488] sm:$0xff] }
  0x26   : > { %238 = vst [vmem:[%s2111_s6 + $0x90] sm:$0xff] %v237_v18  ;;  %v277_v38 = vld [vmem:[%s2106_s5 + $0x4c0] sm:$0xff]  ;;  %v279_v39 = vld [vmem:[%s2106_s5 + $0x4c8] sm:$0xff] }
  0x27   : > { %240 = vst [vmem:[%s2111_s6 + $0x98] sm:$0xff] %v239_v19  ;;  %v281_v40 = vld [vmem:[%s2106_s5 + $0x500] sm:$0xff]  ;;  %v283_v41 = vld [vmem:[%s2106_s5 + $0x508] sm:$0xff] }
  0x28   : > { %242 = vst [vmem:[%s2111_s6 + $0xa0] sm:$0xff] %v241_v20  ;;  %v285_v42 = vld [vmem:[%s2106_s5 + $0x540] sm:$0xff]  ;;  %v287_v43 = vld [vmem:[%s2106_s5 + $0x548] sm:$0xff] }
  0x29   : > { %244 = vst [vmem:[%s2111_s6 + $0xa8] sm:$0xff] %v243_v21  ;;  %v289_v44 = vld [vmem:[%s2106_s5 + $0x580] sm:$0xff]  ;;  %v291_v45 = vld [vmem:[%s2106_s5 + $0x588] sm:$0xff] }
  0x2a   : > { %246 = vst [vmem:[%s2111_s6 + $0xb0] sm:$0xff] %v245_v22  ;;  %v293_v46 = vld [vmem:[%s2106_s5 + $0x5c0] sm:$0xff]  ;;  %v295_v47 = vld [vmem:[%s2106_s5 + $0x5c8] sm:$0xff] }
  0x2b   : > { %248 = vst [vmem:[%s2111_s6 + $0xb8] sm:$0xff] %v247_v23  ;;  %v297_v48 = vld [vmem:[%s2106_s5 + $0x600] sm:$0xff]  ;;  %v299_v49 = vld [vmem:[%s2106_s5 + $0x608] sm:$0xff] }
  0x2c   : > { %250 = vst [vmem:[%s2111_s6 + $0xc0] sm:$0xff] %v249_v24  ;;  %v301_v50 = vld [vmem:[%s2106_s5 + $0x640] sm:$0xff]  ;;  %v303_v51 = vld [vmem:[%s2106_s5 + $0x648] sm:$0xff] }
  0x2d   : > { %252 = vst [vmem:[%s2111_s6 + $0xc8] sm:$0xff] %v251_v25  ;;  %v305_v52 = vld [vmem:[%s2106_s5 + $0x680] sm:$0xff]  ;;  %v307_v53 = vld [vmem:[%s2106_s5 + $0x688] sm:$0xff] }
  0x2e   : > { %254 = vst [vmem:[%s2111_s6 + $0xd0] sm:$0xff] %v253_v26  ;;  %v309_v54 = vld [vmem:[%s2106_s5 + $0x6c0] sm:$0xff]  ;;  %v311_v55 = vld [vmem:[%s2106_s5 + $0x6c8] sm:$0xff] }
  0x2f   : > { %256 = vst [vmem:[%s2111_s6 + $0xd8] sm:$0xff] %v255_v27  ;;  %v313_v56 = vld [vmem:[%s2106_s5 + $0x700] sm:$0xff]  ;;  %v315_v57 = vld [vmem:[%s2106_s5 + $0x708] sm:$0xff] }
  0x30   : > { %258 = vst [vmem:[%s2111_s6 + $0xe0] sm:$0xff] %v257_v28  ;;  %v317_v58 = vld [vmem:[%s2106_s5 + $0x740] sm:$0xff]  ;;  %v319_v59 = vld [vmem:[%s2106_s5 + $0x748] sm:$0xff] }
  0x31   : > { %260 = vst [vmem:[%s2111_s6 + $0xe8] sm:$0xff] %v259_v29  ;;  %v321_v60 = vld [vmem:[%s2106_s5 + $0x780] sm:$0xff]  ;;  %v323_v61 = vld [vmem:[%s2106_s5 + $0x788] sm:$0xff] }
  0x32   : > { %262 = vst [vmem:[%s2111_s6 + $0xf0] sm:$0xff] %v261_v30  ;;  %v325_v62 = vld [vmem:[%s2106_s5 + $0x7c0] sm:$0xff]  ;;  %v327_v63 = vld [vmem:[%s2106_s5 + $0x7c8] sm:$0xff] }
  0x33   : > { %264 = vst [vmem:[%s2111_s6 + $0xf8] sm:$0xff] %v263_v31 }
  0x34   : > { %266 = vst [vmem:[%s2111_s6 + $0x100] sm:$0xff] %v265_v32 }
  0x35   : > { %268 = vst [vmem:[%s2111_s6 + $0x108] sm:$0xff] %v267_v33 }
  0x36   : > { %270 = vst [vmem:[%s2111_s6 + $0x110] sm:$0xff] %v269_v34 }
  0x37   : > { %272 = vst [vmem:[%s2111_s6 + $0x118] sm:$0xff] %v271_v35 }
  0x38   : > { %274 = vst [vmem:[%s2111_s6 + $0x120] sm:$0xff] %v273_v36 }
  0x39   : > { %276 = vst [vmem:[%s2111_s6 + $0x128] sm:$0xff] %v275_v37 }
  0x3a   : > { %278 = vst [vmem:[%s2111_s6 + $0x130] sm:$0xff] %v277_v38 }
  0x3b   : > { %280 = vst [vmem:[%s2111_s6 + $0x138] sm:$0xff] %v279_v39 }
  0x3c   : > { %282 = vst [vmem:[%s2111_s6 + $0x140] sm:$0xff] %v281_v40 }
  0x3d   : > { %284 = vst [vmem:[%s2111_s6 + $0x148] sm:$0xff] %v283_v41 }
  0x3e   : > { %286 = vst [vmem:[%s2111_s6 + $0x150] sm:$0xff] %v285_v42 }
  0x3f   : > { %288 = vst [vmem:[%s2111_s6 + $0x158] sm:$0xff] %v287_v43 }
  0x40   : > { %290 = vst [vmem:[%s2111_s6 + $0x160] sm:$0xff] %v289_v44 }
  0x41   : > { %292 = vst [vmem:[%s2111_s6 + $0x168] sm:$0xff] %v291_v45 }
  0x42   : > { %294 = vst [vmem:[%s2111_s6 + $0x170] sm:$0xff] %v293_v46 }
  0x43   : > { %296 = vst [vmem:[%s2111_s6 + $0x178] sm:$0xff] %v295_v47 }
  0x44   : > { %298 = vst [vmem:[%s2111_s6 + $0x180] sm:$0xff] %v297_v48 }
  0x45   : > { %300 = vst [vmem:[%s2111_s6 + $0x188] sm:$0xff] %v299_v49 }
  0x46   : > { %302 = vst [vmem:[%s2111_s6 + $0x190] sm:$0xff] %v301_v50 }
  0x47   : > { %304 = vst [vmem:[%s2111_s6 + $0x198] sm:$0xff] %v303_v51 }
  0x48   : > { %306 = vst [vmem:[%s2111_s6 + $0x1a0] sm:$0xff] %v305_v52 }
  0x49   : > { %308 = vst [vmem:[%s2111_s6 + $0x1a8] sm:$0xff] %v307_v53 }
  0x4a   : > { %310 = vst [vmem:[%s2111_s6 + $0x1b0] sm:$0xff] %v309_v54 }
  0x4b   : > { %312 = vst [vmem:[%s2111_s6 + $0x1b8] sm:$0xff] %v311_v55 }
  0x4c   : > { %314 = vst [vmem:[%s2111_s6 + $0x1c0] sm:$0xff] %v313_v56 }
  0x4d   : > { %316 = vst [vmem:[%s2111_s6 + $0x1c8] sm:$0xff] %v315_v57 }
  0x4e   : > { %318 = vst [vmem:[%s2111_s6 + $0x1d0] sm:$0xff] %v317_v58 }
  0x4f   : > { %320 = vst [vmem:[%s2111_s6 + $0x1d8] sm:$0xff] %v319_v59 }
  0x50   : > { %322 = vst [vmem:[%s2111_s6 + $0x1e0] sm:$0xff] %v321_v60 }
  0x51   : > { %324 = vst [vmem:[%s2111_s6 + $0x1e8] sm:$0xff] %v323_v61 }
  0x52   : > { %326 = vst [vmem:[%s2111_s6 + $0x1f0] sm:$0xff] %v325_v62 }
  0x53   : > { %328 = vst [vmem:[%s2111_s6 + $0x1f8] sm:$0xff] %v327_v63 }
  0x54 PF: > { %p1623_p8 = scmp.ge.s32.totalorder %s2031_s19, 1  ;;  %p333_p9 = scmp.lt.s32.totalorder %s2031_s19, 5 }
  0x56   : > { %p334_p10 = pnand %p1623_p8, %p333_p9 }
  0x57   : > { %s340_s7 = sand.u32 (!%p334_p10), 1, %s2015_s15  }
  0x58   : > { %337 = sbr.rel (%p334_p10) target bundleno = 520 (0x208), region = 55  ;;  %s2241_s8 = sshll.u32 (!%p334_p10), %s340_s7, 9 }
  0x59   : > { %s2244_s9 = scalar_lea.vmem (!%p334_p10), [#allocation2], %s2241_s8  ;;  %s2614_s7 = scalar_lea.vmem (!%p334_p10), [#allocation3], %s2241_s8 }
  0x5d   : > { %v1740_v0 = vld [vmem:[%s2244_s9 + $0xe0] sm:$0xf]  ;;  %v1918_v1 = vld [vmem:[%s2244_s9 + $0xec] sm:$0xf0]  ;;  %v1916_v5 = vld [vmem:[%s2244_s9 + $0xe4] sm:$0xf] }
  0x5e   : > { %v1868_v2 = vld [vmem:[%s2244_s9 + $0x1e0] sm:$0xf]  ;;  %v1741_v3 = vor.u32 %v1918_v1, %v1740_v0  ;;  %v1950_v4 = vld [vmem:[%s2244_s9 + $0x1ec] sm:$0xf0]  ;;  %v1742_v6 = vld [vmem:[%s2244_s9 + $0xf0] sm:$0xf0] }
  0x5f   : > { %v1869_v7 = vor.u32 %v1950_v4, %v1868_v2  ;;  %v1745_v8 = vor.u32 %v1916_v5, %v1742_v6  ;;  %v1948_v9 = vld [vmem:[%s2244_s9 + $0x1e4] sm:$0xf]  ;;  %v1870_v10 = vld [vmem:[%s2244_s9 + $0x1f0] sm:$0xf0]  ;;  %v1724_v11 = vld [vmem:[%s2244_s9 + $0xc0] sm:$0xf] }
  0x60   : > { %920 = vmatpush.bf16.msra.mxu0 %v1741_v3  ;;  %v1873_v12 = vor.u32 %v1948_v9, %v1870_v10  ;;  %v1914_v13 = vld [vmem:[%s2244_s9 + $0xcc] sm:$0xf0]  ;;  %v1852_v14 = vld [vmem:[%s2244_s9 + $0x1c0] sm:$0xf]  ;;  %v1912_v18 = vld [vmem:[%s2244_s9 + $0xc4] sm:$0xf] }
  0x61   : > { %v1946_v15 = vld [vmem:[%s2244_s9 + $0x1cc] sm:$0xf0]  ;;  %969 = vmatpush.bf16.msra.mxu1 %v1869_v7  ;;  %1018 = vmatpush.bf16.msra.mxu2 %v1745_v8  ;;  %v1725_v16 = vor.u32 %v1914_v13, %v1724_v11  ;;  %v1726_v19 = vld [vmem:[%s2244_s9 + $0xd0] sm:$0xf0]  ;;  %v1944_v20 = vld [vmem:[%s2244_s9 + $0x1c4] sm:$0xf] }
  0x62   : > { %v1853_v17 = vor.u32 %v1946_v15, %v1852_v14  ;;  %1067 = vmatpush.bf16.msra.mxu3 %v1873_v12  ;;  %v1729_v21 = vor.u32 %v1912_v18, %v1726_v19  ;;  %v1854_v22 = vld [vmem:[%s2244_s9 + $0x1d0] sm:$0xf0]  ;;  %v1708_v23 = vld [vmem:[%s2244_s9 + $0xa0] sm:$0xf]  ;;  %v1910_v24 = vld [vmem:[%s2244_s9 + $0xac] sm:$0xf0] }
  0x63   : > { %v1857_v25 = vor.u32 %v1944_v20, %v1854_v22  ;;  %v1836_v26 = vld [vmem:[%s2244_s9 + $0x1a0] sm:$0xf]  ;;  %v1942_v27 = vld [vmem:[%s2244_s9 + $0x1ac] sm:$0xf0]  ;;  %v1908_v28 = vld [vmem:[%s2244_s9 + $0xa4] sm:$0xf]  ;;  %v1709_v29 = vor.u32 %v1910_v24, %v1708_v23 }
  0x64   : > { %921 = vmatpush.bf16.msra.mxu0 %v1725_v16  ;;  %v1710_v30 = vld [vmem:[%s2244_s9 + $0xb0] sm:$0xf0]  ;;  %v1940_v31 = vld [vmem:[%s2244_s9 + $0x1a4] sm:$0xf]  ;;  %v1837_v33 = vor.u32 %v1942_v27, %v1836_v26  ;;  %v1692_v35 = vld [vmem:[%s2244_s9 + $0x80] sm:$0xf] }
  0x65   : > { %v1838_v32 = vld [vmem:[%s2244_s9 + $0x1b0] sm:$0xf0]  ;;  %970 = vmatpush.bf16.msra.mxu1 %v1853_v17  ;;  %1019 = vmatpush.bf16.msra.mxu2 %v1729_v21  ;;  %v1713_v34 = vor.u32 %v1908_v28, %v1710_v30  ;;  %v1906_v36 = vld [vmem:[%s2244_s9 + $0x8c] sm:$0xf0]  ;;  %v1820_v37 = vld [vmem:[%s2244_s9 + $0x180] sm:$0xf] }
  0x66   : > { %1068 = vmatpush.bf16.msra.mxu3 %v1857_v25  ;;  %v1841_v38 = vor.u32 %v1940_v31, %v1838_v32  ;;  %v1938_v39 = vld [vmem:[%s2244_s9 + $0x18c] sm:$0xf0]  ;;  %v1904_v40 = vld [vmem:[%s2244_s9 + $0x84] sm:$0xf]  ;;  %v1694_v41 = vld [vmem:[%s2244_s9 + $0x90] sm:$0xf0]  ;;  %v1693_v44 = vor.u32 %v1906_v36, %v1692_v35 }
  0x67   : > { %v1936_v42 = vld [vmem:[%s2244_s9 + $0x184] sm:$0xf]  ;;  %v1822_v43 = vld [vmem:[%s2244_s9 + $0x190] sm:$0xf0]  ;;  %v412_v45 = vld [vmem:[%s2863_s1] sm:$0x3]  ;;  %v1821_v46 = vor.u32 %v1938_v39, %v1820_v37  ;;  %v1697_v47 = vor.u32 %v1904_v40, %v1694_v41 }
  0x68   : > { %922 = vmatpush.bf16.msra.mxu0 %v1709_v29  ;;  %v1676_v48 = vld [vmem:[%s2244_s9 + $0x60] sm:$0xf]  ;;  %v1902_v49 = vld [vmem:[%s2244_s9 + $0x6c] sm:$0xf0]  ;;  %v1825_v51 = vor.u32 %v1936_v42, %v1822_v43  ;;  %v1900_v53 = vld [vmem:[%s2244_s9 + $0x64] sm:$0xf] }
  0x69   : > { %971 = vmatpush.bf16.msra.mxu1 %v1837_v33  ;;  %1020 = vmatpush.bf16.msra.mxu2 %v1713_v34  ;;  %v1804_v50 = vld [vmem:[%s2244_s9 + $0x160] sm:$0xf]  ;;  %v1934_v52 = vld [vmem:[%s2244_s9 + $0x16c] sm:$0xf0]  ;;  %v1678_v54 = vld [vmem:[%s2244_s9 + $0x70] sm:$0xf0]  ;;  %v1677_v60 = vor.u32 %v1902_v49, %v1676_v48 }
  0x6a   : > { %1069 = vmatpush.bf16.msra.mxu3 %v1841_v38  ;;  %v380_v55 = vld [vmem:[%s2862_s0] sm:$0xff]  ;;  %v1806_v57 = vld [vmem:[%s2244_s9 + $0x170] sm:$0xf0]  ;;  %v2295_v59 = vperm.slane %v412_v45, 0  ;;  %v381_v62 = vld [vmem:[%s2862_s0 + $0x8] sm:$0xff]  ;;  %v2306_v0 = vperm.slane %v412_v45, 1  ;;  %v1805_v1 = vor.u32 %v1934_v52, %v1804_v50  ;;  %v1681_v2 = vor.u32 %v1900_v53, %v1678_v54 }
  0x6b   : > { %v1932_v56 = vld [vmem:[%s2244_s9 + $0x164] sm:$0xf]  ;;  %v382_v58 = vld [vmem:[%s2862_s0 + $0x10] sm:$0xff]  ;;  %v450_v61 = vld [vmem:[%s2864_s2] sm:$0x3]  ;;  %s1952_s8 = sshll.u32 (%p2093_p6), %s2023_s17, 5 }
  0x6c   : > { %923 = vmatpush.bf16.msra.mxu0 %v1693_v44  ;;  %v383_v63 = vld [vmem:[%s2862_s0 + $0x18] sm:$0xff]  ;;  %v1660_v3 = vld [vmem:[%s2244_s9 + $0x40] sm:$0xf]  ;;  %v1898_v4 = vld [vmem:[%s2244_s9 + $0x4c] sm:$0xf0]  ;;  %v1809_v6 = vor.u32 %v1932_v56, %v1806_v57  ;;  %v418_v12 = vmul.f32 %v2295_v59, %v380_v55  ;;  %v420_v13 = vmul.f32 %v2295_v59, %v382_v58  ;;  %v2318_v14 = vperm.slane %v450_v61, 0  ;;  %s2719_s12 = scalar_lea.vmem (%p2093_p6), %s2866_s4, %s1952_s8 }
  0x6d   : > { %972 = vmatpush.bf16.msra.mxu1 %v1821_v46  ;;  %1021 = vmatpush.bf16.msra.mxu2 %v1697_v47  ;;  %v1788_v5 = vld [vmem:[%s2244_s9 + $0x140] sm:$0xf]  ;;  %v1930_v7 = vld [vmem:[%s2244_s9 + $0x14c] sm:$0xf0]  ;;  %v1896_v8 = vld [vmem:[%s2244_s9 + $0x44] sm:$0xf]  ;;  %v1661_v15 = vor.u32 %v1898_v4, %v1660_v3  ;;  %v419_v16 = vmul.f32 %v2306_v0, %v381_v62  ;;  %v421_v17 = vmul.f32 %v2306_v0, %v383_v63 }
  0x6e   : > { %1070 = vmatpush.bf16.msra.mxu3 %v1825_v51  ;;  %v1662_v9 = vld [vmem:[%s2244_s9 + $0x50] sm:$0xf0]  ;;  %v1928_v10 = vld [vmem:[%s2244_s9 + $0x144] sm:$0xf]  ;;  %v2322_v18 = vperm.slane %v450_v61, 1  ;;  %v1789_v19 = vor.u32 %v1930_v7, %v1788_v5  ;;  %v456_v30 = vadd.f32 %v2318_v14, %v418_v12  ;;  %v458_v31 = vadd.f32 %v2318_v14, %v420_v13  ;;  %v387_v12 = vld [vmem:[%s2862_s0 + $0x38] sm:$0xff] }
  0x6f   : > { %v1790_v11 = vld [vmem:[%s2244_s9 + $0x150] sm:$0xf0]  ;;  %v1665_v20 = vor.u32 %v1896_v8, %v1662_v9  ;;  %v1644_v21 = vld [vmem:[%s2244_s9 + $0x20] sm:$0xf]  ;;  %v1894_v22 = vld [vmem:[%s2244_s9 + $0x2c] sm:$0xf0] }
  0x70   : > { %924 = vmatpush.bf16.msra.mxu0 %v1677_v60  ;;  %v1772_v23 = vld [vmem:[%s2244_s9 + $0x120] sm:$0xf]  ;;  %v1793_v24 = vor.u32 %v1928_v10, %v1790_v11  ;;  %v1926_v25 = vld [vmem:[%s2244_s9 + $0x12c] sm:$0xf0]  ;;  %v1892_v26 = vld [vmem:[%s2244_s9 + $0x24] sm:$0xf]  ;;  %v1645_v32 = vor.u32 %v1894_v22, %v1644_v21  ;;  %v457_v35 = vadd.f32 %v2322_v18, %v419_v16  ;;  %v459_v36 = vadd.f32 %v2322_v18, %v421_v17 }
  0x71   : > { %973 = vmatpush.bf16.msra.mxu1 %v1805_v1  ;;  %1022 = vmatpush.bf16.msra.mxu2 %v1681_v2  ;;  %v1646_v27 = vld [vmem:[%s2244_s9 + $0x30] sm:$0xf0]  ;;  %v1924_v28 = vld [vmem:[%s2244_s9 + $0x124] sm:$0xf]  ;;  %v1628_v33 = vld [vmem:[%s2244_s9] sm:$0xf]  ;;  %v1773_v37 = vor.u32 %v1926_v25, %v1772_v23  ;;  %v425_v25 = vmul.f32 %v2306_v0, %v387_v12 }
  0x72   : > { %1071 = vmatpush.bf16.msra.mxu3 %v1809_v6  ;;  %v1774_v29 = vld [vmem:[%s2244_s9 + $0x130] sm:$0xf0]  ;;  %v1890_v34 = vld [vmem:[%s2244_s9 + $0xc] sm:$0xf0]  ;;  %v1649_v38 = vor.u32 %v1892_v26, %v1646_v27  ;;  %v1756_v39 = vld [vmem:[%s2244_s9 + $0x100] sm:$0xf] }
  0x73   : > { %v1922_v40 = vld [vmem:[%s2244_s9 + $0x10c] sm:$0xf0]  ;;  %v1888_v41 = vld [vmem:[%s2244_s9 + $0x4] sm:$0xf]  ;;  %v1777_v42 = vor.u32 %v1924_v28, %v1774_v29  ;;  %v1630_v43 = vld [vmem:[%s2244_s9 + $0x10] sm:$0xf0]  ;;  %v1629_v50 = vor.u32 %v1890_v34, %v1628_v33 }
  0x74   : > { %925 = vmatpush.bf16.msra.mxu0 %v1661_v15  ;;  %v1920_v44 = vld [vmem:[%s2244_s9 + $0x104] sm:$0xf]  ;;  %v1758_v45 = vld [vmem:[%s2244_s9 + $0x110] sm:$0xf0]  ;;  %v488_v46 = vmax.f32 %v456_v30, 0.0  ;;  %v490_v47 = vmax.f32 %v458_v31, 0.0  ;;  %v1757_v55 = vor.u32 %v1922_v40, %v1756_v39  ;;  %v1633_v56 = vor.u32 %v1888_v41, %v1630_v43 }
  0x75   : > { %974 = vmatpush.bf16.msra.mxu1 %v1789_v19  ;;  %1023 = vmatpush.bf16.msra.mxu2 %v1665_v20  ;;  %v1917_v48 = vld [vmem:[%s2244_s9 + $0xec] sm:$0xf]  ;;  %v1750_v49 = vld [vmem:[%s2244_s9 + $0xf8] sm:$0xf0]  ;;  %v489_v51 = vmax.f32 %v457_v35, 0.0  ;;  %v491_v52 = vmax.f32 %v459_v36, 0.0  ;;  %v1761_v57 = vor.u32 %v1920_v44, %v1758_v45  ;;  %v463_v41 = vadd.f32 %v2322_v18, %v425_v25 }
  0x76   : > { %1072 = vmatpush.bf16.msra.mxu3 %v1793_v24  ;;  %v1949_v53 = vld [vmem:[%s2244_s9 + $0x1ec] sm:$0xf]  ;;  %v1878_v54 = vld [vmem:[%s2244_s9 + $0x1f8] sm:$0xf0]  ;;  %v1753_v58 = vor.u32 %v1917_v48, %v1750_v49  ;;  %v1748_v60 = vld [vmem:[%s2244_s9 + $0xe8] sm:$0xf]  ;;  %v2354_v1 = vpack.c.bf16 %v490_v47, %v488_v46 }
  0x77   : > { %v1919_v61 = vld [vmem:[%s2244_s9 + $0xf4] sm:$0xf0]  ;;  %v1876_v62 = vld [vmem:[%s2244_s9 + $0x1e8] sm:$0xf]  ;;  %v384_v63 = vld [vmem:[%s2862_s0 + $0x20] sm:$0xff]  ;;  %v1881_v2 = vor.u32 %v1949_v53, %v1878_v54  ;;  %v2359_v6 = vpack.c.bf16 %v491_v52, %v489_v51  ;;  %v495_v47 = vmax.f32 %v463_v41, 0.0 }
  0x78   : > { %926 = vmatpush.bf16.msra.mxu0 %v1645_v32  ;;  %v1951_v3 = vld [vmem:[%s2244_s9 + $0x1f4] sm:$0xf0]  ;;  %v1913_v4 = vld [vmem:[%s2244_s9 + $0xcc] sm:$0xf]  ;;  %v1734_v5 = vld [vmem:[%s2244_s9 + $0xd8] sm:$0xf0]  ;;  %v1749_v10 = vor.u32 %v1919_v61, %v1748_v60  ;;  %v422_v19 = vmul.f32 %v2295_v59, %v384_v63 }
  0x79   : > { %975 = vmatpush.bf16.msra.mxu1 %v1773_v37  ;;  %1024 = vmatpush.bf16.msra.mxu2 %v1649_v38  ;;  %v386_v7 = vld [vmem:[%s2862_s0 + $0x30] sm:$0xff]  ;;  %v1945_v8 = vld [vmem:[%s2244_s9 + $0x1cc] sm:$0xf]  ;;  %v1862_v9 = vld [vmem:[%s2244_s9 + $0x1d8] sm:$0xf0]  ;;  %v1877_v13 = vor.u32 %v1951_v3, %v1876_v62  ;;  %v1737_v15 = vor.u32 %v1913_v4, %v1734_v5 }
  0x7a   : > { %1073 = vmatpush.bf16.msra.mxu3 %v1777_v42  ;;  %v385_v11 = vld [vmem:[%s2862_s0 + $0x28] sm:$0xff]  ;;  %v1915_v17 = vld [vmem:[%s2244_s9 + $0xd4] sm:$0xf0]  ;;  %v424_v20 = vmul.f32 %v2295_v59, %v386_v7  ;;  %v1865_v21 = vor.u32 %v1945_v8, %v1862_v9  ;;  %v1718_v28 = vld [vmem:[%s2244_s9 + $0xb8] sm:$0xf0]  ;;  %v460_v35 = vadd.f32 %v2318_v14, %v422_v19 }
  0x7b   : > { %v1732_v16 = vld [vmem:[%s2244_s9 + $0xc8] sm:$0xf]  ;;  %v1947_v23 = vld [vmem:[%s2244_s9 + $0x1d4] sm:$0xf0]  ;;  %v423_v24 = vmul.f32 %v2306_v0, %v385_v11  ;;  %v1909_v27 = vld [vmem:[%s2244_s9 + $0xac] sm:$0xf] }
  0x7c   : > { %927 = vmatpush.bf16.msra.mxu0 %v1629_v50  ;;  %v1860_v22 = vld [vmem:[%s2244_s9 + $0x1c8] sm:$0xf]  ;;  %v1733_v26 = vor.u32 %v1915_v17, %v1732_v16  ;;  %v1941_v29 = vld [vmem:[%s2244_s9 + $0x1ac] sm:$0xf]  ;;  %v1721_v31 = vor.u32 %v1909_v27, %v1718_v28  ;;  %v1846_v32 = vld [vmem:[%s2244_s9 + $0x1b8] sm:$0xf0]  ;;  %v462_v36 = vadd.f32 %v2318_v14, %v424_v20 }
  0x7d   : > { %976 = vmatpush.bf16.msra.mxu1 %v1757_v55  ;;  %1025 = vmatpush.bf16.msra.mxu2 %v1633_v56  ;;  %v1861_v30 = vor.u32 %v1947_v23, %v1860_v22  ;;  %v1716_v33 = vld [vmem:[%s2244_s9 + $0xa8] sm:$0xf]  ;;  %v1911_v34 = vld [vmem:[%s2244_s9 + $0xb4] sm:$0xf0]  ;;  %v1849_v37 = vor.u32 %v1941_v29, %v1846_v32  ;;  %v461_v40 = vadd.f32 %v2322_v18, %v423_v24  ;;  %v492_v44 = vmax.f32 %v460_v35, 0.0  ;;  %v388_v50 = vld [vmem:[%s2862_s0 + $0x40] sm:$0xff] }
  0x7e   : > { %1074 = vmatpush.bf16.msra.mxu3 %v1761_v57  ;;  %v1844_v38 = vld [vmem:[%s2244_s9 + $0x1a8] sm:$0xf]  ;;  %v1943_v39 = vld [vmem:[%s2244_s9 + $0x1b4] sm:$0xf0]  ;;  %v1717_v42 = vor.u32 %v1911_v34, %v1716_v33  ;;  %v494_v45 = vmax.f32 %v462_v36, 0.0  ;;  %v390_v51 = vld [vmem:[%s2862_s0 + $0x50] sm:$0xff]  ;;  %v426_v54 = vmul.f32 %v2295_v59, %v388_v50 }
  0x7f   : > { %928 = vmatmul.bf16.vlgmr.msra.gmra.mxu0 %v2354_v1  ;;  %v1845_v43 = vor.u32 %v1943_v39, %v1844_v38  ;;  %v493_v46 = vmax.f32 %v461_v40, 0.0  ;;  %v389_v52 = vld [vmem:[%s2862_s0 + $0x48] sm:$0xff]  ;;  %v391_v53 = vld [vmem:[%s2862_s0 + $0x58] sm:$0xff]  ;;  %v428_v55 = vmul.f32 %v2295_v59, %v390_v51  ;;  %v392_v22 = vld [vmem:[%s2862_s0 + $0x60] sm:$0xff] }
  0x80   : > { %977 = vmatmul.bf16.vlgmr.msra.gmra.mxu1 %v2359_v6  ;;  %1026 = vmatmul.bf16.vlgmr.msra.gmra.mxu2 %v2354_v1  ;;  %v2396_v48 = vpack.c.bf16 %v494_v45, %v492_v44  ;;  %v427_v56 = vmul.f32 %v2306_v0, %v389_v52  ;;  %v429_v57 = vmul.f32 %v2306_v0, %v391_v53  ;;  %v1702_v60 = vld [vmem:[%s2244_s9 + $0x98] sm:$0xf0]  ;;  %v1937_v61 = vld [vmem:[%s2244_s9 + $0x18c] sm:$0xf]  ;;  %v1907_v3 = vld [vmem:[%s2244_s9 + $0x94] sm:$0xf0] }
  0x81   : > { %1214 = vmatpush.bf16.msrb.mxu2 %v1753_v58  ;;  %1075 = vmatmul.bf16.vlgmr.msra.gmra.mxu3 %v2359_v6  ;;  %v2398_v49 = vpack.c.bf16 %v495_v47, %v493_v46  ;;  %v1905_v58 = vld [vmem:[%s2244_s9 + $0x8c] sm:$0xf]  ;;  %v1830_v63 = vld [vmem:[%s2244_s9 + $0x198] sm:$0xf0]  ;;  %v464_v4 = vadd.f32 %v2318_v14, %v426_v54  ;;  %v466_v5 = vadd.f32 %v2318_v14, %v428_v55  ;;  %v1828_v9 = vld [vmem:[%s2244_s9 + $0x188] sm:$0xf] }
  0x82   : > { %1263 = vmatpush.bf16.msrb.mxu3 %v1881_v2  ;;  %1116 = vmatpush.bf16.msrb.mxu0 %v1749_v10  ;;  %v1705_v62 = vor.u32 %v1905_v58, %v1702_v60  ;;  %v1700_v2 = vld [vmem:[%s2244_s9 + $0x88] sm:$0xf]  ;;  %v1833_v7 = vor.u32 %v1937_v61, %v1830_v63  ;;  %v1939_v10 = vld [vmem:[%s2244_s9 + $0x194] sm:$0xf0]  ;;  %v465_v11 = vadd.f32 %v2322_v18, %v427_v56  ;;  %v394_v23 = vld [vmem:[%s2862_s0 + $0x70] sm:$0xff] }
  0x83   : > { %1165 = vmatpush.bf16.msrb.mxu1 %v1877_v13  ;;  %v1701_v8 = vor.u32 %v1907_v3, %v1700_v2  ;;  %v467_v12 = vadd.f32 %v2322_v18, %v429_v57  ;;  %v1829_v13 = vor.u32 %v1939_v10, %v1828_v9  ;;  %v498_v16 = vmax.f32 %v466_v5, 0.0  ;;  %v393_v24 = vld [vmem:[%s2862_s0 + $0x68] sm:$0xff]  ;;  %v395_v25 = vld [vmem:[%s2862_s0 + $0x78] sm:$0xff]  ;;  %v396_v54 = vld [vmem:[%s2862_s0 + $0x80] sm:$0xff] }
  0x84   : > { %v497_v17 = vmax.f32 %v465_v11, 0.0  ;;  %v432_v27 = vmul.f32 %v2295_v59, %v394_v23  ;;  %v431_v28 = vmul.f32 %v2306_v0, %v393_v24  ;;  %v433_v29 = vmul.f32 %v2306_v0, %v395_v25  ;;  %v1933_v32 = vld [vmem:[%s2244_s9 + $0x16c] sm:$0xf]  ;;  %v1814_v34 = vld [vmem:[%s2244_s9 + $0x178] sm:$0xf0]  ;;  %v398_v55 = vld [vmem:[%s2862_s0 + $0x90] sm:$0xff] }
  0x85   : > { %1215 = vmatpush.bf16.msrb.mxu2 %v1737_v15  ;;  %v496_v15 = vmax.f32 %v464_v4, 0.0  ;;  %v499_v19 = vmax.f32 %v467_v12, 0.0  ;;  %v1684_v35 = vld [vmem:[%s2244_s9 + $0x68] sm:$0xf]  ;;  %v1903_v36 = vld [vmem:[%s2244_s9 + $0x74] sm:$0xf0]  ;;  %v1817_v39 = vor.u32 %v1933_v32, %v1814_v34  ;;  %v434_v58 = vmul.f32 %v2295_v59, %v396_v54 }
  0x86   : > { %1264 = vmatpush.bf16.msrb.mxu3 %v1865_v21  ;;  %1117 = vmatpush.bf16.msrb.mxu0 %v1733_v26  ;;  %v430_v26 = vmul.f32 %v2295_v59, %v392_v22  ;;  %v470_v38 = vadd.f32 %v2318_v14, %v432_v27  ;;  %v1685_v40 = vor.u32 %v1903_v36, %v1684_v35  ;;  %v1812_v41 = vld [vmem:[%s2244_s9 + $0x168] sm:$0xf]  ;;  %v399_v57 = vld [vmem:[%s2862_s0 + $0x98] sm:$0xff]  ;;  %v1897_v63 = vld [vmem:[%s2244_s9 + $0x4c] sm:$0xf] }
  0x87   : > { %1166 = vmatpush.bf16.msrb.mxu1 %v1861_v30  ;;  %v2432_v20 = vpack.c.bf16 %v498_v16, %v496_v15  ;;  %v2434_v21 = vpack.c.bf16 %v499_v19, %v497_v17  ;;  %v1901_v30 = vld [vmem:[%s2244_s9 + $0x6c] sm:$0xf]  ;;  %v471_v44 = vadd.f32 %v2322_v18, %v433_v29  ;;  %v436_v60 = vmul.f32 %v2295_v59, %v398_v55  ;;  %v1670_v2 = vld [vmem:[%s2244_s9 + $0x58] sm:$0xf0]  ;;  %v1931_v15 = vld [vmem:[%s2244_s9 + $0x154] sm:$0xf0] }
  0x88   : > { %v502_v47 = vmax.f32 %v470_v38, 0.0  ;;  %v397_v56 = vld [vmem:[%s2862_s0 + $0x88] sm:$0xff]  ;;  %v1673_v4 = vor.u32 %v1897_v63, %v1670_v2  ;;  %v1798_v5 = vld [vmem:[%s2244_s9 + $0x158] sm:$0xf0]  ;;  %v472_v9 = vadd.f32 %v2318_v14, %v434_v58  ;;  %v402_v29 = vld [vmem:[%s2862_s0 + $0xb0] sm:$0xff] }
  0x89   : > { %1216 = vmatpush.bf16.msrb.mxu2 %v1721_v31  ;;  %v1686_v31 = vld [vmem:[%s2244_s9 + $0x78] sm:$0xf0]  ;;  %v503_v51 = vmax.f32 %v471_v44, 0.0  ;;  %v435_v61 = vmul.f32 %v2306_v0, %v397_v56  ;;  %v1929_v3 = vld [vmem:[%s2244_s9 + $0x14c] sm:$0xf]  ;;  %v474_v10 = vadd.f32 %v2318_v14, %v436_v60  ;;  %v404_v63 = vld [vmem:[%s2862_s0 + $0xc0] sm:$0xff] }
  0x8a   : > { %1265 = vmatpush.bf16.msrb.mxu3 %v1849_v37  ;;  %1118 = vmatpush.bf16.msrb.mxu0 %v1717_v42  ;;  %v1689_v33 = vor.u32 %v1901_v30, %v1686_v31  ;;  %v468_v37 = vadd.f32 %v2318_v14, %v430_v26  ;;  %v1935_v42 = vld [vmem:[%s2244_s9 + $0x174] sm:$0xf0]  ;;  %v1801_v11 = vor.u32 %v1929_v3, %v1798_v5  ;;  %v504_v22 = vmax.f32 %v472_v9, 0.0  ;;  %v401_v30 = vld [vmem:[%s2862_s0 + $0xa8] sm:$0xff]  ;;  %v406_v2 = vld [vmem:[%s2862_s0 + $0xd0] sm:$0xff] }
  0x8b   : > { %1167 = vmatpush.bf16.msrb.mxu1 %v1845_v43  ;;  %v469_v43 = vadd.f32 %v2322_v18, %v431_v28  ;;  %v1813_v45 = vor.u32 %v1935_v42, %v1812_v41  ;;  %v473_v16 = vadd.f32 %v2322_v18, %v435_v61  ;;  %v506_v23 = vmax.f32 %v474_v10, 0.0  ;;  %v400_v28 = vld [vmem:[%s2862_s0 + $0xa0] sm:$0xff]  ;;  %v403_v31 = vld [vmem:[%s2862_s0 + $0xb8] sm:$0xff]  ;;  %v1893_v36 = vld [vmem:[%s2244_s9 + $0x2c] sm:$0xf] }
  0x8c   : > { %v500_v46 = vmax.f32 %v468_v37, 0.0  ;;  %v438_v32 = vmul.f32 %v2295_v59, %v400_v28  ;;  %v439_v34 = vmul.f32 %v2306_v0, %v401_v30  ;;  %v441_v35 = vmul.f32 %v2306_v0, %v403_v31  ;;  %v1654_v37 = vld [vmem:[%s2244_s9 + $0x38] sm:$0xf0]  ;;  %v1925_v38 = vld [vmem:[%s2244_s9 + $0x12c] sm:$0xf] }
  0x8d   : > { %1217 = vmatpush.bf16.msrb.mxu2 %v1705_v62  ;;  %v501_v50 = vmax.f32 %v469_v43, 0.0  ;;  %v437_v62 = vmul.f32 %v2306_v0, %v399_v57  ;;  %v505_v24 = vmax.f32 %v473_v16, 0.0  ;;  %v2504_v26 = vpack.c.bf16 %v506_v23, %v504_v22  ;;  %v1652_v41 = vld [vmem:[%s2244_s9 + $0x28] sm:$0xf]  ;;  %v1895_v42 = vld [vmem:[%s2244_s9 + $0x34] sm:$0xf0] }
  0x8e   : > { %1266 = vmatpush.bf16.msrb.mxu3 %v1833_v7  ;;  %1119 = vmatpush.bf16.msrb.mxu0 %v1701_v8  ;;  %v2468_v52 = vpack.c.bf16 %v502_v47, %v500_v46  ;;  %v1668_v7 = vld [vmem:[%s2244_s9 + $0x48] sm:$0xf]  ;;  %v1899_v8 = vld [vmem:[%s2244_s9 + $0x54] sm:$0xf0]  ;;  %v476_v43 = vadd.f32 %v2318_v14, %v438_v32  ;;  %v1653_v46 = vor.u32 %v1895_v42, %v1652_v41  ;;  %v1889_v10 = vld [vmem:[%s2244_s9 + $0xc] sm:$0xf] }
  0x8f   : > { %933 = vmatmul.bf16.gmra.mxu0 %v2396_v48  ;;  %1168 = vmatpush.bf16.msrb.mxu1 %v1829_v13  ;;  %v2470_v53 = vpack.c.bf16 %v503_v51, %v501_v50  ;;  %v1669_v12 = vor.u32 %v1899_v8, %v1668_v7  ;;  %v1796_v13 = vld [vmem:[%s2244_s9 + $0x148] sm:$0xf]  ;;  %v475_v17 = vadd.f32 %v2322_v18, %v437_v62  ;;  %v1927_v50 = vld [vmem:[%s2244_s9 + $0x134] sm:$0xf0] }
  0x90   : > { %982 = vmatmul.bf16.gmra.mxu1 %v2398_v49  ;;  %1031 = vmatmul.bf16.gmra.mxu2 %v2396_v48  ;;  %v1797_v19 = vor.u32 %v1931_v15, %v1796_v13  ;;  %v1780_v47 = vld [vmem:[%s2244_s9 + $0x128] sm:$0xf]  ;;  %v477_v51 = vadd.f32 %v2322_v18, %v439_v34  ;;  %v479_v54 = vadd.f32 %v2322_v18, %v441_v35  ;;  %v508_v56 = vmax.f32 %v476_v43, 0.0  ;;  %v1766_v15 = vld [vmem:[%s2244_s9 + $0x118] sm:$0xf0] }
  0x91   : > { %1080 = vmatmul.bf16.gmra.mxu3 %v2398_v49  ;;  %1218 = vmatpush.bf16.msrb.mxu2 %v1689_v33  ;;  %v507_v25 = vmax.f32 %v475_v17, 0.0  ;;  %v440_v33 = vmul.f32 %v2295_v59, %v402_v29  ;;  %v1781_v55 = vor.u32 %v1927_v50, %v1780_v47  ;;  %v405_v3 = vld [vmem:[%s2862_s0 + $0xc8] sm:$0xff]  ;;  %v442_v5 = vmul.f32 %v2295_v59, %v404_v63  ;;  %v1891_v17 = vld [vmem:[%s2244_s9 + $0x14] sm:$0xf0] }
  0x92   : > { %1267 = vmatpush.bf16.msrb.mxu3 %v1817_v39  ;;  %1120 = vmatpush.bf16.msrb.mxu0 %v1685_v40  ;;  %v1657_v39 = vor.u32 %v1893_v36, %v1654_v37  ;;  %v1782_v40 = vld [vmem:[%s2244_s9 + $0x138] sm:$0xf0]  ;;  %v509_v58 = vmax.f32 %v477_v51, 0.0  ;;  %v511_v60 = vmax.f32 %v479_v54, 0.0  ;;  %v444_v7 = vmul.f32 %v2295_v59, %v406_v2  ;;  %v1636_v16 = vld [vmem:[%s2244_s9 + $0x8] sm:$0xf] }
  0x93   : > { %1169 = vmatpush.bf16.msrb.mxu1 %v1813_v45  ;;  %v2506_v27 = vpack.c.bf16 %v507_v25, %v505_v24  ;;  %v478_v44 = vadd.f32 %v2318_v14, %v440_v33  ;;  %v1785_v45 = vor.u32 %v1925_v38, %v1782_v40  ;;  %v443_v8 = vmul.f32 %v2306_v0, %v405_v3  ;;  %v1764_v25 = vld [vmem:[%s2244_s9 + $0x108] sm:$0xf]  ;;  %v1923_v28 = vld [vmem:[%s2244_s9 + $0x114] sm:$0xf0]  ;;  %v408_v38 = vld [vmem:[%s2862_s0 + $0xe0] sm:$0xff] }
  0x94   : > { %v2542_v62 = vpack.c.bf16 %v511_v60, %v509_v58  ;;  %v482_v22 = vadd.f32 %v2318_v14, %v444_v7  ;;  %v1637_v24 = vor.u32 %v1891_v17, %v1636_v16  ;;  %v1765_v31 = vor.u32 %v1923_v28, %v1764_v25  ;;  %v409_v40 = vld [vmem:[%s2862_s0 + $0xe8] sm:$0xff]  ;;  %v411_v41 = vld [vmem:[%s2862_s0 + $0xf8] sm:$0xff] }
  0x95   : > { %1219 = vmatpush.bf16.msrb.mxu2 %v1673_v4  ;;  %v510_v57 = vmax.f32 %v478_v44, 0.0  ;;  %v407_v4 = vld [vmem:[%s2862_s0 + $0xd8] sm:$0xff]  ;;  %v481_v29 = vadd.f32 %v2322_v18, %v443_v8  ;;  %v446_v42 = vmul.f32 %v2295_v59, %v408_v38  ;;  %v447_v44 = vmul.f32 %v2306_v0, %v409_v40 }
  0x96   : > { %1268 = vmatpush.bf16.msrb.mxu3 %v1801_v11  ;;  %1121 = vmatpush.bf16.msrb.mxu0 %v1669_v12  ;;  %v445_v9 = vmul.f32 %v2306_v0, %v407_v4  ;;  %v1638_v11 = vld [vmem:[%s2244_s9 + $0x18] sm:$0xf0]  ;;  %v1921_v12 = vld [vmem:[%s2244_s9 + $0x10c] sm:$0xf]  ;;  %v514_v33 = vmax.f32 %v482_v22, 0.0 }
  0x97   : > { %1170 = vmatpush.bf16.msrb.mxu1 %v1797_v19  ;;  %v2540_v61 = vpack.c.bf16 %v510_v57, %v508_v56  ;;  %v1641_v13 = vor.u32 %v1889_v10, %v1638_v11  ;;  %v480_v19 = vadd.f32 %v2318_v14, %v442_v5  ;;  %v1769_v23 = vor.u32 %v1921_v12, %v1766_v15 }
  0x98   : > { %v483_v30 = vadd.f32 %v2322_v18, %v445_v9  ;;  %v513_v34 = vmax.f32 %v481_v29, 0.0  ;;  %v485_v50 = vadd.f32 %v2322_v18, %v447_v44 }
  0x99   : > { %1220 = vmatpush.bf16.msrb.mxu2 %v1657_v39  ;;  %v512_v32 = vmax.f32 %v480_v19, 0.0  ;;  %v410_v39 = vld [vmem:[%s2862_s0 + $0xf0] sm:$0xff] }
  0x9a   : > { %1269 = vmatpush.bf16.msrb.mxu3 %v1785_v45  ;;  %1122 = vmatpush.bf16.msrb.mxu0 %v1653_v46  ;;  %v515_v35 = vmax.f32 %v483_v30, 0.0  ;;  %v448_v43 = vmul.f32 %v2295_v59, %v410_v39  ;;  %v449_v45 = vmul.f32 %v2306_v0, %v411_v41  ;;  %v484_v46 = vadd.f32 %v2318_v14, %v446_v42 }
  0x9b   : > { %1171 = vmatpush.bf16.msrb.mxu1 %v1781_v55  ;;  %v2576_v36 = vpack.c.bf16 %v514_v33, %v512_v32  ;;  %v517_v55 = vmax.f32 %v485_v50, 0.0 }
  0x9c   : > { %v2578_v37 = vpack.c.bf16 %v515_v35, %v513_v34  ;;  %v486_v47 = vadd.f32 %v2318_v14, %v448_v43  ;;  %v487_v51 = vadd.f32 %v2322_v18, %v449_v45  ;;  %v516_v59 = vmax.f32 %v484_v46, 0.0 }
  0x9d   : > { %1221 = vmatpush.bf16.msrb.mxu2 %v1641_v13 }
  0x9e   : > { %1270 = vmatpush.bf16.msrb.mxu3 %v1769_v23  ;;  %1123 = vmatpush.bf16.msrb.mxu0 %v1637_v24  ;;  %v518_v54 = vmax.f32 %v486_v47, 0.0  ;;  %v519_v56 = vmax.f32 %v487_v51, 0.0 }
  0x9f   : > { %938 = vmatmul.bf16.gmra.mxu0 %v2432_v20  ;;  %1172 = vmatpush.bf16.msrb.mxu1 %v1765_v31 }
  0xa0   : > { %987 = vmatmul.bf16.gmra.mxu1 %v2434_v21  ;;  %1036 = vmatmul.bf16.gmra.mxu2 %v2432_v20  ;;  %v2604_v57 = vpack.c.bf16 %v518_v54, %v516_v59  ;;  %v2606_v58 = vpack.c.bf16 %v519_v56, %v517_v55 }
  0xa1   : > { %1085 = vmatmul.bf16.gmra.mxu3 %v2434_v21 }
  0xaf   : > { %943 = vmatmul.bf16.gmra.mxu0 %v2468_v52 }
  0xb0   : > { %992 = vmatmul.bf16.gmra.mxu1 %v2470_v53  ;;  %1041 = vmatmul.bf16.gmra.mxu2 %v2468_v52 }
  0xb1   : > { %1090 = vmatmul.bf16.gmra.mxu3 %v2470_v53 }
  0xbf   : > { %948 = vmatmul.bf16.gmra.mxu0 %v2504_v26 }
  0xc0   : > { %997 = vmatmul.bf16.gmra.mxu1 %v2506_v27  ;;  %1046 = vmatmul.bf16.gmra.mxu2 %v2504_v26 }
  0xc1   : > { %1095 = vmatmul.bf16.gmra.mxu3 %v2506_v27 }
  0xcf   : > { %953 = vmatmul.bf16.gmra.mxu0 %v2540_v61 }
  0xd0   : > { %1002 = vmatmul.bf16.gmra.mxu1 %v2542_v62  ;;  %1051 = vmatmul.bf16.gmra.mxu2 %v2540_v61 }
  0xd1   : > { %1100 = vmatmul.bf16.gmra.mxu3 %v2542_v62 }
  0xdf   : > { %958 = vmatmul.bf16.gmra.mxu0 %v2576_v36 }
  0xe0   : > { %1007 = vmatmul.bf16.gmra.mxu1 %v2578_v37  ;;  %1056 = vmatmul.bf16.gmra.mxu2 %v2576_v36 }
  0xe1   : > { %1105 = vmatmul.bf16.gmra.mxu3 %v2578_v37 }
  0xef   : > { %963 = vmatmul.bf16.gmra.mxu0 %v2604_v57 }
  0xf0   : > { %1012 = vmatmul.bf16.gmra.mxu1 %v2606_v58  ;;  %1061 = vmatmul.bf16.gmra.mxu2 %v2604_v57 }
  0xf1   : > { %1110 = vmatmul.bf16.gmra.mxu3 %v2606_v58 }
  0xfc   : > { %v929_v0 = vpop.f32.mrf.mxu0 }
  0xfd   : > { %v978_v14 = vpop.f32.mrf.mxu1 }
  0xfe   : > { %v979_v60 = vadd.f32 %v978_v14, %v929_v0 }
  0xff   : > { %1124 = vmatmul.bf16.vlgmr.msrb.gmra.mxu0 %v2354_v1 }
 0x100   : > { %1312 = vst [vmem:[%s2614_s7] sm:$0xff] %v979_v60  ;;  %1173 = vmatmul.bf16.vlgmr.msrb.gmra.mxu1 %v2359_v6  ;;  %1222 = vmatmul.bf16.vlgmr.msrb.gmra.mxu2 %v2354_v1 }
 0x101   : > { %1271 = vmatmul.bf16.vlgmr.msrb.gmra.mxu3 %v2359_v6 }
 0x103   : > { %v1027_v18 = vpop.f32.mrf.mxu2 }
 0x104   : > { %v1076_v63 = vpop.f32.mrf.mxu3  ;;  %v931_v2 = vpop.f32.mrf.mxu0 }
 0x105   : > { %v1077_v3 = vadd.f32 %v1076_v63, %v1027_v18  ;;  %v980_v4 = vpop.f32.mrf.mxu1 }
 0x106   : > { %v981_v5 = vadd.f32 %v980_v4, %v931_v2 }
 0x107   : > { %1313 = vst [vmem:[%s2614_s7 + $0x8] sm:$0xff] %v1077_v3 }
 0x108   : > { %1316 = vst [vmem:[%s2614_s7 + $0x20] sm:$0xff] %v981_v5 }
 0x10b   : > { %v1029_v7 = vpop.f32.mrf.mxu2 }
 0x10c   : > { %v1078_v8 = vpop.f32.mrf.mxu3  ;;  %v934_v9 = vpop.f32.mrf.mxu0 }
 0x10d   : > { %v1079_v10 = vadd.f32 %v1078_v8, %v1029_v7  ;;  %v983_v11 = vpop.f32.mrf.mxu1 }
 0x10e   : > { %v984_v1 = vadd.f32 %v983_v11, %v934_v9 }
 0x10f   : > { %1317 = vst [vmem:[%s2614_s7 + $0x28] sm:$0xff] %v1079_v10  ;;  %1129 = vmatmul.bf16.gmra.mxu0 %v2396_v48 }
 0x110   : > { %1320 = vst [vmem:[%s2614_s7 + $0x40] sm:$0xff] %v984_v1  ;;  %1178 = vmatmul.bf16.gmra.mxu1 %v2398_v49  ;;  %1227 = vmatmul.bf16.gmra.mxu2 %v2396_v48 }
 0x111   : > { %1276 = vmatmul.bf16.gmra.mxu3 %v2398_v49 }
 0x113   : > { %v1032_v6 = vpop.f32.mrf.mxu2 }
 0x114   : > { %v1081_v12 = vpop.f32.mrf.mxu3  ;;  %v936_v13 = vpop.f32.mrf.mxu0 }
 0x115   : > { %v1082_v15 = vadd.f32 %v1081_v12, %v1032_v6  ;;  %v985_v16 = vpop.f32.mrf.mxu1 }
 0x116   : > { %v986_v17 = vadd.f32 %v985_v16, %v936_v13 }
 0x117   : > { %1321 = vst [vmem:[%s2614_s7 + $0x48] sm:$0xff] %v1082_v15 }
 0x118   : > { %1324 = vst [vmem:[%s2614_s7 + $0x60] sm:$0xff] %v986_v17 }
 0x11b   : > { %v1034_v19 = vpop.f32.mrf.mxu2 }
 0x11c   : > { %v1083_v22 = vpop.f32.mrf.mxu3  ;;  %v939_v23 = vpop.f32.mrf.mxu0 }
 0x11d   : > { %v1084_v24 = vadd.f32 %v1083_v22, %v1034_v19  ;;  %v988_v25 = vpop.f32.mrf.mxu1 }
 0x11e   : > { %v989_v48 = vadd.f32 %v988_v25, %v939_v23 }
 0x11f   : > { %1325 = vst [vmem:[%s2614_s7 + $0x68] sm:$0xff] %v1084_v24  ;;  %1134 = vmatmul.bf16.gmra.mxu0 %v2432_v20 }
 0x120   : > { %1328 = vst [vmem:[%s2614_s7 + $0x80] sm:$0xff] %v989_v48  ;;  %1183 = vmatmul.bf16.gmra.mxu1 %v2434_v21  ;;  %1232 = vmatmul.bf16.gmra.mxu2 %v2432_v20 }
 0x121   : > { %1281 = vmatmul.bf16.gmra.mxu3 %v2434_v21 }
 0x123   : > { %v1037_v49 = vpop.f32.mrf.mxu2 }
 0x124   : > { %v1086_v28 = vpop.f32.mrf.mxu3  ;;  %v941_v29 = vpop.f32.mrf.mxu0 }
 0x125   : > { %v1087_v30 = vadd.f32 %v1086_v28, %v1037_v49  ;;  %v990_v31 = vpop.f32.mrf.mxu1 }
 0x126   : > { %v991_v32 = vadd.f32 %v990_v31, %v941_v29 }
 0x127   : > { %1329 = vst [vmem:[%s2614_s7 + $0x88] sm:$0xff] %v1087_v30 }
 0x128   : > { %1332 = vst [vmem:[%s2614_s7 + $0xa0] sm:$0xff] %v991_v32 }
 0x12b   : > { %v1039_v33 = vpop.f32.mrf.mxu2 }
 0x12c   : > { %v1088_v34 = vpop.f32.mrf.mxu3  ;;  %v944_v35 = vpop.f32.mrf.mxu0 }
 0x12d   : > { %v1089_v38 = vadd.f32 %v1088_v34, %v1039_v33  ;;  %v993_v39 = vpop.f32.mrf.mxu1 }
 0x12e   : > { %v994_v20 = vadd.f32 %v993_v39, %v944_v35 }
 0x12f   : > { %1333 = vst [vmem:[%s2614_s7 + $0xa8] sm:$0xff] %v1089_v38  ;;  %1139 = vmatmul.bf16.gmra.mxu0 %v2468_v52 }
 0x130   : > { %1336 = vst [vmem:[%s2614_s7 + $0xc0] sm:$0xff] %v994_v20  ;;  %1188 = vmatmul.bf16.gmra.mxu1 %v2470_v53  ;;  %1237 = vmatmul.bf16.gmra.mxu2 %v2468_v52 }
 0x131   : > { %1286 = vmatmul.bf16.gmra.mxu3 %v2470_v53 }
 0x133   : > { %v1042_v21 = vpop.f32.mrf.mxu2 }
 0x134   : > { %v1091_v40 = vpop.f32.mrf.mxu3  ;;  %v946_v41 = vpop.f32.mrf.mxu0 }
 0x135   : > { %v1092_v42 = vadd.f32 %v1091_v40, %v1042_v21  ;;  %v995_v43 = vpop.f32.mrf.mxu1 }
 0x136   : > { %v996_v44 = vadd.f32 %v995_v43, %v946_v41 }
 0x137   : > { %1337 = vst [vmem:[%s2614_s7 + $0xc8] sm:$0xff] %v1092_v42 }
 0x138   : > { %1340 = vst [vmem:[%s2614_s7 + $0xe0] sm:$0xff] %v996_v44 }
 0x13b   : > { %v1044_v45 = vpop.f32.mrf.mxu2 }
 0x13c   : > { %v1093_v46 = vpop.f32.mrf.mxu3  ;;  %v949_v47 = vpop.f32.mrf.mxu0 }
 0x13d   : > { %v1094_v50 = vadd.f32 %v1093_v46, %v1044_v45  ;;  %v998_v51 = vpop.f32.mrf.mxu1 }
 0x13e   : > { %v999_v52 = vadd.f32 %v998_v51, %v949_v47 }
 0x13f   : > { %1341 = vst [vmem:[%s2614_s7 + $0xe8] sm:$0xff] %v1094_v50  ;;  %1144 = vmatmul.bf16.gmra.mxu0 %v2504_v26 }
 0x140   : > { %1344 = vst [vmem:[%s2614_s7 + $0x100] sm:$0xff] %v999_v52  ;;  %1193 = vmatmul.bf16.gmra.mxu1 %v2506_v27  ;;  %1242 = vmatmul.bf16.gmra.mxu2 %v2504_v26 }
 0x141   : > { %1291 = vmatmul.bf16.gmra.mxu3 %v2506_v27 }
 0x143   : > { %v1047_v53 = vpop.f32.mrf.mxu2 }
 0x144   : > { %v1096_v59 = vpop.f32.mrf.mxu3  ;;  %v951_v54 = vpop.f32.mrf.mxu0 }
 0x145   : > { %v1097_v55 = vadd.f32 %v1096_v59, %v1047_v53  ;;  %v1000_v56 = vpop.f32.mrf.mxu1 }
 0x146   : > { %v1001_v0 = vadd.f32 %v1000_v56, %v951_v54 }
 0x147   : > { %1345 = vst [vmem:[%s2614_s7 + $0x108] sm:$0xff] %v1097_v55 }
 0x148   : > { %1348 = vst [vmem:[%s2614_s7 + $0x120] sm:$0xff] %v1001_v0 }
 0x14b   : > { %v1049_v14 = vpop.f32.mrf.mxu2 }
 0x14c   : > { %v1098_v60 = vpop.f32.mrf.mxu3  ;;  %v954_v18 = vpop.f32.mrf.mxu0 }
 0x14d   : > { %v1099_v63 = vadd.f32 %v1098_v60, %v1049_v14  ;;  %v1003_v2 = vpop.f32.mrf.mxu1 }
 0x14e   : > { %v1004_v26 = vadd.f32 %v1003_v2, %v954_v18 }
 0x14f   : > { %1349 = vst [vmem:[%s2614_s7 + $0x128] sm:$0xff] %v1099_v63  ;;  %1149 = vmatmul.bf16.gmra.mxu0 %v2540_v61 }
 0x150   : > { %1352 = vst [vmem:[%s2614_s7 + $0x140] sm:$0xff] %v1004_v26  ;;  %1198 = vmatmul.bf16.gmra.mxu1 %v2542_v62  ;;  %1247 = vmatmul.bf16.gmra.mxu2 %v2540_v61 }
 0x151   : > { %1296 = vmatmul.bf16.gmra.mxu3 %v2542_v62 }
 0x153   : > { %v1052_v27 = vpop.f32.mrf.mxu2 }
 0x154   : > { %v1101_v3 = vpop.f32.mrf.mxu3  ;;  %v956_v4 = vpop.f32.mrf.mxu0 }
 0x155   : > { %v1102_v5 = vadd.f32 %v1101_v3, %v1052_v27  ;;  %v1005_v7 = vpop.f32.mrf.mxu1 }
 0x156   : > { %v1006_v8 = vadd.f32 %v1005_v7, %v956_v4 }
 0x157   : > { %1353 = vst [vmem:[%s2614_s7 + $0x148] sm:$0xff] %v1102_v5 }
 0x158   : > { %1356 = vst [vmem:[%s2614_s7 + $0x160] sm:$0xff] %v1006_v8 }
 0x15b   : > { %v1054_v9 = vpop.f32.mrf.mxu2 }
 0x15c   : > { %v1103_v10 = vpop.f32.mrf.mxu3  ;;  %v959_v11 = vpop.f32.mrf.mxu0 }
 0x15d   : > { %v1104_v1 = vadd.f32 %v1103_v10, %v1054_v9  ;;  %v1008_v6 = vpop.f32.mrf.mxu1 }
 0x15e   : > { %v1009_v61 = vadd.f32 %v1008_v6, %v959_v11 }
 0x15f   : > { %1357 = vst [vmem:[%s2614_s7 + $0x168] sm:$0xff] %v1104_v1  ;;  %1154 = vmatmul.bf16.gmra.mxu0 %v2576_v36 }
 0x160   : > { %1360 = vst [vmem:[%s2614_s7 + $0x180] sm:$0xff] %v1009_v61  ;;  %1203 = vmatmul.bf16.gmra.mxu1 %v2578_v37  ;;  %1252 = vmatmul.bf16.gmra.mxu2 %v2576_v36 }
 0x161   : > { %1301 = vmatmul.bf16.gmra.mxu3 %v2578_v37 }
 0x163   : > { %v1057_v62 = vpop.f32.mrf.mxu2 }
 0x164   : > { %v1106_v12 = vpop.f32.mrf.mxu3  ;;  %v961_v13 = vpop.f32.mrf.mxu0 }
 0x165   : > { %v1107_v15 = vadd.f32 %v1106_v12, %v1057_v62  ;;  %v1010_v16 = vpop.f32.mrf.mxu1 }
 0x166   : > { %v1011_v17 = vadd.f32 %v1010_v16, %v961_v13 }
 0x167   : > { %1361 = vst [vmem:[%s2614_s7 + $0x188] sm:$0xff] %v1107_v15 }
 0x168   : > { %1364 = vst [vmem:[%s2614_s7 + $0x1a0] sm:$0xff] %v1011_v17 }
 0x16b   : > { %v1059_v19 = vpop.f32.mrf.mxu2 }
 0x16c   : > { %v1108_v22 = vpop.f32.mrf.mxu3  ;;  %v964_v23 = vpop.f32.mrf.mxu0 }
 0x16d   : > { %v1109_v24 = vadd.f32 %v1108_v22, %v1059_v19  ;;  %v1013_v25 = vpop.f32.mrf.mxu1 }
 0x16e   : > { %v1014_v36 = vadd.f32 %v1013_v25, %v964_v23 }
 0x16f   : > { %1365 = vst [vmem:[%s2614_s7 + $0x1a8] sm:$0xff] %v1109_v24  ;;  %1159 = vmatmul.bf16.gmra.mxu0 %v2604_v57 }
 0x170   : > { %1368 = vst [vmem:[%s2614_s7 + $0x1c0] sm:$0xff] %v1014_v36  ;;  %1208 = vmatmul.bf16.gmra.mxu1 %v2606_v58  ;;  %1257 = vmatmul.bf16.gmra.mxu2 %v2604_v57 }
 0x171   : > { %1306 = vmatmul.bf16.gmra.mxu3 %v2606_v58 }
 0x173   : > { %v1062_v37 = vpop.f32.mrf.mxu2 }
 0x174   : > { %v1111_v48 = vpop.f32.mrf.mxu3  ;;  %v966_v49 = vpop.f32.mrf.mxu0 }
 0x175   : > { %v1112_v28 = vadd.f32 %v1111_v48, %v1062_v37  ;;  %v1015_v29 = vpop.f32.mrf.mxu1 }
 0x176   : > { %v1016_v30 = vadd.f32 %v1015_v29, %v966_v49 }
 0x177   : > { %1369 = vst [vmem:[%s2614_s7 + $0x1c8] sm:$0xff] %v1112_v28 }
 0x178   : > { %1372 = vst [vmem:[%s2614_s7 + $0x1e0] sm:$0xff] %v1016_v30 }
 0x17b   : > { %v1064_v31 = vpop.f32.mrf.mxu2 }
 0x17c   : > { %v1113_v32 = vpop.f32.mrf.mxu3  ;;  %v1125_v33 = vpop.f32.mrf.mxu0 }
 0x17d   : > { %v1114_v34 = vadd.f32 %v1113_v32, %v1064_v31  ;;  %v1174_v35 = vpop.f32.mrf.mxu1 }
 0x17e   : > { %v1175_v57 = vadd.f32 %v1174_v35, %v1125_v33 }
 0x17f   : > { %1373 = vst [vmem:[%s2614_s7 + $0x1e8] sm:$0xff] %v1114_v34 }
 0x180   : > { %1314 = vst [vmem:[%s2614_s7 + $0x10] sm:$0xff] %v1175_v57 }
 0x183   : > { %v1223_v58 = vpop.f32.mrf.mxu2 }
 0x184   : > { %v1272_v38 = vpop.f32.mrf.mxu3  ;;  %v1127_v39 = vpop.f32.mrf.mxu0 }
 0x185   : > { %v1273_v20 = vadd.f32 %v1272_v38, %v1223_v58  ;;  %v1176_v21 = vpop.f32.mrf.mxu1 }
 0x186   : > { %v1177_v40 = vadd.f32 %v1176_v21, %v1127_v39 }
 0x187   : > { %1315 = vst [vmem:[%s2614_s7 + $0x18] sm:$0xff] %v1273_v20 }
 0x188   : > { %1318 = vst [vmem:[%s2614_s7 + $0x30] sm:$0xff] %v1177_v40 }
 0x18b   : > { %v1225_v41 = vpop.f32.mrf.mxu2 }
 0x18c   : > { %v1274_v42 = vpop.f32.mrf.mxu3  ;;  %v1130_v43 = vpop.f32.mrf.mxu0 }
 0x18d   : > { %v1275_v44 = vadd.f32 %v1274_v42, %v1225_v41  ;;  %v1179_v45 = vpop.f32.mrf.mxu1 }
 0x18e   : > { %v1180_v46 = vadd.f32 %v1179_v45, %v1130_v43 }
 0x18f   : > { %1319 = vst [vmem:[%s2614_s7 + $0x38] sm:$0xff] %v1275_v44 }
 0x190   : > { %1322 = vst [vmem:[%s2614_s7 + $0x50] sm:$0xff] %v1180_v46 }
 0x193   : > { %v1228_v47 = vpop.f32.mrf.mxu2 }
 0x194   : > { %v1277_v50 = vpop.f32.mrf.mxu3  ;;  %v1132_v51 = vpop.f32.mrf.mxu0 }
 0x195   : > { %v1278_v52 = vadd.f32 %v1277_v50, %v1228_v47  ;;  %v1181_v53 = vpop.f32.mrf.mxu1 }
 0x196   : > { %v1182_v59 = vadd.f32 %v1181_v53, %v1132_v51 }
 0x197   : > { %1323 = vst [vmem:[%s2614_s7 + $0x58] sm:$0xff] %v1278_v52 }
 0x198   : > { %1326 = vst [vmem:[%s2614_s7 + $0x70] sm:$0xff] %v1182_v59 }
 0x19b   : > { %v1230_v54 = vpop.f32.mrf.mxu2 }
 0x19c   : > { %v1279_v55 = vpop.f32.mrf.mxu3  ;;  %v1135_v56 = vpop.f32.mrf.mxu0 }
 0x19d   : > { %v1280_v0 = vadd.f32 %v1279_v55, %v1230_v54  ;;  %v1184_v14 = vpop.f32.mrf.mxu1 }
 0x19e   : > { %v1185_v60 = vadd.f32 %v1184_v14, %v1135_v56 }
 0x19f   : > { %1327 = vst [vmem:[%s2614_s7 + $0x78] sm:$0xff] %v1280_v0 }
 0x1a0   : > { %1330 = vst [vmem:[%s2614_s7 + $0x90] sm:$0xff] %v1185_v60 }
 0x1a3   : > { %v1233_v18 = vpop.f32.mrf.mxu2 }
 0x1a4   : > { %v1282_v63 = vpop.f32.mrf.mxu3  ;;  %v1137_v2 = vpop.f32.mrf.mxu0 }
 0x1a5   : > { %v1283_v26 = vadd.f32 %v1282_v63, %v1233_v18  ;;  %v1186_v27 = vpop.f32.mrf.mxu1 }
 0x1a6   : > { %v1187_v3 = vadd.f32 %v1186_v27, %v1137_v2 }
 0x1a7   : > { %1331 = vst [vmem:[%s2614_s7 + $0x98] sm:$0xff] %v1283_v26 }
 0x1a8   : > { %1334 = vst [vmem:[%s2614_s7 + $0xb0] sm:$0xff] %v1187_v3  ;;  %v1401_v3 = vld [vmem:[%s2614_s7] sm:$0xff] (%p2093_p6) }
 0x1a9   : > { %1402 = vst [vmem:[%s2719_s12] sm:$0xff] (%p2093_p6), %v1401_v3 }
 0x1ab   : > { %v1235_v4 = vpop.f32.mrf.mxu2 }
 0x1ac   : > { %v1284_v5 = vpop.f32.mrf.mxu3  ;;  %v1140_v7 = vpop.f32.mrf.mxu0 }
 0x1ad   : > { %v1285_v8 = vadd.f32 %v1284_v5, %v1235_v4  ;;  %v1189_v9 = vpop.f32.mrf.mxu1  ;;  %v1403_v4 = vld [vmem:[%s2614_s7 + $0x8] sm:$0xff] (%p2093_p6)  ;;  %v1405_v5 = vld [vmem:[%s2614_s7 + $0x10] sm:$0xff] (%p2093_p6) }
 0x1ae   : > { %v1190_v10 = vadd.f32 %v1189_v9, %v1140_v7  ;;  %v1407_v7 = vld [vmem:[%s2614_s7 + $0x18] sm:$0xff] (%p2093_p6)  ;;  %1404 = vst [vmem:[%s2719_s12 + $0x8] sm:$0xff] (%p2093_p6), %v1403_v4  ;;  %v1411_v9 = vld [vmem:[%s2614_s7 + $0x28] sm:$0xff] (%p2093_p6) }
 0x1af   : > { %1335 = vst [vmem:[%s2614_s7 + $0xb8] sm:$0xff] %v1285_v8  ;;  %v1409_v8 = vld [vmem:[%s2614_s7 + $0x20] sm:$0xff] (%p2093_p6) }
 0x1b0   : > { %1338 = vst [vmem:[%s2614_s7 + $0xd0] sm:$0xff] %v1190_v10  ;;  %v1413_v10 = vld [vmem:[%s2614_s7 + $0x30] sm:$0xff] (%p2093_p6) }
 0x1b1   : > { %1406 = vst [vmem:[%s2719_s12 + $0x10] sm:$0xff] (%p2093_p6), %v1405_v5 }
 0x1b2   : > { %1408 = vst [vmem:[%s2719_s12 + $0x18] sm:$0xff] (%p2093_p6), %v1407_v7 }
 0x1b3   : > { %v1238_v11 = vpop.f32.mrf.mxu2  ;;  %1410 = vst [vmem:[%s2719_s12 + $0x80] sm:$0xff] (%p2093_p6), %v1409_v8 }
 0x1b4   : > { %v1287_v1 = vpop.f32.mrf.mxu3  ;;  %v1142_v6 = vpop.f32.mrf.mxu0  ;;  %1412 = vst [vmem:[%s2719_s12 + $0x88] sm:$0xff] (%p2093_p6), %v1411_v9 }
 0x1b5   : > { %v1288_v61 = vadd.f32 %v1287_v1, %v1238_v11  ;;  %v1191_v62 = vpop.f32.mrf.mxu1  ;;  %v1415_v11 = vld [vmem:[%s2614_s7 + $0x38] sm:$0xff] (%p2093_p6)  ;;  %v1417_v1 = vld [vmem:[%s2614_s7 + $0x40] sm:$0xff] (%p2093_p6)  ;;  %1414 = vst [vmem:[%s2719_s12 + $0x90] sm:$0xff] (%p2093_p6), %v1413_v10 }
 0x1b6   : > { %v1192_v12 = vadd.f32 %v1191_v62, %v1142_v6  ;;  %v1419_v6 = vld [vmem:[%s2614_s7 + $0x48] sm:$0xff] (%p2093_p6)  ;;  %1416 = vst [vmem:[%s2719_s12 + $0x98] sm:$0xff] (%p2093_p6), %v1415_v11  ;;  %v1423_v62 = vld [vmem:[%s2614_s7 + $0x58] sm:$0xff] (%p2093_p6) }
 0x1b7   : > { %1339 = vst [vmem:[%s2614_s7 + $0xd8] sm:$0xff] %v1288_v61  ;;  %v1421_v61 = vld [vmem:[%s2614_s7 + $0x50] sm:$0xff] (%p2093_p6) }
 0x1b8   : > { %1342 = vst [vmem:[%s2614_s7 + $0xf0] sm:$0xff] %v1192_v12  ;;  %v1425_v12 = vld [vmem:[%s2614_s7 + $0x60] sm:$0xff] (%p2093_p6) }
 0x1b9   : > { %1418 = vst [vmem:[%s2719_s12 + $0x100] sm:$0xff] (%p2093_p6), %v1417_v1 }
 0x1ba   : > { %1420 = vst [vmem:[%s2719_s12 + $0x108] sm:$0xff] (%p2093_p6), %v1419_v6 }
 0x1bb   : > { %v1240_v13 = vpop.f32.mrf.mxu2  ;;  %1422 = vst [vmem:[%s2719_s12 + $0x110] sm:$0xff] (%p2093_p6), %v1421_v61 }
 0x1bc   : > { %v1289_v15 = vpop.f32.mrf.mxu3  ;;  %v1145_v16 = vpop.f32.mrf.mxu0  ;;  %1424 = vst [vmem:[%s2719_s12 + $0x118] sm:$0xff] (%p2093_p6), %v1423_v62 }
 0x1bd   : > { %v1290_v17 = vadd.f32 %v1289_v15, %v1240_v13  ;;  %v1194_v19 = vpop.f32.mrf.mxu1  ;;  %v1427_v13 = vld [vmem:[%s2614_s7 + $0x68] sm:$0xff] (%p2093_p6)  ;;  %v1429_v15 = vld [vmem:[%s2614_s7 + $0x70] sm:$0xff] (%p2093_p6)  ;;  %1426 = vst [vmem:[%s2719_s12 + $0x180] sm:$0xff] (%p2093_p6), %v1425_v12 }
 0x1be   : > { %v1195_v22 = vadd.f32 %v1194_v19, %v1145_v16  ;;  %v1431_v16 = vld [vmem:[%s2614_s7 + $0x78] sm:$0xff] (%p2093_p6)  ;;  %1428 = vst [vmem:[%s2719_s12 + $0x188] sm:$0xff] (%p2093_p6), %v1427_v13  ;;  %v1435_v19 = vld [vmem:[%s2614_s7 + $0x88] sm:$0xff] (%p2093_p6) }
 0x1bf   : > { %1343 = vst [vmem:[%s2614_s7 + $0xf8] sm:$0xff] %v1290_v17  ;;  %v1433_v17 = vld [vmem:[%s2614_s7 + $0x80] sm:$0xff] (%p2093_p6) }
 0x1c0   : > { %1346 = vst [vmem:[%s2614_s7 + $0x110] sm:$0xff] %v1195_v22  ;;  %v1437_v22 = vld [vmem:[%s2614_s7 + $0x90] sm:$0xff] (%p2093_p6) }
 0x1c1   : > { %1430 = vst [vmem:[%s2719_s12 + $0x190] sm:$0xff] (%p2093_p6), %v1429_v15 }
 0x1c2   : > { %1432 = vst [vmem:[%s2719_s12 + $0x198] sm:$0xff] (%p2093_p6), %v1431_v16 }
 0x1c3   : > { %v1243_v23 = vpop.f32.mrf.mxu2  ;;  %1434 = vst [vmem:[%s2719_s12 + $0x200] sm:$0xff] (%p2093_p6), %v1433_v17 }
 0x1c4   : > { %v1292_v24 = vpop.f32.mrf.mxu3  ;;  %v1147_v25 = vpop.f32.mrf.mxu0  ;;  %1436 = vst [vmem:[%s2719_s12 + $0x208] sm:$0xff] (%p2093_p6), %v1435_v19 }
 0x1c5   : > { %v1293_v36 = vadd.f32 %v1292_v24, %v1243_v23  ;;  %v1196_v37 = vpop.f32.mrf.mxu1  ;;  %v1439_v23 = vld [vmem:[%s2614_s7 + $0x98] sm:$0xff] (%p2093_p6)  ;;  %v1441_v24 = vld [vmem:[%s2614_s7 + $0xa0] sm:$0xff] (%p2093_p6)  ;;  %1438 = vst [vmem:[%s2719_s12 + $0x210] sm:$0xff] (%p2093_p6), %v1437_v22 }
 0x1c6   : > { %v1197_v48 = vadd.f32 %v1196_v37, %v1147_v25  ;;  %v1443_v25 = vld [vmem:[%s2614_s7 + $0xa8] sm:$0xff] (%p2093_p6)  ;;  %1440 = vst [vmem:[%s2719_s12 + $0x218] sm:$0xff] (%p2093_p6), %v1439_v23  ;;  %v1447_v37 = vld [vmem:[%s2614_s7 + $0xb8] sm:$0xff] (%p2093_p6) }
 0x1c7   : > { %1347 = vst [vmem:[%s2614_s7 + $0x118] sm:$0xff] %v1293_v36  ;;  %v1445_v36 = vld [vmem:[%s2614_s7 + $0xb0] sm:$0xff] (%p2093_p6) }
 0x1c8   : > { %1350 = vst [vmem:[%s2614_s7 + $0x130] sm:$0xff] %v1197_v48  ;;  %v1449_v48 = vld [vmem:[%s2614_s7 + $0xc0] sm:$0xff] (%p2093_p6) }
 0x1c9   : > { %1442 = vst [vmem:[%s2719_s12 + $0x280] sm:$0xff] (%p2093_p6), %v1441_v24 }
 0x1ca   : > { %1444 = vst [vmem:[%s2719_s12 + $0x288] sm:$0xff] (%p2093_p6), %v1443_v25 }
 0x1cb   : > { %v1245_v49 = vpop.f32.mrf.mxu2  ;;  %1446 = vst [vmem:[%s2719_s12 + $0x290] sm:$0xff] (%p2093_p6), %v1445_v36 }
 0x1cc   : > { %v1294_v28 = vpop.f32.mrf.mxu3  ;;  %v1150_v29 = vpop.f32.mrf.mxu0  ;;  %1448 = vst [vmem:[%s2719_s12 + $0x298] sm:$0xff] (%p2093_p6), %v1447_v37 }
 0x1cd   : > { %v1295_v30 = vadd.f32 %v1294_v28, %v1245_v49  ;;  %v1199_v31 = vpop.f32.mrf.mxu1  ;;  %v1451_v49 = vld [vmem:[%s2614_s7 + $0xc8] sm:$0xff] (%p2093_p6)  ;;  %v1453_v28 = vld [vmem:[%s2614_s7 + $0xd0] sm:$0xff] (%p2093_p6)  ;;  %1450 = vst [vmem:[%s2719_s12 + $0x300] sm:$0xff] (%p2093_p6), %v1449_v48 }
 0x1ce   : > { %v1200_v32 = vadd.f32 %v1199_v31, %v1150_v29  ;;  %v1455_v29 = vld [vmem:[%s2614_s7 + $0xd8] sm:$0xff] (%p2093_p6)  ;;  %1452 = vst [vmem:[%s2719_s12 + $0x308] sm:$0xff] (%p2093_p6), %v1451_v49  ;;  %v1459_v31 = vld [vmem:[%s2614_s7 + $0xe8] sm:$0xff] (%p2093_p6) }
 0x1cf   : > { %1351 = vst [vmem:[%s2614_s7 + $0x138] sm:$0xff] %v1295_v30  ;;  %v1457_v30 = vld [vmem:[%s2614_s7 + $0xe0] sm:$0xff] (%p2093_p6) }
 0x1d0   : > { %1354 = vst [vmem:[%s2614_s7 + $0x150] sm:$0xff] %v1200_v32  ;;  %v1461_v32 = vld [vmem:[%s2614_s7 + $0xf0] sm:$0xff] (%p2093_p6) }
 0x1d1   : > { %1454 = vst [vmem:[%s2719_s12 + $0x310] sm:$0xff] (%p2093_p6), %v1453_v28 }
 0x1d2   : > { %1456 = vst [vmem:[%s2719_s12 + $0x318] sm:$0xff] (%p2093_p6), %v1455_v29 }
 0x1d3   : > { %v1248_v33 = vpop.f32.mrf.mxu2  ;;  %1458 = vst [vmem:[%s2719_s12 + $0x380] sm:$0xff] (%p2093_p6), %v1457_v30 }
 0x1d4   : > { %v1297_v34 = vpop.f32.mrf.mxu3  ;;  %v1152_v35 = vpop.f32.mrf.mxu0  ;;  %1460 = vst [vmem:[%s2719_s12 + $0x388] sm:$0xff] (%p2093_p6), %v1459_v31 }
 0x1d5   : > { %v1298_v57 = vadd.f32 %v1297_v34, %v1248_v33  ;;  %v1201_v58 = vpop.f32.mrf.mxu1  ;;  %v1463_v33 = vld [vmem:[%s2614_s7 + $0xf8] sm:$0xff] (%p2093_p6)  ;;  %v1465_v34 = vld [vmem:[%s2614_s7 + $0x100] sm:$0xff] (%p2093_p6)  ;;  %1462 = vst [vmem:[%s2719_s12 + $0x390] sm:$0xff] (%p2093_p6), %v1461_v32 }
 0x1d6   : > { %v1202_v38 = vadd.f32 %v1201_v58, %v1152_v35  ;;  %v1467_v35 = vld [vmem:[%s2614_s7 + $0x108] sm:$0xff] (%p2093_p6)  ;;  %1464 = vst [vmem:[%s2719_s12 + $0x398] sm:$0xff] (%p2093_p6), %v1463_v33  ;;  %v1471_v58 = vld [vmem:[%s2614_s7 + $0x118] sm:$0xff] (%p2093_p6) }
 0x1d7   : > { %1355 = vst [vmem:[%s2614_s7 + $0x158] sm:$0xff] %v1298_v57  ;;  %v1469_v57 = vld [vmem:[%s2614_s7 + $0x110] sm:$0xff] (%p2093_p6) }
 0x1d8   : > { %1358 = vst [vmem:[%s2614_s7 + $0x170] sm:$0xff] %v1202_v38  ;;  %v1473_v38 = vld [vmem:[%s2614_s7 + $0x120] sm:$0xff] (%p2093_p6) }
 0x1d9   : > { %1466 = vst [vmem:[%s2719_s12 + $0x400] sm:$0xff] (%p2093_p6), %v1465_v34 }
 0x1da   : > { %1468 = vst [vmem:[%s2719_s12 + $0x408] sm:$0xff] (%p2093_p6), %v1467_v35 }
 0x1db   : > { %v1250_v39 = vpop.f32.mrf.mxu2  ;;  %1470 = vst [vmem:[%s2719_s12 + $0x410] sm:$0xff] (%p2093_p6), %v1469_v57 }
 0x1dc   : > { %v1299_v20 = vpop.f32.mrf.mxu3  ;;  %v1155_v21 = vpop.f32.mrf.mxu0  ;;  %1472 = vst [vmem:[%s2719_s12 + $0x418] sm:$0xff] (%p2093_p6), %v1471_v58 }
 0x1dd   : > { %v1300_v40 = vadd.f32 %v1299_v20, %v1250_v39  ;;  %v1204_v41 = vpop.f32.mrf.mxu1  ;;  %v1475_v39 = vld [vmem:[%s2614_s7 + $0x128] sm:$0xff] (%p2093_p6)  ;;  %v1477_v20 = vld [vmem:[%s2614_s7 + $0x130] sm:$0xff] (%p2093_p6)  ;;  %1474 = vst [vmem:[%s2719_s12 + $0x480] sm:$0xff] (%p2093_p6), %v1473_v38 }
 0x1de   : > { %v1205_v42 = vadd.f32 %v1204_v41, %v1155_v21  ;;  %v1479_v21 = vld [vmem:[%s2614_s7 + $0x138] sm:$0xff] (%p2093_p6)  ;;  %1476 = vst [vmem:[%s2719_s12 + $0x488] sm:$0xff] (%p2093_p6), %v1475_v39  ;;  %v1483_v41 = vld [vmem:[%s2614_s7 + $0x148] sm:$0xff] (%p2093_p6) }
 0x1df   : > { %1359 = vst [vmem:[%s2614_s7 + $0x178] sm:$0xff] %v1300_v40  ;;  %v1481_v40 = vld [vmem:[%s2614_s7 + $0x140] sm:$0xff] (%p2093_p6) }
 0x1e0   : > { %1362 = vst [vmem:[%s2614_s7 + $0x190] sm:$0xff] %v1205_v42  ;;  %v1485_v42 = vld [vmem:[%s2614_s7 + $0x150] sm:$0xff] (%p2093_p6) }
 0x1e1   : > { %1478 = vst [vmem:[%s2719_s12 + $0x490] sm:$0xff] (%p2093_p6), %v1477_v20 }
 0x1e2   : > { %1480 = vst [vmem:[%s2719_s12 + $0x498] sm:$0xff] (%p2093_p6), %v1479_v21 }
 0x1e3   : > { %v1253_v43 = vpop.f32.mrf.mxu2  ;;  %1482 = vst [vmem:[%s2719_s12 + $0x500] sm:$0xff] (%p2093_p6), %v1481_v40 }
 0x1e4   : > { %v1302_v44 = vpop.f32.mrf.mxu3  ;;  %v1157_v45 = vpop.f32.mrf.mxu0  ;;  %1484 = vst [vmem:[%s2719_s12 + $0x508] sm:$0xff] (%p2093_p6), %v1483_v41 }
 0x1e5   : > { %v1303_v46 = vadd.f32 %v1302_v44, %v1253_v43  ;;  %v1206_v47 = vpop.f32.mrf.mxu1  ;;  %v1487_v43 = vld [vmem:[%s2614_s7 + $0x158] sm:$0xff] (%p2093_p6)  ;;  %v1489_v44 = vld [vmem:[%s2614_s7 + $0x160] sm:$0xff] (%p2093_p6)  ;;  %1486 = vst [vmem:[%s2719_s12 + $0x510] sm:$0xff] (%p2093_p6), %v1485_v42 }
 0x1e6   : > { %v1207_v50 = vadd.f32 %v1206_v47, %v1157_v45  ;;  %v1491_v45 = vld [vmem:[%s2614_s7 + $0x168] sm:$0xff] (%p2093_p6)  ;;  %1488 = vst [vmem:[%s2719_s12 + $0x518] sm:$0xff] (%p2093_p6), %v1487_v43  ;;  %v1495_v47 = vld [vmem:[%s2614_s7 + $0x178] sm:$0xff] (%p2093_p6) }
 0x1e7   : > { %1363 = vst [vmem:[%s2614_s7 + $0x198] sm:$0xff] %v1303_v46  ;;  %v1493_v46 = vld [vmem:[%s2614_s7 + $0x170] sm:$0xff] (%p2093_p6) }
 0x1e8   : > { %1366 = vst [vmem:[%s2614_s7 + $0x1b0] sm:$0xff] %v1207_v50  ;;  %v1497_v50 = vld [vmem:[%s2614_s7 + $0x180] sm:$0xff] (%p2093_p6) }
 0x1e9   : > { %1490 = vst [vmem:[%s2719_s12 + $0x580] sm:$0xff] (%p2093_p6), %v1489_v44 }
 0x1ea   : > { %1492 = vst [vmem:[%s2719_s12 + $0x588] sm:$0xff] (%p2093_p6), %v1491_v45 }
 0x1eb   : > { %v1255_v51 = vpop.f32.mrf.mxu2  ;;  %1494 = vst [vmem:[%s2719_s12 + $0x590] sm:$0xff] (%p2093_p6), %v1493_v46 }
 0x1ec   : > { %v1304_v52 = vpop.f32.mrf.mxu3  ;;  %v1160_v53 = vpop.f32.mrf.mxu0  ;;  %1496 = vst [vmem:[%s2719_s12 + $0x598] sm:$0xff] (%p2093_p6), %v1495_v47 }
 0x1ed   : > { %v1305_v59 = vadd.f32 %v1304_v52, %v1255_v51  ;;  %v1209_v54 = vpop.f32.mrf.mxu1  ;;  %v1499_v51 = vld [vmem:[%s2614_s7 + $0x188] sm:$0xff] (%p2093_p6)  ;;  %v1501_v52 = vld [vmem:[%s2614_s7 + $0x190] sm:$0xff] (%p2093_p6)  ;;  %1498 = vst [vmem:[%s2719_s12 + $0x600] sm:$0xff] (%p2093_p6), %v1497_v50 }
 0x1ee   : > { %v1210_v55 = vadd.f32 %v1209_v54, %v1160_v53  ;;  %v1503_v53 = vld [vmem:[%s2614_s7 + $0x198] sm:$0xff] (%p2093_p6)  ;;  %1500 = vst [vmem:[%s2719_s12 + $0x608] sm:$0xff] (%p2093_p6), %v1499_v51  ;;  %v1507_v54 = vld [vmem:[%s2614_s7 + $0x1a8] sm:$0xff] (%p2093_p6) }
 0x1ef   : > { %1367 = vst [vmem:[%s2614_s7 + $0x1b8] sm:$0xff] %v1305_v59  ;;  %v1505_v59 = vld [vmem:[%s2614_s7 + $0x1a0] sm:$0xff] (%p2093_p6) }
 0x1f0   : > { %1370 = vst [vmem:[%s2614_s7 + $0x1d0] sm:$0xff] %v1210_v55  ;;  %v1509_v55 = vld [vmem:[%s2614_s7 + $0x1b0] sm:$0xff] (%p2093_p6) }
 0x1f1   : > { %1502 = vst [vmem:[%s2719_s12 + $0x610] sm:$0xff] (%p2093_p6), %v1501_v52 }
 0x1f2   : > { %1504 = vst [vmem:[%s2719_s12 + $0x618] sm:$0xff] (%p2093_p6), %v1503_v53 }
 0x1f3   : > { %v1258_v56 = vpop.f32.mrf.mxu2  ;;  %1506 = vst [vmem:[%s2719_s12 + $0x680] sm:$0xff] (%p2093_p6), %v1505_v59 }
 0x1f4   : > { %v1307_v0 = vpop.f32.mrf.mxu3  ;;  %v1162_v14 = vpop.f32.mrf.mxu0  ;;  %1508 = vst [vmem:[%s2719_s12 + $0x688] sm:$0xff] (%p2093_p6), %v1507_v54 }
 0x1f5   : > { %v1308_v60 = vadd.f32 %v1307_v0, %v1258_v56  ;;  %v1211_v18 = vpop.f32.mrf.mxu1  ;;  %v1513_v0 = vld [vmem:[%s2614_s7 + $0x1c0] sm:$0xff] (%p2093_p6)  ;;  %1510 = vst [vmem:[%s2719_s12 + $0x690] sm:$0xff] (%p2093_p6), %v1509_v55 }
 0x1f6   : > { %v1212_v63 = vadd.f32 %v1211_v18, %v1162_v14  ;;  %v1511_v56 = vld [vmem:[%s2614_s7 + $0x1b8] sm:$0xff] (%p2093_p6)  ;;  %v1515_v14 = vld [vmem:[%s2614_s7 + $0x1c8] sm:$0xff] (%p2093_p6)  ;;  %1514 = vst [vmem:[%s2719_s12 + $0x700] sm:$0xff] (%p2093_p6), %v1513_v0 }
 0x1f7   : > { %1371 = vst [vmem:[%s2614_s7 + $0x1d8] sm:$0xff] %v1308_v60  ;;  %v1517_v60 = vld [vmem:[%s2614_s7 + $0x1d0] sm:$0xff] (%p2093_p6) }
 0x1f8   : > { %1374 = vst [vmem:[%s2614_s7 + $0x1f0] sm:$0xff] %v1212_v63  ;;  %v1521_v63 = vld [vmem:[%s2614_s7 + $0x1e0] sm:$0xff] (%p2093_p6) }
 0x1f9   : > { %1512 = vst [vmem:[%s2719_s12 + $0x698] sm:$0xff] (%p2093_p6), %v1511_v56 }
 0x1fa   : > { %1516 = vst [vmem:[%s2719_s12 + $0x708] sm:$0xff] (%p2093_p6), %v1515_v14 }
 0x1fb   : > { %v1260_v2 = vpop.f32.mrf.mxu2  ;;  %1382 = sbr.rel (!%p2093_p6) target bundleno = 520 (0x208), region = 63  ;;  %1518 = vst [vmem:[%s2719_s12 + $0x710] sm:$0xff] (%p2093_p6), %v1517_v60 }
 0x1fc   : > { %v1309_v26 = vpop.f32.mrf.mxu3  ;;  %1522 = vst [vmem:[%s2719_s12 + $0x780] sm:$0xff] (%p2093_p6), %v1521_v63 }
 0x1fd   : > { %v1310_v27 = vadd.f32 %v1309_v26, %v1260_v2  ;;  %v1523_v2 = vld [vmem:[%s2614_s7 + $0x1e8] sm:$0xff] (%p2093_p6) }
 0x1fe   : > { %v1519_v18 = vld [vmem:[%s2614_s7 + $0x1d8] sm:$0xff] (%p2093_p6)  ;;  %1524 = vst [vmem:[%s2719_s12 + $0x788] sm:$0xff] (%p2093_p6), %v1523_v2 }
 0x1ff   : > { %1375 = vst [vmem:[%s2614_s7 + $0x1f8] sm:$0xff] %v1310_v27  ;;  %v1525_v26 = vld [vmem:[%s2614_s7 + $0x1f0] sm:$0xff] (%p2093_p6) }
 0x200   : > { %1520 = vst [vmem:[%s2719_s12 + $0x718] sm:$0xff] %v1519_v18 }
 0x201   : > { %1526 = vst [vmem:[%s2719_s12 + $0x790] sm:$0xff] %v1525_v26 }
 0x206   : > { %v1527_v27 = vld [vmem:[%s2614_s7 + $0x1f8] sm:$0xff] }
 0x207   : > { %1528 = vst [vmem:[%s2719_s12 + $0x798] sm:$0xff] %v1527_v27 }
 0x208 PF: > { %s14_s19 = sadd.s32 1, %s2031_s19   ;;  %s2868_s15 = smov %s2019_s16 }
 0x209   : > { %p11_p11 = scmp.ge.s32.totalorder %s14_s19, 6   ;;  %s2869_s16 = smov %s2098_s25 }
 0x20a   : > { %s2870_s17 = smov %s2027_s18  ;;  %s2871_s18 = smov %s2873_s20 }
 0x20b   :  { %13 = sbr.rel (!%p11_p11) target bundleno = 3 (0x3), region = 120 }

// kernel: lfw_generator.14
= control target key start
LH: loop header
LB: loop body
LE: loop exit
PB: predicated region body
PF: predicated region fallthrough
CT: control target
= control target key end

     0   :  { %s409_s9 = smov 0   ;;  %s468_s0 = inlined_call_operand.vmem [shape: f32[512,128], index: 0, kind: input, shape index: {}]   ;;  %s469_s1 = inlined_call_operand.vmem [shape: f32[16,128], index: 1, kind: output, shape index: {0}]   ;;  %s470_s2 = inlined_call_operand.vmem [shape: f32[16,128], index: 2, kind: output, shape index: {1}]  }
   0x1 LB: > { %s415_s10 = sadd.s32 4294967295, %s392_s9   ;;  %p371_p0 = scmp.ge.s32.totalorder %s392_s9, 1  ;;  %s392_s9 = sphi %s409_s9, %s13_s9  }
   0x2   : > { %p116_p1 = scmp.lt.s32.totalorder %s392_s9, 3 }
   0x4   : > { %p117_p2 = pnand %p371_p0, %p116_p1 }
   0x5   : > { %s372_s11 = sshll.u32 (!%p117_p2), %s415_s10, 5  ;;  %p147_p4 = scmp.lt.s32.totalorder (!%p117_p2), %s415_s10, 1 }
   0x6   : > { %120 = sbr.rel (%p117_p2) target bundleno = 80 (0x50), region = 24  ;;  %p142_p3 = scmp.lt.s32.totalorder (!%p117_p2), %s372_s11, 63 }
   0xb   : > { %s472_s11 = smov (!%p142_p3, %s372_s11), 63  ;;  %s474_s10 = smov (!%p147_p4, %s415_s10), 1 }
   0xc   : > { %s373_s12 = sshll.u32 %s472_s11, 3  ;;  %s374_s16 = sshll.u32 %s474_s10, 3 }
   0xd   : > { %s423_s15 = scalar_lea.vmem %s468_s0, %s373_s12  ;;  %s150_s19 = scalar_lea.vmem %s469_s1, %s374_s16 }
   0xe   : > { %v155_v0 = vld [vmem:[%s423_s15] sm:$0xff]  ;;  %v156_v1 = vld [vmem:[%s423_s15 + $0x8] sm:$0xff]  ;;  %v157_v2 = vld [vmem:[%s423_s15 + $0x10] sm:$0xff]  ;;  %s154_s22 = scalar_lea.vmem %s470_s2, %s374_s16 }
   0xf   : > { %v158_v3 = vld [vmem:[%s423_s15 + $0x18] sm:$0xff]  ;;  %v187_v4 = vadd.f32 %v156_v1, %v155_v0  ;;  %v219_v5 = vmul.f32 %v155_v0, %v155_v0  ;;  %v220_v6 = vmul.f32 %v156_v1, %v156_v1  ;;  %v221_v7 = vmul.f32 %v157_v2, %v157_v2  ;;  %v159_v8 = vld [vmem:[%s423_s15 + $0x20] sm:$0xff]  ;;  %v160_v12 = vld [vmem:[%s423_s15 + $0x28] sm:$0xff] }
  0x10   : > { %v222_v10 = vmul.f32 %v158_v3, %v158_v3  ;;  %v223_v14 = vmul.f32 %v159_v8, %v159_v8  ;;  %v161_v16 = vld [vmem:[%s423_s15 + $0x30] sm:$0xff]  ;;  %v224_v18 = vmul.f32 %v160_v12, %v160_v12  ;;  %v162_v20 = vld [vmem:[%s423_s15 + $0x38] sm:$0xff]  ;;  %v163_v24 = vld [vmem:[%s423_s15 + $0x40] sm:$0xff] }
  0x11   : > { %v188_v9 = vadd.f32 %v187_v4, %v157_v2  ;;  %v251_v11 = vadd.f32 %v220_v6, %v219_v5  ;;  %v225_v22 = vmul.f32 %v161_v16, %v161_v16  ;;  %v226_v26 = vmul.f32 %v162_v20, %v162_v20  ;;  %v164_v28 = vld [vmem:[%s423_s15 + $0x48] sm:$0xff]  ;;  %v165_v32 = vld [vmem:[%s423_s15 + $0x50] sm:$0xff]  ;;  %v166_v36 = vld [vmem:[%s423_s15 + $0x58] sm:$0xff] }
  0x12   : > { %v227_v30 = vmul.f32 %v163_v24, %v163_v24  ;;  %v228_v34 = vmul.f32 %v164_v28, %v164_v28  ;;  %v229_v38 = vmul.f32 %v165_v32, %v165_v32  ;;  %v167_v40 = vld [vmem:[%s423_s15 + $0x60] sm:$0xff]  ;;  %v230_v42 = vmul.f32 %v166_v36, %v166_v36  ;;  %v168_v44 = vld [vmem:[%s423_s15 + $0x68] sm:$0xff]  ;;  %v169_v48 = vld [vmem:[%s423_s15 + $0x70] sm:$0xff] }
  0x13   : > { %v189_v13 = vadd.f32 %v188_v9, %v158_v3  ;;  %v252_v15 = vadd.f32 %v251_v11, %v221_v7  ;;  %v231_v46 = vmul.f32 %v167_v40, %v167_v40  ;;  %v232_v50 = vmul.f32 %v168_v44, %v168_v44  ;;  %v170_v52 = vld [vmem:[%s423_s15 + $0x78] sm:$0xff]  ;;  %v171_v56 = vld [vmem:[%s423_s15 + $0x80] sm:$0xff]  ;;  %v172_v60 = vld [vmem:[%s423_s15 + $0x88] sm:$0xff] }
  0x14   : > { %v233_v54 = vmul.f32 %v169_v48, %v169_v48  ;;  %v234_v58 = vmul.f32 %v170_v52, %v170_v52  ;;  %v235_v62 = vmul.f32 %v171_v56, %v171_v56  ;;  %v173_v0 = vld [vmem:[%s423_s15 + $0x90] sm:$0xff]  ;;  %v236_v2 = vmul.f32 %v172_v60, %v172_v60  ;;  %v174_v4 = vld [vmem:[%s423_s15 + $0x98] sm:$0xff] }
  0x15   : > { %v190_v17 = vadd.f32 %v189_v13, %v159_v8  ;;  %v253_v19 = vadd.f32 %v252_v15, %v222_v10  ;;  %v237_v6 = vmul.f32 %v173_v0, %v173_v0  ;;  %v175_v8 = vld [vmem:[%s423_s15 + $0xa0] sm:$0xff]  ;;  %v238_v10 = vmul.f32 %v174_v4, %v174_v4 }
  0x17   : > { %v191_v21 = vadd.f32 %v190_v17, %v160_v12  ;;  %v254_v23 = vadd.f32 %v253_v19, %v223_v14  ;;  %v176_v12 = vld [vmem:[%s423_s15 + $0xa8] sm:$0xff]  ;;  %v239_v14 = vmul.f32 %v175_v8, %v175_v8 }
  0x19   : > { %v192_v25 = vadd.f32 %v191_v21, %v161_v16  ;;  %v255_v27 = vadd.f32 %v254_v23, %v224_v18  ;;  %v177_v16 = vld [vmem:[%s423_s15 + $0xb0] sm:$0xff]  ;;  %v240_v18 = vmul.f32 %v176_v12, %v176_v12 }
  0x1b   : > { %v193_v29 = vadd.f32 %v192_v25, %v162_v20  ;;  %v256_v31 = vadd.f32 %v255_v27, %v225_v22  ;;  %v178_v20 = vld [vmem:[%s423_s15 + $0xb8] sm:$0xff]  ;;  %v241_v22 = vmul.f32 %v177_v16, %v177_v16 }
  0x1d   : > { %v194_v33 = vadd.f32 %v193_v29, %v163_v24  ;;  %v257_v35 = vadd.f32 %v256_v31, %v226_v26  ;;  %v179_v24 = vld [vmem:[%s423_s15 + $0xc0] sm:$0xff]  ;;  %v242_v26 = vmul.f32 %v178_v20, %v178_v20 }
  0x1f   : > { %v195_v37 = vadd.f32 %v194_v33, %v164_v28  ;;  %v258_v39 = vadd.f32 %v257_v35, %v227_v30  ;;  %v180_v28 = vld [vmem:[%s423_s15 + $0xc8] sm:$0xff]  ;;  %v243_v30 = vmul.f32 %v179_v24, %v179_v24 }
  0x21   : > { %v196_v41 = vadd.f32 %v195_v37, %v165_v32  ;;  %v259_v43 = vadd.f32 %v258_v39, %v228_v34  ;;  %v181_v32 = vld [vmem:[%s423_s15 + $0xd0] sm:$0xff]  ;;  %v244_v34 = vmul.f32 %v180_v28, %v180_v28 }
  0x23   : > { %v197_v45 = vadd.f32 %v196_v41, %v166_v36  ;;  %v260_v47 = vadd.f32 %v259_v43, %v229_v38  ;;  %v182_v36 = vld [vmem:[%s423_s15 + $0xd8] sm:$0xff]  ;;  %v245_v38 = vmul.f32 %v181_v32, %v181_v32 }
  0x25   : > { %v198_v49 = vadd.f32 %v197_v45, %v167_v40  ;;  %v261_v51 = vadd.f32 %v260_v47, %v230_v42  ;;  %v183_v40 = vld [vmem:[%s423_s15 + $0xe0] sm:$0xff]  ;;  %v246_v42 = vmul.f32 %v182_v36, %v182_v36 }
  0x27   : > { %v199_v53 = vadd.f32 %v198_v49, %v168_v44  ;;  %v262_v55 = vadd.f32 %v261_v51, %v231_v46  ;;  %v184_v44 = vld [vmem:[%s423_s15 + $0xe8] sm:$0xff]  ;;  %v247_v46 = vmul.f32 %v183_v40, %v183_v40 }
  0x29   : > { %v200_v57 = vadd.f32 %v199_v53, %v169_v48  ;;  %v263_v59 = vadd.f32 %v262_v55, %v232_v50  ;;  %v185_v48 = vld [vmem:[%s423_s15 + $0xf0] sm:$0xff]  ;;  %v248_v50 = vmul.f32 %v184_v44, %v184_v44 }
  0x2b   : > { %v201_v61 = vadd.f32 %v200_v57, %v170_v52  ;;  %v264_v63 = vadd.f32 %v263_v59, %v233_v54  ;;  %v186_v52 = vld [vmem:[%s423_s15 + $0xf8] sm:$0xff]  ;;  %v249_v54 = vmul.f32 %v185_v48, %v185_v48 }
  0x2c   : > { %v250_v57 = vmul.f32 %v186_v52, %v186_v52 }
  0x2d   : > { %v202_v1 = vadd.f32 %v201_v61, %v171_v56  ;;  %v265_v3 = vadd.f32 %v264_v63, %v234_v58 }
  0x2f   : > { %v203_v5 = vadd.f32 %v202_v1, %v172_v60  ;;  %v266_v7 = vadd.f32 %v265_v3, %v235_v62 }
  0x31   : > { %v204_v9 = vadd.f32 %v203_v5, %v173_v0  ;;  %v267_v11 = vadd.f32 %v266_v7, %v236_v2 }
  0x33   : > { %v205_v13 = vadd.f32 %v204_v9, %v174_v4  ;;  %v268_v15 = vadd.f32 %v267_v11, %v237_v6 }
  0x35   : > { %v206_v17 = vadd.f32 %v205_v13, %v175_v8  ;;  %v269_v19 = vadd.f32 %v268_v15, %v238_v10 }
  0x37   : > { %v207_v21 = vadd.f32 %v206_v17, %v176_v12  ;;  %v270_v23 = vadd.f32 %v269_v19, %v239_v14 }
  0x39   : > { %v208_v25 = vadd.f32 %v207_v21, %v177_v16  ;;  %v271_v27 = vadd.f32 %v270_v23, %v240_v18 }
  0x3b   : > { %v209_v29 = vadd.f32 %v208_v25, %v178_v20  ;;  %v272_v31 = vadd.f32 %v271_v27, %v241_v22 }
  0x3d   : > { %v210_v33 = vadd.f32 %v209_v29, %v179_v24  ;;  %v273_v35 = vadd.f32 %v272_v31, %v242_v26 }
  0x3f   : > { %v211_v37 = vadd.f32 %v210_v33, %v180_v28  ;;  %v274_v39 = vadd.f32 %v273_v35, %v243_v30 }
  0x41   : > { %v212_v41 = vadd.f32 %v211_v37, %v181_v32  ;;  %v275_v43 = vadd.f32 %v274_v39, %v244_v34 }
  0x43   : > { %v213_v45 = vadd.f32 %v212_v41, %v182_v36  ;;  %v276_v47 = vadd.f32 %v275_v43, %v245_v38 }
  0x45   : > { %v214_v49 = vadd.f32 %v213_v45, %v183_v40  ;;  %v277_v51 = vadd.f32 %v276_v47, %v246_v42 }
  0x47   : > { %v215_v53 = vadd.f32 %v214_v49, %v184_v44  ;;  %v278_v55 = vadd.f32 %v277_v51, %v247_v46 }
  0x49   : > { %v216_v56 = vadd.f32 %v215_v53, %v185_v48  ;;  %v279_v58 = vadd.f32 %v278_v55, %v248_v50 }
  0x4b   : > { %v217_v59 = vadd.f32 %v216_v56, %v186_v52  ;;  %v280_v60 = vadd.f32 %v279_v58, %v249_v54 }
  0x4d   : > { %218 = vst [vmem:[%s150_s19] sm:$0xff] %v217_v59  ;;  %v281_v61 = vadd.f32 %v280_v60, %v250_v57 }
  0x4f   : > { %282 = vst [vmem:[%s154_s22] sm:$0xff] %v281_v61 }
  0x50 PF: > { %s13_s9 = sadd.s32 1, %s392_s9  }
  0x51   : > { %p10_p5 = scmp.ge.s32.totalorder %s13_s9, 4  }
  0x53   :  { %12 = sbr.rel (!%p10_p5) target bundleno = 1 (0x1), region = 66 }

// kernel: lfw_generator.15
= control target key start
LH: loop header
LB: loop body
LE: loop exit
PB: predicated region body
PF: predicated region fallthrough
CT: control target
= control target key end

     0   :  { %s2643_s15 = smov 0   ;;  %s2645_s16 = smov 0   ;;  %s3965_s0 = inlined_call_operand.vmem [shape: f32[512,128], index: 0, kind: input, shape index: {}]   ;;  %s3966_s1 = inlined_call_operand.vmem [shape: f32[1,128], index: 1, kind: input, shape index: {}]   ;;  %s3967_s2 = inlined_call_operand.vmem [shape: f32[1,128], index: 2, kind: input, shape index: {}]   ;;  %s3968_s3 = inlined_call_operand.vmem [shape: bf16[128,1024], index: 3, kind: input, shape index: {}]   ;;  %s3969_s4 = inlined_call_operand.vmem [shape: f32[512,1024], index: 4, kind: output, shape index: {}]  }
   0x1   :  { %s2647_s17 = smov 0   ;;  %s2649_s18 = smov 0  }
   0x2   :  { %s2651_s19 = smov 0  }
   0x3 LB: > { %s23_s20 = sadd.s32 1, %s2612_s18  ;;  %s2356_s21 = sadd.s32 4294967295, %s2616_s19   ;;  %s2616_s19 = sphi %s2651_s19, %s14_s19   ;;  %s2612_s18 = sphi %s2649_s18, %s3974_s18   ;;  %s2608_s17 = sphi %s2647_s17, %s3973_s17   ;;  %s2604_s16 = sphi %s2645_s16, %s3972_s16   ;;  %s2600_s15 = sphi %s2643_s15, %s3971_s15  }
   0x4   : > { %p24_p0 = scmp.ge.s32.totalorder %s23_s20, 2  ;;  %p108_p1 = scmp.ne.s32.totalorder %s2604_s16, %s2600_s15 }
   0x5   : > { %p109_p2 = scmp.eq.s32.totalorder %s2616_s19, 0  ;;  %p140_p4 = scmp.eq.s32.totalorder %s2356_s21, 1 }
   0x6   : > { %s3976_s20 = smov (%p24_p0, %s23_s20), 0  ;;  %s101_s23 = sadd.s32 1, %s2604_s16 }
   0x7   : > { %p110_p3 = por %p109_p2, %p108_p1  ;;  %s98_s22 = ssub.s32 %s2612_s18, %s3976_s20 }
   0x8   : > { %p99_p5 = scmp.eq.s32.totalorder %s98_s22, 0  ;;  %p2678_p6 = por %p140_p4, %p108_p1 }
   0x9   : > { %p2360_p7 = scmp.ge.s32.totalorder %s2616_s19, 2 }
   0xa   : > { %s2683_s25 = scalar_select %p99_p5, %s2604_s16, %s101_s23  }
   0xb   : > { %177 = sbr.rel (%p2360_p7) target bundleno = 52 (0x34), region = 28 }
  0x10   : > { %180 = sbr.rel (!%p110_p3) target bundleno = 52 (0x34), region = 32  ;;  %s182_s26 = sand.u32 (%p110_p3), 1, %s2604_s16  }
  0x11   : > { %s2500_s27 = sshll.u32 (%p110_p3), %s2612_s18, 4  ;;  %s2361_s28 = sshll.u32 (%p110_p3), %s182_s26, 8 }
  0x12   : > { %s2691_s5 = scalar_lea.vmem (%p110_p3), %s3968_s3, %s2500_s27  ;;  %s2696_s6 = scalar_lea.vmem (%p110_p3), [#allocation2], %s2361_s28 }
  0x13   : > { %v200_v0 = vld [vmem:[%s2691_s5] sm:$0xff] (%p110_p3)  ;;  %v202_v1 = vld [vmem:[%s2691_s5 + $0x8] sm:$0xff] (%p110_p3) }
  0x14   : > { %v204_v2 = vld [vmem:[%s2691_s5 + $0x20] sm:$0xff] (%p110_p3)  ;;  %201 = vst [vmem:[%s2696_s6] sm:$0xff] (%p110_p3), %v200_v0  ;;  %v206_v3 = vld [vmem:[%s2691_s5 + $0x28] sm:$0xff] (%p110_p3) }
  0x15   : > { %203 = vst [vmem:[%s2696_s6 + $0x8] sm:$0xff] %v202_v1  ;;  %v208_v4 = vld [vmem:[%s2691_s5 + $0x40] sm:$0xff]  ;;  %v210_v5 = vld [vmem:[%s2691_s5 + $0x48] sm:$0xff] }
  0x16   : > { %205 = vst [vmem:[%s2696_s6 + $0x10] sm:$0xff] %v204_v2  ;;  %v212_v6 = vld [vmem:[%s2691_s5 + $0x60] sm:$0xff]  ;;  %v214_v7 = vld [vmem:[%s2691_s5 + $0x68] sm:$0xff] }
  0x17   : > { %207 = vst [vmem:[%s2696_s6 + $0x18] sm:$0xff] %v206_v3  ;;  %v216_v8 = vld [vmem:[%s2691_s5 + $0x80] sm:$0xff]  ;;  %v218_v9 = vld [vmem:[%s2691_s5 + $0x88] sm:$0xff] }
  0x18   : > { %209 = vst [vmem:[%s2696_s6 + $0x20] sm:$0xff] %v208_v4  ;;  %v220_v10 = vld [vmem:[%s2691_s5 + $0xa0] sm:$0xff]  ;;  %v222_v11 = vld [vmem:[%s2691_s5 + $0xa8] sm:$0xff] }
  0x19   : > { %211 = vst [vmem:[%s2696_s6 + $0x28] sm:$0xff] %v210_v5  ;;  %v224_v12 = vld [vmem:[%s2691_s5 + $0xc0] sm:$0xff]  ;;  %v226_v13 = vld [vmem:[%s2691_s5 + $0xc8] sm:$0xff] }
  0x1a   : > { %213 = vst [vmem:[%s2696_s6 + $0x30] sm:$0xff] %v212_v6  ;;  %v228_v14 = vld [vmem:[%s2691_s5 + $0xe0] sm:$0xff]  ;;  %v230_v15 = vld [vmem:[%s2691_s5 + $0xe8] sm:$0xff] }
  0x1b   : > { %215 = vst [vmem:[%s2696_s6 + $0x38] sm:$0xff] %v214_v7  ;;  %v232_v16 = vld [vmem:[%s2691_s5 + $0x100] sm:$0xff]  ;;  %v234_v17 = vld [vmem:[%s2691_s5 + $0x108] sm:$0xff] }
  0x1c   : > { %217 = vst [vmem:[%s2696_s6 + $0x40] sm:$0xff] %v216_v8  ;;  %v236_v18 = vld [vmem:[%s2691_s5 + $0x120] sm:$0xff]  ;;  %v238_v19 = vld [vmem:[%s2691_s5 + $0x128] sm:$0xff] }
  0x1d   : > { %219 = vst [vmem:[%s2696_s6 + $0x48] sm:$0xff] %v218_v9  ;;  %v240_v20 = vld [vmem:[%s2691_s5 + $0x140] sm:$0xff]  ;;  %v242_v21 = vld [vmem:[%s2691_s5 + $0x148] sm:$0xff] }
  0x1e   : > { %221 = vst [vmem:[%s2696_s6 + $0x50] sm:$0xff] %v220_v10  ;;  %v244_v22 = vld [vmem:[%s2691_s5 + $0x160] sm:$0xff]  ;;  %v246_v23 = vld [vmem:[%s2691_s5 + $0x168] sm:$0xff] }
  0x1f   : > { %223 = vst [vmem:[%s2696_s6 + $0x58] sm:$0xff] %v222_v11  ;;  %v248_v24 = vld [vmem:[%s2691_s5 + $0x180] sm:$0xff]  ;;  %v250_v25 = vld [vmem:[%s2691_s5 + $0x188] sm:$0xff] }
  0x20   : > { %225 = vst [vmem:[%s2696_s6 + $0x60] sm:$0xff] %v224_v12  ;;  %v252_v26 = vld [vmem:[%s2691_s5 + $0x1a0] sm:$0xff]  ;;  %v254_v27 = vld [vmem:[%s2691_s5 + $0x1a8] sm:$0xff] }
  0x21   : > { %227 = vst [vmem:[%s2696_s6 + $0x68] sm:$0xff] %v226_v13  ;;  %v256_v28 = vld [vmem:[%s2691_s5 + $0x1c0] sm:$0xff]  ;;  %v258_v29 = vld [vmem:[%s2691_s5 + $0x1c8] sm:$0xff] }
  0x22   : > { %229 = vst [vmem:[%s2696_s6 + $0x70] sm:$0xff] %v228_v14  ;;  %v260_v30 = vld [vmem:[%s2691_s5 + $0x1e0] sm:$0xff]  ;;  %v262_v31 = vld [vmem:[%s2691_s5 + $0x1e8] sm:$0xff] }
  0x23   : > { %231 = vst [vmem:[%s2696_s6 + $0x78] sm:$0xff] %v230_v15 }
  0x24   : > { %233 = vst [vmem:[%s2696_s6 + $0x80] sm:$0xff] %v232_v16 }
  0x25   : > { %235 = vst [vmem:[%s2696_s6 + $0x88] sm:$0xff] %v234_v17 }
  0x26   : > { %237 = vst [vmem:[%s2696_s6 + $0x90] sm:$0xff] %v236_v18 }
  0x27   : > { %239 = vst [vmem:[%s2696_s6 + $0x98] sm:$0xff] %v238_v19 }
  0x28   : > { %241 = vst [vmem:[%s2696_s6 + $0xa0] sm:$0xff] %v240_v20 }
  0x29   : > { %243 = vst [vmem:[%s2696_s6 + $0xa8] sm:$0xff] %v242_v21 }
  0x2a   : > { %245 = vst [vmem:[%s2696_s6 + $0xb0] sm:$0xff] %v244_v22 }
  0x2b   : > { %247 = vst [vmem:[%s2696_s6 + $0xb8] sm:$0xff] %v246_v23 }
  0x2c   : > { %249 = vst [vmem:[%s2696_s6 + $0xc0] sm:$0xff] %v248_v24 }
  0x2d   : > { %251 = vst [vmem:[%s2696_s6 + $0xc8] sm:$0xff] %v250_v25 }
  0x2e   : > { %253 = vst [vmem:[%s2696_s6 + $0xd0] sm:$0xff] %v252_v26 }
  0x2f   : > { %255 = vst [vmem:[%s2696_s6 + $0xd8] sm:$0xff] %v254_v27 }
  0x30   : > { %257 = vst [vmem:[%s2696_s6 + $0xe0] sm:$0xff] %v256_v28 }
  0x31   : > { %259 = vst [vmem:[%s2696_s6 + $0xe8] sm:$0xff] %v258_v29 }
  0x32   : > { %261 = vst [vmem:[%s2696_s6 + $0xf0] sm:$0xff] %v260_v30 }
  0x33   : > { %263 = vst [vmem:[%s2696_s6 + $0xf8] sm:$0xff] %v262_v31 }
  0x34 PF: > { %p2364_p8 = scmp.ge.s32.totalorder %s2616_s19, 1  ;;  %p268_p9 = scmp.lt.s32.totalorder %s2616_s19, 3 }
  0x36   : > { %p269_p10 = pnand %p2364_p8, %p268_p9 }
  0x37   : > { %s275_s7 = sand.u32 (!%p269_p10), 1, %s2600_s15  }
  0x38   : > { %272 = sbr.rel (%p269_p10) target bundleno = 926 (0x39e), region = 55  ;;  %s2365_s8 = sshll.u32 (!%p269_p10), %s275_s7, 8 }
  0x39   : > { %s2764_s9 = scalar_lea.vmem (!%p269_p10), [#allocation2], %s2365_s8  ;;  %s2366_s22 = sshll.u32 (!%p269_p10), %s275_s7, 11 }
  0x3a   : > { %s2938_s29 = scalar_lea.vmem (!%p269_p10), [#allocation3], %s2366_s22 }
  0x3d   : > { %v2481_v32 = vld [vmem:[%s2764_s9 + $0xe0] sm:$0xf]  ;;  %v2531_v33 = vld [vmem:[%s2764_s9 + $0xec] sm:$0xf0]  ;;  %v2529_v34 = vld [vmem:[%s2764_s9 + $0xe4] sm:$0xf] }
  0x3e   : > { %v2482_v35 = vor.u32 %v2531_v33, %v2481_v32  ;;  %v2483_v36 = vld [vmem:[%s2764_s9 + $0xf0] sm:$0xf0]  ;;  %v2489_v37 = vld [vmem:[%s2764_s9 + $0xe8] sm:$0xf]  ;;  %v2532_v38 = vld [vmem:[%s2764_s9 + $0xf4] sm:$0xf0] }
  0x3f   : > { %v2486_v39 = vor.u32 %v2529_v34, %v2483_v36  ;;  %v2490_v40 = vor.u32 %v2532_v38, %v2489_v37  ;;  %v2530_v41 = vld [vmem:[%s2764_s9 + $0xec] sm:$0xf]  ;;  %v2491_v42 = vld [vmem:[%s2764_s9 + $0xf8] sm:$0xf0]  ;;  %v2465_v43 = vld [vmem:[%s2764_s9 + $0xc0] sm:$0xf] }
  0x40   : > { %801 = vmatpush.bf16.msra.mxu0 %v2482_v35  ;;  %v2494_v44 = vor.u32 %v2530_v41, %v2491_v42  ;;  %v2527_v45 = vld [vmem:[%s2764_s9 + $0xcc] sm:$0xf0]  ;;  %v2525_v46 = vld [vmem:[%s2764_s9 + $0xc4] sm:$0xf]  ;;  %v2467_v47 = vld [vmem:[%s2764_s9 + $0xd0] sm:$0xf0] }
  0x41   : > { %970 = vmatpush.bf16.msra.mxu1 %v2486_v39  ;;  %1139 = vmatpush.bf16.msra.mxu2 %v2490_v40  ;;  %v2466_v48 = vor.u32 %v2527_v45, %v2465_v43  ;;  %v2470_v49 = vor.u32 %v2525_v46, %v2467_v47  ;;  %v2473_v50 = vld [vmem:[%s2764_s9 + $0xc8] sm:$0xf]  ;;  %v2528_v51 = vld [vmem:[%s2764_s9 + $0xd4] sm:$0xf0]  ;;  %v2526_v52 = vld [vmem:[%s2764_s9 + $0xcc] sm:$0xf] }
  0x42   : > { %1308 = vmatpush.bf16.msra.mxu3 %v2494_v44  ;;  %v2474_v53 = vor.u32 %v2528_v51, %v2473_v50  ;;  %v2475_v54 = vld [vmem:[%s2764_s9 + $0xd8] sm:$0xf0]  ;;  %v2449_v55 = vld [vmem:[%s2764_s9 + $0xa0] sm:$0xf]  ;;  %v2523_v56 = vld [vmem:[%s2764_s9 + $0xac] sm:$0xf0] }
  0x43   : > { %v2478_v57 = vor.u32 %v2526_v52, %v2475_v54  ;;  %v2521_v58 = vld [vmem:[%s2764_s9 + $0xa4] sm:$0xf]  ;;  %v2451_v59 = vld [vmem:[%s2764_s9 + $0xb0] sm:$0xf0]  ;;  %v2457_v60 = vld [vmem:[%s2764_s9 + $0xa8] sm:$0xf]  ;;  %v2450_v61 = vor.u32 %v2523_v56, %v2449_v55 }
  0x44   : > { %802 = vmatpush.bf16.msra.mxu0 %v2466_v48  ;;  %v2524_v62 = vld [vmem:[%s2764_s9 + $0xb4] sm:$0xf0]  ;;  %v2522_v63 = vld [vmem:[%s2764_s9 + $0xac] sm:$0xf]  ;;  %v2459_v0 = vld [vmem:[%s2764_s9 + $0xb8] sm:$0xf0]  ;;  %v2454_v1 = vor.u32 %v2521_v58, %v2451_v59 }
  0x45   : > { %971 = vmatpush.bf16.msra.mxu1 %v2470_v49  ;;  %1140 = vmatpush.bf16.msra.mxu2 %v2474_v53  ;;  %v2458_v2 = vor.u32 %v2524_v62, %v2457_v60  ;;  %v2433_v3 = vld [vmem:[%s2764_s9 + $0x80] sm:$0xf]  ;;  %v2519_v4 = vld [vmem:[%s2764_s9 + $0x8c] sm:$0xf0]  ;;  %v2517_v5 = vld [vmem:[%s2764_s9 + $0x84] sm:$0xf]  ;;  %v2462_v6 = vor.u32 %v2522_v63, %v2459_v0 }
  0x46   : > { %1309 = vmatpush.bf16.msra.mxu3 %v2478_v57  ;;  %v2435_v7 = vld [vmem:[%s2764_s9 + $0x90] sm:$0xf0]  ;;  %v2441_v8 = vld [vmem:[%s2764_s9 + $0x88] sm:$0xf]  ;;  %v2520_v9 = vld [vmem:[%s2764_s9 + $0x94] sm:$0xf0]  ;;  %v2434_v12 = vor.u32 %v2519_v4, %v2433_v3 }
  0x47   : > { %v2518_v10 = vld [vmem:[%s2764_s9 + $0x8c] sm:$0xf]  ;;  %v2443_v11 = vld [vmem:[%s2764_s9 + $0x98] sm:$0xf0]  ;;  %v2438_v13 = vor.u32 %v2517_v5, %v2435_v7  ;;  %v2442_v14 = vor.u32 %v2520_v9, %v2441_v8  ;;  %v2417_v15 = vld [vmem:[%s2764_s9 + $0x60] sm:$0xf] }
  0x48   : > { %803 = vmatpush.bf16.msra.mxu0 %v2450_v61  ;;  %v2515_v16 = vld [vmem:[%s2764_s9 + $0x6c] sm:$0xf0]  ;;  %v2513_v17 = vld [vmem:[%s2764_s9 + $0x64] sm:$0xf]  ;;  %v2446_v18 = vor.u32 %v2518_v10, %v2443_v11  ;;  %v2419_v19 = vld [vmem:[%s2764_s9 + $0x70] sm:$0xf0] }
  0x49   : > { %972 = vmatpush.bf16.msra.mxu1 %v2454_v1  ;;  %1141 = vmatpush.bf16.msra.mxu2 %v2458_v2  ;;  %v2425_v20 = vld [vmem:[%s2764_s9 + $0x68] sm:$0xf]  ;;  %v2516_v21 = vld [vmem:[%s2764_s9 + $0x74] sm:$0xf0]  ;;  %v2514_v22 = vld [vmem:[%s2764_s9 + $0x6c] sm:$0xf]  ;;  %v2418_v25 = vor.u32 %v2515_v16, %v2417_v15  ;;  %v2422_v28 = vor.u32 %v2513_v17, %v2419_v19 }
  0x4a   : > { %1310 = vmatpush.bf16.msra.mxu3 %v2462_v6  ;;  %v2427_v23 = vld [vmem:[%s2764_s9 + $0x78] sm:$0xf0]  ;;  %v2809_v24 = vld [vmem:[%s3966_s1] ss:$0 sm:$0xff]  ;;  %v314_v27 = vld [vmem:[%s3965_s0 + $0x8] sm:$0xff]  ;;  %v2426_v29 = vor.u32 %v2516_v21, %v2425_v20  ;;  %s2533_s30 = sshll.u32 (%p2678_p6), %s2608_s17, 5 }
  0x4b   : > { %v313_v26 = vld [vmem:[%s3965_s0] sm:$0xff]  ;;  %v2511_v31 = vld [vmem:[%s2764_s9 + $0x4c] sm:$0xf0]  ;;  %v2430_v33 = vor.u32 %v2514_v22, %v2427_v23  ;;  %v2403_v34 = vld [vmem:[%s2764_s9 + $0x50] sm:$0xf0]  ;;  %v382_v40 = vmul.f32 %v2809_v24, %v314_v27  ;;  %s3438_s8 = scalar_lea.vmem (%p2678_p6), %s3969_s4, %s2533_s30 }
  0x4c   : > { %804 = vmatpush.bf16.msra.mxu0 %v2434_v12  ;;  %v2401_v30 = vld [vmem:[%s2764_s9 + $0x40] sm:$0xf]  ;;  %v2509_v32 = vld [vmem:[%s2764_s9 + $0x44] sm:$0xf]  ;;  %v2409_v35 = vld [vmem:[%s2764_s9 + $0x48] sm:$0xf]  ;;  %v381_v39 = vmul.f32 %v2809_v24, %v313_v26 }
  0x4d   : > { %973 = vmatpush.bf16.msra.mxu1 %v2438_v13  ;;  %1142 = vmatpush.bf16.msra.mxu2 %v2442_v14  ;;  %v2512_v36 = vld [vmem:[%s2764_s9 + $0x54] sm:$0xf0]  ;;  %v2510_v37 = vld [vmem:[%s2764_s9 + $0x4c] sm:$0xf]  ;;  %v2411_v38 = vld [vmem:[%s2764_s9 + $0x58] sm:$0xf0]  ;;  %v2402_v42 = vor.u32 %v2511_v31, %v2401_v30  ;;  %v2406_v43 = vor.u32 %v2509_v32, %v2403_v34 }
  0x4e   : > { %1311 = vmatpush.bf16.msra.mxu3 %v2446_v18  ;;  %v2830_v41 = vld [vmem:[%s3967_s2] ss:$0 sm:$0xff]  ;;  %v2410_v44 = vor.u32 %v2512_v36, %v2409_v35  ;;  %v2507_v46 = vld [vmem:[%s2764_s9 + $0x2c] sm:$0xf0]  ;;  %v2505_v47 = vld [vmem:[%s2764_s9 + $0x24] sm:$0xf]  ;;  %v2414_v48 = vor.u32 %v2510_v37, %v2411_v38 }
  0x4f   : > { %v2385_v45 = vld [vmem:[%s2764_s9 + $0x20] sm:$0xf]  ;;  %v2387_v49 = vld [vmem:[%s2764_s9 + $0x30] sm:$0xf0]  ;;  %v2393_v50 = vld [vmem:[%s2764_s9 + $0x28] sm:$0xf]  ;;  %v449_v54 = vadd.f32 %v2830_v41, %v381_v39  ;;  %v450_v55 = vadd.f32 %v2830_v41, %v382_v40 }
  0x50   : > { %805 = vmatpush.bf16.msra.mxu0 %v2418_v25  ;;  %v2508_v51 = vld [vmem:[%s2764_s9 + $0x34] sm:$0xf0]  ;;  %v2506_v52 = vld [vmem:[%s2764_s9 + $0x2c] sm:$0xf]  ;;  %v2395_v53 = vld [vmem:[%s2764_s9 + $0x38] sm:$0xf0]  ;;  %v2386_v56 = vor.u32 %v2507_v46, %v2385_v45  ;;  %v2390_v57 = vor.u32 %v2505_v47, %v2387_v49 }
  0x51   : > { %974 = vmatpush.bf16.msra.mxu1 %v2422_v28  ;;  %1143 = vmatpush.bf16.msra.mxu2 %v2426_v29  ;;  %v2394_v58 = vor.u32 %v2508_v51, %v2393_v50  ;;  %v2369_v59 = vld [vmem:[%s2764_s9] sm:$0xf]  ;;  %v2503_v60 = vld [vmem:[%s2764_s9 + $0xc] sm:$0xf0]  ;;  %v2501_v61 = vld [vmem:[%s2764_s9 + $0x4] sm:$0xf]  ;;  %v2398_v62 = vor.u32 %v2506_v52, %v2395_v53 }
  0x52   : > { %1312 = vmatpush.bf16.msra.mxu3 %v2430_v33  ;;  %v2371_v63 = vld [vmem:[%s2764_s9 + $0x10] sm:$0xf0]  ;;  %v2377_v0 = vld [vmem:[%s2764_s9 + $0x8] sm:$0xf]  ;;  %v2504_v1 = vld [vmem:[%s2764_s9 + $0x14] sm:$0xf0]  ;;  %v2370_v6 = vor.u32 %v2503_v60, %v2369_v59 }
  0x53   : > { %v2502_v2 = vld [vmem:[%s2764_s9 + $0xc] sm:$0xf]  ;;  %v2379_v3 = vld [vmem:[%s2764_s9 + $0x18] sm:$0xf0]  ;;  %v513_v4 = vmax.f32 %v449_v54, 0.0  ;;  %v514_v5 = vmax.f32 %v450_v55, 0.0  ;;  %v2374_v7 = vor.u32 %v2501_v61, %v2371_v63  ;;  %v2378_v8 = vor.u32 %v2504_v1, %v2377_v0 }
  0x54   : > { %806 = vmatpush.bf16.msra.mxu0 %v2402_v42  ;;  %v2382_v9 = vor.u32 %v2502_v2, %v2379_v3  ;;  %v315_v11 = vld [vmem:[%s3965_s0 + $0x10] sm:$0xff]  ;;  %v316_v12 = vld [vmem:[%s3965_s0 + $0x18] sm:$0xff]  ;;  %v317_v20 = vld [vmem:[%s3965_s0 + $0x20] sm:$0xff] }
  0x55   : > { %975 = vmatpush.bf16.msra.mxu1 %v2406_v43  ;;  %1144 = vmatpush.bf16.msra.mxu2 %v2410_v44  ;;  %v577_v10 = vpack.c.bf16 %v514_v5, %v513_v4  ;;  %v383_v13 = vmul.f32 %v2809_v24, %v315_v11  ;;  %v384_v14 = vmul.f32 %v2809_v24, %v316_v12  ;;  %v318_v21 = vld [vmem:[%s3965_s0 + $0x28] sm:$0xff]  ;;  %v319_v30 = vld [vmem:[%s3965_s0 + $0x30] sm:$0xff]  ;;  %v320_v31 = vld [vmem:[%s3965_s0 + $0x38] sm:$0xff] }
  0x56   : > { %1313 = vmatpush.bf16.msra.mxu3 %v2414_v48  ;;  %v385_v22 = vmul.f32 %v2809_v24, %v317_v20  ;;  %v386_v23 = vmul.f32 %v2809_v24, %v318_v21  ;;  %v387_v32 = vmul.f32 %v2809_v24, %v319_v30  ;;  %v388_v33 = vmul.f32 %v2809_v24, %v320_v31  ;;  %v321_v39 = vld [vmem:[%s3965_s0 + $0x40] sm:$0xff]  ;;  %v322_v40 = vld [vmem:[%s3965_s0 + $0x48] sm:$0xff]  ;;  %v323_v49 = vld [vmem:[%s3965_s0 + $0x50] sm:$0xff] }
  0x57   : > { %v451_v15 = vadd.f32 %v2830_v41, %v383_v13  ;;  %v452_v16 = vadd.f32 %v2830_v41, %v384_v14  ;;  %v389_v42 = vmul.f32 %v2809_v24, %v321_v39  ;;  %v390_v43 = vmul.f32 %v2809_v24, %v322_v40  ;;  %v324_v50 = vld [vmem:[%s3965_s0 + $0x58] sm:$0xff]  ;;  %v326_v59 = vld [vmem:[%s3965_s0 + $0x68] sm:$0xff]  ;;  %v327_v3 = vld [vmem:[%s3965_s0 + $0x70] sm:$0xff] }
  0x58   : > { %807 = vmatpush.bf16.msra.mxu0 %v2386_v56  ;;  %v453_v25 = vadd.f32 %v2830_v41, %v385_v22  ;;  %v454_v26 = vadd.f32 %v2830_v41, %v386_v23  ;;  %v455_v34 = vadd.f32 %v2830_v41, %v387_v32  ;;  %v456_v35 = vadd.f32 %v2830_v41, %v388_v33  ;;  %v328_v4 = vld [vmem:[%s3965_s0 + $0x78] sm:$0xff]  ;;  %v329_v12 = vld [vmem:[%s3965_s0 + $0x80] sm:$0xff]  ;;  %v330_v13 = vld [vmem:[%s3965_s0 + $0x88] sm:$0xff] }
  0x59   : > { %976 = vmatpush.bf16.msra.mxu1 %v2390_v57  ;;  %1145 = vmatpush.bf16.msra.mxu2 %v2394_v58  ;;  %v515_v17 = vmax.f32 %v451_v15, 0.0  ;;  %v516_v18 = vmax.f32 %v452_v16, 0.0  ;;  %v457_v44 = vadd.f32 %v2830_v41, %v389_v42  ;;  %v458_v45 = vadd.f32 %v2830_v41, %v390_v43  ;;  %v325_v58 = vld [vmem:[%s3965_s0 + $0x60] sm:$0xff]  ;;  %v331_v22 = vld [vmem:[%s3965_s0 + $0x90] sm:$0xff]  ;;  %v332_v23 = vld [vmem:[%s3965_s0 + $0x98] sm:$0xff] }
  0x5a   : > { %1314 = vmatpush.bf16.msra.mxu3 %v2398_v62  ;;  %v517_v27 = vmax.f32 %v453_v25, 0.0  ;;  %v518_v28 = vmax.f32 %v454_v26, 0.0  ;;  %v519_v36 = vmax.f32 %v455_v34, 0.0  ;;  %v520_v37 = vmax.f32 %v456_v35, 0.0  ;;  %v333_v40 = vld [vmem:[%s3965_s0 + $0xa0] sm:$0xff]  ;;  %v334_v42 = vld [vmem:[%s3965_s0 + $0xa8] sm:$0xff] }
  0x5b   : > { %v578_v19 = vpack.c.bf16 %v516_v18, %v515_v17  ;;  %v521_v46 = vmax.f32 %v457_v44, 0.0  ;;  %v522_v47 = vmax.f32 %v458_v45, 0.0  ;;  %v391_v51 = vmul.f32 %v2809_v24, %v323_v49 }
  0x5c   : > { %808 = vmatpush.bf16.msra.mxu0 %v2370_v6  ;;  %v579_v29 = vpack.c.bf16 %v518_v28, %v517_v27  ;;  %v580_v38 = vpack.c.bf16 %v520_v37, %v519_v36  ;;  %v392_v52 = vmul.f32 %v2809_v24, %v324_v50  ;;  %v393_v60 = vmul.f32 %v2809_v24, %v325_v58  ;;  %v335_v58 = vld [vmem:[%s3965_s0 + $0xb0] sm:$0xff] }
  0x5d   : > { %977 = vmatpush.bf16.msra.mxu1 %v2374_v7  ;;  %1146 = vmatpush.bf16.msra.mxu2 %v2378_v8  ;;  %v581_v48 = vpack.c.bf16 %v522_v47, %v521_v46  ;;  %v459_v53 = vadd.f32 %v2830_v41, %v391_v51  ;;  %v394_v61 = vmul.f32 %v2809_v24, %v326_v59  ;;  %v336_v59 = vld [vmem:[%s3965_s0 + $0xb8] sm:$0xff] }
  0x5e   : > { %1315 = vmatpush.bf16.msra.mxu3 %v2382_v9  ;;  %v460_v54 = vadd.f32 %v2830_v41, %v392_v52  ;;  %v461_v62 = vadd.f32 %v2830_v41, %v393_v60  ;;  %v395_v5 = vmul.f32 %v2809_v24, %v327_v3  ;;  %v396_v6 = vmul.f32 %v2809_v24, %v328_v4 }
  0x5f   : > { %809 = vmatmul.bf16.vlgmr.msra.gmra.mxu0 %v577_v10  ;;  %v523_v55 = vmax.f32 %v459_v53, 0.0  ;;  %v462_v63 = vadd.f32 %v2830_v41, %v394_v61  ;;  %v397_v14 = vmul.f32 %v2809_v24, %v329_v12  ;;  %v398_v15 = vmul.f32 %v2809_v24, %v330_v13  ;;  %v338_v12 = vld [vmem:[%s3965_s0 + $0xc8] sm:$0xff] }
  0x60   : > { %978 = vmatmul.bf16.vlgmr.msra.gmra.mxu1 %v577_v10  ;;  %1147 = vmatmul.bf16.vlgmr.msra.gmra.mxu2 %v577_v10  ;;  %v524_v56 = vmax.f32 %v460_v54, 0.0  ;;  %v525_v0 = vmax.f32 %v461_v62, 0.0  ;;  %v463_v7 = vadd.f32 %v2830_v41, %v395_v5  ;;  %v464_v8 = vadd.f32 %v2830_v41, %v396_v6 }
  0x61   : > { %1316 = vmatmul.bf16.vlgmr.msra.gmra.mxu3 %v577_v10  ;;  %v526_v1 = vmax.f32 %v462_v63, 0.0  ;;  %v465_v16 = vadd.f32 %v2830_v41, %v397_v14  ;;  %v466_v17 = vadd.f32 %v2830_v41, %v398_v15  ;;  %v399_v26 = vmul.f32 %v2809_v24, %v331_v22 }
  0x62   : > { %v582_v57 = vpack.c.bf16 %v524_v56, %v523_v55  ;;  %v527_v9 = vmax.f32 %v463_v7, 0.0  ;;  %v528_v10 = vmax.f32 %v464_v8, 0.0  ;;  %v400_v27 = vmul.f32 %v2809_v24, %v332_v23 }
  0x63   : > { %v583_v2 = vpack.c.bf16 %v526_v1, %v525_v0  ;;  %v529_v18 = vmax.f32 %v465_v16, 0.0  ;;  %v401_v44 = vmul.f32 %v2809_v24, %v333_v40  ;;  %v402_v45 = vmul.f32 %v2809_v24, %v334_v42 }
  0x64   : > { %v584_v11 = vpack.c.bf16 %v528_v10, %v527_v9  ;;  %v468_v30 = vadd.f32 %v2830_v41, %v400_v27  ;;  %v403_v61 = vmul.f32 %v2809_v24, %v335_v58  ;;  %v404_v62 = vmul.f32 %v2809_v24, %v336_v59 }
  0x65   : > { %v469_v47 = vadd.f32 %v2830_v41, %v401_v44  ;;  %v406_v15 = vmul.f32 %v2809_v24, %v338_v12 }
  0x66   : > { %v532_v35 = vmax.f32 %v468_v30, 0.0  ;;  %v471_v0 = vadd.f32 %v2830_v41, %v403_v61  ;;  %v472_v1 = vadd.f32 %v2830_v41, %v404_v62  ;;  %v340_v30 = vld [vmem:[%s3965_s0 + $0xd8] sm:$0xff] }
  0x67   : > { %v533_v52 = vmax.f32 %v469_v47, 0.0  ;;  %v341_v47 = vld [vmem:[%s3965_s0 + $0xe0] sm:$0xff] }
  0x68   : > { %v535_v5 = vmax.f32 %v471_v0, 0.0  ;;  %v536_v6 = vmax.f32 %v472_v1, 0.0  ;;  %v343_v0 = vld [vmem:[%s3965_s0 + $0xf0] sm:$0xff]  ;;  %v344_v1 = vld [vmem:[%s3965_s0 + $0xf8] sm:$0xff] }
  0x6a   : > { %v588_v8 = vpack.c.bf16 %v536_v6, %v535_v5 }
  0x6f   : > { %814 = vmatmul.bf16.gmra.mxu0 %v578_v19 }
  0x70   : > { %983 = vmatmul.bf16.gmra.mxu1 %v578_v19  ;;  %1152 = vmatmul.bf16.gmra.mxu2 %v578_v19 }
  0x71   : > { %1321 = vmatmul.bf16.gmra.mxu3 %v578_v19  ;;  %v530_v19 = vmax.f32 %v466_v17, 0.0 }
  0x73   : > { %v585_v20 = vpack.c.bf16 %v530_v19, %v529_v18  ;;  %v474_v18 = vadd.f32 %v2830_v41, %v406_v15 }
  0x75   : > { %v538_v23 = vmax.f32 %v474_v18, 0.0  ;;  %v346_v18 = vld [vmem:[%s3965_s0 + $0x108] sm:$0xff] }
  0x7f   : > { %819 = vmatmul.bf16.gmra.mxu0 %v579_v29 }
  0x80   : > { %988 = vmatmul.bf16.gmra.mxu1 %v579_v29  ;;  %1157 = vmatmul.bf16.gmra.mxu2 %v579_v29 }
  0x81   : > { %1326 = vmatmul.bf16.gmra.mxu3 %v579_v29  ;;  %v467_v29 = vadd.f32 %v2830_v41, %v399_v26 }
  0x83   : > { %v531_v34 = vmax.f32 %v467_v29, 0.0  ;;  %v339_v29 = vld [vmem:[%s3965_s0 + $0xd0] sm:$0xff] }
  0x85   : > { %v586_v37 = vpack.c.bf16 %v532_v35, %v531_v34 }
  0x8f   : > { %824 = vmatmul.bf16.gmra.mxu0 %v580_v38 }
  0x90   : > { %993 = vmatmul.bf16.gmra.mxu1 %v580_v38  ;;  %1162 = vmatmul.bf16.gmra.mxu2 %v580_v38 }
  0x91   : > { %1331 = vmatmul.bf16.gmra.mxu3 %v580_v38 }
  0x9f   : > { %829 = vmatmul.bf16.gmra.mxu0 %v581_v48 }
  0xa0   : > { %998 = vmatmul.bf16.gmra.mxu1 %v581_v48  ;;  %1167 = vmatmul.bf16.gmra.mxu2 %v581_v48 }
  0xa1   : > { %1336 = vmatmul.bf16.gmra.mxu3 %v581_v48  ;;  %v470_v48 = vadd.f32 %v2830_v41, %v402_v45 }
  0xa3   : > { %v534_v53 = vmax.f32 %v470_v48, 0.0  ;;  %v342_v48 = vld [vmem:[%s3965_s0 + $0xe8] sm:$0xff] }
  0xa5   : > { %v587_v55 = vpack.c.bf16 %v534_v53, %v533_v52 }
  0xaf   : > { %834 = vmatmul.bf16.gmra.mxu0 %v582_v57 }
  0xb0   : > { %1003 = vmatmul.bf16.gmra.mxu1 %v582_v57  ;;  %1172 = vmatmul.bf16.gmra.mxu2 %v582_v57 }
  0xb1   : > { %1341 = vmatmul.bf16.gmra.mxu3 %v582_v57 }
  0xbf   : > { %839 = vmatmul.bf16.gmra.mxu0 %v583_v2 }
  0xc0   : > { %1008 = vmatmul.bf16.gmra.mxu1 %v583_v2  ;;  %1177 = vmatmul.bf16.gmra.mxu2 %v583_v2 }
  0xc1   : > { %1346 = vmatmul.bf16.gmra.mxu3 %v583_v2 }
  0xcf   : > { %844 = vmatmul.bf16.gmra.mxu0 %v584_v11 }
  0xd0   : > { %1013 = vmatmul.bf16.gmra.mxu1 %v584_v11  ;;  %1182 = vmatmul.bf16.gmra.mxu2 %v584_v11 }
  0xd1   : > { %1351 = vmatmul.bf16.gmra.mxu3 %v584_v11  ;;  %v337_v11 = vld [vmem:[%s3965_s0 + $0xc0] sm:$0xff] }
  0xd2   : > { %v405_v14 = vmul.f32 %v2809_v24, %v337_v11 }
  0xd4   : > { %v473_v17 = vadd.f32 %v2830_v41, %v405_v14 }
  0xd6   : > { %v537_v22 = vmax.f32 %v473_v17, 0.0  ;;  %v345_v17 = vld [vmem:[%s3965_s0 + $0x100] sm:$0xff] }
  0xd8   : > { %v589_v26 = vpack.c.bf16 %v538_v23, %v537_v22 }
  0xdc   : > { %v810_v21 = vpop.f32.mrf.mxu0 }
  0xdd   : > { %1477 = vst [vmem:[%s2938_s29] sm:$0xff] %v810_v21  ;;  %v979_v25 = vpop.f32.mrf.mxu1 }
  0xde   : > { %1478 = vst [vmem:[%s2938_s29 + $0x8] sm:$0xff] %v979_v25 }
  0xdf   : > { %849 = vmatmul.bf16.gmra.mxu0 %v585_v20 }
  0xe0   : > { %1018 = vmatmul.bf16.gmra.mxu1 %v585_v20  ;;  %1187 = vmatmul.bf16.gmra.mxu2 %v585_v20 }
  0xe1   : > { %1356 = vmatmul.bf16.gmra.mxu3 %v585_v20 }
  0xe3   : > { %v1148_v28 = vpop.f32.mrf.mxu2 }
  0xe4   : > { %1479 = vst [vmem:[%s2938_s29 + $0x10] sm:$0xff] %v1148_v28  ;;  %v1317_v31 = vpop.f32.mrf.mxu3  ;;  %v812_v32 = vpop.f32.mrf.mxu0 }
  0xe5   : > { %1480 = vst [vmem:[%s2938_s29 + $0x18] sm:$0xff] %v1317_v31  ;;  %v981_v33 = vpop.f32.mrf.mxu1 }
  0xe6   : > { %1481 = vst [vmem:[%s2938_s29 + $0x20] sm:$0xff] %v812_v32  ;;  %v407_v32 = vmul.f32 %v2809_v24, %v339_v29 }
  0xe7   : > { %1482 = vst [vmem:[%s2938_s29 + $0x28] sm:$0xff] %v981_v33  ;;  %v408_v33 = vmul.f32 %v2809_v24, %v340_v30 }
  0xe8   : > { %v475_v35 = vadd.f32 %v2830_v41, %v407_v32 }
  0xea   : > { %v539_v40 = vmax.f32 %v475_v35, 0.0  ;;  %v347_v35 = vld [vmem:[%s3965_s0 + $0x110] sm:$0xff] }
  0xeb   : > { %v1150_v36 = vpop.f32.mrf.mxu2 }
  0xec   : > { %1483 = vst [vmem:[%s2938_s29 + $0x30] sm:$0xff] %v1150_v36  ;;  %v1319_v38 = vpop.f32.mrf.mxu3  ;;  %v815_v39 = vpop.f32.mrf.mxu0  ;;  %v476_v36 = vadd.f32 %v2830_v41, %v408_v33 }
  0xed   : > { %1484 = vst [vmem:[%s2938_s29 + $0x38] sm:$0xff] %v1319_v38  ;;  %v984_v43 = vpop.f32.mrf.mxu1 }
  0xee   : > { %1485 = vst [vmem:[%s2938_s29 + $0x40] sm:$0xff] %v815_v39  ;;  %v540_v42 = vmax.f32 %v476_v36, 0.0  ;;  %v348_v36 = vld [vmem:[%s3965_s0 + $0x118] sm:$0xff] }
  0xef   : > { %1486 = vst [vmem:[%s2938_s29 + $0x48] sm:$0xff] %v984_v43  ;;  %854 = vmatmul.bf16.gmra.mxu0 %v586_v37 }
  0xf0   : > { %1023 = vmatmul.bf16.gmra.mxu1 %v586_v37  ;;  %1192 = vmatmul.bf16.gmra.mxu2 %v586_v37  ;;  %v590_v44 = vpack.c.bf16 %v540_v42, %v539_v40 }
  0xf1   : > { %1361 = vmatmul.bf16.gmra.mxu3 %v586_v37 }
  0xf3   : > { %v1153_v46 = vpop.f32.mrf.mxu2 }
  0xf4   : > { %1487 = vst [vmem:[%s2938_s29 + $0x50] sm:$0xff] %v1153_v46  ;;  %v1322_v49 = vpop.f32.mrf.mxu3  ;;  %v817_v50 = vpop.f32.mrf.mxu0 }
  0xf5   : > { %1488 = vst [vmem:[%s2938_s29 + $0x58] sm:$0xff] %v1322_v49  ;;  %v986_v51 = vpop.f32.mrf.mxu1 }
  0xf6   : > { %1489 = vst [vmem:[%s2938_s29 + $0x60] sm:$0xff] %v817_v50  ;;  %v409_v50 = vmul.f32 %v2809_v24, %v341_v47 }
  0xf7   : > { %1490 = vst [vmem:[%s2938_s29 + $0x68] sm:$0xff] %v986_v51  ;;  %v410_v51 = vmul.f32 %v2809_v24, %v342_v48 }
  0xf8   : > { %v477_v53 = vadd.f32 %v2830_v41, %v409_v50 }
  0xfa   : > { %v541_v58 = vmax.f32 %v477_v53, 0.0  ;;  %v349_v53 = vld [vmem:[%s3965_s0 + $0x120] sm:$0xff] }
  0xfb   : > { %v1155_v54 = vpop.f32.mrf.mxu2 }
  0xfc   : > { %1491 = vst [vmem:[%s2938_s29 + $0x70] sm:$0xff] %v1155_v54  ;;  %v1324_v56 = vpop.f32.mrf.mxu3  ;;  %v820_v57 = vpop.f32.mrf.mxu0  ;;  %v478_v54 = vadd.f32 %v2830_v41, %v410_v51 }
  0xfd   : > { %1492 = vst [vmem:[%s2938_s29 + $0x78] sm:$0xff] %v1324_v56  ;;  %v989_v60 = vpop.f32.mrf.mxu1 }
  0xfe   : > { %1493 = vst [vmem:[%s2938_s29 + $0x80] sm:$0xff] %v820_v57  ;;  %v542_v59 = vmax.f32 %v478_v54, 0.0  ;;  %v350_v54 = vld [vmem:[%s3965_s0 + $0x128] sm:$0xff] }
  0xff   : > { %1494 = vst [vmem:[%s2938_s29 + $0x88] sm:$0xff] %v989_v60  ;;  %859 = vmatmul.bf16.gmra.mxu0 %v587_v55 }
 0x100   : > { %1028 = vmatmul.bf16.gmra.mxu1 %v587_v55  ;;  %1197 = vmatmul.bf16.gmra.mxu2 %v587_v55  ;;  %v591_v61 = vpack.c.bf16 %v542_v59, %v541_v58 }
 0x101   : > { %1366 = vmatmul.bf16.gmra.mxu3 %v587_v55 }
 0x103   : > { %v1158_v63 = vpop.f32.mrf.mxu2 }
 0x104   : > { %1495 = vst [vmem:[%s2938_s29 + $0x90] sm:$0xff] %v1158_v63  ;;  %v1327_v2 = vpop.f32.mrf.mxu3  ;;  %v822_v3 = vpop.f32.mrf.mxu0 }
 0x105   : > { %1496 = vst [vmem:[%s2938_s29 + $0x98] sm:$0xff] %v1327_v2  ;;  %v991_v4 = vpop.f32.mrf.mxu1 }
 0x106   : > { %1497 = vst [vmem:[%s2938_s29 + $0xa0] sm:$0xff] %v822_v3  ;;  %v411_v3 = vmul.f32 %v2809_v24, %v343_v0 }
 0x107   : > { %1498 = vst [vmem:[%s2938_s29 + $0xa8] sm:$0xff] %v991_v4  ;;  %v412_v4 = vmul.f32 %v2809_v24, %v344_v1 }
 0x108   : > { %v479_v6 = vadd.f32 %v2830_v41, %v411_v3 }
 0x10a   : > { %v543_v11 = vmax.f32 %v479_v6, 0.0  ;;  %v351_v6 = vld [vmem:[%s3965_s0 + $0x130] sm:$0xff] }
 0x10b   : > { %v1160_v7 = vpop.f32.mrf.mxu2 }
 0x10c   : > { %1499 = vst [vmem:[%s2938_s29 + $0xb0] sm:$0xff] %v1160_v7  ;;  %v1329_v9 = vpop.f32.mrf.mxu3  ;;  %v825_v10 = vpop.f32.mrf.mxu0  ;;  %v480_v7 = vadd.f32 %v2830_v41, %v412_v4 }
 0x10d   : > { %1500 = vst [vmem:[%s2938_s29 + $0xb8] sm:$0xff] %v1329_v9  ;;  %v994_v13 = vpop.f32.mrf.mxu1 }
 0x10e   : > { %1501 = vst [vmem:[%s2938_s29 + $0xc0] sm:$0xff] %v825_v10  ;;  %v544_v12 = vmax.f32 %v480_v7, 0.0  ;;  %v352_v7 = vld [vmem:[%s3965_s0 + $0x138] sm:$0xff] }
 0x10f   : > { %1502 = vst [vmem:[%s2938_s29 + $0xc8] sm:$0xff] %v994_v13  ;;  %864 = vmatmul.bf16.gmra.mxu0 %v588_v8 }
 0x110   : > { %1033 = vmatmul.bf16.gmra.mxu1 %v588_v8  ;;  %1202 = vmatmul.bf16.gmra.mxu2 %v588_v8  ;;  %v592_v14 = vpack.c.bf16 %v544_v12, %v543_v11 }
 0x111   : > { %1371 = vmatmul.bf16.gmra.mxu3 %v588_v8 }
 0x113   : > { %v1163_v16 = vpop.f32.mrf.mxu2 }
 0x114   : > { %1503 = vst [vmem:[%s2938_s29 + $0xd0] sm:$0xff] %v1163_v16  ;;  %v1332_v19 = vpop.f32.mrf.mxu3  ;;  %v827_v20 = vpop.f32.mrf.mxu0 }
 0x115   : > { %1504 = vst [vmem:[%s2938_s29 + $0xd8] sm:$0xff] %v1332_v19  ;;  %v996_v21 = vpop.f32.mrf.mxu1 }
 0x116   : > { %1505 = vst [vmem:[%s2938_s29 + $0xe0] sm:$0xff] %v827_v20  ;;  %v413_v20 = vmul.f32 %v2809_v24, %v345_v17 }
 0x117   : > { %1506 = vst [vmem:[%s2938_s29 + $0xe8] sm:$0xff] %v996_v21  ;;  %v414_v21 = vmul.f32 %v2809_v24, %v346_v18 }
 0x118   : > { %v481_v23 = vadd.f32 %v2830_v41, %v413_v20 }
 0x11a   : > { %v545_v29 = vmax.f32 %v481_v23, 0.0  ;;  %v353_v23 = vld [vmem:[%s3965_s0 + $0x140] sm:$0xff] }
 0x11b   : > { %v1165_v25 = vpop.f32.mrf.mxu2 }
 0x11c   : > { %1507 = vst [vmem:[%s2938_s29 + $0xf0] sm:$0xff] %v1165_v25  ;;  %v1334_v27 = vpop.f32.mrf.mxu3  ;;  %v830_v28 = vpop.f32.mrf.mxu0  ;;  %v482_v25 = vadd.f32 %v2830_v41, %v414_v21 }
 0x11d   : > { %1508 = vst [vmem:[%s2938_s29 + $0xf8] sm:$0xff] %v1334_v27  ;;  %v999_v31 = vpop.f32.mrf.mxu1 }
 0x11e   : > { %1509 = vst [vmem:[%s2938_s29 + $0x100] sm:$0xff] %v830_v28  ;;  %v546_v30 = vmax.f32 %v482_v25, 0.0  ;;  %v354_v25 = vld [vmem:[%s3965_s0 + $0x148] sm:$0xff] }
 0x11f   : > { %1510 = vst [vmem:[%s2938_s29 + $0x108] sm:$0xff] %v999_v31  ;;  %869 = vmatmul.bf16.gmra.mxu0 %v589_v26 }
 0x120   : > { %1038 = vmatmul.bf16.gmra.mxu1 %v589_v26  ;;  %1207 = vmatmul.bf16.gmra.mxu2 %v589_v26  ;;  %v593_v32 = vpack.c.bf16 %v546_v30, %v545_v29 }
 0x121   : > { %1376 = vmatmul.bf16.gmra.mxu3 %v589_v26 }
 0x123   : > { %v1168_v34 = vpop.f32.mrf.mxu2 }
 0x124   : > { %1511 = vst [vmem:[%s2938_s29 + $0x110] sm:$0xff] %v1168_v34  ;;  %v1337_v37 = vpop.f32.mrf.mxu3  ;;  %v832_v38 = vpop.f32.mrf.mxu0 }
 0x125   : > { %1512 = vst [vmem:[%s2938_s29 + $0x118] sm:$0xff] %v1337_v37  ;;  %v1001_v39 = vpop.f32.mrf.mxu1 }
 0x126   : > { %1513 = vst [vmem:[%s2938_s29 + $0x120] sm:$0xff] %v832_v38  ;;  %v415_v38 = vmul.f32 %v2809_v24, %v347_v35 }
 0x127   : > { %1514 = vst [vmem:[%s2938_s29 + $0x128] sm:$0xff] %v1001_v39  ;;  %v416_v39 = vmul.f32 %v2809_v24, %v348_v36 }
 0x128   : > { %v483_v42 = vadd.f32 %v2830_v41, %v415_v38 }
 0x12a   : > { %v547_v47 = vmax.f32 %v483_v42, 0.0 }
 0x12b   : > { %v1170_v43 = vpop.f32.mrf.mxu2 }
 0x12c   : > { %1515 = vst [vmem:[%s2938_s29 + $0x130] sm:$0xff] %v1170_v43  ;;  %v1339_v45 = vpop.f32.mrf.mxu3  ;;  %v835_v46 = vpop.f32.mrf.mxu0  ;;  %v484_v43 = vadd.f32 %v2830_v41, %v416_v39 }
 0x12d   : > { %1516 = vst [vmem:[%s2938_s29 + $0x138] sm:$0xff] %v1339_v45  ;;  %v1004_v49 = vpop.f32.mrf.mxu1 }
 0x12e   : > { %1517 = vst [vmem:[%s2938_s29 + $0x140] sm:$0xff] %v835_v46  ;;  %v548_v48 = vmax.f32 %v484_v43, 0.0  ;;  %v3161_v43 = vld [vmem:[%s3966_s1] ss:$0 sm:$0xff] }
 0x12f   : > { %1518 = vst [vmem:[%s2938_s29 + $0x148] sm:$0xff] %v1004_v49  ;;  %874 = vmatmul.bf16.gmra.mxu0 %v590_v44 }
 0x130   : > { %1043 = vmatmul.bf16.gmra.mxu1 %v590_v44  ;;  %1212 = vmatmul.bf16.gmra.mxu2 %v590_v44  ;;  %v594_v50 = vpack.c.bf16 %v548_v48, %v547_v47  ;;  %v3168_v47 = vld [vmem:[%s3967_s2] ss:$0 sm:$0xff] }
 0x131   : > { %1381 = vmatmul.bf16.gmra.mxu3 %v590_v44 }
 0x133   : > { %v1173_v52 = vpop.f32.mrf.mxu2 }
 0x134   : > { %1519 = vst [vmem:[%s2938_s29 + $0x150] sm:$0xff] %v1173_v52  ;;  %v1342_v55 = vpop.f32.mrf.mxu3  ;;  %v837_v56 = vpop.f32.mrf.mxu0 }
 0x135   : > { %1520 = vst [vmem:[%s2938_s29 + $0x158] sm:$0xff] %v1342_v55  ;;  %v1006_v57 = vpop.f32.mrf.mxu1 }
 0x136   : > { %1521 = vst [vmem:[%s2938_s29 + $0x160] sm:$0xff] %v837_v56  ;;  %v417_v56 = vmul.f32 %v2809_v24, %v349_v53 }
 0x137   : > { %1522 = vst [vmem:[%s2938_s29 + $0x168] sm:$0xff] %v1006_v57  ;;  %v418_v57 = vmul.f32 %v2809_v24, %v350_v54 }
 0x138   : > { %v485_v59 = vadd.f32 %v2830_v41, %v417_v56 }
 0x13a   : > { %v549_v0 = vmax.f32 %v485_v59, 0.0  ;;  %v357_v59 = vld [vmem:[%s3965_s0 + $0x160] sm:$0xff] }
 0x13b   : > { %v1175_v60 = vpop.f32.mrf.mxu2 }
 0x13c   : > { %1523 = vst [vmem:[%s2938_s29 + $0x170] sm:$0xff] %v1175_v60  ;;  %v1344_v62 = vpop.f32.mrf.mxu3  ;;  %v840_v63 = vpop.f32.mrf.mxu0  ;;  %v486_v60 = vadd.f32 %v2830_v41, %v418_v57 }
 0x13d   : > { %1524 = vst [vmem:[%s2938_s29 + $0x178] sm:$0xff] %v1344_v62  ;;  %v1009_v2 = vpop.f32.mrf.mxu1 }
 0x13e   : > { %1525 = vst [vmem:[%s2938_s29 + $0x180] sm:$0xff] %v840_v63  ;;  %v550_v1 = vmax.f32 %v486_v60, 0.0  ;;  %v358_v60 = vld [vmem:[%s3965_s0 + $0x168] sm:$0xff] }
 0x13f   : > { %1526 = vst [vmem:[%s2938_s29 + $0x188] sm:$0xff] %v1009_v2  ;;  %879 = vmatmul.bf16.gmra.mxu0 %v591_v61 }
 0x140   : > { %1048 = vmatmul.bf16.gmra.mxu1 %v591_v61  ;;  %1217 = vmatmul.bf16.gmra.mxu2 %v591_v61  ;;  %v595_v3 = vpack.c.bf16 %v550_v1, %v549_v0 }
 0x141   : > { %1386 = vmatmul.bf16.gmra.mxu3 %v591_v61 }
 0x143   : > { %v1178_v5 = vpop.f32.mrf.mxu2 }
 0x144   : > { %1527 = vst [vmem:[%s2938_s29 + $0x190] sm:$0xff] %v1178_v5  ;;  %v1347_v8 = vpop.f32.mrf.mxu3  ;;  %v842_v9 = vpop.f32.mrf.mxu0 }
 0x145   : > { %1528 = vst [vmem:[%s2938_s29 + $0x198] sm:$0xff] %v1347_v8  ;;  %v1011_v10 = vpop.f32.mrf.mxu1 }
 0x146   : > { %1529 = vst [vmem:[%s2938_s29 + $0x1a0] sm:$0xff] %v842_v9  ;;  %v419_v9 = vmul.f32 %v2809_v24, %v351_v6 }
 0x147   : > { %1530 = vst [vmem:[%s2938_s29 + $0x1a8] sm:$0xff] %v1011_v10  ;;  %v420_v10 = vmul.f32 %v2809_v24, %v352_v7 }
 0x148   : > { %v487_v12 = vadd.f32 %v2830_v41, %v419_v9 }
 0x14a   : > { %v551_v17 = vmax.f32 %v487_v12, 0.0  ;;  %v359_v12 = vld [vmem:[%s3965_s0 + $0x170] sm:$0xff] }
 0x14b   : > { %v1180_v13 = vpop.f32.mrf.mxu2 }
 0x14c   : > { %1531 = vst [vmem:[%s2938_s29 + $0x1b0] sm:$0xff] %v1180_v13  ;;  %v1349_v15 = vpop.f32.mrf.mxu3  ;;  %v845_v16 = vpop.f32.mrf.mxu0  ;;  %v488_v13 = vadd.f32 %v2830_v41, %v420_v10 }
 0x14d   : > { %1532 = vst [vmem:[%s2938_s29 + $0x1b8] sm:$0xff] %v1349_v15  ;;  %v1014_v19 = vpop.f32.mrf.mxu1 }
 0x14e   : > { %1533 = vst [vmem:[%s2938_s29 + $0x1c0] sm:$0xff] %v845_v16  ;;  %v552_v18 = vmax.f32 %v488_v13, 0.0  ;;  %v360_v13 = vld [vmem:[%s3965_s0 + $0x178] sm:$0xff] }
 0x14f   : > { %1534 = vst [vmem:[%s2938_s29 + $0x1c8] sm:$0xff] %v1014_v19  ;;  %884 = vmatmul.bf16.gmra.mxu0 %v592_v14 }
 0x150   : > { %1053 = vmatmul.bf16.gmra.mxu1 %v592_v14  ;;  %1222 = vmatmul.bf16.gmra.mxu2 %v592_v14  ;;  %v596_v20 = vpack.c.bf16 %v552_v18, %v551_v17 }
 0x151   : > { %1391 = vmatmul.bf16.gmra.mxu3 %v592_v14 }
 0x153   : > { %v1183_v22 = vpop.f32.mrf.mxu2 }
 0x154   : > { %1535 = vst [vmem:[%s2938_s29 + $0x1d0] sm:$0xff] %v1183_v22  ;;  %v1352_v26 = vpop.f32.mrf.mxu3  ;;  %v847_v27 = vpop.f32.mrf.mxu0 }
 0x155   : > { %1536 = vst [vmem:[%s2938_s29 + $0x1d8] sm:$0xff] %v1352_v26  ;;  %v1016_v28 = vpop.f32.mrf.mxu1 }
 0x156   : > { %1537 = vst [vmem:[%s2938_s29 + $0x1e0] sm:$0xff] %v847_v27  ;;  %v421_v27 = vmul.f32 %v2809_v24, %v353_v23 }
 0x157   : > { %1538 = vst [vmem:[%s2938_s29 + $0x1e8] sm:$0xff] %v1016_v28  ;;  %v422_v28 = vmul.f32 %v2809_v24, %v354_v25 }
 0x158   : > { %v489_v30 = vadd.f32 %v2830_v41, %v421_v27 }
 0x15a   : > { %v553_v24 = vmax.f32 %v489_v30, 0.0  ;;  %v361_v30 = vld [vmem:[%s3965_s0 + $0x180] sm:$0xff] }
 0x15b   : > { %v1185_v31 = vpop.f32.mrf.mxu2 }
 0x15c   : > { %1539 = vst [vmem:[%s2938_s29 + $0x1f0] sm:$0xff] %v1185_v31  ;;  %v1354_v33 = vpop.f32.mrf.mxu3  ;;  %v850_v34 = vpop.f32.mrf.mxu0  ;;  %v490_v31 = vadd.f32 %v2830_v41, %v422_v28  ;;  %v355_v41 = vld [vmem:[%s3965_s0 + $0x150] sm:$0xff] }
 0x15d   : > { %1540 = vst [vmem:[%s2938_s29 + $0x1f8] sm:$0xff] %v1354_v33  ;;  %v1019_v37 = vpop.f32.mrf.mxu1 }
 0x15e   : > { %1541 = vst [vmem:[%s2938_s29 + $0x200] sm:$0xff] %v850_v34  ;;  %v554_v35 = vmax.f32 %v490_v31, 0.0  ;;  %v362_v31 = vld [vmem:[%s3965_s0 + $0x188] sm:$0xff] }
 0x15f   : > { %1542 = vst [vmem:[%s2938_s29 + $0x208] sm:$0xff] %v1019_v37  ;;  %889 = vmatmul.bf16.gmra.mxu0 %v593_v32 }
 0x160   : > { %1058 = vmatmul.bf16.gmra.mxu1 %v593_v32  ;;  %1227 = vmatmul.bf16.gmra.mxu2 %v593_v32  ;;  %v597_v37 = vpack.c.bf16 %v554_v35, %v553_v24 }
 0x161   : > { %1396 = vmatmul.bf16.gmra.mxu3 %v593_v32 }
 0x163   : > { %v1188_v40 = vpop.f32.mrf.mxu2 }
 0x164   : > { %1543 = vst [vmem:[%s2938_s29 + $0x210] sm:$0xff] %v1188_v40  ;;  %v1357_v44 = vpop.f32.mrf.mxu3  ;;  %v852_v45 = vpop.f32.mrf.mxu0  ;;  %v356_v40 = vld [vmem:[%s3965_s0 + $0x158] sm:$0xff] }
 0x165   : > { %1544 = vst [vmem:[%s2938_s29 + $0x218] sm:$0xff] %v1357_v44  ;;  %v1021_v46 = vpop.f32.mrf.mxu1  ;;  %v423_v44 = vmul.f32 %v3161_v43, %v355_v41 }
 0x166   : > { %1545 = vst [vmem:[%s2938_s29 + $0x220] sm:$0xff] %v852_v45  ;;  %v424_v45 = vmul.f32 %v3161_v43, %v356_v40 }
 0x167   : > { %1546 = vst [vmem:[%s2938_s29 + $0x228] sm:$0xff] %v1021_v46  ;;  %v491_v48 = vadd.f32 %v3168_v47, %v423_v44 }
 0x169   : > { %v555_v53 = vmax.f32 %v491_v48, 0.0  ;;  %v363_v48 = vld [vmem:[%s3965_s0 + $0x190] sm:$0xff] }
 0x16b   : > { %v1190_v49 = vpop.f32.mrf.mxu2 }
 0x16c   : > { %1547 = vst [vmem:[%s2938_s29 + $0x230] sm:$0xff] %v1190_v49  ;;  %v1359_v51 = vpop.f32.mrf.mxu3  ;;  %v855_v52 = vpop.f32.mrf.mxu0  ;;  %v492_v49 = vadd.f32 %v3168_v47, %v424_v45 }
 0x16d   : > { %1548 = vst [vmem:[%s2938_s29 + $0x238] sm:$0xff] %v1359_v51  ;;  %v1024_v55 = vpop.f32.mrf.mxu1 }
 0x16e   : > { %1549 = vst [vmem:[%s2938_s29 + $0x240] sm:$0xff] %v855_v52  ;;  %v556_v54 = vmax.f32 %v492_v49, 0.0  ;;  %v364_v49 = vld [vmem:[%s3965_s0 + $0x198] sm:$0xff] }
 0x16f   : > { %1550 = vst [vmem:[%s2938_s29 + $0x248] sm:$0xff] %v1024_v55  ;;  %894 = vmatmul.bf16.gmra.mxu0 %v594_v50 }
 0x170   : > { %1063 = vmatmul.bf16.gmra.mxu1 %v594_v50  ;;  %1232 = vmatmul.bf16.gmra.mxu2 %v594_v50  ;;  %v598_v56 = vpack.c.bf16 %v556_v54, %v555_v53 }
 0x171   : > { %1401 = vmatmul.bf16.gmra.mxu3 %v594_v50 }
 0x173   : > { %v1193_v58 = vpop.f32.mrf.mxu2 }
 0x174   : > { %1551 = vst [vmem:[%s2938_s29 + $0x250] sm:$0xff] %v1193_v58  ;;  %v1362_v61 = vpop.f32.mrf.mxu3  ;;  %v857_v62 = vpop.f32.mrf.mxu0 }
 0x175   : > { %1552 = vst [vmem:[%s2938_s29 + $0x258] sm:$0xff] %v1362_v61  ;;  %v1026_v63 = vpop.f32.mrf.mxu1 }
 0x176   : > { %1553 = vst [vmem:[%s2938_s29 + $0x260] sm:$0xff] %v857_v62  ;;  %v425_v62 = vmul.f32 %v3161_v43, %v357_v59 }
 0x177   : > { %1554 = vst [vmem:[%s2938_s29 + $0x268] sm:$0xff] %v1026_v63  ;;  %v426_v63 = vmul.f32 %v3161_v43, %v358_v60 }
 0x178   : > { %v493_v1 = vadd.f32 %v3168_v47, %v425_v62 }
 0x17a   : > { %v557_v6 = vmax.f32 %v493_v1, 0.0  ;;  %v365_v1 = vld [vmem:[%s3965_s0 + $0x1a0] sm:$0xff] }
 0x17b   : > { %v1195_v2 = vpop.f32.mrf.mxu2 }
 0x17c   : > { %1555 = vst [vmem:[%s2938_s29 + $0x270] sm:$0xff] %v1195_v2  ;;  %v1364_v4 = vpop.f32.mrf.mxu3  ;;  %v860_v5 = vpop.f32.mrf.mxu0  ;;  %v494_v2 = vadd.f32 %v3168_v47, %v426_v63 }
 0x17d   : > { %1556 = vst [vmem:[%s2938_s29 + $0x278] sm:$0xff] %v1364_v4  ;;  %v1029_v8 = vpop.f32.mrf.mxu1 }
 0x17e   : > { %1557 = vst [vmem:[%s2938_s29 + $0x280] sm:$0xff] %v860_v5  ;;  %v558_v7 = vmax.f32 %v494_v2, 0.0  ;;  %v366_v2 = vld [vmem:[%s3965_s0 + $0x1a8] sm:$0xff] }
 0x17f   : > { %1558 = vst [vmem:[%s2938_s29 + $0x288] sm:$0xff] %v1029_v8  ;;  %899 = vmatmul.bf16.gmra.mxu0 %v595_v3 }
 0x180   : > { %1068 = vmatmul.bf16.gmra.mxu1 %v595_v3  ;;  %1237 = vmatmul.bf16.gmra.mxu2 %v595_v3  ;;  %v599_v9 = vpack.c.bf16 %v558_v7, %v557_v6 }
 0x181   : > { %1406 = vmatmul.bf16.gmra.mxu3 %v595_v3 }
 0x183   : > { %v1198_v11 = vpop.f32.mrf.mxu2 }
 0x184   : > { %1559 = vst [vmem:[%s2938_s29 + $0x290] sm:$0xff] %v1198_v11  ;;  %v1367_v14 = vpop.f32.mrf.mxu3  ;;  %v862_v15 = vpop.f32.mrf.mxu0 }
 0x185   : > { %1560 = vst [vmem:[%s2938_s29 + $0x298] sm:$0xff] %v1367_v14  ;;  %v1031_v16 = vpop.f32.mrf.mxu1 }
 0x186   : > { %1561 = vst [vmem:[%s2938_s29 + $0x2a0] sm:$0xff] %v862_v15  ;;  %v427_v15 = vmul.f32 %v3161_v43, %v359_v12 }
 0x187   : > { %1562 = vst [vmem:[%s2938_s29 + $0x2a8] sm:$0xff] %v1031_v16  ;;  %v428_v16 = vmul.f32 %v3161_v43, %v360_v13 }
 0x188   : > { %v495_v18 = vadd.f32 %v3168_v47, %v427_v15 }
 0x18a   : > { %v559_v23 = vmax.f32 %v495_v18, 0.0  ;;  %v367_v18 = vld [vmem:[%s3965_s0 + $0x1b0] sm:$0xff] }
 0x18b   : > { %v1200_v19 = vpop.f32.mrf.mxu2 }
 0x18c   : > { %1563 = vst [vmem:[%s2938_s29 + $0x2b0] sm:$0xff] %v1200_v19  ;;  %v1369_v21 = vpop.f32.mrf.mxu3  ;;  %v865_v22 = vpop.f32.mrf.mxu0  ;;  %v496_v19 = vadd.f32 %v3168_v47, %v428_v16 }
 0x18d   : > { %1564 = vst [vmem:[%s2938_s29 + $0x2b8] sm:$0xff] %v1369_v21  ;;  %v1034_v26 = vpop.f32.mrf.mxu1 }
 0x18e   : > { %1565 = vst [vmem:[%s2938_s29 + $0x2c0] sm:$0xff] %v865_v22  ;;  %v560_v25 = vmax.f32 %v496_v19, 0.0  ;;  %v368_v19 = vld [vmem:[%s3965_s0 + $0x1b8] sm:$0xff] }
 0x18f   : > { %1566 = vst [vmem:[%s2938_s29 + $0x2c8] sm:$0xff] %v1034_v26  ;;  %904 = vmatmul.bf16.gmra.mxu0 %v596_v20 }
 0x190   : > { %1073 = vmatmul.bf16.gmra.mxu1 %v596_v20  ;;  %1242 = vmatmul.bf16.gmra.mxu2 %v596_v20  ;;  %v600_v27 = vpack.c.bf16 %v560_v25, %v559_v23 }
 0x191   : > { %1411 = vmatmul.bf16.gmra.mxu3 %v596_v20 }
 0x193   : > { %v1203_v29 = vpop.f32.mrf.mxu2 }
 0x194   : > { %1567 = vst [vmem:[%s2938_s29 + $0x2d0] sm:$0xff] %v1203_v29  ;;  %v1372_v32 = vpop.f32.mrf.mxu3  ;;  %v867_v33 = vpop.f32.mrf.mxu0 }
 0x195   : > { %1568 = vst [vmem:[%s2938_s29 + $0x2d8] sm:$0xff] %v1372_v32  ;;  %v1036_v34 = vpop.f32.mrf.mxu1 }
 0x196   : > { %1569 = vst [vmem:[%s2938_s29 + $0x2e0] sm:$0xff] %v867_v33  ;;  %v429_v33 = vmul.f32 %v3161_v43, %v361_v30 }
 0x197   : > { %1570 = vst [vmem:[%s2938_s29 + $0x2e8] sm:$0xff] %v1036_v34  ;;  %v430_v34 = vmul.f32 %v3161_v43, %v362_v31 }
 0x198   : > { %v497_v35 = vadd.f32 %v3168_v47, %v429_v33 }
 0x19a   : > { %v561_v41 = vmax.f32 %v497_v35, 0.0  ;;  %v369_v35 = vld [vmem:[%s3965_s0 + $0x1c0] sm:$0xff] }
 0x19b   : > { %v1205_v36 = vpop.f32.mrf.mxu2 }
 0x19c   : > { %1571 = vst [vmem:[%s2938_s29 + $0x2f0] sm:$0xff] %v1205_v36  ;;  %v1374_v38 = vpop.f32.mrf.mxu3  ;;  %v870_v39 = vpop.f32.mrf.mxu0  ;;  %v498_v36 = vadd.f32 %v3168_v47, %v430_v34 }
 0x19d   : > { %1572 = vst [vmem:[%s2938_s29 + $0x2f8] sm:$0xff] %v1374_v38  ;;  %v1039_v42 = vpop.f32.mrf.mxu1 }
 0x19e   : > { %1573 = vst [vmem:[%s2938_s29 + $0x300] sm:$0xff] %v870_v39  ;;  %v562_v40 = vmax.f32 %v498_v36, 0.0  ;;  %v370_v36 = vld [vmem:[%s3965_s0 + $0x1c8] sm:$0xff] }
 0x19f   : > { %1574 = vst [vmem:[%s2938_s29 + $0x308] sm:$0xff] %v1039_v42  ;;  %909 = vmatmul.bf16.gmra.mxu0 %v597_v37 }
 0x1a0   : > { %1078 = vmatmul.bf16.gmra.mxu1 %v597_v37  ;;  %1247 = vmatmul.bf16.gmra.mxu2 %v597_v37  ;;  %v601_v44 = vpack.c.bf16 %v562_v40, %v561_v41 }
 0x1a1   : > { %1416 = vmatmul.bf16.gmra.mxu3 %v597_v37 }
 0x1a3   : > { %v1208_v46 = vpop.f32.mrf.mxu2 }
 0x1a4   : > { %1575 = vst [vmem:[%s2938_s29 + $0x310] sm:$0xff] %v1208_v46  ;;  %v1377_v50 = vpop.f32.mrf.mxu3  ;;  %v872_v51 = vpop.f32.mrf.mxu0 }
 0x1a5   : > { %1576 = vst [vmem:[%s2938_s29 + $0x318] sm:$0xff] %v1377_v50  ;;  %v1041_v52 = vpop.f32.mrf.mxu1 }
 0x1a6   : > { %1577 = vst [vmem:[%s2938_s29 + $0x320] sm:$0xff] %v872_v51  ;;  %v431_v51 = vmul.f32 %v3161_v43, %v363_v48 }
 0x1a7   : > { %1578 = vst [vmem:[%s2938_s29 + $0x328] sm:$0xff] %v1041_v52  ;;  %v432_v52 = vmul.f32 %v3161_v43, %v364_v49 }
 0x1a8   : > { %v499_v54 = vadd.f32 %v3168_v47, %v431_v51 }
 0x1aa   : > { %v563_v59 = vmax.f32 %v499_v54, 0.0  ;;  %v371_v54 = vld [vmem:[%s3965_s0 + $0x1d0] sm:$0xff] }
 0x1ab   : > { %v1210_v55 = vpop.f32.mrf.mxu2 }
 0x1ac   : > { %1579 = vst [vmem:[%s2938_s29 + $0x330] sm:$0xff] %v1210_v55  ;;  %v1379_v57 = vpop.f32.mrf.mxu3  ;;  %v875_v58 = vpop.f32.mrf.mxu0  ;;  %v500_v55 = vadd.f32 %v3168_v47, %v432_v52 }
 0x1ad   : > { %1580 = vst [vmem:[%s2938_s29 + $0x338] sm:$0xff] %v1379_v57  ;;  %v1044_v61 = vpop.f32.mrf.mxu1 }
 0x1ae   : > { %1581 = vst [vmem:[%s2938_s29 + $0x340] sm:$0xff] %v875_v58  ;;  %v564_v60 = vmax.f32 %v500_v55, 0.0  ;;  %v372_v55 = vld [vmem:[%s3965_s0 + $0x1d8] sm:$0xff] }
 0x1af   : > { %1582 = vst [vmem:[%s2938_s29 + $0x348] sm:$0xff] %v1044_v61  ;;  %914 = vmatmul.bf16.gmra.mxu0 %v598_v56 }
 0x1b0   : > { %1083 = vmatmul.bf16.gmra.mxu1 %v598_v56  ;;  %1252 = vmatmul.bf16.gmra.mxu2 %v598_v56  ;;  %v602_v62 = vpack.c.bf16 %v564_v60, %v563_v59 }
 0x1b1   : > { %1421 = vmatmul.bf16.gmra.mxu3 %v598_v56 }
 0x1b3   : > { %v1213_v0 = vpop.f32.mrf.mxu2 }
 0x1b4   : > { %1583 = vst [vmem:[%s2938_s29 + $0x350] sm:$0xff] %v1213_v0  ;;  %v1382_v3 = vpop.f32.mrf.mxu3  ;;  %v877_v4 = vpop.f32.mrf.mxu0 }
 0x1b5   : > { %1584 = vst [vmem:[%s2938_s29 + $0x358] sm:$0xff] %v1382_v3  ;;  %v1046_v5 = vpop.f32.mrf.mxu1 }
 0x1b6   : > { %1585 = vst [vmem:[%s2938_s29 + $0x360] sm:$0xff] %v877_v4  ;;  %v433_v4 = vmul.f32 %v3161_v43, %v365_v1 }
 0x1b7   : > { %1586 = vst [vmem:[%s2938_s29 + $0x368] sm:$0xff] %v1046_v5  ;;  %v434_v5 = vmul.f32 %v3161_v43, %v366_v2 }
 0x1b8   : > { %v501_v7 = vadd.f32 %v3168_v47, %v433_v4 }
 0x1ba   : > { %v565_v12 = vmax.f32 %v501_v7, 0.0  ;;  %v373_v7 = vld [vmem:[%s3965_s0 + $0x1e0] sm:$0xff] }
 0x1bb   : > { %v1215_v8 = vpop.f32.mrf.mxu2 }
 0x1bc   : > { %1587 = vst [vmem:[%s2938_s29 + $0x370] sm:$0xff] %v1215_v8  ;;  %v1384_v10 = vpop.f32.mrf.mxu3  ;;  %v880_v11 = vpop.f32.mrf.mxu0  ;;  %v502_v8 = vadd.f32 %v3168_v47, %v434_v5 }
 0x1bd   : > { %1588 = vst [vmem:[%s2938_s29 + $0x378] sm:$0xff] %v1384_v10  ;;  %v1049_v14 = vpop.f32.mrf.mxu1 }
 0x1be   : > { %1589 = vst [vmem:[%s2938_s29 + $0x380] sm:$0xff] %v880_v11  ;;  %v566_v13 = vmax.f32 %v502_v8, 0.0  ;;  %v374_v8 = vld [vmem:[%s3965_s0 + $0x1e8] sm:$0xff] }
 0x1bf   : > { %1590 = vst [vmem:[%s2938_s29 + $0x388] sm:$0xff] %v1049_v14  ;;  %919 = vmatmul.bf16.gmra.mxu0 %v599_v9 }
 0x1c0   : > { %1088 = vmatmul.bf16.gmra.mxu1 %v599_v9  ;;  %1257 = vmatmul.bf16.gmra.mxu2 %v599_v9  ;;  %v603_v15 = vpack.c.bf16 %v566_v13, %v565_v12 }
 0x1c1   : > { %1426 = vmatmul.bf16.gmra.mxu3 %v599_v9 }
 0x1c3   : > { %v1218_v17 = vpop.f32.mrf.mxu2 }
 0x1c4   : > { %1591 = vst [vmem:[%s2938_s29 + $0x390] sm:$0xff] %v1218_v17  ;;  %v1387_v20 = vpop.f32.mrf.mxu3  ;;  %v882_v21 = vpop.f32.mrf.mxu0 }
 0x1c5   : > { %1592 = vst [vmem:[%s2938_s29 + $0x398] sm:$0xff] %v1387_v20  ;;  %v1051_v22 = vpop.f32.mrf.mxu1 }
 0x1c6   : > { %1593 = vst [vmem:[%s2938_s29 + $0x3a0] sm:$0xff] %v882_v21  ;;  %v435_v21 = vmul.f32 %v3161_v43, %v367_v18 }
 0x1c7   : > { %1594 = vst [vmem:[%s2938_s29 + $0x3a8] sm:$0xff] %v1051_v22  ;;  %v436_v22 = vmul.f32 %v3161_v43, %v368_v19 }
 0x1c8   : > { %v503_v25 = vadd.f32 %v3168_v47, %v435_v21 }
 0x1ca   : > { %v567_v30 = vmax.f32 %v503_v25, 0.0  ;;  %v375_v25 = vld [vmem:[%s3965_s0 + $0x1f0] sm:$0xff] }
 0x1cb   : > { %v1220_v26 = vpop.f32.mrf.mxu2 }
 0x1cc   : > { %1595 = vst [vmem:[%s2938_s29 + $0x3b0] sm:$0xff] %v1220_v26  ;;  %v1389_v28 = vpop.f32.mrf.mxu3  ;;  %v885_v29 = vpop.f32.mrf.mxu0  ;;  %v504_v26 = vadd.f32 %v3168_v47, %v436_v22 }
 0x1cd   : > { %1596 = vst [vmem:[%s2938_s29 + $0x3b8] sm:$0xff] %v1389_v28  ;;  %v1054_v32 = vpop.f32.mrf.mxu1 }
 0x1ce   : > { %1597 = vst [vmem:[%s2938_s29 + $0x3c0] sm:$0xff] %v885_v29  ;;  %v568_v31 = vmax.f32 %v504_v26, 0.0  ;;  %v376_v26 = vld [vmem:[%s3965_s0 + $0x1f8] sm:$0xff] }
 0x1cf   : > { %1598 = vst [vmem:[%s2938_s29 + $0x3c8] sm:$0xff] %v1054_v32  ;;  %924 = vmatmul.bf16.gmra.mxu0 %v600_v27 }
 0x1d0   : > { %1093 = vmatmul.bf16.gmra.mxu1 %v600_v27  ;;  %1262 = vmatmul.bf16.gmra.mxu2 %v600_v27  ;;  %v604_v33 = vpack.c.bf16 %v568_v31, %v567_v30 }
 0x1d1   : > { %1431 = vmatmul.bf16.gmra.mxu3 %v600_v27 }
 0x1d3   : > { %v1223_v24 = vpop.f32.mrf.mxu2 }
 0x1d4   : > { %1599 = vst [vmem:[%s2938_s29 + $0x3d0] sm:$0xff] %v1223_v24  ;;  %v1392_v37 = vpop.f32.mrf.mxu3  ;;  %v887_v38 = vpop.f32.mrf.mxu0 }
 0x1d5   : > { %1600 = vst [vmem:[%s2938_s29 + $0x3d8] sm:$0xff] %v1392_v37  ;;  %v1056_v39 = vpop.f32.mrf.mxu1 }
 0x1d6   : > { %1601 = vst [vmem:[%s2938_s29 + $0x3e0] sm:$0xff] %v887_v38  ;;  %v437_v38 = vmul.f32 %v3161_v43, %v369_v35 }
 0x1d7   : > { %1602 = vst [vmem:[%s2938_s29 + $0x3e8] sm:$0xff] %v1056_v39  ;;  %v438_v39 = vmul.f32 %v3161_v43, %v370_v36 }
 0x1d8   : > { %v505_v40 = vadd.f32 %v3168_v47, %v437_v38 }
 0x1da   : > { %v569_v48 = vmax.f32 %v505_v40, 0.0 }
 0x1db   : > { %v1225_v42 = vpop.f32.mrf.mxu2 }
 0x1dc   : > { %1603 = vst [vmem:[%s2938_s29 + $0x3f0] sm:$0xff] %v1225_v42  ;;  %v1394_v45 = vpop.f32.mrf.mxu3  ;;  %v890_v46 = vpop.f32.mrf.mxu0  ;;  %v506_v42 = vadd.f32 %v3168_v47, %v438_v39 }
 0x1dd   : > { %1604 = vst [vmem:[%s2938_s29 + $0x3f8] sm:$0xff] %v1394_v45  ;;  %v1059_v50 = vpop.f32.mrf.mxu1 }
 0x1de   : > { %1605 = vst [vmem:[%s2938_s29 + $0x400] sm:$0xff] %v890_v46  ;;  %v570_v49 = vmax.f32 %v506_v42, 0.0 }
 0x1df   : > { %1606 = vst [vmem:[%s2938_s29 + $0x408] sm:$0xff] %v1059_v50  ;;  %929 = vmatmul.bf16.gmra.mxu0 %v601_v44 }
 0x1e0   : > { %1098 = vmatmul.bf16.gmra.mxu1 %v601_v44  ;;  %1267 = vmatmul.bf16.gmra.mxu2 %v601_v44  ;;  %v605_v51 = vpack.c.bf16 %v570_v49, %v569_v48 }
 0x1e1   : > { %1436 = vmatmul.bf16.gmra.mxu3 %v601_v44 }
 0x1e3   : > { %v1228_v53 = vpop.f32.mrf.mxu2 }
 0x1e4   : > { %1607 = vst [vmem:[%s2938_s29 + $0x410] sm:$0xff] %v1228_v53  ;;  %v1397_v56 = vpop.f32.mrf.mxu3  ;;  %v892_v57 = vpop.f32.mrf.mxu0 }
 0x1e5   : > { %1608 = vst [vmem:[%s2938_s29 + $0x418] sm:$0xff] %v1397_v56  ;;  %v1061_v58 = vpop.f32.mrf.mxu1 }
 0x1e6   : > { %1609 = vst [vmem:[%s2938_s29 + $0x420] sm:$0xff] %v892_v57  ;;  %v439_v57 = vmul.f32 %v3161_v43, %v371_v54 }
 0x1e7   : > { %1610 = vst [vmem:[%s2938_s29 + $0x428] sm:$0xff] %v1061_v58  ;;  %v440_v58 = vmul.f32 %v3161_v43, %v372_v55 }
 0x1e8   : > { %v507_v60 = vadd.f32 %v3168_v47, %v439_v57 }
 0x1ea   : > { %v571_v1 = vmax.f32 %v507_v60, 0.0 }
 0x1eb   : > { %v1230_v61 = vpop.f32.mrf.mxu2 }
 0x1ec   : > { %1611 = vst [vmem:[%s2938_s29 + $0x430] sm:$0xff] %v1230_v61  ;;  %v1399_v63 = vpop.f32.mrf.mxu3  ;;  %v895_v0 = vpop.f32.mrf.mxu0  ;;  %v508_v61 = vadd.f32 %v3168_v47, %v440_v58 }
 0x1ed   : > { %1612 = vst [vmem:[%s2938_s29 + $0x438] sm:$0xff] %v1399_v63  ;;  %v1064_v3 = vpop.f32.mrf.mxu1 }
 0x1ee   : > { %1613 = vst [vmem:[%s2938_s29 + $0x440] sm:$0xff] %v895_v0  ;;  %v572_v2 = vmax.f32 %v508_v61, 0.0 }
 0x1ef   : > { %1614 = vst [vmem:[%s2938_s29 + $0x448] sm:$0xff] %v1064_v3  ;;  %934 = vmatmul.bf16.gmra.mxu0 %v602_v62 }
 0x1f0   : > { %1103 = vmatmul.bf16.gmra.mxu1 %v602_v62  ;;  %1272 = vmatmul.bf16.gmra.mxu2 %v602_v62  ;;  %v606_v4 = vpack.c.bf16 %v572_v2, %v571_v1 }
 0x1f1   : > { %1441 = vmatmul.bf16.gmra.mxu3 %v602_v62 }
 0x1f3   : > { %v1233_v6 = vpop.f32.mrf.mxu2 }
 0x1f4   : > { %1615 = vst [vmem:[%s2938_s29 + $0x450] sm:$0xff] %v1233_v6  ;;  %v1402_v9 = vpop.f32.mrf.mxu3  ;;  %v897_v10 = vpop.f32.mrf.mxu0 }
 0x1f5   : > { %1616 = vst [vmem:[%s2938_s29 + $0x458] sm:$0xff] %v1402_v9  ;;  %v1066_v11 = vpop.f32.mrf.mxu1 }
 0x1f6   : > { %1617 = vst [vmem:[%s2938_s29 + $0x460] sm:$0xff] %v897_v10  ;;  %v441_v10 = vmul.f32 %v3161_v43, %v373_v7 }
 0x1f7   : > { %1618 = vst [vmem:[%s2938_s29 + $0x468] sm:$0xff] %v1066_v11  ;;  %v442_v11 = vmul.f32 %v3161_v43, %v374_v8 }
 0x1f8   : > { %v509_v13 = vadd.f32 %v3168_v47, %v441_v10 }
 0x1fa   : > { %v573_v18 = vmax.f32 %v509_v13, 0.0 }
 0x1fb   : > { %v1235_v14 = vpop.f32.mrf.mxu2 }
 0x1fc   : > { %1619 = vst [vmem:[%s2938_s29 + $0x470] sm:$0xff] %v1235_v14  ;;  %v1404_v16 = vpop.f32.mrf.mxu3  ;;  %v900_v17 = vpop.f32.mrf.mxu0  ;;  %v510_v14 = vadd.f32 %v3168_v47, %v442_v11 }
 0x1fd   : > { %1620 = vst [vmem:[%s2938_s29 + $0x478] sm:$0xff] %v1404_v16  ;;  %v1069_v20 = vpop.f32.mrf.mxu1 }
 0x1fe   : > { %1621 = vst [vmem:[%s2938_s29 + $0x480] sm:$0xff] %v900_v17  ;;  %v574_v19 = vmax.f32 %v510_v14, 0.0 }
 0x1ff   : > { %1622 = vst [vmem:[%s2938_s29 + $0x488] sm:$0xff] %v1069_v20  ;;  %939 = vmatmul.bf16.gmra.mxu0 %v603_v15 }
 0x200   : > { %1108 = vmatmul.bf16.gmra.mxu1 %v603_v15  ;;  %1277 = vmatmul.bf16.gmra.mxu2 %v603_v15  ;;  %v607_v21 = vpack.c.bf16 %v574_v19, %v573_v18 }
 0x201   : > { %1446 = vmatmul.bf16.gmra.mxu3 %v603_v15 }
 0x203   : > { %v1238_v23 = vpop.f32.mrf.mxu2 }
 0x204   : > { %1623 = vst [vmem:[%s2938_s29 + $0x490] sm:$0xff] %v1238_v23  ;;  %v1407_v27 = vpop.f32.mrf.mxu3  ;;  %v902_v28 = vpop.f32.mrf.mxu0 }
 0x205   : > { %1624 = vst [vmem:[%s2938_s29 + $0x498] sm:$0xff] %v1407_v27  ;;  %v1071_v29 = vpop.f32.mrf.mxu1 }
 0x206   : > { %1625 = vst [vmem:[%s2938_s29 + $0x4a0] sm:$0xff] %v902_v28  ;;  %v443_v28 = vmul.f32 %v3161_v43, %v375_v25 }
 0x207   : > { %1626 = vst [vmem:[%s2938_s29 + $0x4a8] sm:$0xff] %v1071_v29  ;;  %v444_v29 = vmul.f32 %v3161_v43, %v376_v26 }
 0x208   : > { %v511_v31 = vadd.f32 %v3168_v47, %v443_v28 }
 0x20a   : > { %v575_v43 = vmax.f32 %v511_v31, 0.0 }
 0x20b   : > { %v1240_v32 = vpop.f32.mrf.mxu2 }
 0x20c   : > { %1627 = vst [vmem:[%s2938_s29 + $0x4b0] sm:$0xff] %v1240_v32  ;;  %v1409_v34 = vpop.f32.mrf.mxu3  ;;  %v905_v24 = vpop.f32.mrf.mxu0  ;;  %v512_v32 = vadd.f32 %v3168_v47, %v444_v29 }
 0x20d   : > { %1628 = vst [vmem:[%s2938_s29 + $0x4b8] sm:$0xff] %v1409_v34  ;;  %v1074_v37 = vpop.f32.mrf.mxu1 }
 0x20e   : > { %1629 = vst [vmem:[%s2938_s29 + $0x4c0] sm:$0xff] %v905_v24  ;;  %v576_v35 = vmax.f32 %v512_v32, 0.0 }
 0x20f   : > { %1630 = vst [vmem:[%s2938_s29 + $0x4c8] sm:$0xff] %v1074_v37  ;;  %944 = vmatmul.bf16.gmra.mxu0 %v604_v33 }
 0x210   : > { %1113 = vmatmul.bf16.gmra.mxu1 %v604_v33  ;;  %1282 = vmatmul.bf16.gmra.mxu2 %v604_v33  ;;  %v608_v37 = vpack.c.bf16 %v576_v35, %v575_v43 }
 0x211   : > { %1451 = vmatmul.bf16.gmra.mxu3 %v604_v33 }
 0x213   : > { %v1243_v41 = vpop.f32.mrf.mxu2 }
 0x214   : > { %1631 = vst [vmem:[%s2938_s29 + $0x4d0] sm:$0xff] %v1243_v41  ;;  %v1412_v44 = vpop.f32.mrf.mxu3  ;;  %v907_v45 = vpop.f32.mrf.mxu0 }
 0x215   : > { %1632 = vst [vmem:[%s2938_s29 + $0x4d8] sm:$0xff] %v1412_v44  ;;  %v1076_v46 = vpop.f32.mrf.mxu1 }
 0x216   : > { %1633 = vst [vmem:[%s2938_s29 + $0x4e0] sm:$0xff] %v907_v45 }
 0x217   : > { %1634 = vst [vmem:[%s2938_s29 + $0x4e8] sm:$0xff] %v1076_v46 }
 0x21b   : > { %v1245_v50 = vpop.f32.mrf.mxu2 }
 0x21c   : > { %1635 = vst [vmem:[%s2938_s29 + $0x4f0] sm:$0xff] %v1245_v50  ;;  %v1414_v52 = vpop.f32.mrf.mxu3  ;;  %v910_v53 = vpop.f32.mrf.mxu0 }
 0x21d   : > { %1636 = vst [vmem:[%s2938_s29 + $0x4f8] sm:$0xff] %v1414_v52  ;;  %v1079_v56 = vpop.f32.mrf.mxu1 }
 0x21e   : > { %1637 = vst [vmem:[%s2938_s29 + $0x500] sm:$0xff] %v910_v53 }
 0x21f   : > { %1638 = vst [vmem:[%s2938_s29 + $0x508] sm:$0xff] %v1079_v56  ;;  %949 = vmatmul.bf16.gmra.mxu0 %v605_v51 }
 0x220   : > { %1118 = vmatmul.bf16.gmra.mxu1 %v605_v51  ;;  %1287 = vmatmul.bf16.gmra.mxu2 %v605_v51 }
 0x221   : > { %1456 = vmatmul.bf16.gmra.mxu3 %v605_v51 }
 0x223   : > { %v1248_v59 = vpop.f32.mrf.mxu2 }
 0x224   : > { %1639 = vst [vmem:[%s2938_s29 + $0x510] sm:$0xff] %v1248_v59  ;;  %v1417_v62 = vpop.f32.mrf.mxu3  ;;  %v912_v63 = vpop.f32.mrf.mxu0 }
 0x225   : > { %1640 = vst [vmem:[%s2938_s29 + $0x518] sm:$0xff] %v1417_v62  ;;  %v1081_v0 = vpop.f32.mrf.mxu1 }
 0x226   : > { %1641 = vst [vmem:[%s2938_s29 + $0x520] sm:$0xff] %v912_v63 }
 0x227   : > { %1642 = vst [vmem:[%s2938_s29 + $0x528] sm:$0xff] %v1081_v0 }
 0x22b   : > { %v1250_v3 = vpop.f32.mrf.mxu2 }
 0x22c   : > { %1643 = vst [vmem:[%s2938_s29 + $0x530] sm:$0xff] %v1250_v3  ;;  %v1419_v5 = vpop.f32.mrf.mxu3  ;;  %v915_v6 = vpop.f32.mrf.mxu0 }
 0x22d   : > { %1644 = vst [vmem:[%s2938_s29 + $0x538] sm:$0xff] %v1419_v5  ;;  %v1084_v9 = vpop.f32.mrf.mxu1 }
 0x22e   : > { %1645 = vst [vmem:[%s2938_s29 + $0x540] sm:$0xff] %v915_v6 }
 0x22f   : > { %1646 = vst [vmem:[%s2938_s29 + $0x548] sm:$0xff] %v1084_v9  ;;  %954 = vmatmul.bf16.gmra.mxu0 %v606_v4 }
 0x230   : > { %1123 = vmatmul.bf16.gmra.mxu1 %v606_v4  ;;  %1292 = vmatmul.bf16.gmra.mxu2 %v606_v4 }
 0x231   : > { %1461 = vmatmul.bf16.gmra.mxu3 %v606_v4 }
 0x233   : > { %v1253_v12 = vpop.f32.mrf.mxu2 }
 0x234   : > { %1647 = vst [vmem:[%s2938_s29 + $0x550] sm:$0xff] %v1253_v12  ;;  %v1422_v15 = vpop.f32.mrf.mxu3  ;;  %v917_v16 = vpop.f32.mrf.mxu0 }
 0x235   : > { %1648 = vst [vmem:[%s2938_s29 + $0x558] sm:$0xff] %v1422_v15  ;;  %v1086_v17 = vpop.f32.mrf.mxu1 }
 0x236   : > { %1649 = vst [vmem:[%s2938_s29 + $0x560] sm:$0xff] %v917_v16 }
 0x237   : > { %1650 = vst [vmem:[%s2938_s29 + $0x568] sm:$0xff] %v1086_v17 }
 0x23b   : > { %v1255_v20 = vpop.f32.mrf.mxu2 }
 0x23c   : > { %1651 = vst [vmem:[%s2938_s29 + $0x570] sm:$0xff] %v1255_v20  ;;  %v1424_v22 = vpop.f32.mrf.mxu3  ;;  %v920_v23 = vpop.f32.mrf.mxu0 }
 0x23d   : > { %1652 = vst [vmem:[%s2938_s29 + $0x578] sm:$0xff] %v1424_v22  ;;  %v1089_v27 = vpop.f32.mrf.mxu1 }
 0x23e   : > { %1653 = vst [vmem:[%s2938_s29 + $0x580] sm:$0xff] %v920_v23 }
 0x23f   : > { %1654 = vst [vmem:[%s2938_s29 + $0x588] sm:$0xff] %v1089_v27  ;;  %959 = vmatmul.bf16.gmra.mxu0 %v607_v21 }
 0x240   : > { %1128 = vmatmul.bf16.gmra.mxu1 %v607_v21  ;;  %1297 = vmatmul.bf16.gmra.mxu2 %v607_v21 }
 0x241   : > { %1466 = vmatmul.bf16.gmra.mxu3 %v607_v21 }
 0x243   : > { %v1258_v30 = vpop.f32.mrf.mxu2 }
 0x244   : > { %1655 = vst [vmem:[%s2938_s29 + $0x590] sm:$0xff] %v1258_v30  ;;  %v1427_v33 = vpop.f32.mrf.mxu3  ;;  %v922_v34 = vpop.f32.mrf.mxu0 }
 0x245   : > { %1656 = vst [vmem:[%s2938_s29 + $0x598] sm:$0xff] %v1427_v33  ;;  %v1091_v24 = vpop.f32.mrf.mxu1 }
 0x246   : > { %1657 = vst [vmem:[%s2938_s29 + $0x5a0] sm:$0xff] %v922_v34 }
 0x247   : > { %1658 = vst [vmem:[%s2938_s29 + $0x5a8] sm:$0xff] %v1091_v24 }
 0x24b   : > { %v1260_v36 = vpop.f32.mrf.mxu2 }
 0x24c   : > { %1659 = vst [vmem:[%s2938_s29 + $0x5b0] sm:$0xff] %v1260_v36  ;;  %v1429_v38 = vpop.f32.mrf.mxu3  ;;  %v925_v39 = vpop.f32.mrf.mxu0 }
 0x24d   : > { %1660 = vst [vmem:[%s2938_s29 + $0x5b8] sm:$0xff] %v1429_v38  ;;  %v1094_v47 = vpop.f32.mrf.mxu1 }
 0x24e   : > { %1661 = vst [vmem:[%s2938_s29 + $0x5c0] sm:$0xff] %v925_v39 }
 0x24f   : > { %1662 = vst [vmem:[%s2938_s29 + $0x5c8] sm:$0xff] %v1094_v47  ;;  %964 = vmatmul.bf16.gmra.mxu0 %v608_v37 }
 0x250   : > { %1133 = vmatmul.bf16.gmra.mxu1 %v608_v37  ;;  %1302 = vmatmul.bf16.gmra.mxu2 %v608_v37 }
 0x251   : > { %1471 = vmatmul.bf16.gmra.mxu3 %v608_v37 }
 0x253   : > { %v1263_v41 = vpop.f32.mrf.mxu2 }
 0x254   : > { %1663 = vst [vmem:[%s2938_s29 + $0x5d0] sm:$0xff] %v1263_v41  ;;  %v1432_v40 = vpop.f32.mrf.mxu3  ;;  %v927_v42 = vpop.f32.mrf.mxu0 }
 0x255   : > { %1664 = vst [vmem:[%s2938_s29 + $0x5d8] sm:$0xff] %v1432_v40  ;;  %v1096_v44 = vpop.f32.mrf.mxu1 }
 0x256   : > { %1665 = vst [vmem:[%s2938_s29 + $0x5e0] sm:$0xff] %v927_v42 }
 0x257   : > { %1666 = vst [vmem:[%s2938_s29 + $0x5e8] sm:$0xff] %v1096_v44 }
 0x25b   : > { %v1265_v45 = vpop.f32.mrf.mxu2 }
 0x25c   : > { %1667 = vst [vmem:[%s2938_s29 + $0x5f0] sm:$0xff] %v1265_v45  ;;  %v1434_v46 = vpop.f32.mrf.mxu3  ;;  %v930_v48 = vpop.f32.mrf.mxu0 }
 0x25d   : > { %1668 = vst [vmem:[%s2938_s29 + $0x5f8] sm:$0xff] %v1434_v46  ;;  %v1099_v49 = vpop.f32.mrf.mxu1 }
 0x25e   : > { %1669 = vst [vmem:[%s2938_s29 + $0x600] sm:$0xff] %v930_v48  ;;  %v1758_v48 = vld [vmem:[%s2938_s29] sm:$0xff] (%p2678_p6) }
 0x25f   : > { %1670 = vst [vmem:[%s2938_s29 + $0x608] sm:$0xff] %v1099_v49  ;;  %v1760_v49 = vld [vmem:[%s2938_s29 + $0x8] sm:$0xff] (%p2678_p6) }
 0x260   : > { %1759 = vst [vmem:[%s3438_s8] sm:$0xff] (%p2678_p6), %v1758_v48  ;;  %v1886_v48 = vld [vmem:[%s2938_s29 + $0x200] sm:$0xff] (%p2678_p6) }
 0x261   : > { %1761 = vst [vmem:[%s3438_s8 + $0x8] sm:$0xff] (%p2678_p6), %v1760_v49  ;;  %v1888_v49 = vld [vmem:[%s2938_s29 + $0x208] sm:$0xff] (%p2678_p6) }
 0x262   : > { %1887 = vst [vmem:[%s3438_s8 + $0x400] sm:$0xff] (%p2678_p6), %v1886_v48  ;;  %v2014_v48 = vld [vmem:[%s2938_s29 + $0x400] sm:$0xff] (%p2678_p6) }
 0x263   : > { %v1268_v50 = vpop.f32.mrf.mxu2  ;;  %1889 = vst [vmem:[%s3438_s8 + $0x408] sm:$0xff] (%p2678_p6), %v1888_v49  ;;  %v2016_v49 = vld [vmem:[%s2938_s29 + $0x408] sm:$0xff] (%p2678_p6) }
 0x264   : > { %1671 = vst [vmem:[%s2938_s29 + $0x610] sm:$0xff] %v1268_v50  ;;  %v1437_v51 = vpop.f32.mrf.mxu3  ;;  %v932_v52 = vpop.f32.mrf.mxu0  ;;  %v1762_v50 = vld [vmem:[%s2938_s29 + $0x10] sm:$0xff] (%p2678_p6) }
 0x265   : > { %1672 = vst [vmem:[%s2938_s29 + $0x618] sm:$0xff] %v1437_v51  ;;  %v1101_v53 = vpop.f32.mrf.mxu1  ;;  %v1764_v51 = vld [vmem:[%s2938_s29 + $0x18] sm:$0xff] (%p2678_p6) }
 0x266   : > { %1673 = vst [vmem:[%s2938_s29 + $0x620] sm:$0xff] %v932_v52  ;;  %v1766_v52 = vld [vmem:[%s2938_s29 + $0x20] sm:$0xff] (%p2678_p6) }
 0x267   : > { %1674 = vst [vmem:[%s2938_s29 + $0x628] sm:$0xff] %v1101_v53  ;;  %v1768_v53 = vld [vmem:[%s2938_s29 + $0x28] sm:$0xff] (%p2678_p6) }
 0x268   : > { %1763 = vst [vmem:[%s3438_s8 + $0x10] sm:$0xff] (%p2678_p6), %v1762_v50  ;;  %v1890_v50 = vld [vmem:[%s2938_s29 + $0x210] sm:$0xff] (%p2678_p6) }
 0x269   : > { %1765 = vst [vmem:[%s3438_s8 + $0x18] sm:$0xff] (%p2678_p6), %v1764_v51  ;;  %v1892_v51 = vld [vmem:[%s2938_s29 + $0x218] sm:$0xff] (%p2678_p6) }
 0x26a   : > { %1767 = vst [vmem:[%s3438_s8 + $0x40] sm:$0xff] (%p2678_p6), %v1766_v52  ;;  %v1894_v52 = vld [vmem:[%s2938_s29 + $0x220] sm:$0xff] (%p2678_p6) }
 0x26b   : > { %v1270_v54 = vpop.f32.mrf.mxu2  ;;  %1769 = vst [vmem:[%s3438_s8 + $0x48] sm:$0xff] (%p2678_p6), %v1768_v53  ;;  %v1896_v53 = vld [vmem:[%s2938_s29 + $0x228] sm:$0xff] (%p2678_p6) }
 0x26c   : > { %1675 = vst [vmem:[%s2938_s29 + $0x630] sm:$0xff] %v1270_v54  ;;  %v1439_v55 = vpop.f32.mrf.mxu3  ;;  %v935_v56 = vpop.f32.mrf.mxu0  ;;  %v1770_v54 = vld [vmem:[%s2938_s29 + $0x30] sm:$0xff] (%p2678_p6) }
 0x26d   : > { %1676 = vst [vmem:[%s2938_s29 + $0x638] sm:$0xff] %v1439_v55  ;;  %v1104_v57 = vpop.f32.mrf.mxu1  ;;  %v1772_v55 = vld [vmem:[%s2938_s29 + $0x38] sm:$0xff] (%p2678_p6) }
 0x26e   : > { %1677 = vst [vmem:[%s2938_s29 + $0x640] sm:$0xff] %v935_v56  ;;  %v1774_v56 = vld [vmem:[%s2938_s29 + $0x40] sm:$0xff] (%p2678_p6) }
 0x26f   : > { %1678 = vst [vmem:[%s2938_s29 + $0x648] sm:$0xff] %v1104_v57  ;;  %v1776_v57 = vld [vmem:[%s2938_s29 + $0x48] sm:$0xff] (%p2678_p6) }
 0x270   : > { %1771 = vst [vmem:[%s3438_s8 + $0x50] sm:$0xff] (%p2678_p6), %v1770_v54  ;;  %v1898_v54 = vld [vmem:[%s2938_s29 + $0x230] sm:$0xff] (%p2678_p6) }
 0x271   : > { %1773 = vst [vmem:[%s3438_s8 + $0x58] sm:$0xff] (%p2678_p6), %v1772_v55  ;;  %v1900_v55 = vld [vmem:[%s2938_s29 + $0x238] sm:$0xff] (%p2678_p6) }
 0x272   : > { %1775 = vst [vmem:[%s3438_s8 + $0x80] sm:$0xff] (%p2678_p6), %v1774_v56  ;;  %v1902_v56 = vld [vmem:[%s2938_s29 + $0x240] sm:$0xff] (%p2678_p6) }
 0x273   : > { %v1273_v58 = vpop.f32.mrf.mxu2  ;;  %1777 = vst [vmem:[%s3438_s8 + $0x88] sm:$0xff] (%p2678_p6), %v1776_v57  ;;  %v1904_v57 = vld [vmem:[%s2938_s29 + $0x248] sm:$0xff] (%p2678_p6) }
 0x274   : > { %1679 = vst [vmem:[%s2938_s29 + $0x650] sm:$0xff] %v1273_v58  ;;  %v1442_v59 = vpop.f32.mrf.mxu3  ;;  %v937_v60 = vpop.f32.mrf.mxu0  ;;  %v1778_v58 = vld [vmem:[%s2938_s29 + $0x50] sm:$0xff] (%p2678_p6) }
 0x275   : > { %1680 = vst [vmem:[%s2938_s29 + $0x658] sm:$0xff] %v1442_v59  ;;  %v1106_v61 = vpop.f32.mrf.mxu1  ;;  %v1780_v59 = vld [vmem:[%s2938_s29 + $0x58] sm:$0xff] (%p2678_p6) }
 0x276   : > { %1681 = vst [vmem:[%s2938_s29 + $0x660] sm:$0xff] %v937_v60  ;;  %v1782_v60 = vld [vmem:[%s2938_s29 + $0x60] sm:$0xff] (%p2678_p6) }
 0x277   : > { %1682 = vst [vmem:[%s2938_s29 + $0x668] sm:$0xff] %v1106_v61  ;;  %v1784_v61 = vld [vmem:[%s2938_s29 + $0x68] sm:$0xff] (%p2678_p6) }
 0x278   : > { %1779 = vst [vmem:[%s3438_s8 + $0x90] sm:$0xff] (%p2678_p6), %v1778_v58  ;;  %v1906_v58 = vld [vmem:[%s2938_s29 + $0x250] sm:$0xff] (%p2678_p6) }
 0x279   : > { %1781 = vst [vmem:[%s3438_s8 + $0x98] sm:$0xff] (%p2678_p6), %v1780_v59  ;;  %v1908_v59 = vld [vmem:[%s2938_s29 + $0x258] sm:$0xff] (%p2678_p6) }
 0x27a   : > { %1783 = vst [vmem:[%s3438_s8 + $0xc0] sm:$0xff] (%p2678_p6), %v1782_v60  ;;  %v1910_v60 = vld [vmem:[%s2938_s29 + $0x260] sm:$0xff] (%p2678_p6) }
 0x27b   : > { %v1275_v62 = vpop.f32.mrf.mxu2  ;;  %1785 = vst [vmem:[%s3438_s8 + $0xc8] sm:$0xff] (%p2678_p6), %v1784_v61  ;;  %v1912_v61 = vld [vmem:[%s2938_s29 + $0x268] sm:$0xff] (%p2678_p6) }
 0x27c   : > { %1683 = vst [vmem:[%s2938_s29 + $0x670] sm:$0xff] %v1275_v62  ;;  %v1444_v63 = vpop.f32.mrf.mxu3  ;;  %v940_v0 = vpop.f32.mrf.mxu0  ;;  %v1786_v62 = vld [vmem:[%s2938_s29 + $0x70] sm:$0xff] (%p2678_p6) }
 0x27d   : > { %1684 = vst [vmem:[%s2938_s29 + $0x678] sm:$0xff] %v1444_v63  ;;  %v1109_v1 = vpop.f32.mrf.mxu1  ;;  %v1788_v63 = vld [vmem:[%s2938_s29 + $0x78] sm:$0xff] (%p2678_p6) }
 0x27e   : > { %1685 = vst [vmem:[%s2938_s29 + $0x680] sm:$0xff] %v940_v0  ;;  %v1790_v0 = vld [vmem:[%s2938_s29 + $0x80] sm:$0xff] (%p2678_p6) }
 0x27f   : > { %1686 = vst [vmem:[%s2938_s29 + $0x688] sm:$0xff] %v1109_v1  ;;  %v1792_v1 = vld [vmem:[%s2938_s29 + $0x88] sm:$0xff] (%p2678_p6) }
 0x280   : > { %1787 = vst [vmem:[%s3438_s8 + $0xd0] sm:$0xff] (%p2678_p6), %v1786_v62  ;;  %v1914_v62 = vld [vmem:[%s2938_s29 + $0x270] sm:$0xff] (%p2678_p6) }
 0x281   : > { %1789 = vst [vmem:[%s3438_s8 + $0xd8] sm:$0xff] (%p2678_p6), %v1788_v63  ;;  %v1916_v63 = vld [vmem:[%s2938_s29 + $0x278] sm:$0xff] (%p2678_p6) }
 0x282   : > { %1791 = vst [vmem:[%s3438_s8 + $0x100] sm:$0xff] (%p2678_p6), %v1790_v0  ;;  %v1918_v0 = vld [vmem:[%s2938_s29 + $0x280] sm:$0xff] (%p2678_p6) }
 0x283   : > { %v1278_v2 = vpop.f32.mrf.mxu2  ;;  %1793 = vst [vmem:[%s3438_s8 + $0x108] sm:$0xff] (%p2678_p6), %v1792_v1  ;;  %v1920_v1 = vld [vmem:[%s2938_s29 + $0x288] sm:$0xff] (%p2678_p6) }
 0x284   : > { %1687 = vst [vmem:[%s2938_s29 + $0x690] sm:$0xff] %v1278_v2  ;;  %v1447_v3 = vpop.f32.mrf.mxu3  ;;  %v942_v4 = vpop.f32.mrf.mxu0  ;;  %v1794_v2 = vld [vmem:[%s2938_s29 + $0x90] sm:$0xff] (%p2678_p6) }
 0x285   : > { %1688 = vst [vmem:[%s2938_s29 + $0x698] sm:$0xff] %v1447_v3  ;;  %v1111_v5 = vpop.f32.mrf.mxu1  ;;  %v1796_v3 = vld [vmem:[%s2938_s29 + $0x98] sm:$0xff] (%p2678_p6) }
 0x286   : > { %1689 = vst [vmem:[%s2938_s29 + $0x6a0] sm:$0xff] %v942_v4  ;;  %v1798_v4 = vld [vmem:[%s2938_s29 + $0xa0] sm:$0xff] (%p2678_p6) }
 0x287   : > { %1690 = vst [vmem:[%s2938_s29 + $0x6a8] sm:$0xff] %v1111_v5  ;;  %v1800_v5 = vld [vmem:[%s2938_s29 + $0xa8] sm:$0xff] (%p2678_p6) }
 0x288   : > { %1795 = vst [vmem:[%s3438_s8 + $0x110] sm:$0xff] (%p2678_p6), %v1794_v2  ;;  %v1922_v2 = vld [vmem:[%s2938_s29 + $0x290] sm:$0xff] (%p2678_p6) }
 0x289   : > { %1797 = vst [vmem:[%s3438_s8 + $0x118] sm:$0xff] (%p2678_p6), %v1796_v3  ;;  %v1924_v3 = vld [vmem:[%s2938_s29 + $0x298] sm:$0xff] (%p2678_p6) }
 0x28a   : > { %1799 = vst [vmem:[%s3438_s8 + $0x140] sm:$0xff] (%p2678_p6), %v1798_v4  ;;  %v1926_v4 = vld [vmem:[%s2938_s29 + $0x2a0] sm:$0xff] (%p2678_p6) }
 0x28b   : > { %v1280_v6 = vpop.f32.mrf.mxu2  ;;  %1801 = vst [vmem:[%s3438_s8 + $0x148] sm:$0xff] (%p2678_p6), %v1800_v5  ;;  %v1928_v5 = vld [vmem:[%s2938_s29 + $0x2a8] sm:$0xff] (%p2678_p6) }
 0x28c   : > { %1691 = vst [vmem:[%s2938_s29 + $0x6b0] sm:$0xff] %v1280_v6  ;;  %v1449_v7 = vpop.f32.mrf.mxu3  ;;  %v945_v8 = vpop.f32.mrf.mxu0  ;;  %v1802_v6 = vld [vmem:[%s2938_s29 + $0xb0] sm:$0xff] (%p2678_p6) }
 0x28d   : > { %1692 = vst [vmem:[%s2938_s29 + $0x6b8] sm:$0xff] %v1449_v7  ;;  %v1114_v9 = vpop.f32.mrf.mxu1  ;;  %v1804_v7 = vld [vmem:[%s2938_s29 + $0xb8] sm:$0xff] (%p2678_p6) }
 0x28e   : > { %1693 = vst [vmem:[%s2938_s29 + $0x6c0] sm:$0xff] %v945_v8  ;;  %v1806_v8 = vld [vmem:[%s2938_s29 + $0xc0] sm:$0xff] (%p2678_p6) }
 0x28f   : > { %1694 = vst [vmem:[%s2938_s29 + $0x6c8] sm:$0xff] %v1114_v9  ;;  %v1808_v9 = vld [vmem:[%s2938_s29 + $0xc8] sm:$0xff] (%p2678_p6) }
 0x290   : > { %1803 = vst [vmem:[%s3438_s8 + $0x150] sm:$0xff] (%p2678_p6), %v1802_v6  ;;  %v1930_v6 = vld [vmem:[%s2938_s29 + $0x2b0] sm:$0xff] (%p2678_p6) }
 0x291   : > { %1805 = vst [vmem:[%s3438_s8 + $0x158] sm:$0xff] (%p2678_p6), %v1804_v7  ;;  %v1932_v7 = vld [vmem:[%s2938_s29 + $0x2b8] sm:$0xff] (%p2678_p6) }
 0x292   : > { %1807 = vst [vmem:[%s3438_s8 + $0x180] sm:$0xff] (%p2678_p6), %v1806_v8  ;;  %v1934_v8 = vld [vmem:[%s2938_s29 + $0x2c0] sm:$0xff] (%p2678_p6) }
 0x293   : > { %v1283_v10 = vpop.f32.mrf.mxu2  ;;  %1809 = vst [vmem:[%s3438_s8 + $0x188] sm:$0xff] (%p2678_p6), %v1808_v9  ;;  %v1936_v9 = vld [vmem:[%s2938_s29 + $0x2c8] sm:$0xff] (%p2678_p6) }
 0x294   : > { %1695 = vst [vmem:[%s2938_s29 + $0x6d0] sm:$0xff] %v1283_v10  ;;  %v1452_v11 = vpop.f32.mrf.mxu3  ;;  %v947_v12 = vpop.f32.mrf.mxu0  ;;  %v1810_v10 = vld [vmem:[%s2938_s29 + $0xd0] sm:$0xff] (%p2678_p6) }
 0x295   : > { %1696 = vst [vmem:[%s2938_s29 + $0x6d8] sm:$0xff] %v1452_v11  ;;  %v1116_v13 = vpop.f32.mrf.mxu1  ;;  %v1812_v11 = vld [vmem:[%s2938_s29 + $0xd8] sm:$0xff] (%p2678_p6) }
 0x296   : > { %1697 = vst [vmem:[%s2938_s29 + $0x6e0] sm:$0xff] %v947_v12  ;;  %v1814_v12 = vld [vmem:[%s2938_s29 + $0xe0] sm:$0xff] (%p2678_p6) }
 0x297   : > { %1698 = vst [vmem:[%s2938_s29 + $0x6e8] sm:$0xff] %v1116_v13  ;;  %v1816_v13 = vld [vmem:[%s2938_s29 + $0xe8] sm:$0xff] (%p2678_p6) }
 0x298   : > { %1811 = vst [vmem:[%s3438_s8 + $0x190] sm:$0xff] (%p2678_p6), %v1810_v10  ;;  %v1938_v10 = vld [vmem:[%s2938_s29 + $0x2d0] sm:$0xff] (%p2678_p6) }
 0x299   : > { %1813 = vst [vmem:[%s3438_s8 + $0x198] sm:$0xff] (%p2678_p6), %v1812_v11  ;;  %v1940_v11 = vld [vmem:[%s2938_s29 + $0x2d8] sm:$0xff] (%p2678_p6) }
 0x29a   : > { %1815 = vst [vmem:[%s3438_s8 + $0x1c0] sm:$0xff] (%p2678_p6), %v1814_v12  ;;  %v1942_v12 = vld [vmem:[%s2938_s29 + $0x2e0] sm:$0xff] (%p2678_p6) }
 0x29b   : > { %v1285_v14 = vpop.f32.mrf.mxu2  ;;  %1817 = vst [vmem:[%s3438_s8 + $0x1c8] sm:$0xff] (%p2678_p6), %v1816_v13  ;;  %v1944_v13 = vld [vmem:[%s2938_s29 + $0x2e8] sm:$0xff] (%p2678_p6) }
 0x29c   : > { %1699 = vst [vmem:[%s2938_s29 + $0x6f0] sm:$0xff] %v1285_v14  ;;  %v1454_v15 = vpop.f32.mrf.mxu3  ;;  %v950_v16 = vpop.f32.mrf.mxu0  ;;  %v1818_v14 = vld [vmem:[%s2938_s29 + $0xf0] sm:$0xff] (%p2678_p6) }
 0x29d   : > { %1700 = vst [vmem:[%s2938_s29 + $0x6f8] sm:$0xff] %v1454_v15  ;;  %v1119_v17 = vpop.f32.mrf.mxu1  ;;  %v1820_v15 = vld [vmem:[%s2938_s29 + $0xf8] sm:$0xff] (%p2678_p6) }
 0x29e   : > { %1701 = vst [vmem:[%s2938_s29 + $0x700] sm:$0xff] %v950_v16  ;;  %v1822_v16 = vld [vmem:[%s2938_s29 + $0x100] sm:$0xff] (%p2678_p6) }
 0x29f   : > { %1702 = vst [vmem:[%s2938_s29 + $0x708] sm:$0xff] %v1119_v17  ;;  %v1824_v17 = vld [vmem:[%s2938_s29 + $0x108] sm:$0xff] (%p2678_p6) }
 0x2a0   : > { %1819 = vst [vmem:[%s3438_s8 + $0x1d0] sm:$0xff] (%p2678_p6), %v1818_v14  ;;  %v1946_v14 = vld [vmem:[%s2938_s29 + $0x2f0] sm:$0xff] (%p2678_p6) }
 0x2a1   : > { %1821 = vst [vmem:[%s3438_s8 + $0x1d8] sm:$0xff] (%p2678_p6), %v1820_v15  ;;  %v1948_v15 = vld [vmem:[%s2938_s29 + $0x2f8] sm:$0xff] (%p2678_p6) }
 0x2a2   : > { %1823 = vst [vmem:[%s3438_s8 + $0x200] sm:$0xff] (%p2678_p6), %v1822_v16  ;;  %v1950_v16 = vld [vmem:[%s2938_s29 + $0x300] sm:$0xff] (%p2678_p6) }
 0x2a3   : > { %v1288_v18 = vpop.f32.mrf.mxu2  ;;  %1825 = vst [vmem:[%s3438_s8 + $0x208] sm:$0xff] (%p2678_p6), %v1824_v17  ;;  %v1952_v17 = vld [vmem:[%s2938_s29 + $0x308] sm:$0xff] (%p2678_p6) }
 0x2a4   : > { %1703 = vst [vmem:[%s2938_s29 + $0x710] sm:$0xff] %v1288_v18  ;;  %v1457_v19 = vpop.f32.mrf.mxu3  ;;  %v952_v20 = vpop.f32.mrf.mxu0  ;;  %v1826_v18 = vld [vmem:[%s2938_s29 + $0x110] sm:$0xff] (%p2678_p6) }
 0x2a5   : > { %1704 = vst [vmem:[%s2938_s29 + $0x718] sm:$0xff] %v1457_v19  ;;  %v1121_v21 = vpop.f32.mrf.mxu1  ;;  %v1828_v19 = vld [vmem:[%s2938_s29 + $0x118] sm:$0xff] (%p2678_p6) }
 0x2a6   : > { %1705 = vst [vmem:[%s2938_s29 + $0x720] sm:$0xff] %v952_v20  ;;  %v1830_v20 = vld [vmem:[%s2938_s29 + $0x120] sm:$0xff] (%p2678_p6) }
 0x2a7   : > { %1706 = vst [vmem:[%s2938_s29 + $0x728] sm:$0xff] %v1121_v21  ;;  %v1832_v21 = vld [vmem:[%s2938_s29 + $0x128] sm:$0xff] (%p2678_p6) }
 0x2a8   : > { %1827 = vst [vmem:[%s3438_s8 + $0x210] sm:$0xff] (%p2678_p6), %v1826_v18  ;;  %v1954_v18 = vld [vmem:[%s2938_s29 + $0x310] sm:$0xff] (%p2678_p6) }
 0x2a9   : > { %1829 = vst [vmem:[%s3438_s8 + $0x218] sm:$0xff] (%p2678_p6), %v1828_v19  ;;  %v1956_v19 = vld [vmem:[%s2938_s29 + $0x318] sm:$0xff] (%p2678_p6) }
 0x2aa   : > { %1831 = vst [vmem:[%s3438_s8 + $0x240] sm:$0xff] (%p2678_p6), %v1830_v20  ;;  %v1958_v20 = vld [vmem:[%s2938_s29 + $0x320] sm:$0xff] (%p2678_p6) }
 0x2ab   : > { %v1290_v22 = vpop.f32.mrf.mxu2  ;;  %1833 = vst [vmem:[%s3438_s8 + $0x248] sm:$0xff] (%p2678_p6), %v1832_v21  ;;  %v1960_v21 = vld [vmem:[%s2938_s29 + $0x328] sm:$0xff] (%p2678_p6) }
 0x2ac   : > { %1707 = vst [vmem:[%s2938_s29 + $0x730] sm:$0xff] %v1290_v22  ;;  %v1459_v23 = vpop.f32.mrf.mxu3  ;;  %v955_v25 = vpop.f32.mrf.mxu0  ;;  %v1834_v22 = vld [vmem:[%s2938_s29 + $0x130] sm:$0xff] (%p2678_p6) }
 0x2ad   : > { %1708 = vst [vmem:[%s2938_s29 + $0x738] sm:$0xff] %v1459_v23  ;;  %v1124_v26 = vpop.f32.mrf.mxu1  ;;  %v1836_v23 = vld [vmem:[%s2938_s29 + $0x138] sm:$0xff] (%p2678_p6) }
 0x2ae   : > { %1709 = vst [vmem:[%s2938_s29 + $0x740] sm:$0xff] %v955_v25  ;;  %v1838_v25 = vld [vmem:[%s2938_s29 + $0x140] sm:$0xff] (%p2678_p6) }
 0x2af   : > { %1710 = vst [vmem:[%s2938_s29 + $0x748] sm:$0xff] %v1124_v26  ;;  %v1840_v26 = vld [vmem:[%s2938_s29 + $0x148] sm:$0xff] (%p2678_p6) }
 0x2b0   : > { %1835 = vst [vmem:[%s3438_s8 + $0x250] sm:$0xff] (%p2678_p6), %v1834_v22  ;;  %v1962_v22 = vld [vmem:[%s2938_s29 + $0x330] sm:$0xff] (%p2678_p6) }
 0x2b1   : > { %1837 = vst [vmem:[%s3438_s8 + $0x258] sm:$0xff] (%p2678_p6), %v1836_v23  ;;  %v1964_v23 = vld [vmem:[%s2938_s29 + $0x338] sm:$0xff] (%p2678_p6) }
 0x2b2   : > { %1839 = vst [vmem:[%s3438_s8 + $0x280] sm:$0xff] (%p2678_p6), %v1838_v25  ;;  %v1966_v25 = vld [vmem:[%s2938_s29 + $0x340] sm:$0xff] (%p2678_p6) }
 0x2b3   : > { %v1293_v27 = vpop.f32.mrf.mxu2  ;;  %1841 = vst [vmem:[%s3438_s8 + $0x288] sm:$0xff] (%p2678_p6), %v1840_v26  ;;  %v1968_v26 = vld [vmem:[%s2938_s29 + $0x348] sm:$0xff] (%p2678_p6) }
 0x2b4   : > { %1711 = vst [vmem:[%s2938_s29 + $0x750] sm:$0xff] %v1293_v27  ;;  %v1462_v28 = vpop.f32.mrf.mxu3  ;;  %v957_v29 = vpop.f32.mrf.mxu0  ;;  %v1842_v27 = vld [vmem:[%s2938_s29 + $0x150] sm:$0xff] (%p2678_p6) }
 0x2b5   : > { %1712 = vst [vmem:[%s2938_s29 + $0x758] sm:$0xff] %v1462_v28  ;;  %v1126_v30 = vpop.f32.mrf.mxu1  ;;  %v1844_v28 = vld [vmem:[%s2938_s29 + $0x158] sm:$0xff] (%p2678_p6) }
 0x2b6   : > { %1713 = vst [vmem:[%s2938_s29 + $0x760] sm:$0xff] %v957_v29  ;;  %v1846_v29 = vld [vmem:[%s2938_s29 + $0x160] sm:$0xff] (%p2678_p6) }
 0x2b7   : > { %1714 = vst [vmem:[%s2938_s29 + $0x768] sm:$0xff] %v1126_v30  ;;  %v1848_v30 = vld [vmem:[%s2938_s29 + $0x168] sm:$0xff] (%p2678_p6) }
 0x2b8   : > { %1843 = vst [vmem:[%s3438_s8 + $0x290] sm:$0xff] (%p2678_p6), %v1842_v27  ;;  %v1970_v27 = vld [vmem:[%s2938_s29 + $0x350] sm:$0xff] (%p2678_p6) }
 0x2b9   : > { %1845 = vst [vmem:[%s3438_s8 + $0x298] sm:$0xff] (%p2678_p6), %v1844_v28  ;;  %v1972_v28 = vld [vmem:[%s2938_s29 + $0x358] sm:$0xff] (%p2678_p6) }
 0x2ba   : > { %1847 = vst [vmem:[%s3438_s8 + $0x2c0] sm:$0xff] (%p2678_p6), %v1846_v29  ;;  %v1974_v29 = vld [vmem:[%s2938_s29 + $0x360] sm:$0xff] (%p2678_p6) }
 0x2bb   : > { %v1295_v31 = vpop.f32.mrf.mxu2  ;;  %1849 = vst [vmem:[%s3438_s8 + $0x2c8] sm:$0xff] (%p2678_p6), %v1848_v30  ;;  %v1976_v30 = vld [vmem:[%s2938_s29 + $0x368] sm:$0xff] (%p2678_p6) }
 0x2bc   : > { %1715 = vst [vmem:[%s2938_s29 + $0x770] sm:$0xff] %v1295_v31  ;;  %v1464_v32 = vpop.f32.mrf.mxu3  ;;  %v960_v33 = vpop.f32.mrf.mxu0  ;;  %v1850_v31 = vld [vmem:[%s2938_s29 + $0x170] sm:$0xff] (%p2678_p6) }
 0x2bd   : > { %1716 = vst [vmem:[%s2938_s29 + $0x778] sm:$0xff] %v1464_v32  ;;  %v1129_v34 = vpop.f32.mrf.mxu1  ;;  %v1852_v32 = vld [vmem:[%s2938_s29 + $0x178] sm:$0xff] (%p2678_p6) }
 0x2be   : > { %1717 = vst [vmem:[%s2938_s29 + $0x780] sm:$0xff] %v960_v33  ;;  %v1854_v33 = vld [vmem:[%s2938_s29 + $0x180] sm:$0xff] (%p2678_p6) }
 0x2bf   : > { %1718 = vst [vmem:[%s2938_s29 + $0x788] sm:$0xff] %v1129_v34  ;;  %v1856_v34 = vld [vmem:[%s2938_s29 + $0x188] sm:$0xff] (%p2678_p6) }
 0x2c0   : > { %1851 = vst [vmem:[%s3438_s8 + $0x2d0] sm:$0xff] (%p2678_p6), %v1850_v31  ;;  %v1978_v31 = vld [vmem:[%s2938_s29 + $0x370] sm:$0xff] (%p2678_p6) }
 0x2c1   : > { %1853 = vst [vmem:[%s3438_s8 + $0x2d8] sm:$0xff] (%p2678_p6), %v1852_v32  ;;  %v1980_v32 = vld [vmem:[%s2938_s29 + $0x378] sm:$0xff] (%p2678_p6) }
 0x2c2   : > { %1855 = vst [vmem:[%s3438_s8 + $0x300] sm:$0xff] (%p2678_p6), %v1854_v33  ;;  %v1982_v33 = vld [vmem:[%s2938_s29 + $0x380] sm:$0xff] (%p2678_p6) }
 0x2c3   : > { %v1298_v24 = vpop.f32.mrf.mxu2  ;;  %1857 = vst [vmem:[%s3438_s8 + $0x308] sm:$0xff] (%p2678_p6), %v1856_v34  ;;  %v1984_v34 = vld [vmem:[%s2938_s29 + $0x388] sm:$0xff] (%p2678_p6) }
 0x2c4   : > { %1719 = vst [vmem:[%s2938_s29 + $0x790] sm:$0xff] %v1298_v24  ;;  %v1467_v43 = vpop.f32.mrf.mxu3  ;;  %v962_v35 = vpop.f32.mrf.mxu0  ;;  %v1858_v24 = vld [vmem:[%s2938_s29 + $0x190] sm:$0xff] (%p2678_p6) }
 0x2c5   : > { %1720 = vst [vmem:[%s2938_s29 + $0x798] sm:$0xff] %v1467_v43  ;;  %v1131_v36 = vpop.f32.mrf.mxu1  ;;  %v1860_v43 = vld [vmem:[%s2938_s29 + $0x198] sm:$0xff] (%p2678_p6) }
 0x2c6   : > { %1721 = vst [vmem:[%s2938_s29 + $0x7a0] sm:$0xff] %v962_v35  ;;  %v1862_v35 = vld [vmem:[%s2938_s29 + $0x1a0] sm:$0xff] (%p2678_p6) }
 0x2c7   : > { %1722 = vst [vmem:[%s2938_s29 + $0x7a8] sm:$0xff] %v1131_v36  ;;  %v1864_v36 = vld [vmem:[%s2938_s29 + $0x1a8] sm:$0xff] (%p2678_p6) }
 0x2c8   : > { %1859 = vst [vmem:[%s3438_s8 + $0x310] sm:$0xff] (%p2678_p6), %v1858_v24  ;;  %v1986_v24 = vld [vmem:[%s2938_s29 + $0x390] sm:$0xff] (%p2678_p6) }
 0x2c9   : > { %1861 = vst [vmem:[%s3438_s8 + $0x318] sm:$0xff] (%p2678_p6), %v1860_v43  ;;  %v1988_v43 = vld [vmem:[%s2938_s29 + $0x398] sm:$0xff] (%p2678_p6) }
 0x2ca   : > { %1863 = vst [vmem:[%s3438_s8 + $0x340] sm:$0xff] (%p2678_p6), %v1862_v35  ;;  %v1990_v35 = vld [vmem:[%s2938_s29 + $0x3a0] sm:$0xff] (%p2678_p6) }
 0x2cb   : > { %v1300_v37 = vpop.f32.mrf.mxu2  ;;  %1865 = vst [vmem:[%s3438_s8 + $0x348] sm:$0xff] (%p2678_p6), %v1864_v36  ;;  %v1992_v36 = vld [vmem:[%s2938_s29 + $0x3a8] sm:$0xff] (%p2678_p6) }
 0x2cc   : > { %1723 = vst [vmem:[%s2938_s29 + $0x7b0] sm:$0xff] %v1300_v37  ;;  %v1469_v38 = vpop.f32.mrf.mxu3  ;;  %v965_v39 = vpop.f32.mrf.mxu0  ;;  %v1866_v37 = vld [vmem:[%s2938_s29 + $0x1b0] sm:$0xff] (%p2678_p6) }
 0x2cd   : > { %1724 = vst [vmem:[%s2938_s29 + $0x7b8] sm:$0xff] %v1469_v38  ;;  %v1134_v47 = vpop.f32.mrf.mxu1  ;;  %v1868_v38 = vld [vmem:[%s2938_s29 + $0x1b8] sm:$0xff] (%p2678_p6) }
 0x2ce   : > { %1725 = vst [vmem:[%s2938_s29 + $0x7c0] sm:$0xff] %v965_v39  ;;  %v1870_v39 = vld [vmem:[%s2938_s29 + $0x1c0] sm:$0xff] (%p2678_p6) }
 0x2cf   : > { %1726 = vst [vmem:[%s2938_s29 + $0x7c8] sm:$0xff] %v1134_v47  ;;  %v1872_v47 = vld [vmem:[%s2938_s29 + $0x1c8] sm:$0xff] (%p2678_p6) }
 0x2d0   : > { %1867 = vst [vmem:[%s3438_s8 + $0x350] sm:$0xff] (%p2678_p6), %v1866_v37  ;;  %v1994_v37 = vld [vmem:[%s2938_s29 + $0x3b0] sm:$0xff] (%p2678_p6) }
 0x2d1   : > { %1869 = vst [vmem:[%s3438_s8 + $0x358] sm:$0xff] (%p2678_p6), %v1868_v38  ;;  %v1996_v38 = vld [vmem:[%s2938_s29 + $0x3b8] sm:$0xff] (%p2678_p6) }
 0x2d2   : > { %1871 = vst [vmem:[%s3438_s8 + $0x380] sm:$0xff] (%p2678_p6), %v1870_v39  ;;  %v1998_v39 = vld [vmem:[%s2938_s29 + $0x3c0] sm:$0xff] (%p2678_p6) }
 0x2d3   : > { %v1303_v41 = vpop.f32.mrf.mxu2  ;;  %1873 = vst [vmem:[%s3438_s8 + $0x388] sm:$0xff] (%p2678_p6), %v1872_v47  ;;  %v2000_v47 = vld [vmem:[%s2938_s29 + $0x3c8] sm:$0xff] (%p2678_p6) }
 0x2d4   : > { %1727 = vst [vmem:[%s2938_s29 + $0x7d0] sm:$0xff] %v1303_v41  ;;  %v1472_v40 = vpop.f32.mrf.mxu3  ;;  %v967_v42 = vpop.f32.mrf.mxu0  ;;  %v1874_v41 = vld [vmem:[%s2938_s29 + $0x1d0] sm:$0xff] (%p2678_p6) }
 0x2d5   : > { %1728 = vst [vmem:[%s2938_s29 + $0x7d8] sm:$0xff] %v1472_v40  ;;  %v1136_v44 = vpop.f32.mrf.mxu1  ;;  %v1876_v40 = vld [vmem:[%s2938_s29 + $0x1d8] sm:$0xff] (%p2678_p6) }
 0x2d6   : > { %1729 = vst [vmem:[%s2938_s29 + $0x7e0] sm:$0xff] %v967_v42  ;;  %v1878_v42 = vld [vmem:[%s2938_s29 + $0x1e0] sm:$0xff] (%p2678_p6) }
 0x2d7   : > { %1730 = vst [vmem:[%s2938_s29 + $0x7e8] sm:$0xff] %v1136_v44  ;;  %v1880_v44 = vld [vmem:[%s2938_s29 + $0x1e8] sm:$0xff] (%p2678_p6) }
 0x2d8   : > { %1875 = vst [vmem:[%s3438_s8 + $0x390] sm:$0xff] (%p2678_p6), %v1874_v41  ;;  %v2002_v41 = vld [vmem:[%s2938_s29 + $0x3d0] sm:$0xff] (%p2678_p6) }
 0x2d9   : > { %1739 = sbr.rel (!%p2678_p6) target bundleno = 926 (0x39e), region = 63  ;;  %1877 = vst [vmem:[%s3438_s8 + $0x398] sm:$0xff] (%p2678_p6), %v1876_v40  ;;  %v2004_v40 = vld [vmem:[%s2938_s29 + $0x3d8] sm:$0xff] (%p2678_p6) }
 0x2da   : > { %1879 = vst [vmem:[%s3438_s8 + $0x3c0] sm:$0xff] (%p2678_p6), %v1878_v42  ;;  %v2006_v42 = vld [vmem:[%s2938_s29 + $0x3e0] sm:$0xff] (%p2678_p6) }
 0x2db   : > { %v1305_v45 = vpop.f32.mrf.mxu2  ;;  %1881 = vst [vmem:[%s3438_s8 + $0x3c8] sm:$0xff] (%p2678_p6), %v1880_v44  ;;  %v2008_v44 = vld [vmem:[%s2938_s29 + $0x3e8] sm:$0xff] (%p2678_p6) }
 0x2dc   : > { %1731 = vst [vmem:[%s2938_s29 + $0x7f0] sm:$0xff] %v1305_v45  ;;  %v1474_v46 = vpop.f32.mrf.mxu3  ;;  %v1882_v45 = vld [vmem:[%s2938_s29 + $0x1f0] sm:$0xff] (%p2678_p6) }
 0x2dd   : > { %1732 = vst [vmem:[%s2938_s29 + $0x7f8] sm:$0xff] %v1474_v46  ;;  %v1884_v46 = vld [vmem:[%s2938_s29 + $0x1f8] sm:$0xff] (%p2678_p6) }
 0x2de   : > { %1883 = vst [vmem:[%s3438_s8 + $0x3d0] sm:$0xff] %v1882_v45  ;;  %v2010_v45 = vld [vmem:[%s2938_s29 + $0x3f0] sm:$0xff] }
 0x2df   : > { %1885 = vst [vmem:[%s3438_s8 + $0x3d8] sm:$0xff] %v1884_v46  ;;  %v2012_v46 = vld [vmem:[%s2938_s29 + $0x3f8] sm:$0xff] }
 0x2e0   : > { %1891 = vst [vmem:[%s3438_s8 + $0x410] sm:$0xff] %v1890_v50  ;;  %v2018_v50 = vld [vmem:[%s2938_s29 + $0x410] sm:$0xff] }
 0x2e1   : > { %1893 = vst [vmem:[%s3438_s8 + $0x418] sm:$0xff] %v1892_v51  ;;  %v2020_v51 = vld [vmem:[%s2938_s29 + $0x418] sm:$0xff] }
 0x2e2   : > { %1895 = vst [vmem:[%s3438_s8 + $0x440] sm:$0xff] %v1894_v52  ;;  %v2022_v52 = vld [vmem:[%s2938_s29 + $0x420] sm:$0xff] }
 0x2e3   : > { %1897 = vst [vmem:[%s3438_s8 + $0x448] sm:$0xff] %v1896_v53  ;;  %v2024_v53 = vld [vmem:[%s2938_s29 + $0x428] sm:$0xff] }
 0x2e4   : > { %1899 = vst [vmem:[%s3438_s8 + $0x450] sm:$0xff] %v1898_v54  ;;  %v2026_v54 = vld [vmem:[%s2938_s29 + $0x430] sm:$0xff] }
 0x2e5   : > { %1901 = vst [vmem:[%s3438_s8 + $0x458] sm:$0xff] %v1900_v55  ;;  %v2028_v55 = vld [vmem:[%s2938_s29 + $0x438] sm:$0xff] }
 0x2e6   : > { %1903 = vst [vmem:[%s3438_s8 + $0x480] sm:$0xff] %v1902_v56  ;;  %v2030_v56 = vld [vmem:[%s2938_s29 + $0x440] sm:$0xff] }
 0x2e7   : > { %1905 = vst [vmem:[%s3438_s8 + $0x488] sm:$0xff] %v1904_v57  ;;  %v2032_v57 = vld [vmem:[%s2938_s29 + $0x448] sm:$0xff] }
 0x2e8   : > { %1907 = vst [vmem:[%s3438_s8 + $0x490] sm:$0xff] %v1906_v58  ;;  %v2034_v58 = vld [vmem:[%s2938_s29 + $0x450] sm:$0xff] }
 0x2e9   : > { %1909 = vst [vmem:[%s3438_s8 + $0x498] sm:$0xff] %v1908_v59  ;;  %v2036_v59 = vld [vmem:[%s2938_s29 + $0x458] sm:$0xff] }
 0x2ea   : > { %1911 = vst [vmem:[%s3438_s8 + $0x4c0] sm:$0xff] %v1910_v60  ;;  %v2038_v60 = vld [vmem:[%s2938_s29 + $0x460] sm:$0xff] }
 0x2eb   : > { %1913 = vst [vmem:[%s3438_s8 + $0x4c8] sm:$0xff] %v1912_v61  ;;  %v2040_v61 = vld [vmem:[%s2938_s29 + $0x468] sm:$0xff] }
 0x2ec   : > { %1915 = vst [vmem:[%s3438_s8 + $0x4d0] sm:$0xff] %v1914_v62  ;;  %v2042_v62 = vld [vmem:[%s2938_s29 + $0x470] sm:$0xff] }
 0x2ed   : > { %1917 = vst [vmem:[%s3438_s8 + $0x4d8] sm:$0xff] %v1916_v63  ;;  %v2044_v63 = vld [vmem:[%s2938_s29 + $0x478] sm:$0xff] }
 0x2ee   : > { %1919 = vst [vmem:[%s3438_s8 + $0x500] sm:$0xff] %v1918_v0  ;;  %v2046_v0 = vld [vmem:[%s2938_s29 + $0x480] sm:$0xff] }
 0x2ef   : > { %1921 = vst [vmem:[%s3438_s8 + $0x508] sm:$0xff] %v1920_v1  ;;  %v2048_v1 = vld [vmem:[%s2938_s29 + $0x488] sm:$0xff] }
 0x2f0   : > { %1923 = vst [vmem:[%s3438_s8 + $0x510] sm:$0xff] %v1922_v2  ;;  %v2050_v2 = vld [vmem:[%s2938_s29 + $0x490] sm:$0xff] }
 0x2f1   : > { %1925 = vst [vmem:[%s3438_s8 + $0x518] sm:$0xff] %v1924_v3  ;;  %v2052_v3 = vld [vmem:[%s2938_s29 + $0x498] sm:$0xff] }
 0x2f2   : > { %1927 = vst [vmem:[%s3438_s8 + $0x540] sm:$0xff] %v1926_v4  ;;  %v2054_v4 = vld [vmem:[%s2938_s29 + $0x4a0] sm:$0xff] }
 0x2f3   : > { %1929 = vst [vmem:[%s3438_s8 + $0x548] sm:$0xff] %v1928_v5  ;;  %v2056_v5 = vld [vmem:[%s2938_s29 + $0x4a8] sm:$0xff] }
 0x2f4   : > { %1931 = vst [vmem:[%s3438_s8 + $0x550] sm:$0xff] %v1930_v6  ;;  %v2058_v6 = vld [vmem:[%s2938_s29 + $0x4b0] sm:$0xff] }
 0x2f5   : > { %1933 = vst [vmem:[%s3438_s8 + $0x558] sm:$0xff] %v1932_v7  ;;  %v2060_v7 = vld [vmem:[%s2938_s29 + $0x4b8] sm:$0xff] }
 0x2f6   : > { %1935 = vst [vmem:[%s3438_s8 + $0x580] sm:$0xff] %v1934_v8  ;;  %v2062_v8 = vld [vmem:[%s2938_s29 + $0x4c0] sm:$0xff] }
 0x2f7   : > { %1937 = vst [vmem:[%s3438_s8 + $0x588] sm:$0xff] %v1936_v9  ;;  %v2064_v9 = vld [vmem:[%s2938_s29 + $0x4c8] sm:$0xff] }
 0x2f8   : > { %1939 = vst [vmem:[%s3438_s8 + $0x590] sm:$0xff] %v1938_v10  ;;  %v2066_v10 = vld [vmem:[%s2938_s29 + $0x4d0] sm:$0xff] }
 0x2f9   : > { %1941 = vst [vmem:[%s3438_s8 + $0x598] sm:$0xff] %v1940_v11  ;;  %v2068_v11 = vld [vmem:[%s2938_s29 + $0x4d8] sm:$0xff] }
 0x2fa   : > { %1943 = vst [vmem:[%s3438_s8 + $0x5c0] sm:$0xff] %v1942_v12  ;;  %v2070_v12 = vld [vmem:[%s2938_s29 + $0x4e0] sm:$0xff] }
 0x2fb   : > { %1945 = vst [vmem:[%s3438_s8 + $0x5c8] sm:$0xff] %v1944_v13  ;;  %v2072_v13 = vld [vmem:[%s2938_s29 + $0x4e8] sm:$0xff] }
 0x2fc   : > { %1947 = vst [vmem:[%s3438_s8 + $0x5d0] sm:$0xff] %v1946_v14  ;;  %v2074_v14 = vld [vmem:[%s2938_s29 + $0x4f0] sm:$0xff] }
 0x2fd   : > { %1949 = vst [vmem:[%s3438_s8 + $0x5d8] sm:$0xff] %v1948_v15  ;;  %v2076_v15 = vld [vmem:[%s2938_s29 + $0x4f8] sm:$0xff] }
 0x2fe   : > { %1951 = vst [vmem:[%s3438_s8 + $0x600] sm:$0xff] %v1950_v16  ;;  %v2078_v16 = vld [vmem:[%s2938_s29 + $0x500] sm:$0xff] }
 0x2ff   : > { %1953 = vst [vmem:[%s3438_s8 + $0x608] sm:$0xff] %v1952_v17  ;;  %v2080_v17 = vld [vmem:[%s2938_s29 + $0x508] sm:$0xff] }
 0x300   : > { %1955 = vst [vmem:[%s3438_s8 + $0x610] sm:$0xff] %v1954_v18  ;;  %v2082_v18 = vld [vmem:[%s2938_s29 + $0x510] sm:$0xff] }
 0x301   : > { %1957 = vst [vmem:[%s3438_s8 + $0x618] sm:$0xff] %v1956_v19  ;;  %v2084_v19 = vld [vmem:[%s2938_s29 + $0x518] sm:$0xff] }
 0x302   : > { %1959 = vst [vmem:[%s3438_s8 + $0x640] sm:$0xff] %v1958_v20  ;;  %v2086_v20 = vld [vmem:[%s2938_s29 + $0x520] sm:$0xff] }
 0x303   : > { %1961 = vst [vmem:[%s3438_s8 + $0x648] sm:$0xff] %v1960_v21  ;;  %v2088_v21 = vld [vmem:[%s2938_s29 + $0x528] sm:$0xff] }
 0x304   : > { %1963 = vst [vmem:[%s3438_s8 + $0x650] sm:$0xff] %v1962_v22  ;;  %v2090_v22 = vld [vmem:[%s2938_s29 + $0x530] sm:$0xff] }
 0x305   : > { %1965 = vst [vmem:[%s3438_s8 + $0x658] sm:$0xff] %v1964_v23  ;;  %v2092_v23 = vld [vmem:[%s2938_s29 + $0x538] sm:$0xff] }
 0x306   : > { %1967 = vst [vmem:[%s3438_s8 + $0x680] sm:$0xff] %v1966_v25  ;;  %v2094_v25 = vld [vmem:[%s2938_s29 + $0x540] sm:$0xff] }
 0x307   : > { %1969 = vst [vmem:[%s3438_s8 + $0x688] sm:$0xff] %v1968_v26  ;;  %v2096_v26 = vld [vmem:[%s2938_s29 + $0x548] sm:$0xff] }
 0x308   : > { %1971 = vst [vmem:[%s3438_s8 + $0x690] sm:$0xff] %v1970_v27  ;;  %v2098_v27 = vld [vmem:[%s2938_s29 + $0x550] sm:$0xff] }
 0x309   : > { %1973 = vst [vmem:[%s3438_s8 + $0x698] sm:$0xff] %v1972_v28  ;;  %v2100_v28 = vld [vmem:[%s2938_s29 + $0x558] sm:$0xff] }
 0x30a   : > { %1975 = vst [vmem:[%s3438_s8 + $0x6c0] sm:$0xff] %v1974_v29  ;;  %v2102_v29 = vld [vmem:[%s2938_s29 + $0x560] sm:$0xff] }
 0x30b   : > { %1977 = vst [vmem:[%s3438_s8 + $0x6c8] sm:$0xff] %v1976_v30  ;;  %v2104_v30 = vld [vmem:[%s2938_s29 + $0x568] sm:$0xff] }
 0x30c   : > { %1979 = vst [vmem:[%s3438_s8 + $0x6d0] sm:$0xff] %v1978_v31  ;;  %v2106_v31 = vld [vmem:[%s2938_s29 + $0x570] sm:$0xff] }
 0x30d   : > { %1981 = vst [vmem:[%s3438_s8 + $0x6d8] sm:$0xff] %v1980_v32  ;;  %v2108_v32 = vld [vmem:[%s2938_s29 + $0x578] sm:$0xff] }
 0x30e   : > { %1983 = vst [vmem:[%s3438_s8 + $0x700] sm:$0xff] %v1982_v33  ;;  %v2110_v33 = vld [vmem:[%s2938_s29 + $0x580] sm:$0xff] }
 0x30f   : > { %1985 = vst [vmem:[%s3438_s8 + $0x708] sm:$0xff] %v1984_v34  ;;  %v2112_v34 = vld [vmem:[%s2938_s29 + $0x588] sm:$0xff] }
 0x310   : > { %1987 = vst [vmem:[%s3438_s8 + $0x710] sm:$0xff] %v1986_v24  ;;  %v2114_v24 = vld [vmem:[%s2938_s29 + $0x590] sm:$0xff] }
 0x311   : > { %1989 = vst [vmem:[%s3438_s8 + $0x718] sm:$0xff] %v1988_v43  ;;  %v2116_v43 = vld [vmem:[%s2938_s29 + $0x598] sm:$0xff] }
 0x312   : > { %1991 = vst [vmem:[%s3438_s8 + $0x740] sm:$0xff] %v1990_v35  ;;  %v2118_v35 = vld [vmem:[%s2938_s29 + $0x5a0] sm:$0xff] }
 0x313   : > { %1993 = vst [vmem:[%s3438_s8 + $0x748] sm:$0xff] %v1992_v36  ;;  %v2120_v36 = vld [vmem:[%s2938_s29 + $0x5a8] sm:$0xff] }
 0x314   : > { %1995 = vst [vmem:[%s3438_s8 + $0x750] sm:$0xff] %v1994_v37  ;;  %v2122_v37 = vld [vmem:[%s2938_s29 + $0x5b0] sm:$0xff] }
 0x315   : > { %1997 = vst [vmem:[%s3438_s8 + $0x758] sm:$0xff] %v1996_v38  ;;  %v2124_v38 = vld [vmem:[%s2938_s29 + $0x5b8] sm:$0xff] }
 0x316   : > { %1999 = vst [vmem:[%s3438_s8 + $0x780] sm:$0xff] %v1998_v39  ;;  %v2126_v39 = vld [vmem:[%s2938_s29 + $0x5c0] sm:$0xff] }
 0x317   : > { %2001 = vst [vmem:[%s3438_s8 + $0x788] sm:$0xff] %v2000_v47  ;;  %v2128_v47 = vld [vmem:[%s2938_s29 + $0x5c8] sm:$0xff] }
 0x318   : > { %2003 = vst [vmem:[%s3438_s8 + $0x790] sm:$0xff] %v2002_v41  ;;  %v2130_v41 = vld [vmem:[%s2938_s29 + $0x5d0] sm:$0xff] }
 0x319   : > { %2005 = vst [vmem:[%s3438_s8 + $0x798] sm:$0xff] %v2004_v40  ;;  %v2132_v40 = vld [vmem:[%s2938_s29 + $0x5d8] sm:$0xff] }
 0x31a   : > { %2007 = vst [vmem:[%s3438_s8 + $0x7c0] sm:$0xff] %v2006_v42  ;;  %v2134_v42 = vld [vmem:[%s2938_s29 + $0x5e0] sm:$0xff] }
 0x31b   : > { %2009 = vst [vmem:[%s3438_s8 + $0x7c8] sm:$0xff] %v2008_v44  ;;  %v2136_v44 = vld [vmem:[%s2938_s29 + $0x5e8] sm:$0xff] }
 0x31c   : > { %2011 = vst [vmem:[%s3438_s8 + $0x7d0] sm:$0xff] %v2010_v45  ;;  %v2138_v45 = vld [vmem:[%s2938_s29 + $0x5f0] sm:$0xff] }
 0x31d   : > { %2013 = vst [vmem:[%s3438_s8 + $0x7d8] sm:$0xff] %v2012_v46  ;;  %v2140_v46 = vld [vmem:[%s2938_s29 + $0x5f8] sm:$0xff] }
 0x31e   : > { %2015 = vst [vmem:[%s3438_s8 + $0x800] sm:$0xff] %v2014_v48  ;;  %v2142_v48 = vld [vmem:[%s2938_s29 + $0x600] sm:$0xff] }
 0x31f   : > { %2017 = vst [vmem:[%s3438_s8 + $0x808] sm:$0xff] %v2016_v49  ;;  %v2144_v49 = vld [vmem:[%s2938_s29 + $0x608] sm:$0xff] }
 0x320   : > { %2019 = vst [vmem:[%s3438_s8 + $0x810] sm:$0xff] %v2018_v50  ;;  %v2146_v50 = vld [vmem:[%s2938_s29 + $0x610] sm:$0xff] }
 0x321   : > { %2021 = vst [vmem:[%s3438_s8 + $0x818] sm:$0xff] %v2020_v51  ;;  %v2148_v51 = vld [vmem:[%s2938_s29 + $0x618] sm:$0xff] }
 0x322   : > { %2023 = vst [vmem:[%s3438_s8 + $0x840] sm:$0xff] %v2022_v52  ;;  %v2150_v52 = vld [vmem:[%s2938_s29 + $0x620] sm:$0xff] }
 0x323   : > { %2025 = vst [vmem:[%s3438_s8 + $0x848] sm:$0xff] %v2024_v53  ;;  %v2152_v53 = vld [vmem:[%s2938_s29 + $0x628] sm:$0xff] }
 0x324   : > { %2027 = vst [vmem:[%s3438_s8 + $0x850] sm:$0xff] %v2026_v54  ;;  %v2154_v54 = vld [vmem:[%s2938_s29 + $0x630] sm:$0xff] }
 0x325   : > { %2029 = vst [vmem:[%s3438_s8 + $0x858] sm:$0xff] %v2028_v55  ;;  %v2156_v55 = vld [vmem:[%s2938_s29 + $0x638] sm:$0xff] }
 0x326   : > { %2031 = vst [vmem:[%s3438_s8 + $0x880] sm:$0xff] %v2030_v56  ;;  %v2158_v56 = vld [vmem:[%s2938_s29 + $0x640] sm:$0xff] }
 0x327   : > { %2033 = vst [vmem:[%s3438_s8 + $0x888] sm:$0xff] %v2032_v57  ;;  %v2160_v57 = vld [vmem:[%s2938_s29 + $0x648] sm:$0xff] }
 0x328   : > { %2035 = vst [vmem:[%s3438_s8 + $0x890] sm:$0xff] %v2034_v58  ;;  %v2162_v58 = vld [vmem:[%s2938_s29 + $0x650] sm:$0xff] }
 0x329   : > { %2037 = vst [vmem:[%s3438_s8 + $0x898] sm:$0xff] %v2036_v59  ;;  %v2164_v59 = vld [vmem:[%s2938_s29 + $0x658] sm:$0xff] }
 0x32a   : > { %2039 = vst [vmem:[%s3438_s8 + $0x8c0] sm:$0xff] %v2038_v60  ;;  %v2166_v60 = vld [vmem:[%s2938_s29 + $0x660] sm:$0xff] }
 0x32b   : > { %2041 = vst [vmem:[%s3438_s8 + $0x8c8] sm:$0xff] %v2040_v61  ;;  %v2168_v61 = vld [vmem:[%s2938_s29 + $0x668] sm:$0xff] }
 0x32c   : > { %2043 = vst [vmem:[%s3438_s8 + $0x8d0] sm:$0xff] %v2042_v62  ;;  %v2170_v62 = vld [vmem:[%s2938_s29 + $0x670] sm:$0xff] }
 0x32d   : > { %2045 = vst [vmem:[%s3438_s8 + $0x8d8] sm:$0xff] %v2044_v63  ;;  %v2172_v63 = vld [vmem:[%s2938_s29 + $0x678] sm:$0xff] }
 0x32e   : > { %2047 = vst [vmem:[%s3438_s8 + $0x900] sm:$0xff] %v2046_v0  ;;  %v2174_v0 = vld [vmem:[%s2938_s29 + $0x680] sm:$0xff] }
 0x32f   : > { %2049 = vst [vmem:[%s3438_s8 + $0x908] sm:$0xff] %v2048_v1  ;;  %v2176_v1 = vld [vmem:[%s2938_s29 + $0x688] sm:$0xff] }
 0x330   : > { %2051 = vst [vmem:[%s3438_s8 + $0x910] sm:$0xff] %v2050_v2  ;;  %v2178_v2 = vld [vmem:[%s2938_s29 + $0x690] sm:$0xff] }
 0x331   : > { %2053 = vst [vmem:[%s3438_s8 + $0x918] sm:$0xff] %v2052_v3  ;;  %v2180_v3 = vld [vmem:[%s2938_s29 + $0x698] sm:$0xff] }
 0x332   : > { %2055 = vst [vmem:[%s3438_s8 + $0x940] sm:$0xff] %v2054_v4  ;;  %v2182_v4 = vld [vmem:[%s2938_s29 + $0x6a0] sm:$0xff] }
 0x333   : > { %2057 = vst [vmem:[%s3438_s8 + $0x948] sm:$0xff] %v2056_v5  ;;  %v2184_v5 = vld [vmem:[%s2938_s29 + $0x6a8] sm:$0xff] }
 0x334   : > { %2059 = vst [vmem:[%s3438_s8 + $0x950] sm:$0xff] %v2058_v6  ;;  %v2186_v6 = vld [vmem:[%s2938_s29 + $0x6b0] sm:$0xff] }
 0x335   : > { %2061 = vst [vmem:[%s3438_s8 + $0x958] sm:$0xff] %v2060_v7  ;;  %v2188_v7 = vld [vmem:[%s2938_s29 + $0x6b8] sm:$0xff] }
 0x336   : > { %2063 = vst [vmem:[%s3438_s8 + $0x980] sm:$0xff] %v2062_v8  ;;  %v2190_v8 = vld [vmem:[%s2938_s29 + $0x6c0] sm:$0xff] }
 0x337   : > { %2065 = vst [vmem:[%s3438_s8 + $0x988] sm:$0xff] %v2064_v9  ;;  %v2192_v9 = vld [vmem:[%s2938_s29 + $0x6c8] sm:$0xff] }
 0x338   : > { %2067 = vst [vmem:[%s3438_s8 + $0x990] sm:$0xff] %v2066_v10  ;;  %v2194_v10 = vld [vmem:[%s2938_s29 + $0x6d0] sm:$0xff] }
 0x339   : > { %2069 = vst [vmem:[%s3438_s8 + $0x998] sm:$0xff] %v2068_v11  ;;  %v2196_v11 = vld [vmem:[%s2938_s29 + $0x6d8] sm:$0xff] }
 0x33a   : > { %2071 = vst [vmem:[%s3438_s8 + $0x9c0] sm:$0xff] %v2070_v12  ;;  %v2198_v12 = vld [vmem:[%s2938_s29 + $0x6e0] sm:$0xff] }
 0x33b   : > { %2073 = vst [vmem:[%s3438_s8 + $0x9c8] sm:$0xff] %v2072_v13  ;;  %v2200_v13 = vld [vmem:[%s2938_s29 + $0x6e8] sm:$0xff] }
 0x33c   : > { %2075 = vst [vmem:[%s3438_s8 + $0x9d0] sm:$0xff] %v2074_v14  ;;  %v2202_v14 = vld [vmem:[%s2938_s29 + $0x6f0] sm:$0xff] }
 0x33d   : > { %2077 = vst [vmem:[%s3438_s8 + $0x9d8] sm:$0xff] %v2076_v15  ;;  %v2204_v15 = vld [vmem:[%s2938_s29 + $0x6f8] sm:$0xff] }
 0x33e   : > { %2079 = vst [vmem:[%s3438_s8 + $0xa00] sm:$0xff] %v2078_v16  ;;  %v2206_v16 = vld [vmem:[%s2938_s29 + $0x700] sm:$0xff] }
 0x33f   : > { %2081 = vst [vmem:[%s3438_s8 + $0xa08] sm:$0xff] %v2080_v17  ;;  %v2208_v17 = vld [vmem:[%s2938_s29 + $0x708] sm:$0xff] }
 0x340   : > { %2083 = vst [vmem:[%s3438_s8 + $0xa10] sm:$0xff] %v2082_v18  ;;  %v2210_v18 = vld [vmem:[%s2938_s29 + $0x710] sm:$0xff] }
 0x341   : > { %2085 = vst [vmem:[%s3438_s8 + $0xa18] sm:$0xff] %v2084_v19  ;;  %v2212_v19 = vld [vmem:[%s2938_s29 + $0x718] sm:$0xff] }
 0x342   : > { %2087 = vst [vmem:[%s3438_s8 + $0xa40] sm:$0xff] %v2086_v20  ;;  %v2214_v20 = vld [vmem:[%s2938_s29 + $0x720] sm:$0xff] }
 0x343   : > { %2089 = vst [vmem:[%s3438_s8 + $0xa48] sm:$0xff] %v2088_v21  ;;  %v2216_v21 = vld [vmem:[%s2938_s29 + $0x728] sm:$0xff] }
 0x344   : > { %2091 = vst [vmem:[%s3438_s8 + $0xa50] sm:$0xff] %v2090_v22  ;;  %v2218_v22 = vld [vmem:[%s2938_s29 + $0x730] sm:$0xff] }
 0x345   : > { %2093 = vst [vmem:[%s3438_s8 + $0xa58] sm:$0xff] %v2092_v23  ;;  %v2220_v23 = vld [vmem:[%s2938_s29 + $0x738] sm:$0xff] }
 0x346   : > { %2095 = vst [vmem:[%s3438_s8 + $0xa80] sm:$0xff] %v2094_v25  ;;  %v2222_v25 = vld [vmem:[%s2938_s29 + $0x740] sm:$0xff] }
 0x347   : > { %2097 = vst [vmem:[%s3438_s8 + $0xa88] sm:$0xff] %v2096_v26  ;;  %v2224_v26 = vld [vmem:[%s2938_s29 + $0x748] sm:$0xff] }
 0x348   : > { %2099 = vst [vmem:[%s3438_s8 + $0xa90] sm:$0xff] %v2098_v27  ;;  %v2226_v27 = vld [vmem:[%s2938_s29 + $0x750] sm:$0xff] }
 0x349   : > { %2101 = vst [vmem:[%s3438_s8 + $0xa98] sm:$0xff] %v2100_v28  ;;  %v2228_v28 = vld [vmem:[%s2938_s29 + $0x758] sm:$0xff] }
 0x34a   : > { %2103 = vst [vmem:[%s3438_s8 + $0xac0] sm:$0xff] %v2102_v29  ;;  %v2230_v29 = vld [vmem:[%s2938_s29 + $0x760] sm:$0xff] }
 0x34b   : > { %2105 = vst [vmem:[%s3438_s8 + $0xac8] sm:$0xff] %v2104_v30  ;;  %v2232_v30 = vld [vmem:[%s2938_s29 + $0x768] sm:$0xff] }
 0x34c   : > { %2107 = vst [vmem:[%s3438_s8 + $0xad0] sm:$0xff] %v2106_v31  ;;  %v2234_v31 = vld [vmem:[%s2938_s29 + $0x770] sm:$0xff] }
 0x34d   : > { %2109 = vst [vmem:[%s3438_s8 + $0xad8] sm:$0xff] %v2108_v32  ;;  %v2236_v32 = vld [vmem:[%s2938_s29 + $0x778] sm:$0xff] }
 0x34e   : > { %2111 = vst [vmem:[%s3438_s8 + $0xb00] sm:$0xff] %v2110_v33  ;;  %v2238_v33 = vld [vmem:[%s2938_s29 + $0x780] sm:$0xff] }
 0x34f   : > { %2113 = vst [vmem:[%s3438_s8 + $0xb08] sm:$0xff] %v2112_v34  ;;  %v2240_v34 = vld [vmem:[%s2938_s29 + $0x788] sm:$0xff] }
 0x350   : > { %2115 = vst [vmem:[%s3438_s8 + $0xb10] sm:$0xff] %v2114_v24  ;;  %v2242_v24 = vld [vmem:[%s2938_s29 + $0x790] sm:$0xff] }
 0x351   : > { %2117 = vst [vmem:[%s3438_s8 + $0xb18] sm:$0xff] %v2116_v43  ;;  %v2244_v43 = vld [vmem:[%s2938_s29 + $0x798] sm:$0xff] }
 0x352   : > { %2119 = vst [vmem:[%s3438_s8 + $0xb40] sm:$0xff] %v2118_v35  ;;  %v2246_v35 = vld [vmem:[%s2938_s29 + $0x7a0] sm:$0xff] }
 0x353   : > { %2121 = vst [vmem:[%s3438_s8 + $0xb48] sm:$0xff] %v2120_v36  ;;  %v2248_v36 = vld [vmem:[%s2938_s29 + $0x7a8] sm:$0xff] }
 0x354   : > { %2123 = vst [vmem:[%s3438_s8 + $0xb50] sm:$0xff] %v2122_v37  ;;  %v2250_v37 = vld [vmem:[%s2938_s29 + $0x7b0] sm:$0xff] }
 0x355   : > { %2125 = vst [vmem:[%s3438_s8 + $0xb58] sm:$0xff] %v2124_v38  ;;  %v2252_v38 = vld [vmem:[%s2938_s29 + $0x7b8] sm:$0xff] }
 0x356   : > { %2127 = vst [vmem:[%s3438_s8 + $0xb80] sm:$0xff] %v2126_v39  ;;  %v2254_v39 = vld [vmem:[%s2938_s29 + $0x7c0] sm:$0xff] }
 0x357   : > { %2129 = vst [vmem:[%s3438_s8 + $0xb88] sm:$0xff] %v2128_v47  ;;  %v2256_v47 = vld [vmem:[%s2938_s29 + $0x7c8] sm:$0xff] }
 0x358   : > { %2131 = vst [vmem:[%s3438_s8 + $0xb90] sm:$0xff] %v2130_v41  ;;  %v2258_v41 = vld [vmem:[%s2938_s29 + $0x7d0] sm:$0xff] }
 0x359   : > { %2133 = vst [vmem:[%s3438_s8 + $0xb98] sm:$0xff] %v2132_v40  ;;  %v2260_v40 = vld [vmem:[%s2938_s29 + $0x7d8] sm:$0xff] }
 0x35a   : > { %2135 = vst [vmem:[%s3438_s8 + $0xbc0] sm:$0xff] %v2134_v42  ;;  %v2262_v42 = vld [vmem:[%s2938_s29 + $0x7e0] sm:$0xff] }
 0x35b   : > { %2137 = vst [vmem:[%s3438_s8 + $0xbc8] sm:$0xff] %v2136_v44  ;;  %v2264_v44 = vld [vmem:[%s2938_s29 + $0x7e8] sm:$0xff] }
 0x35c   : > { %2139 = vst [vmem:[%s3438_s8 + $0xbd0] sm:$0xff] %v2138_v45  ;;  %v2266_v45 = vld [vmem:[%s2938_s29 + $0x7f0] sm:$0xff] }
 0x35d   : > { %2141 = vst [vmem:[%s3438_s8 + $0xbd8] sm:$0xff] %v2140_v46  ;;  %v2268_v46 = vld [vmem:[%s2938_s29 + $0x7f8] sm:$0xff] }
 0x35e   : > { %2143 = vst [vmem:[%s3438_s8 + $0xc00] sm:$0xff] %v2142_v48 }
 0x35f   : > { %2145 = vst [vmem:[%s3438_s8 + $0xc08] sm:$0xff] %v2144_v49 }
 0x360   : > { %2147 = vst [vmem:[%s3438_s8 + $0xc10] sm:$0xff] %v2146_v50 }
 0x361   : > { %2149 = vst [vmem:[%s3438_s8 + $0xc18] sm:$0xff] %v2148_v51 }
 0x362   : > { %2151 = vst [vmem:[%s3438_s8 + $0xc40] sm:$0xff] %v2150_v52 }
 0x363   : > { %2153 = vst [vmem:[%s3438_s8 + $0xc48] sm:$0xff] %v2152_v53 }
 0x364   : > { %2155 = vst [vmem:[%s3438_s8 + $0xc50] sm:$0xff] %v2154_v54 }
 0x365   : > { %2157 = vst [vmem:[%s3438_s8 + $0xc58] sm:$0xff] %v2156_v55 }
 0x366   : > { %2159 = vst [vmem:[%s3438_s8 + $0xc80] sm:$0xff] %v2158_v56 }
 0x367   : > { %2161 = vst [vmem:[%s3438_s8 + $0xc88] sm:$0xff] %v2160_v57 }
 0x368   : > { %2163 = vst [vmem:[%s3438_s8 + $0xc90] sm:$0xff] %v2162_v58 }
 0x369   : > { %2165 = vst [vmem:[%s3438_s8 + $0xc98] sm:$0xff] %v2164_v59 }
 0x36a   : > { %2167 = vst [vmem:[%s3438_s8 + $0xcc0] sm:$0xff] %v2166_v60 }
 0x36b   : > { %2169 = vst [vmem:[%s3438_s8 + $0xcc8] sm:$0xff] %v2168_v61 }
 0x36c   : > { %2171 = vst [vmem:[%s3438_s8 + $0xcd0] sm:$0xff] %v2170_v62 }
 0x36d   : > { %2173 = vst [vmem:[%s3438_s8 + $0xcd8] sm:$0xff] %v2172_v63 }
 0x36e   : > { %2175 = vst [vmem:[%s3438_s8 + $0xd00] sm:$0xff] %v2174_v0 }
 0x36f   : > { %2177 = vst [vmem:[%s3438_s8 + $0xd08] sm:$0xff] %v2176_v1 }
 0x370   : > { %2179 = vst [vmem:[%s3438_s8 + $0xd10] sm:$0xff] %v2178_v2 }
 0x371   : > { %2181 = vst [vmem:[%s3438_s8 + $0xd18] sm:$0xff] %v2180_v3 }
 0x372   : > { %2183 = vst [vmem:[%s3438_s8 + $0xd40] sm:$0xff] %v2182_v4 }
 0x373   : > { %2185 = vst [vmem:[%s3438_s8 + $0xd48] sm:$0xff] %v2184_v5 }
 0x374   : > { %2187 = vst [vmem:[%s3438_s8 + $0xd50] sm:$0xff] %v2186_v6 }
 0x375   : > { %2189 = vst [vmem:[%s3438_s8 + $0xd58] sm:$0xff] %v2188_v7 }
 0x376   : > { %2191 = vst [vmem:[%s3438_s8 + $0xd80] sm:$0xff] %v2190_v8 }
 0x377   : > { %2193 = vst [vmem:[%s3438_s8 + $0xd88] sm:$0xff] %v2192_v9 }
 0x378   : > { %2195 = vst [vmem:[%s3438_s8 + $0xd90] sm:$0xff] %v2194_v10 }
 0x379   : > { %2197 = vst [vmem:[%s3438_s8 + $0xd98] sm:$0xff] %v2196_v11 }
 0x37a   : > { %2199 = vst [vmem:[%s3438_s8 + $0xdc0] sm:$0xff] %v2198_v12 }
 0x37b   : > { %2201 = vst [vmem:[%s3438_s8 + $0xdc8] sm:$0xff] %v2200_v13 }
 0x37c   : > { %2203 = vst [vmem:[%s3438_s8 + $0xdd0] sm:$0xff] %v2202_v14 }
 0x37d   : > { %2205 = vst [vmem:[%s3438_s8 + $0xdd8] sm:$0xff] %v2204_v15 }
 0x37e   : > { %2207 = vst [vmem:[%s3438_s8 + $0xe00] sm:$0xff] %v2206_v16 }
 0x37f   : > { %2209 = vst [vmem:[%s3438_s8 + $0xe08] sm:$0xff] %v2208_v17 }
 0x380   : > { %2211 = vst [vmem:[%s3438_s8 + $0xe10] sm:$0xff] %v2210_v18 }
 0x381   : > { %2213 = vst [vmem:[%s3438_s8 + $0xe18] sm:$0xff] %v2212_v19 }
 0x382   : > { %2215 = vst [vmem:[%s3438_s8 + $0xe40] sm:$0xff] %v2214_v20 }
 0x383   : > { %2217 = vst [vmem:[%s3438_s8 + $0xe48] sm:$0xff] %v2216_v21 }
 0x384   : > { %2219 = vst [vmem:[%s3438_s8 + $0xe50] sm:$0xff] %v2218_v22 }
 0x385   : > { %2221 = vst [vmem:[%s3438_s8 + $0xe58] sm:$0xff] %v2220_v23 }
 0x386   : > { %2223 = vst [vmem:[%s3438_s8 + $0xe80] sm:$0xff] %v2222_v25 }
 0x387   : > { %2225 = vst [vmem:[%s3438_s8 + $0xe88] sm:$0xff] %v2224_v26 }
 0x388   : > { %2227 = vst [vmem:[%s3438_s8 + $0xe90] sm:$0xff] %v2226_v27 }
 0x389   : > { %2229 = vst [vmem:[%s3438_s8 + $0xe98] sm:$0xff] %v2228_v28 }
 0x38a   : > { %2231 = vst [vmem:[%s3438_s8 + $0xec0] sm:$0xff] %v2230_v29 }
 0x38b   : > { %2233 = vst [vmem:[%s3438_s8 + $0xec8] sm:$0xff] %v2232_v30 }
 0x38c   : > { %2235 = vst [vmem:[%s3438_s8 + $0xed0] sm:$0xff] %v2234_v31 }
 0x38d   : > { %2237 = vst [vmem:[%s3438_s8 + $0xed8] sm:$0xff] %v2236_v32 }
 0x38e   : > { %2239 = vst [vmem:[%s3438_s8 + $0xf00] sm:$0xff] %v2238_v33 }
 0x38f   : > { %2241 = vst [vmem:[%s3438_s8 + $0xf08] sm:$0xff] %v2240_v34 }
 0x390   : > { %2243 = vst [vmem:[%s3438_s8 + $0xf10] sm:$0xff] %v2242_v24 }
 0x391   : > { %2245 = vst [vmem:[%s3438_s8 + $0xf18] sm:$0xff] %v2244_v43 }
 0x392   : > { %2247 = vst [vmem:[%s3438_s8 + $0xf40] sm:$0xff] %v2246_v35 }
 0x393   : > { %2249 = vst [vmem:[%s3438_s8 + $0xf48] sm:$0xff] %v2248_v36 }
 0x394   : > { %2251 = vst [vmem:[%s3438_s8 + $0xf50] sm:$0xff] %v2250_v37 }
 0x395   : > { %2253 = vst [vmem:[%s3438_s8 + $0xf58] sm:$0xff] %v2252_v38 }
 0x396   : > { %2255 = vst [vmem:[%s3438_s8 + $0xf80] sm:$0xff] %v2254_v39 }
 0x397   : > { %2257 = vst [vmem:[%s3438_s8 + $0xf88] sm:$0xff] %v2256_v47 }
 0x398   : > { %2259 = vst [vmem:[%s3438_s8 + $0xf90] sm:$0xff] %v2258_v41 }
 0x399   : > { %2261 = vst [vmem:[%s3438_s8 + $0xf98] sm:$0xff] %v2260_v40 }
 0x39a   : > { %2263 = vst [vmem:[%s3438_s8 + $0xfc0] sm:$0xff] %v2262_v42 }
 0x39b   : > { %2265 = vst [vmem:[%s3438_s8 + $0xfc8] sm:$0xff] %v2264_v44 }
 0x39c   : > { %2267 = vst [vmem:[%s3438_s8 + $0xfd0] sm:$0xff] %v2266_v45 }
 0x39d   : > { %2269 = vst [vmem:[%s3438_s8 + $0xfd8] sm:$0xff] %v2268_v46 }
 0x39e PF: > { %s14_s19 = sadd.s32 1, %s2616_s19   ;;  %s3971_s15 = smov %s2604_s16 }
 0x39f   : > { %p11_p11 = scmp.ge.s32.totalorder %s14_s19, 4   ;;  %s3972_s16 = smov %s2683_s25 }
 0x3a0   : > { %s3973_s17 = smov %s2612_s18  ;;  %s3974_s18 = smov %s3976_s20 }
 0x3a1   :  { %13 = sbr.rel (!%p11_p11) target bundleno = 3 (0x3), region = 120 }

// kernel: lfw_generator.16
= control target key start
LH: loop header
LB: loop body
LE: loop exit
PB: predicated region body
PF: predicated region fallthrough
CT: control target
= control target key end

     0   :  { %s537_s9 = smov 0   ;;  %s628_s0 = inlined_call_operand.vmem [shape: f32[1024,128], index: 0, kind: input, shape index: {}]   ;;  %s629_s1 = inlined_call_operand.vmem [shape: f32[16,128], index: 1, kind: output, shape index: {0}]   ;;  %s630_s2 = inlined_call_operand.vmem [shape: f32[16,128], index: 2, kind: output, shape index: {1}]  }
   0x1 LB: > { %s543_s10 = sadd.s32 4294967295, %s520_s9   ;;  %p499_p0 = scmp.ge.s32.totalorder %s520_s9, 1  ;;  %s520_s9 = sphi %s537_s9, %s13_s9  }
   0x2   : > { %p116_p1 = scmp.lt.s32.totalorder %s520_s9, 3 }
   0x4   : > { %p117_p2 = pnand %p499_p0, %p116_p1 }
   0x5   : > { %s500_s11 = sshll.u32 (!%p117_p2), %s543_s10, 6  ;;  %p147_p4 = scmp.lt.s32.totalorder (!%p117_p2), %s543_s10, 1 }
   0x6   : > { %120 = sbr.rel (%p117_p2) target bundleno = 144 (0x90), region = 24  ;;  %p142_p3 = scmp.lt.s32.totalorder (!%p117_p2), %s500_s11, 127 }
   0xb   : > { %s632_s11 = smov (!%p142_p3, %s500_s11), 127  ;;  %s634_s10 = smov (!%p147_p4, %s543_s10), 1 }
   0xc   : > { %s501_s12 = sshll.u32 %s632_s11, 3  ;;  %s502_s16 = sshll.u32 %s634_s10, 3 }
   0xd   : > { %s551_s15 = scalar_lea.vmem %s628_s0, %s501_s12  ;;  %s150_s19 = scalar_lea.vmem %s629_s1, %s502_s16 }
   0xe   : > { %v155_v0 = vld [vmem:[%s551_s15] sm:$0xff]  ;;  %v156_v1 = vld [vmem:[%s551_s15 + $0x8] sm:$0xff]  ;;  %v157_v2 = vld [vmem:[%s551_s15 + $0x10] sm:$0xff]  ;;  %s154_s22 = scalar_lea.vmem %s630_s2, %s502_s16 }
   0xf   : > { %v158_v3 = vld [vmem:[%s551_s15 + $0x18] sm:$0xff]  ;;  %v219_v4 = vadd.f32 %v156_v1, %v155_v0  ;;  %v283_v5 = vmul.f32 %v155_v0, %v155_v0  ;;  %v284_v6 = vmul.f32 %v156_v1, %v156_v1  ;;  %v285_v7 = vmul.f32 %v157_v2, %v157_v2  ;;  %v159_v8 = vld [vmem:[%s551_s15 + $0x20] sm:$0xff]  ;;  %v160_v12 = vld [vmem:[%s551_s15 + $0x28] sm:$0xff] }
  0x10   : > { %v286_v10 = vmul.f32 %v158_v3, %v158_v3  ;;  %v287_v14 = vmul.f32 %v159_v8, %v159_v8  ;;  %v161_v16 = vld [vmem:[%s551_s15 + $0x30] sm:$0xff]  ;;  %v288_v18 = vmul.f32 %v160_v12, %v160_v12  ;;  %v162_v20 = vld [vmem:[%s551_s15 + $0x38] sm:$0xff]  ;;  %v163_v24 = vld [vmem:[%s551_s15 + $0x40] sm:$0xff] }
  0x11   : > { %v220_v9 = vadd.f32 %v219_v4, %v157_v2  ;;  %v347_v11 = vadd.f32 %v284_v6, %v283_v5  ;;  %v289_v22 = vmul.f32 %v161_v16, %v161_v16  ;;  %v290_v26 = vmul.f32 %v162_v20, %v162_v20  ;;  %v164_v28 = vld [vmem:[%s551_s15 + $0x48] sm:$0xff]  ;;  %v165_v32 = vld [vmem:[%s551_s15 + $0x50] sm:$0xff]  ;;  %v166_v36 = vld [vmem:[%s551_s15 + $0x58] sm:$0xff] }
  0x12   : > { %v291_v30 = vmul.f32 %v163_v24, %v163_v24  ;;  %v292_v34 = vmul.f32 %v164_v28, %v164_v28  ;;  %v293_v38 = vmul.f32 %v165_v32, %v165_v32  ;;  %v167_v40 = vld [vmem:[%s551_s15 + $0x60] sm:$0xff]  ;;  %v294_v42 = vmul.f32 %v166_v36, %v166_v36  ;;  %v168_v44 = vld [vmem:[%s551_s15 + $0x68] sm:$0xff]  ;;  %v169_v48 = vld [vmem:[%s551_s15 + $0x70] sm:$0xff] }
  0x13   : > { %v221_v13 = vadd.f32 %v220_v9, %v158_v3  ;;  %v348_v15 = vadd.f32 %v347_v11, %v285_v7  ;;  %v295_v46 = vmul.f32 %v167_v40, %v167_v40  ;;  %v296_v50 = vmul.f32 %v168_v44, %v168_v44  ;;  %v170_v52 = vld [vmem:[%s551_s15 + $0x78] sm:$0xff]  ;;  %v171_v56 = vld [vmem:[%s551_s15 + $0x80] sm:$0xff]  ;;  %v172_v60 = vld [vmem:[%s551_s15 + $0x88] sm:$0xff] }
  0x14   : > { %v297_v54 = vmul.f32 %v169_v48, %v169_v48  ;;  %v298_v58 = vmul.f32 %v170_v52, %v170_v52  ;;  %v299_v62 = vmul.f32 %v171_v56, %v171_v56  ;;  %v173_v0 = vld [vmem:[%s551_s15 + $0x90] sm:$0xff]  ;;  %v300_v2 = vmul.f32 %v172_v60, %v172_v60  ;;  %v174_v4 = vld [vmem:[%s551_s15 + $0x98] sm:$0xff] }
  0x15   : > { %v222_v17 = vadd.f32 %v221_v13, %v159_v8  ;;  %v349_v19 = vadd.f32 %v348_v15, %v286_v10  ;;  %v301_v6 = vmul.f32 %v173_v0, %v173_v0  ;;  %v175_v8 = vld [vmem:[%s551_s15 + $0xa0] sm:$0xff]  ;;  %v302_v10 = vmul.f32 %v174_v4, %v174_v4 }
  0x17   : > { %v223_v21 = vadd.f32 %v222_v17, %v160_v12  ;;  %v350_v23 = vadd.f32 %v349_v19, %v287_v14  ;;  %v176_v12 = vld [vmem:[%s551_s15 + $0xa8] sm:$0xff]  ;;  %v303_v14 = vmul.f32 %v175_v8, %v175_v8 }
  0x19   : > { %v224_v25 = vadd.f32 %v223_v21, %v161_v16  ;;  %v351_v27 = vadd.f32 %v350_v23, %v288_v18  ;;  %v177_v16 = vld [vmem:[%s551_s15 + $0xb0] sm:$0xff]  ;;  %v304_v18 = vmul.f32 %v176_v12, %v176_v12 }
  0x1b   : > { %v225_v29 = vadd.f32 %v224_v25, %v162_v20  ;;  %v352_v31 = vadd.f32 %v351_v27, %v289_v22  ;;  %v178_v20 = vld [vmem:[%s551_s15 + $0xb8] sm:$0xff]  ;;  %v305_v22 = vmul.f32 %v177_v16, %v177_v16 }
  0x1d   : > { %v226_v33 = vadd.f32 %v225_v29, %v163_v24  ;;  %v353_v35 = vadd.f32 %v352_v31, %v290_v26  ;;  %v179_v24 = vld [vmem:[%s551_s15 + $0xc0] sm:$0xff]  ;;  %v306_v26 = vmul.f32 %v178_v20, %v178_v20 }
  0x1f   : > { %v227_v37 = vadd.f32 %v226_v33, %v164_v28  ;;  %v354_v39 = vadd.f32 %v353_v35, %v291_v30  ;;  %v180_v28 = vld [vmem:[%s551_s15 + $0xc8] sm:$0xff]  ;;  %v307_v30 = vmul.f32 %v179_v24, %v179_v24 }
  0x21   : > { %v228_v41 = vadd.f32 %v227_v37, %v165_v32  ;;  %v355_v43 = vadd.f32 %v354_v39, %v292_v34  ;;  %v181_v32 = vld [vmem:[%s551_s15 + $0xd0] sm:$0xff]  ;;  %v308_v34 = vmul.f32 %v180_v28, %v180_v28 }
  0x23   : > { %v229_v45 = vadd.f32 %v228_v41, %v166_v36  ;;  %v356_v47 = vadd.f32 %v355_v43, %v293_v38  ;;  %v182_v36 = vld [vmem:[%s551_s15 + $0xd8] sm:$0xff]  ;;  %v309_v38 = vmul.f32 %v181_v32, %v181_v32 }
  0x25   : > { %v230_v49 = vadd.f32 %v229_v45, %v167_v40  ;;  %v357_v51 = vadd.f32 %v356_v47, %v294_v42  ;;  %v183_v40 = vld [vmem:[%s551_s15 + $0xe0] sm:$0xff]  ;;  %v310_v42 = vmul.f32 %v182_v36, %v182_v36 }
  0x27   : > { %v231_v53 = vadd.f32 %v230_v49, %v168_v44  ;;  %v358_v55 = vadd.f32 %v357_v51, %v295_v46  ;;  %v184_v44 = vld [vmem:[%s551_s15 + $0xe8] sm:$0xff]  ;;  %v311_v46 = vmul.f32 %v183_v40, %v183_v40 }
  0x29   : > { %v232_v57 = vadd.f32 %v231_v53, %v169_v48  ;;  %v359_v59 = vadd.f32 %v358_v55, %v296_v50  ;;  %v185_v48 = vld [vmem:[%s551_s15 + $0xf0] sm:$0xff]  ;;  %v312_v50 = vmul.f32 %v184_v44, %v184_v44 }
  0x2b   : > { %v233_v61 = vadd.f32 %v232_v57, %v170_v52  ;;  %v360_v63 = vadd.f32 %v359_v59, %v297_v54  ;;  %v186_v52 = vld [vmem:[%s551_s15 + $0xf8] sm:$0xff]  ;;  %v313_v54 = vmul.f32 %v185_v48, %v185_v48 }
  0x2d   : > { %v234_v1 = vadd.f32 %v233_v61, %v171_v56  ;;  %v361_v3 = vadd.f32 %v360_v63, %v298_v58  ;;  %v187_v56 = vld [vmem:[%s551_s15 + $0x100] sm:$0xff]  ;;  %v314_v58 = vmul.f32 %v186_v52, %v186_v52 }
  0x2f   : > { %v235_v5 = vadd.f32 %v234_v1, %v172_v60  ;;  %v362_v7 = vadd.f32 %v361_v3, %v299_v62  ;;  %v188_v60 = vld [vmem:[%s551_s15 + $0x108] sm:$0xff]  ;;  %v315_v62 = vmul.f32 %v187_v56, %v187_v56 }
  0x31   : > { %v236_v9 = vadd.f32 %v235_v5, %v173_v0  ;;  %v363_v11 = vadd.f32 %v362_v7, %v300_v2  ;;  %v189_v0 = vld [vmem:[%s551_s15 + $0x110] sm:$0xff]  ;;  %v316_v2 = vmul.f32 %v188_v60, %v188_v60 }
  0x33   : > { %v237_v13 = vadd.f32 %v236_v9, %v174_v4  ;;  %v364_v15 = vadd.f32 %v363_v11, %v301_v6  ;;  %v190_v4 = vld [vmem:[%s551_s15 + $0x118] sm:$0xff]  ;;  %v317_v6 = vmul.f32 %v189_v0, %v189_v0 }
  0x35   : > { %v238_v17 = vadd.f32 %v237_v13, %v175_v8  ;;  %v365_v19 = vadd.f32 %v364_v15, %v302_v10  ;;  %v191_v8 = vld [vmem:[%s551_s15 + $0x120] sm:$0xff]  ;;  %v318_v10 = vmul.f32 %v190_v4, %v190_v4 }
  0x37   : > { %v239_v21 = vadd.f32 %v238_v17, %v176_v12  ;;  %v366_v23 = vadd.f32 %v365_v19, %v303_v14  ;;  %v192_v12 = vld [vmem:[%s551_s15 + $0x128] sm:$0xff]  ;;  %v319_v14 = vmul.f32 %v191_v8, %v191_v8 }
  0x39   : > { %v240_v25 = vadd.f32 %v239_v21, %v177_v16  ;;  %v367_v27 = vadd.f32 %v366_v23, %v304_v18  ;;  %v193_v16 = vld [vmem:[%s551_s15 + $0x130] sm:$0xff]  ;;  %v320_v18 = vmul.f32 %v192_v12, %v192_v12 }
  0x3b   : > { %v241_v29 = vadd.f32 %v240_v25, %v178_v20  ;;  %v368_v31 = vadd.f32 %v367_v27, %v305_v22  ;;  %v194_v20 = vld [vmem:[%s551_s15 + $0x138] sm:$0xff]  ;;  %v321_v22 = vmul.f32 %v193_v16, %v193_v16 }
  0x3d   : > { %v242_v33 = vadd.f32 %v241_v29, %v179_v24  ;;  %v369_v35 = vadd.f32 %v368_v31, %v306_v26  ;;  %v195_v24 = vld [vmem:[%s551_s15 + $0x140] sm:$0xff]  ;;  %v322_v26 = vmul.f32 %v194_v20, %v194_v20 }
  0x3f   : > { %v243_v37 = vadd.f32 %v242_v33, %v180_v28  ;;  %v370_v39 = vadd.f32 %v369_v35, %v307_v30  ;;  %v196_v28 = vld [vmem:[%s551_s15 + $0x148] sm:$0xff]  ;;  %v323_v30 = vmul.f32 %v195_v24, %v195_v24 }
  0x41   : > { %v244_v41 = vadd.f32 %v243_v37, %v181_v32  ;;  %v371_v43 = vadd.f32 %v370_v39, %v308_v34  ;;  %v197_v32 = vld [vmem:[%s551_s15 + $0x150] sm:$0xff]  ;;  %v324_v34 = vmul.f32 %v196_v28, %v196_v28 }
  0x43   : > { %v245_v45 = vadd.f32 %v244_v41, %v182_v36  ;;  %v372_v47 = vadd.f32 %v371_v43, %v309_v38  ;;  %v198_v36 = vld [vmem:[%s551_s15 + $0x158] sm:$0xff]  ;;  %v325_v38 = vmul.f32 %v197_v32, %v197_v32 }
  0x45   : > { %v246_v49 = vadd.f32 %v245_v45, %v183_v40  ;;  %v373_v51 = vadd.f32 %v372_v47, %v310_v42  ;;  %v199_v40 = vld [vmem:[%s551_s15 + $0x160] sm:$0xff]  ;;  %v326_v42 = vmul.f32 %v198_v36, %v198_v36 }
  0x47   : > { %v247_v53 = vadd.f32 %v246_v49, %v184_v44  ;;  %v374_v55 = vadd.f32 %v373_v51, %v311_v46  ;;  %v200_v44 = vld [vmem:[%s551_s15 + $0x168] sm:$0xff]  ;;  %v327_v46 = vmul.f32 %v199_v40, %v199_v40 }
  0x49   : > { %v248_v57 = vadd.f32 %v247_v53, %v185_v48  ;;  %v375_v59 = vadd.f32 %v374_v55, %v312_v50  ;;  %v201_v48 = vld [vmem:[%s551_s15 + $0x170] sm:$0xff]  ;;  %v328_v50 = vmul.f32 %v200_v44, %v200_v44 }
  0x4b   : > { %v249_v61 = vadd.f32 %v248_v57, %v186_v52  ;;  %v376_v63 = vadd.f32 %v375_v59, %v313_v54  ;;  %v202_v52 = vld [vmem:[%s551_s15 + $0x178] sm:$0xff]  ;;  %v329_v54 = vmul.f32 %v201_v48, %v201_v48 }
  0x4d   : > { %v250_v1 = vadd.f32 %v249_v61, %v187_v56  ;;  %v377_v3 = vadd.f32 %v376_v63, %v314_v58  ;;  %v203_v56 = vld [vmem:[%s551_s15 + $0x180] sm:$0xff]  ;;  %v330_v58 = vmul.f32 %v202_v52, %v202_v52 }
  0x4f   : > { %v251_v5 = vadd.f32 %v250_v1, %v188_v60  ;;  %v378_v7 = vadd.f32 %v377_v3, %v315_v62  ;;  %v204_v60 = vld [vmem:[%s551_s15 + $0x188] sm:$0xff]  ;;  %v331_v62 = vmul.f32 %v203_v56, %v203_v56 }
  0x51   : > { %v252_v9 = vadd.f32 %v251_v5, %v189_v0  ;;  %v379_v11 = vadd.f32 %v378_v7, %v316_v2  ;;  %v205_v0 = vld [vmem:[%s551_s15 + $0x190] sm:$0xff]  ;;  %v332_v2 = vmul.f32 %v204_v60, %v204_v60 }
  0x53   : > { %v253_v13 = vadd.f32 %v252_v9, %v190_v4  ;;  %v380_v15 = vadd.f32 %v379_v11, %v317_v6  ;;  %v206_v4 = vld [vmem:[%s551_s15 + $0x198] sm:$0xff]  ;;  %v333_v6 = vmul.f32 %v205_v0, %v205_v0 }
  0x55   : > { %v254_v17 = vadd.f32 %v253_v13, %v191_v8  ;;  %v381_v19 = vadd.f32 %v380_v15, %v318_v10  ;;  %v207_v8 = vld [vmem:[%s551_s15 + $0x1a0] sm:$0xff]  ;;  %v334_v10 = vmul.f32 %v206_v4, %v206_v4 }
  0x57   : > { %v255_v21 = vadd.f32 %v254_v17, %v192_v12  ;;  %v382_v23 = vadd.f32 %v381_v19, %v319_v14  ;;  %v208_v12 = vld [vmem:[%s551_s15 + $0x1a8] sm:$0xff]  ;;  %v335_v14 = vmul.f32 %v207_v8, %v207_v8 }
  0x59   : > { %v256_v25 = vadd.f32 %v255_v21, %v193_v16  ;;  %v383_v27 = vadd.f32 %v382_v23, %v320_v18  ;;  %v209_v16 = vld [vmem:[%s551_s15 + $0x1b0] sm:$0xff]  ;;  %v336_v18 = vmul.f32 %v208_v12, %v208_v12 }
  0x5b   : > { %v257_v29 = vadd.f32 %v256_v25, %v194_v20  ;;  %v384_v31 = vadd.f32 %v383_v27, %v321_v22  ;;  %v210_v20 = vld [vmem:[%s551_s15 + $0x1b8] sm:$0xff]  ;;  %v337_v22 = vmul.f32 %v209_v16, %v209_v16 }
  0x5d   : > { %v258_v33 = vadd.f32 %v257_v29, %v195_v24  ;;  %v385_v35 = vadd.f32 %v384_v31, %v322_v26  ;;  %v211_v24 = vld [vmem:[%s551_s15 + $0x1c0] sm:$0xff]  ;;  %v338_v26 = vmul.f32 %v210_v20, %v210_v20 }
  0x5f   : > { %v259_v37 = vadd.f32 %v258_v33, %v196_v28  ;;  %v386_v39 = vadd.f32 %v385_v35, %v323_v30  ;;  %v212_v28 = vld [vmem:[%s551_s15 + $0x1c8] sm:$0xff]  ;;  %v339_v30 = vmul.f32 %v211_v24, %v211_v24 }
  0x61   : > { %v260_v41 = vadd.f32 %v259_v37, %v197_v32  ;;  %v387_v43 = vadd.f32 %v386_v39, %v324_v34  ;;  %v213_v32 = vld [vmem:[%s551_s15 + $0x1d0] sm:$0xff]  ;;  %v340_v34 = vmul.f32 %v212_v28, %v212_v28 }
  0x63   : > { %v261_v45 = vadd.f32 %v260_v41, %v198_v36  ;;  %v388_v47 = vadd.f32 %v387_v43, %v325_v38  ;;  %v214_v36 = vld [vmem:[%s551_s15 + $0x1d8] sm:$0xff]  ;;  %v341_v38 = vmul.f32 %v213_v32, %v213_v32 }
  0x65   : > { %v262_v49 = vadd.f32 %v261_v45, %v199_v40  ;;  %v389_v51 = vadd.f32 %v388_v47, %v326_v42  ;;  %v215_v40 = vld [vmem:[%s551_s15 + $0x1e0] sm:$0xff]  ;;  %v342_v42 = vmul.f32 %v214_v36, %v214_v36 }
  0x67   : > { %v263_v53 = vadd.f32 %v262_v49, %v200_v44  ;;  %v390_v55 = vadd.f32 %v389_v51, %v327_v46  ;;  %v216_v44 = vld [vmem:[%s551_s15 + $0x1e8] sm:$0xff]  ;;  %v343_v46 = vmul.f32 %v215_v40, %v215_v40 }
  0x69   : > { %v264_v57 = vadd.f32 %v263_v53, %v201_v48  ;;  %v391_v59 = vadd.f32 %v390_v55, %v328_v50  ;;  %v217_v48 = vld [vmem:[%s551_s15 + $0x1f0] sm:$0xff]  ;;  %v344_v50 = vmul.f32 %v216_v44, %v216_v44 }
  0x6b   : > { %v265_v61 = vadd.f32 %v264_v57, %v202_v52  ;;  %v392_v63 = vadd.f32 %v391_v59, %v329_v54  ;;  %v218_v52 = vld [vmem:[%s551_s15 + $0x1f8] sm:$0xff]  ;;  %v345_v54 = vmul.f32 %v217_v48, %v217_v48 }
  0x6c   : > { %v346_v57 = vmul.f32 %v218_v52, %v218_v52 }
  0x6d   : > { %v266_v1 = vadd.f32 %v265_v61, %v203_v56  ;;  %v393_v3 = vadd.f32 %v392_v63, %v330_v58 }
  0x6f   : > { %v267_v5 = vadd.f32 %v266_v1, %v204_v60  ;;  %v394_v7 = vadd.f32 %v393_v3, %v331_v62 }
  0x71   : > { %v268_v9 = vadd.f32 %v267_v5, %v205_v0  ;;  %v395_v11 = vadd.f32 %v394_v7, %v332_v2 }
  0x73   : > { %v269_v13 = vadd.f32 %v268_v9, %v206_v4  ;;  %v396_v15 = vadd.f32 %v395_v11, %v333_v6 }
  0x75   : > { %v270_v17 = vadd.f32 %v269_v13, %v207_v8  ;;  %v397_v19 = vadd.f32 %v396_v15, %v334_v10 }
  0x77   : > { %v271_v21 = vadd.f32 %v270_v17, %v208_v12  ;;  %v398_v23 = vadd.f32 %v397_v19, %v335_v14 }
  0x79   : > { %v272_v25 = vadd.f32 %v271_v21, %v209_v16  ;;  %v399_v27 = vadd.f32 %v398_v23, %v336_v18 }
  0x7b   : > { %v273_v29 = vadd.f32 %v272_v25, %v210_v20  ;;  %v400_v31 = vadd.f32 %v399_v27, %v337_v22 }
  0x7d   : > { %v274_v33 = vadd.f32 %v273_v29, %v211_v24  ;;  %v401_v35 = vadd.f32 %v400_v31, %v338_v26 }
  0x7f   : > { %v275_v37 = vadd.f32 %v274_v33, %v212_v28  ;;  %v402_v39 = vadd.f32 %v401_v35, %v339_v30 }
  0x81   : > { %v276_v41 = vadd.f32 %v275_v37, %v213_v32  ;;  %v403_v43 = vadd.f32 %v402_v39, %v340_v34 }
  0x83   : > { %v277_v45 = vadd.f32 %v276_v41, %v214_v36  ;;  %v404_v47 = vadd.f32 %v403_v43, %v341_v38 }
  0x85   : > { %v278_v49 = vadd.f32 %v277_v45, %v215_v40  ;;  %v405_v51 = vadd.f32 %v404_v47, %v342_v42 }
  0x87   : > { %v279_v53 = vadd.f32 %v278_v49, %v216_v44  ;;  %v406_v55 = vadd.f32 %v405_v51, %v343_v46 }
  0x89   : > { %v280_v56 = vadd.f32 %v279_v53, %v217_v48  ;;  %v407_v58 = vadd.f32 %v406_v55, %v344_v50 }
  0x8b   : > { %v281_v59 = vadd.f32 %v280_v56, %v218_v52  ;;  %v408_v60 = vadd.f32 %v407_v58, %v345_v54 }
  0x8d   : > { %282 = vst [vmem:[%s150_s19] sm:$0xff] %v281_v59  ;;  %v409_v61 = vadd.f32 %v408_v60, %v346_v57 }
  0x8f   : > { %410 = vst [vmem:[%s154_s22] sm:$0xff] %v409_v61 }
  0x90 PF: > { %s13_s9 = sadd.s32 1, %s520_s9  }
  0x91   : > { %p10_p5 = scmp.ge.s32.totalorder %s13_s9, 4  }
  0x93   :  { %12 = sbr.rel (!%p10_p5) target bundleno = 1 (0x1), region = 66 }

// kernel: lfw_generator.17
= control target key start
LH: loop header
LB: loop body
LE: loop exit
PB: predicated region body
PF: predicated region fallthrough
CT: control target
= control target key end

     0   :  { %s1072_s15 = smov 0   ;;  %s1074_s16 = smov 0   ;;  %s1406_s0 = inlined_call_operand.vmem [shape: f32[2048,128], index: 0, kind: input, shape index: {}]   ;;  %s1407_s1 = inlined_call_operand.vmem [shape: f32[1,128], index: 1, kind: input, shape index: {}]   ;;  %s1408_s2 = inlined_call_operand.vmem [shape: f32[1,128], index: 2, kind: input, shape index: {}]   ;;  %s1409_s3 = inlined_call_operand.vmem [shape: bf16[128,128], index: 3, kind: input, shape index: {}]   ;;  %s1410_s4 = inlined_call_operand.vmem [shape: f32[2048,128], index: 4, kind: output, shape index: {}]  }
   0x1   :  { %s1076_s17 = smov 0  }
   0x2 LB: > { %s26_s18 = sadd.s32 1, %s1041_s16  ;;  %p926_p0 = scmp.ge.s32.totalorder %s1045_s17, 1  ;;  %s1045_s17 = sphi %s1076_s17, %s14_s17   ;;  %s1041_s16 = sphi %s1074_s16, %s1412_s16   ;;  %s1037_s15 = sphi %s1072_s15, %s1411_s15  }
   0x3   : > { %p28_p1 = scmp.ge.s32.totalorder %s26_s18, 4  ;;  %p186_p2 = scmp.lt.s32.totalorder %s1045_s17, 5 }
   0x5   : > { %s1414_s18 = smov (%p28_p1, %s26_s18), 0  ;;  %p187_p3 = pnand %p926_p0, %p186_p2 }
   0x6   : > { %s927_s21 = sshll.u32 (!%p187_p3), %s1037_s15, 6 }
   0x7   : > { %190 = sbr.rel (%p187_p3) target bundleno = 299 (0x12b), region = 36  ;;  %p220_p4 = scmp.lt.s32.totalorder (!%p187_p3), %s927_s21, 255 }
   0xc   : > { %v972_v0 = vld [vmem:[%s1409_s3 + $0x38] sm:$0xff]  ;;  %v971_v1 = vld [vmem:[%s1409_s3 + $0x30] sm:$0xff]  ;;  %s1416_s21 = smov (!%p220_p4, %s927_s21), 255  ;;  %v970_v2 = vld [vmem:[%s1409_s3 + $0x28] sm:$0xff] }
   0xd   : > { %598 = vmatpush.bf16.msra.mxu0 %v972_v0  ;;  %973 = vmatpush.bf16.msra.mxu1 %v972_v0  ;;  %s928_s26 = sshll.u32 %s1416_s21, 3  ;;  %v969_v3 = vld [vmem:[%s1409_s3 + $0x20] sm:$0xff]  ;;  %v968_v5 = vld [vmem:[%s1409_s3 + $0x18] sm:$0xff]  ;;  %v967_v20 = vld [vmem:[%s1409_s3 + $0x10] sm:$0xff] }
   0xe   : > { %974 = vmatpush.bf16.msra.mxu2 %v972_v0  ;;  %975 = vmatpush.bf16.msra.mxu3 %v972_v0  ;;  %s1110_s5 = scalar_lea.vmem %s1406_s0, %s928_s26  ;;  %v1115_v4 = vld [vmem:[%s1407_s1] ss:$0 sm:$0xff]  ;;  %v966_v29 = vld [vmem:[%s1409_s3 + $0x8] sm:$0xff]  ;;  %s1331_s24 = scalar_lea.vmem %s1410_s4, %s928_s26 }
   0xf   : > { %v238_v6 = vld [vmem:[%s1110_s5] sm:$0xff]  ;;  %v239_v7 = vld [vmem:[%s1110_s5 + $0x8] sm:$0xff]  ;;  %v240_v44 = vld [vmem:[%s1110_s5 + $0x10] sm:$0xff] }
  0x10   : > { %v254_v8 = vld [vmem:[%s1110_s5 + $0x80] sm:$0xff]  ;;  %v255_v9 = vld [vmem:[%s1110_s5 + $0x88] sm:$0xff]  ;;  %v306_v14 = vmul.f32 %v1115_v4, %v238_v6  ;;  %v307_v16 = vmul.f32 %v1115_v4, %v239_v7  ;;  %v241_v45 = vld [vmem:[%s1110_s5 + $0x18] sm:$0xff]  ;;  %v308_v54 = vmul.f32 %v1115_v4, %v240_v44 }
  0x11   : > { %599 = vmatpush.bf16.msra.mxu0 %v971_v1  ;;  %976 = vmatpush.bf16.msra.mxu1 %v971_v1  ;;  %v270_v10 = vld [vmem:[%s1110_s5 + $0x100] sm:$0xff]  ;;  %v271_v11 = vld [vmem:[%s1110_s5 + $0x108] sm:$0xff]  ;;  %v322_v17 = vmul.f32 %v1115_v4, %v254_v8  ;;  %v323_v18 = vmul.f32 %v1115_v4, %v255_v9  ;;  %v256_v48 = vld [vmem:[%s1110_s5 + $0x90] sm:$0xff]  ;;  %v309_v55 = vmul.f32 %v1115_v4, %v241_v45 }
  0x12   : > { %977 = vmatpush.bf16.msra.mxu2 %v971_v1  ;;  %978 = vmatpush.bf16.msra.mxu3 %v971_v1  ;;  %v286_v12 = vld [vmem:[%s1110_s5 + $0x180] sm:$0xff]  ;;  %v287_v13 = vld [vmem:[%s1110_s5 + $0x188] sm:$0xff]  ;;  %v338_v19 = vmul.f32 %v1115_v4, %v270_v10  ;;  %v339_v21 = vmul.f32 %v1115_v4, %v271_v11  ;;  %v257_v49 = vld [vmem:[%s1110_s5 + $0x98] sm:$0xff]  ;;  %v324_v56 = vmul.f32 %v1115_v4, %v256_v48 }
  0x13   : > { %v1132_v15 = vld [vmem:[%s1408_s2] ss:$0 sm:$0xff]  ;;  %v354_v22 = vmul.f32 %v1115_v4, %v286_v12  ;;  %v355_v23 = vmul.f32 %v1115_v4, %v287_v13  ;;  %v272_v50 = vld [vmem:[%s1110_s5 + $0x110] sm:$0xff]  ;;  %v273_v51 = vld [vmem:[%s1110_s5 + $0x118] sm:$0xff]  ;;  %v325_v57 = vmul.f32 %v1115_v4, %v257_v49 }
  0x14   : > { %v374_v24 = vadd.f32 %v1132_v15, %v306_v14  ;;  %v375_v25 = vadd.f32 %v1132_v15, %v307_v16  ;;  %v390_v26 = vadd.f32 %v1132_v15, %v322_v17  ;;  %v391_v27 = vadd.f32 %v1132_v15, %v323_v18  ;;  %v965_v37 = vld [vmem:[%s1409_s3] sm:$0xff]  ;;  %v288_v52 = vld [vmem:[%s1110_s5 + $0x190] sm:$0xff]  ;;  %v289_v53 = vld [vmem:[%s1110_s5 + $0x198] sm:$0xff] }
  0x15   : > { %600 = vmatpush.bf16.msra.mxu0 %v970_v2  ;;  %979 = vmatpush.bf16.msra.mxu1 %v970_v2  ;;  %v406_v28 = vadd.f32 %v1132_v15, %v338_v19  ;;  %v407_v30 = vadd.f32 %v1132_v15, %v339_v21  ;;  %v422_v31 = vadd.f32 %v1132_v15, %v354_v22  ;;  %v242_v18 = vld [vmem:[%s1110_s5 + $0x20] sm:$0xff]  ;;  %v243_v19 = vld [vmem:[%s1110_s5 + $0x28] sm:$0xff] }
  0x16   : > { %980 = vmatpush.bf16.msra.mxu2 %v970_v2  ;;  %981 = vmatpush.bf16.msra.mxu3 %v970_v2  ;;  %v423_v32 = vadd.f32 %v1132_v15, %v355_v23  ;;  %v438_v33 = vmax.f32 %v374_v24, 0.0  ;;  %v439_v34 = vmax.f32 %v375_v25, 0.0  ;;  %v454_v35 = vmax.f32 %v390_v26, 0.0  ;;  %v258_v22 = vld [vmem:[%s1110_s5 + $0xa0] sm:$0xff]  ;;  %v259_v23 = vld [vmem:[%s1110_s5 + $0xa8] sm:$0xff] }
  0x17   : > { %v455_v36 = vmax.f32 %v391_v27, 0.0  ;;  %v470_v38 = vmax.f32 %v406_v28, 0.0  ;;  %v471_v39 = vmax.f32 %v407_v30, 0.0  ;;  %v486_v40 = vmax.f32 %v422_v31, 0.0  ;;  %v274_v24 = vld [vmem:[%s1110_s5 + $0x120] sm:$0xff]  ;;  %v275_v25 = vld [vmem:[%s1110_s5 + $0x128] sm:$0xff] }
  0x18   : > { %v487_v41 = vmax.f32 %v423_v32, 0.0  ;;  %v502_v42 = vpack.c.bf16 %v439_v34, %v438_v33  ;;  %v340_v58 = vmul.f32 %v1115_v4, %v272_v50  ;;  %v341_v59 = vmul.f32 %v1115_v4, %v273_v51  ;;  %v290_v26 = vld [vmem:[%s1110_s5 + $0x1a0] sm:$0xff]  ;;  %v291_v27 = vld [vmem:[%s1110_s5 + $0x1a8] sm:$0xff] }
  0x19   : > { %601 = vmatpush.bf16.msra.mxu0 %v969_v3  ;;  %982 = vmatpush.bf16.msra.mxu1 %v969_v3  ;;  %v510_v43 = vpack.c.bf16 %v455_v36, %v454_v35  ;;  %v518_v46 = vpack.c.bf16 %v471_v39, %v470_v38  ;;  %v356_v60 = vmul.f32 %v1115_v4, %v288_v52 }
  0x1a   : > { %983 = vmatpush.bf16.msra.mxu2 %v969_v3  ;;  %984 = vmatpush.bf16.msra.mxu3 %v969_v3  ;;  %v526_v47 = vpack.c.bf16 %v487_v41, %v486_v40  ;;  %v357_v61 = vmul.f32 %v1115_v4, %v289_v53  ;;  %v376_v62 = vadd.f32 %v1132_v15, %v308_v54  ;;  %v244_v54 = vld [vmem:[%s1110_s5 + $0x30] sm:$0xff] }
  0x1b   : > { %v377_v63 = vadd.f32 %v1132_v15, %v309_v55  ;;  %v392_v0 = vadd.f32 %v1132_v15, %v324_v56  ;;  %v393_v1 = vadd.f32 %v1132_v15, %v325_v57  ;;  %v408_v2 = vadd.f32 %v1132_v15, %v340_v58  ;;  %v245_v55 = vld [vmem:[%s1110_s5 + $0x38] sm:$0xff]  ;;  %v260_v58 = vld [vmem:[%s1110_s5 + $0xb0] sm:$0xff] }
  0x1c   : > { %v409_v3 = vadd.f32 %v1132_v15, %v341_v59  ;;  %v425_v6 = vadd.f32 %v1132_v15, %v357_v61  ;;  %v440_v7 = vmax.f32 %v376_v62, 0.0  ;;  %v310_v28 = vmul.f32 %v1115_v4, %v242_v18  ;;  %v261_v59 = vld [vmem:[%s1110_s5 + $0xb8] sm:$0xff]  ;;  %v292_v62 = vld [vmem:[%s1110_s5 + $0x1b0] sm:$0xff] }
  0x1d   : > { %602 = vmatpush.bf16.msra.mxu0 %v968_v5  ;;  %985 = vmatpush.bf16.msra.mxu1 %v968_v5  ;;  %v441_v8 = vmax.f32 %v377_v63, 0.0  ;;  %v456_v9 = vmax.f32 %v392_v0, 0.0  ;;  %v457_v10 = vmax.f32 %v393_v1, 0.0  ;;  %v472_v11 = vmax.f32 %v408_v2, 0.0  ;;  %v277_v61 = vld [vmem:[%s1110_s5 + $0x138] sm:$0xff] }
  0x1e   : > { %986 = vmatpush.bf16.msra.mxu2 %v968_v5  ;;  %987 = vmatpush.bf16.msra.mxu3 %v968_v5  ;;  %v424_v5 = vadd.f32 %v1132_v15, %v356_v60  ;;  %v473_v12 = vmax.f32 %v409_v3, 0.0  ;;  %v489_v14 = vmax.f32 %v425_v6, 0.0  ;;  %v326_v30 = vmul.f32 %v1115_v4, %v258_v22  ;;  %v276_v60 = vld [vmem:[%s1110_s5 + $0x130] sm:$0xff]  ;;  %v293_v63 = vld [vmem:[%s1110_s5 + $0x1b8] sm:$0xff] }
  0x1f   : > { %v503_v16 = vpack.c.bf16 %v441_v8, %v440_v7  ;;  %v511_v17 = vpack.c.bf16 %v457_v10, %v456_v9  ;;  %v327_v31 = vmul.f32 %v1115_v4, %v259_v23  ;;  %v342_v32 = vmul.f32 %v1115_v4, %v274_v24 }
  0x20   : > { %v488_v13 = vmax.f32 %v424_v5, 0.0  ;;  %v343_v33 = vmul.f32 %v1115_v4, %v275_v25  ;;  %v358_v34 = vmul.f32 %v1115_v4, %v290_v26  ;;  %v359_v35 = vmul.f32 %v1115_v4, %v291_v27 }
  0x21   : > { %603 = vmatpush.bf16.msra.mxu0 %v967_v20  ;;  %988 = vmatpush.bf16.msra.mxu1 %v967_v20  ;;  %v378_v36 = vadd.f32 %v1132_v15, %v310_v28  ;;  %v394_v38 = vadd.f32 %v1132_v15, %v326_v30  ;;  %v395_v39 = vadd.f32 %v1132_v15, %v327_v31  ;;  %v246_v28 = vld [vmem:[%s1110_s5 + $0x40] sm:$0xff] }
  0x22   : > { %989 = vmatpush.bf16.msra.mxu2 %v967_v20  ;;  %990 = vmatpush.bf16.msra.mxu3 %v967_v20  ;;  %v519_v20 = vpack.c.bf16 %v473_v12, %v472_v11  ;;  %v527_v21 = vpack.c.bf16 %v489_v14, %v488_v13  ;;  %v410_v40 = vadd.f32 %v1132_v15, %v342_v32  ;;  %v262_v32 = vld [vmem:[%s1110_s5 + $0xc0] sm:$0xff] }
  0x23   : > { %v411_v41 = vadd.f32 %v1132_v15, %v343_v33  ;;  %v442_v44 = vmax.f32 %v378_v36, 0.0  ;;  %v312_v0 = vmul.f32 %v1115_v4, %v244_v54  ;;  %v313_v1 = vmul.f32 %v1115_v4, %v245_v55  ;;  %v263_v33 = vld [vmem:[%s1110_s5 + $0xc8] sm:$0xff]  ;;  %v294_v36 = vld [vmem:[%s1110_s5 + $0x1c0] sm:$0xff] }
  0x24   : > { %v474_v48 = vmax.f32 %v410_v40, 0.0  ;;  %v328_v2 = vmul.f32 %v1115_v4, %v260_v58  ;;  %v329_v3 = vmul.f32 %v1115_v4, %v261_v59  ;;  %v344_v5 = vmul.f32 %v1115_v4, %v276_v60 }
  0x25   : > { %604 = vmatpush.bf16.msra.mxu0 %v966_v29  ;;  %991 = vmatpush.bf16.msra.mxu1 %v966_v29  ;;  %v475_v49 = vmax.f32 %v411_v41, 0.0  ;;  %v345_v6 = vmul.f32 %v1115_v4, %v277_v61  ;;  %v360_v7 = vmul.f32 %v1115_v4, %v292_v62  ;;  %v361_v8 = vmul.f32 %v1115_v4, %v293_v63 }
  0x26   : > { %992 = vmatpush.bf16.msra.mxu2 %v966_v29  ;;  %993 = vmatpush.bf16.msra.mxu3 %v966_v29  ;;  %v311_v29 = vmul.f32 %v1115_v4, %v243_v19  ;;  %v380_v9 = vadd.f32 %v1132_v15, %v312_v0  ;;  %v381_v10 = vadd.f32 %v1132_v15, %v313_v1  ;;  %v248_v0 = vld [vmem:[%s1110_s5 + $0x50] sm:$0xff]  ;;  %v249_v1 = vld [vmem:[%s1110_s5 + $0x58] sm:$0xff] }
  0x27   : > { %v520_v56 = vpack.c.bf16 %v475_v49, %v474_v48  ;;  %v396_v11 = vadd.f32 %v1132_v15, %v328_v2  ;;  %v397_v12 = vadd.f32 %v1132_v15, %v329_v3  ;;  %v412_v13 = vadd.f32 %v1132_v15, %v344_v5  ;;  %v264_v5 = vld [vmem:[%s1110_s5 + $0xd0] sm:$0xff] }
  0x28   : > { %v413_v14 = vadd.f32 %v1132_v15, %v345_v6  ;;  %v444_v18 = vmax.f32 %v380_v9, 0.0  ;;  %v445_v19 = vmax.f32 %v381_v10, 0.0  ;;  %v330_v40 = vmul.f32 %v1115_v4, %v262_v32  ;;  %v265_v6 = vld [vmem:[%s1110_s5 + $0xd8] sm:$0xff]  ;;  %v296_v9 = vld [vmem:[%s1110_s5 + $0x1d0] sm:$0xff] }
  0x29   : > { %605 = vmatpush.bf16.msra.mxu0 %v965_v37  ;;  %994 = vmatpush.bf16.msra.mxu1 %v965_v37  ;;  %v476_v22 = vmax.f32 %v412_v13, 0.0  ;;  %v331_v41 = vmul.f32 %v1115_v4, %v263_v33  ;;  %v297_v10 = vld [vmem:[%s1110_s5 + $0x1d8] sm:$0xff]  ;;  %v332_v13 = vmul.f32 %v1115_v4, %v264_v5 }
  0x2a   : > { %995 = vmatpush.bf16.msra.mxu2 %v965_v37  ;;  %996 = vmatpush.bf16.msra.mxu3 %v965_v37  ;;  %v379_v37 = vadd.f32 %v1132_v15, %v311_v29  ;;  %v477_v23 = vmax.f32 %v413_v14, 0.0  ;;  %v505_v26 = vpack.c.bf16 %v445_v19, %v444_v18  ;;  %v247_v29 = vld [vmem:[%s1110_s5 + $0x48] sm:$0xff]  ;;  %v398_v48 = vadd.f32 %v1132_v15, %v330_v40 }
  0x2b   : > { %v399_v49 = vadd.f32 %v1132_v15, %v331_v41  ;;  %v333_v14 = vmul.f32 %v1115_v4, %v265_v6  ;;  %v364_v18 = vmul.f32 %v1115_v4, %v296_v9  ;;  %v365_v19 = vmul.f32 %v1115_v4, %v297_v10 }
  0x2c   : > { %606 = vmatmul.bf16.vlgmr.msra.gmra.mxu0 %v502_v42  ;;  %646 = vmatmul.bf16.vlgmr.msra.gmra.mxu1 %v510_v43  ;;  %v426_v42 = vadd.f32 %v1132_v15, %v358_v34  ;;  %v427_v43 = vadd.f32 %v1132_v15, %v359_v35  ;;  %v443_v45 = vmax.f32 %v379_v37, 0.0  ;;  %v521_v30 = vpack.c.bf16 %v477_v23, %v476_v22  ;;  %v278_v34 = vld [vmem:[%s1110_s5 + $0x140] sm:$0xff]  ;;  %v279_v35 = vld [vmem:[%s1110_s5 + $0x148] sm:$0xff] }
  0x2d   : > { %686 = vmatmul.bf16.vlgmr.msra.gmra.mxu2 %v518_v46  ;;  %726 = vmatmul.bf16.vlgmr.msra.gmra.mxu3 %v526_v47  ;;  %v458_v46 = vmax.f32 %v394_v38, 0.0  ;;  %v459_v47 = vmax.f32 %v395_v39, 0.0  ;;  %v295_v37 = vld [vmem:[%s1110_s5 + $0x1c8] sm:$0xff]  ;;  %v314_v38 = vmul.f32 %v1115_v4, %v246_v28  ;;  %v315_v39 = vmul.f32 %v1115_v4, %v247_v29 }
  0x2e   : > { %v490_v50 = vmax.f32 %v426_v42, 0.0  ;;  %v491_v51 = vmax.f32 %v427_v43, 0.0  ;;  %v504_v52 = vpack.c.bf16 %v443_v45, %v442_v44  ;;  %v346_v42 = vmul.f32 %v1115_v4, %v278_v34 }
  0x2f   : > { %v512_v53 = vpack.c.bf16 %v459_v47, %v458_v46  ;;  %v347_v43 = vmul.f32 %v1115_v4, %v279_v35  ;;  %v362_v44 = vmul.f32 %v1115_v4, %v294_v36  ;;  %v363_v45 = vmul.f32 %v1115_v4, %v295_v37 }
  0x30   : > { %v528_v57 = vpack.c.bf16 %v491_v51, %v490_v50  ;;  %v382_v46 = vadd.f32 %v1132_v15, %v314_v38  ;;  %v383_v47 = vadd.f32 %v1132_v15, %v315_v39  ;;  %v414_v50 = vadd.f32 %v1132_v15, %v346_v42  ;;  %v250_v38 = vld [vmem:[%s1110_s5 + $0x60] sm:$0xff]  ;;  %v251_v39 = vld [vmem:[%s1110_s5 + $0x68] sm:$0xff] }
  0x31   : > { %v415_v51 = vadd.f32 %v1132_v15, %v347_v43  ;;  %v400_v22 = vadd.f32 %v1132_v15, %v332_v13  ;;  %v401_v23 = vadd.f32 %v1132_v15, %v333_v14  ;;  %v266_v42 = vld [vmem:[%s1110_s5 + $0xe0] sm:$0xff]  ;;  %v267_v43 = vld [vmem:[%s1110_s5 + $0xe8] sm:$0xff] }
  0x32   : > { %v446_v54 = vmax.f32 %v382_v46, 0.0  ;;  %v447_v55 = vmax.f32 %v383_v47, 0.0  ;;  %v478_v58 = vmax.f32 %v414_v50, 0.0  ;;  %v298_v46 = vld [vmem:[%s1110_s5 + $0x1e0] sm:$0xff]  ;;  %v299_v47 = vld [vmem:[%s1110_s5 + $0x1e8] sm:$0xff]  ;;  %v334_v50 = vmul.f32 %v1115_v4, %v266_v42 }
  0x33   : > { %v479_v59 = vmax.f32 %v415_v51, 0.0  ;;  %v335_v51 = vmul.f32 %v1115_v4, %v267_v43 }
  0x34   : > { %v506_v62 = vpack.c.bf16 %v447_v55, %v446_v54  ;;  %v366_v54 = vmul.f32 %v1115_v4, %v298_v46  ;;  %v367_v55 = vmul.f32 %v1115_v4, %v299_v47 }
  0x35   : > { %v522_v2 = vpack.c.bf16 %v479_v59, %v478_v58  ;;  %v402_v58 = vadd.f32 %v1132_v15, %v334_v50  ;;  %v403_v59 = vadd.f32 %v1132_v15, %v335_v51 }
  0x3c   : > { %611 = vmatmul.bf16.gmra.mxu0 %v503_v16  ;;  %651 = vmatmul.bf16.gmra.mxu1 %v511_v17  ;;  %v428_v16 = vadd.f32 %v1132_v15, %v360_v7  ;;  %v429_v17 = vadd.f32 %v1132_v15, %v361_v8  ;;  %v280_v7 = vld [vmem:[%s1110_s5 + $0x150] sm:$0xff]  ;;  %v281_v8 = vld [vmem:[%s1110_s5 + $0x158] sm:$0xff] }
  0x3d   : > { %691 = vmatmul.bf16.gmra.mxu2 %v519_v20  ;;  %731 = vmatmul.bf16.gmra.mxu3 %v527_v21  ;;  %v460_v20 = vmax.f32 %v396_v11, 0.0  ;;  %v461_v21 = vmax.f32 %v397_v12, 0.0  ;;  %v316_v11 = vmul.f32 %v1115_v4, %v248_v0  ;;  %v317_v12 = vmul.f32 %v1115_v4, %v249_v1 }
  0x3e   : > { %v492_v24 = vmax.f32 %v428_v16, 0.0  ;;  %v493_v25 = vmax.f32 %v429_v17, 0.0  ;;  %v348_v16 = vmul.f32 %v1115_v4, %v280_v7  ;;  %v349_v17 = vmul.f32 %v1115_v4, %v281_v8 }
  0x3f   : > { %v513_v27 = vpack.c.bf16 %v461_v21, %v460_v20  ;;  %v384_v20 = vadd.f32 %v1132_v15, %v316_v11  ;;  %v385_v21 = vadd.f32 %v1132_v15, %v317_v12  ;;  %v252_v11 = vld [vmem:[%s1110_s5 + $0x70] sm:$0xff]  ;;  %v253_v12 = vld [vmem:[%s1110_s5 + $0x78] sm:$0xff] }
  0x40   : > { %v529_v31 = vpack.c.bf16 %v493_v25, %v492_v24  ;;  %v416_v24 = vadd.f32 %v1132_v15, %v348_v16  ;;  %v417_v25 = vadd.f32 %v1132_v15, %v349_v17  ;;  %v268_v16 = vld [vmem:[%s1110_s5 + $0xf0] sm:$0xff]  ;;  %v269_v17 = vld [vmem:[%s1110_s5 + $0xf8] sm:$0xff] }
  0x41   : > { %v448_v28 = vmax.f32 %v384_v20, 0.0  ;;  %v449_v29 = vmax.f32 %v385_v21, 0.0  ;;  %v300_v20 = vld [vmem:[%s1110_s5 + $0x1f0] sm:$0xff]  ;;  %v301_v21 = vld [vmem:[%s1110_s5 + $0x1f8] sm:$0xff] }
  0x42   : > { %v480_v32 = vmax.f32 %v416_v24, 0.0  ;;  %v481_v33 = vmax.f32 %v417_v25, 0.0  ;;  %v336_v24 = vmul.f32 %v1115_v4, %v268_v16  ;;  %v337_v25 = vmul.f32 %v1115_v4, %v269_v17 }
  0x43   : > { %v507_v36 = vpack.c.bf16 %v449_v29, %v448_v28  ;;  %v368_v28 = vmul.f32 %v1115_v4, %v300_v20  ;;  %v369_v29 = vmul.f32 %v1115_v4, %v301_v21 }
  0x44   : > { %v523_v40 = vpack.c.bf16 %v481_v33, %v480_v32  ;;  %v404_v32 = vadd.f32 %v1132_v15, %v336_v24  ;;  %v405_v33 = vadd.f32 %v1132_v15, %v337_v25 }
  0x4c   : > { %616 = vmatmul.bf16.gmra.mxu0 %v504_v52  ;;  %656 = vmatmul.bf16.gmra.mxu1 %v512_v53  ;;  %v430_v52 = vadd.f32 %v1132_v15, %v362_v44  ;;  %v431_v53 = vadd.f32 %v1132_v15, %v363_v45  ;;  %v282_v44 = vld [vmem:[%s1110_s5 + $0x160] sm:$0xff]  ;;  %v283_v45 = vld [vmem:[%s1110_s5 + $0x168] sm:$0xff] }
  0x4d   : > { %696 = vmatmul.bf16.gmra.mxu2 %v520_v56  ;;  %736 = vmatmul.bf16.gmra.mxu3 %v528_v57  ;;  %v462_v56 = vmax.f32 %v398_v48, 0.0  ;;  %v463_v57 = vmax.f32 %v399_v49, 0.0  ;;  %v318_v48 = vmul.f32 %v1115_v4, %v250_v38  ;;  %v319_v49 = vmul.f32 %v1115_v4, %v251_v39 }
  0x4e   : > { %v494_v60 = vmax.f32 %v430_v52, 0.0  ;;  %v495_v61 = vmax.f32 %v431_v53, 0.0  ;;  %v350_v52 = vmul.f32 %v1115_v4, %v282_v44  ;;  %v351_v53 = vmul.f32 %v1115_v4, %v283_v45 }
  0x4f   : > { %v514_v63 = vpack.c.bf16 %v463_v57, %v462_v56  ;;  %v386_v56 = vadd.f32 %v1132_v15, %v318_v48  ;;  %v387_v57 = vadd.f32 %v1132_v15, %v319_v49 }
  0x50   : > { %v530_v3 = vpack.c.bf16 %v495_v61, %v494_v60  ;;  %v418_v60 = vadd.f32 %v1132_v15, %v350_v52  ;;  %v419_v61 = vadd.f32 %v1132_v15, %v351_v53 }
  0x51   : > { %v450_v0 = vmax.f32 %v386_v56, 0.0  ;;  %v451_v1 = vmax.f32 %v387_v57, 0.0 }
  0x52   : > { %v482_v5 = vmax.f32 %v418_v60, 0.0  ;;  %v483_v6 = vmax.f32 %v419_v61, 0.0 }
  0x53   : > { %v508_v9 = vpack.c.bf16 %v451_v1, %v450_v0 }
  0x54   : > { %v524_v13 = vpack.c.bf16 %v483_v6, %v482_v5 }
  0x5c   : > { %621 = vmatmul.bf16.gmra.mxu0 %v505_v26  ;;  %661 = vmatmul.bf16.gmra.mxu1 %v513_v27  ;;  %v432_v26 = vadd.f32 %v1132_v15, %v364_v18  ;;  %v433_v27 = vadd.f32 %v1132_v15, %v365_v19  ;;  %v284_v18 = vld [vmem:[%s1110_s5 + $0x170] sm:$0xff]  ;;  %v285_v19 = vld [vmem:[%s1110_s5 + $0x178] sm:$0xff] }
  0x5d   : > { %701 = vmatmul.bf16.gmra.mxu2 %v521_v30  ;;  %741 = vmatmul.bf16.gmra.mxu3 %v529_v31  ;;  %v464_v30 = vmax.f32 %v400_v22, 0.0  ;;  %v465_v31 = vmax.f32 %v401_v23, 0.0  ;;  %v320_v22 = vmul.f32 %v1115_v4, %v252_v11  ;;  %v321_v23 = vmul.f32 %v1115_v4, %v253_v12 }
  0x5e   : > { %v496_v34 = vmax.f32 %v432_v26, 0.0  ;;  %v497_v35 = vmax.f32 %v433_v27, 0.0  ;;  %v352_v26 = vmul.f32 %v1115_v4, %v284_v18  ;;  %v353_v27 = vmul.f32 %v1115_v4, %v285_v19 }
  0x5f   : > { %v515_v37 = vpack.c.bf16 %v465_v31, %v464_v30  ;;  %v388_v30 = vadd.f32 %v1132_v15, %v320_v22  ;;  %v389_v31 = vadd.f32 %v1132_v15, %v321_v23  ;;  %v468_v4 = vmax.f32 %v404_v32, 0.0 }
  0x60   : > { %v531_v41 = vpack.c.bf16 %v497_v35, %v496_v34  ;;  %v420_v34 = vadd.f32 %v1132_v15, %v352_v26  ;;  %v421_v35 = vadd.f32 %v1132_v15, %v353_v27 }
  0x61   : > { %v452_v38 = vmax.f32 %v388_v30, 0.0  ;;  %v453_v39 = vmax.f32 %v389_v31, 0.0 }
  0x62   : > { %v485_v42 = vmax.f32 %v421_v35, 0.0 }
  0x63   : > { %v509_v45 = vpack.c.bf16 %v453_v39, %v452_v38 }
  0x6c   : > { %626 = vmatmul.bf16.gmra.mxu0 %v506_v62  ;;  %666 = vmatmul.bf16.gmra.mxu1 %v514_v63  ;;  %v434_v62 = vadd.f32 %v1132_v15, %v366_v54  ;;  %v435_v63 = vadd.f32 %v1132_v15, %v367_v55 }
  0x6d   : > { %706 = vmatmul.bf16.gmra.mxu2 %v522_v2  ;;  %746 = vmatmul.bf16.gmra.mxu3 %v530_v3  ;;  %v466_v2 = vmax.f32 %v402_v58, 0.0  ;;  %v467_v3 = vmax.f32 %v403_v59, 0.0 }
  0x6e   : > { %v498_v7 = vmax.f32 %v434_v62, 0.0  ;;  %v499_v8 = vmax.f32 %v435_v63, 0.0 }
  0x6f   : > { %v516_v10 = vpack.c.bf16 %v467_v3, %v466_v2 }
  0x70   : > { %v532_v14 = vpack.c.bf16 %v499_v8, %v498_v7 }
  0x7c   : > { %631 = vmatmul.bf16.gmra.mxu0 %v507_v36  ;;  %671 = vmatmul.bf16.gmra.mxu1 %v515_v37  ;;  %v436_v36 = vadd.f32 %v1132_v15, %v368_v28  ;;  %v437_v37 = vadd.f32 %v1132_v15, %v369_v29 }
  0x7d   : > { %711 = vmatmul.bf16.gmra.mxu2 %v523_v40  ;;  %751 = vmatmul.bf16.gmra.mxu3 %v531_v41  ;;  %v469_v40 = vmax.f32 %v405_v33, 0.0  ;;  %v484_v41 = vmax.f32 %v420_v34, 0.0 }
  0x7e   : > { %v500_v43 = vmax.f32 %v436_v36, 0.0  ;;  %v501_v44 = vmax.f32 %v437_v37, 0.0 }
  0x7f   : > { %v517_v46 = vpack.c.bf16 %v469_v40, %v468_v4  ;;  %v525_v47 = vpack.c.bf16 %v485_v42, %v484_v41 }
  0x80   : > { %v533_v48 = vpack.c.bf16 %v501_v44, %v500_v43 }
  0x8c   : > { %636 = vmatmul.bf16.gmra.mxu0 %v508_v9  ;;  %676 = vmatmul.bf16.gmra.mxu1 %v516_v10 }
  0x8d   : > { %716 = vmatmul.bf16.gmra.mxu2 %v524_v13  ;;  %756 = vmatmul.bf16.gmra.mxu3 %v532_v14 }
  0x9c   : > { %641 = vmatmul.bf16.gmra.mxu0 %v509_v45  ;;  %681 = vmatmul.bf16.gmra.mxu1 %v517_v46 }
  0x9d   : > { %721 = vmatmul.bf16.gmra.mxu2 %v525_v47  ;;  %761 = vmatmul.bf16.gmra.mxu3 %v533_v48 }
  0xa9   : > { %v607_v15 = vpop.f32.mrf.mxu0  ;;  %v647_v49 = vpop.f32.mrf.mxu1 }
  0xaa   : > { %767 = vst [vmem:[%s1331_s24] sm:$0xff] %v607_v15 }
  0xab   : > { %783 = vst [vmem:[%s1331_s24 + $0x80] sm:$0xff] %v647_v49 }
  0xb0   : > { %v687_v50 = vpop.f32.mrf.mxu2  ;;  %v727_v51 = vpop.f32.mrf.mxu3 }
  0xb1   : > { %799 = vst [vmem:[%s1331_s24 + $0x100] sm:$0xff] %v687_v50  ;;  %v609_v52 = vpop.f32.mrf.mxu0  ;;  %v649_v53 = vpop.f32.mrf.mxu1 }
  0xb2   : > { %815 = vst [vmem:[%s1331_s24 + $0x180] sm:$0xff] %v727_v51 }
  0xb3   : > { %768 = vst [vmem:[%s1331_s24 + $0x8] sm:$0xff] %v609_v52 }
  0xb4   : > { %784 = vst [vmem:[%s1331_s24 + $0x88] sm:$0xff] %v649_v53 }
  0xb8   : > { %v689_v54 = vpop.f32.mrf.mxu2  ;;  %v729_v55 = vpop.f32.mrf.mxu3 }
  0xb9   : > { %800 = vst [vmem:[%s1331_s24 + $0x108] sm:$0xff] %v689_v54  ;;  %v612_v56 = vpop.f32.mrf.mxu0  ;;  %v652_v57 = vpop.f32.mrf.mxu1 }
  0xba   : > { %816 = vst [vmem:[%s1331_s24 + $0x188] sm:$0xff] %v729_v55 }
  0xbb   : > { %769 = vst [vmem:[%s1331_s24 + $0x10] sm:$0xff] %v612_v56 }
  0xbc   : > { %785 = vst [vmem:[%s1331_s24 + $0x90] sm:$0xff] %v652_v57 }
  0xc0   : > { %v692_v58 = vpop.f32.mrf.mxu2  ;;  %v732_v59 = vpop.f32.mrf.mxu3 }
  0xc1   : > { %801 = vst [vmem:[%s1331_s24 + $0x110] sm:$0xff] %v692_v58  ;;  %v614_v60 = vpop.f32.mrf.mxu0  ;;  %v654_v61 = vpop.f32.mrf.mxu1 }
  0xc2   : > { %817 = vst [vmem:[%s1331_s24 + $0x190] sm:$0xff] %v732_v59 }
  0xc3   : > { %770 = vst [vmem:[%s1331_s24 + $0x18] sm:$0xff] %v614_v60 }
  0xc4   : > { %786 = vst [vmem:[%s1331_s24 + $0x98] sm:$0xff] %v654_v61 }
  0xc8   : > { %v694_v62 = vpop.f32.mrf.mxu2  ;;  %v734_v63 = vpop.f32.mrf.mxu3 }
  0xc9   : > { %802 = vst [vmem:[%s1331_s24 + $0x118] sm:$0xff] %v694_v62  ;;  %v617_v0 = vpop.f32.mrf.mxu0  ;;  %v657_v1 = vpop.f32.mrf.mxu1 }
  0xca   : > { %818 = vst [vmem:[%s1331_s24 + $0x198] sm:$0xff] %v734_v63 }
  0xcb   : > { %771 = vst [vmem:[%s1331_s24 + $0x20] sm:$0xff] %v617_v0 }
  0xcc   : > { %787 = vst [vmem:[%s1331_s24 + $0xa0] sm:$0xff] %v657_v1 }
  0xd0   : > { %v697_v2 = vpop.f32.mrf.mxu2  ;;  %v737_v3 = vpop.f32.mrf.mxu3 }
  0xd1   : > { %803 = vst [vmem:[%s1331_s24 + $0x120] sm:$0xff] %v697_v2  ;;  %v619_v5 = vpop.f32.mrf.mxu0  ;;  %v659_v6 = vpop.f32.mrf.mxu1 }
  0xd2   : > { %819 = vst [vmem:[%s1331_s24 + $0x1a0] sm:$0xff] %v737_v3 }
  0xd3   : > { %772 = vst [vmem:[%s1331_s24 + $0x28] sm:$0xff] %v619_v5 }
  0xd4   : > { %788 = vst [vmem:[%s1331_s24 + $0xa8] sm:$0xff] %v659_v6 }
  0xd8   : > { %v699_v7 = vpop.f32.mrf.mxu2  ;;  %v739_v8 = vpop.f32.mrf.mxu3 }
  0xd9   : > { %804 = vst [vmem:[%s1331_s24 + $0x128] sm:$0xff] %v699_v7  ;;  %v622_v9 = vpop.f32.mrf.mxu0  ;;  %v662_v10 = vpop.f32.mrf.mxu1 }
  0xda   : > { %820 = vst [vmem:[%s1331_s24 + $0x1a8] sm:$0xff] %v739_v8 }
  0xdb   : > { %773 = vst [vmem:[%s1331_s24 + $0x30] sm:$0xff] %v622_v9 }
  0xdc   : > { %789 = vst [vmem:[%s1331_s24 + $0xb0] sm:$0xff] %v662_v10 }
  0xe0   : > { %v702_v11 = vpop.f32.mrf.mxu2  ;;  %v742_v12 = vpop.f32.mrf.mxu3 }
  0xe1   : > { %805 = vst [vmem:[%s1331_s24 + $0x130] sm:$0xff] %v702_v11  ;;  %v624_v13 = vpop.f32.mrf.mxu0  ;;  %v664_v14 = vpop.f32.mrf.mxu1 }
  0xe2   : > { %821 = vst [vmem:[%s1331_s24 + $0x1b0] sm:$0xff] %v742_v12 }
  0xe3   : > { %774 = vst [vmem:[%s1331_s24 + $0x38] sm:$0xff] %v624_v13 }
  0xe4   : > { %790 = vst [vmem:[%s1331_s24 + $0xb8] sm:$0xff] %v664_v14 }
  0xe8   : > { %v704_v16 = vpop.f32.mrf.mxu2  ;;  %v744_v17 = vpop.f32.mrf.mxu3 }
  0xe9   : > { %806 = vst [vmem:[%s1331_s24 + $0x138] sm:$0xff] %v704_v16  ;;  %v627_v18 = vpop.f32.mrf.mxu0  ;;  %v667_v19 = vpop.f32.mrf.mxu1 }
  0xea   : > { %822 = vst [vmem:[%s1331_s24 + $0x1b8] sm:$0xff] %v744_v17 }
  0xeb   : > { %775 = vst [vmem:[%s1331_s24 + $0x40] sm:$0xff] %v627_v18 }
  0xec   : > { %791 = vst [vmem:[%s1331_s24 + $0xc0] sm:$0xff] %v667_v19 }
  0xf0   : > { %v707_v20 = vpop.f32.mrf.mxu2  ;;  %v747_v21 = vpop.f32.mrf.mxu3 }
  0xf1   : > { %807 = vst [vmem:[%s1331_s24 + $0x140] sm:$0xff] %v707_v20  ;;  %v629_v22 = vpop.f32.mrf.mxu0  ;;  %v669_v23 = vpop.f32.mrf.mxu1 }
  0xf2   : > { %823 = vst [vmem:[%s1331_s24 + $0x1c0] sm:$0xff] %v747_v21 }
  0xf3   : > { %776 = vst [vmem:[%s1331_s24 + $0x48] sm:$0xff] %v629_v22 }
  0xf4   : > { %792 = vst [vmem:[%s1331_s24 + $0xc8] sm:$0xff] %v669_v23 }
  0xf8   : > { %v709_v24 = vpop.f32.mrf.mxu2  ;;  %v749_v25 = vpop.f32.mrf.mxu3 }
  0xf9   : > { %808 = vst [vmem:[%s1331_s24 + $0x148] sm:$0xff] %v709_v24  ;;  %v632_v26 = vpop.f32.mrf.mxu0  ;;  %v672_v27 = vpop.f32.mrf.mxu1 }
  0xfa   : > { %824 = vst [vmem:[%s1331_s24 + $0x1c8] sm:$0xff] %v749_v25 }
  0xfb   : > { %777 = vst [vmem:[%s1331_s24 + $0x50] sm:$0xff] %v632_v26 }
  0xfc   : > { %793 = vst [vmem:[%s1331_s24 + $0xd0] sm:$0xff] %v672_v27 }
 0x100   : > { %v712_v28 = vpop.f32.mrf.mxu2  ;;  %v752_v29 = vpop.f32.mrf.mxu3 }
 0x101   : > { %809 = vst [vmem:[%s1331_s24 + $0x150] sm:$0xff] %v712_v28  ;;  %v634_v30 = vpop.f32.mrf.mxu0  ;;  %v674_v31 = vpop.f32.mrf.mxu1 }
 0x102   : > { %825 = vst [vmem:[%s1331_s24 + $0x1d0] sm:$0xff] %v752_v29 }
 0x103   : > { %778 = vst [vmem:[%s1331_s24 + $0x58] sm:$0xff] %v634_v30 }
 0x104   : > { %794 = vst [vmem:[%s1331_s24 + $0xd8] sm:$0xff] %v674_v31 }
 0x108   : > { %v714_v32 = vpop.f32.mrf.mxu2  ;;  %v754_v33 = vpop.f32.mrf.mxu3 }
 0x109   : > { %810 = vst [vmem:[%s1331_s24 + $0x158] sm:$0xff] %v714_v32  ;;  %v637_v34 = vpop.f32.mrf.mxu0  ;;  %v677_v35 = vpop.f32.mrf.mxu1 }
 0x10a   : > { %826 = vst [vmem:[%s1331_s24 + $0x1d8] sm:$0xff] %v754_v33 }
 0x10b   : > { %779 = vst [vmem:[%s1331_s24 + $0x60] sm:$0xff] %v637_v34 }
 0x10c   : > { %795 = vst [vmem:[%s1331_s24 + $0xe0] sm:$0xff] %v677_v35 }
 0x110   : > { %v717_v36 = vpop.f32.mrf.mxu2  ;;  %v757_v37 = vpop.f32.mrf.mxu3 }
 0x111   : > { %811 = vst [vmem:[%s1331_s24 + $0x160] sm:$0xff] %v717_v36  ;;  %v639_v38 = vpop.f32.mrf.mxu0  ;;  %v679_v39 = vpop.f32.mrf.mxu1 }
 0x112   : > { %827 = vst [vmem:[%s1331_s24 + $0x1e0] sm:$0xff] %v757_v37 }
 0x113   : > { %780 = vst [vmem:[%s1331_s24 + $0x68] sm:$0xff] %v639_v38 }
 0x114   : > { %796 = vst [vmem:[%s1331_s24 + $0xe8] sm:$0xff] %v679_v39 }
 0x118   : > { %v719_v4 = vpop.f32.mrf.mxu2  ;;  %v759_v40 = vpop.f32.mrf.mxu3 }
 0x119   : > { %812 = vst [vmem:[%s1331_s24 + $0x168] sm:$0xff] %v719_v4  ;;  %v642_v41 = vpop.f32.mrf.mxu0  ;;  %v682_v42 = vpop.f32.mrf.mxu1 }
 0x11a   : > { %828 = vst [vmem:[%s1331_s24 + $0x1e8] sm:$0xff] %v759_v40 }
 0x11b   : > { %781 = vst [vmem:[%s1331_s24 + $0x70] sm:$0xff] %v642_v41 }
 0x11c   : > { %797 = vst [vmem:[%s1331_s24 + $0xf0] sm:$0xff] %v682_v42 }
 0x120   : > { %v722_v43 = vpop.f32.mrf.mxu2  ;;  %v762_v44 = vpop.f32.mrf.mxu3 }
 0x121   : > { %813 = vst [vmem:[%s1331_s24 + $0x170] sm:$0xff] %v722_v43  ;;  %v644_v45 = vpop.f32.mrf.mxu0  ;;  %v684_v46 = vpop.f32.mrf.mxu1 }
 0x122   : > { %829 = vst [vmem:[%s1331_s24 + $0x1f0] sm:$0xff] %v762_v44 }
 0x123   : > { %782 = vst [vmem:[%s1331_s24 + $0x78] sm:$0xff] %v644_v45 }
 0x124   : > { %798 = vst [vmem:[%s1331_s24 + $0xf8] sm:$0xff] %v684_v46 }
 0x128   : > { %v724_v47 = vpop.f32.mrf.mxu2  ;;  %v764_v48 = vpop.f32.mrf.mxu3 }
 0x129   : > { %814 = vst [vmem:[%s1331_s24 + $0x178] sm:$0xff] %v724_v47 }
 0x12a   : > { %830 = vst [vmem:[%s1331_s24 + $0x1f8] sm:$0xff] %v764_v48 }
 0x12b PF: > { %s14_s17 = sadd.s32 1, %s1045_s17   ;;  %s1411_s15 = smov %s1041_s16 }
 0x12c   : > { %p11_p5 = scmp.ge.s32.totalorder %s14_s17, 6   ;;  %s1412_s16 = smov %s1414_s18 }
 0x12e   :  { %13 = sbr.rel (!%p11_p5) target bundleno = 2 (0x2), region = 69 }

</bundles_post_ra>
